<compile_context>
chip_gen: v7x
topology: tpu7x:2x2x1
jax: 0.10.0
libtpu: 0.0.40
codegen_flags: <defaults>
</compile_context>

<pallas_src>
import functools
import math

import jax
import jax.numpy as jnp
from jax.experimental import pallas as pl


# ----------------------------------------------------------------------------
# Fused forward kernel (no grid: everything resident in VMEM, B/L tiny).
# ----------------------------------------------------------------------------
def _hybrid_kernel(x_ref,
                   w1_ref, s1_ref, t1_ref,
                   w2_ref, s2_ref, t2_ref,
                   w3_ref, s3_ref, t3_ref,
                   wih1_ref, whh1_ref, b1_ref,
                   wih2_ref, whh2_ref, b2_ref,
                   aw1_ref, ab1_ref, aw2_ref, ab2_ref,
                   fw1_ref, fb1_ref, fw2_ref, fb2_ref,
                   o_ref, *, B, L, hidden):
    H = hidden
    f32 = jnp.float32

    def mm(a, w):
        # MXU matmul: bf16 operands, f32 accumulation.
        return jnp.dot(a.astype(w.dtype), w, preferred_element_type=f32)

    # ---------------- CNN: Conv1d(k=3,pad=1) + folded BN + ReLU ---------------
    # Batch is flattened into the matmul M dimension; conv is a single im2col
    # matmul (K = 3*Cin) per layer.
    def conv_block(xs, w_ref, scale_ref, shift_ref):
        l, c = xs[0].shape
        z = jnp.zeros((1, c), f32)
        cols = []
        for xb in xs:
            prev = jnp.concatenate([z, xb[:l - 1]], axis=0)          # x[t-1]
            nxt = jnp.concatenate([xb[1:], z], axis=0)               # x[t+1]
            cols.append(jnp.concatenate([prev, xb, nxt], axis=1))    # (l, 3c)
        X = jnp.concatenate(cols, axis=0)                            # (B*l, 3c)
        Y = mm(X, w_ref[...])                                        # (B*l, cout)
        Y = jnp.maximum(Y * scale_ref[...] + shift_ref[...], 0.0)    # BN + ReLU
        return [Y[i * l:(i + 1) * l] for i in range(len(xs))]

    xs = [x_ref[b] for b in range(B)]                                # (L, Cin) each
    h = conv_block(xs, w1_ref, s1_ref, t1_ref)                       # (L, 64)
    h = conv_block(h, w2_ref, s2_ref, t2_ref)                        # (L, 128)

    # MaxPool1d(2) over time (odd tail truncated, as PyTorch does).
    Lp = L // 2
    hp = []
    for yb in h:
        rows = [jnp.maximum(yb[2 * i:2 * i + 1], yb[2 * i + 1:2 * i + 2])
                for i in range(Lp)]
        hp.append(jnp.concatenate(rows, axis=0))                     # (Lp, 128)
    h = conv_block(hp, w3_ref, s3_ref, t3_ref)                       # (Lp, 256) each

    # Per-time-step LSTM inputs (B, 256).
    x_t = [jnp.concatenate([h[b][t:t + 1] for b in range(B)], axis=0)
           for t in range(Lp)]

    # ---------------- 2-layer bidirectional LSTM (directions fused) ----------
    def bilstm_layer(x_t_list, wih_ref, whh_ref, b_ref):
        Lc = len(x_t_list)
        Wih = wih_ref[...]         # (Din, 8H) bf16: [fwd i,f,g,o | bwd i,f,g,o]
        Whh = whh_ref[...]         # (2H, 8H)  bf16: block-diag(W_hh_f, W_hh_b)
        bias = b_ref[...]          # (1, 8H)   f32:  b_ih + b_hh, both directions

        # Hoisted input projection (no loop-carried dep): one matmul, bias once.
        Xp = mm(jnp.concatenate(x_t_list, axis=0), Wih) + bias       # (Lc*B, 8H)
        xp = [Xp[t * B:(t + 1) * B] for t in range(Lc)]              # (B, 8H) each

        def cell(g, c):            # PyTorch gate order i, f, g, o
            i = jax.nn.sigmoid(g[:, 0 * H:1 * H])
            f = jax.nn.sigmoid(g[:, 1 * H:2 * H])
            gg = jnp.tanh(g[:, 2 * H:3 * H])
            o = jax.nn.sigmoid(g[:, 3 * H:4 * H])
            c_new = f * c + i * gg
            return o * jnp.tanh(c_new), c_new

        h_f = jnp.zeros((B, H), f32); c_f = jnp.zeros((B, H), f32)
        h_b = jnp.zeros((B, H), f32); c_b = jnp.zeros((B, H), f32)
        out_f = [None] * Lc
        out_b = [None] * Lc
        for t in range(Lc):                                          # fully unrolled
            # One recurrent matmul covers both directions (block-diag W_hh).
            rec = mm(jnp.concatenate([h_f, h_b], axis=1), Whh)       # (B, 8H)
            g_f = rec[:, :4 * H] + xp[t][:, :4 * H]
            g_b = rec[:, 4 * H:] + xp[Lc - 1 - t][:, 4 * H:]
            h_f, c_f = cell(g_f, c_f)
            h_b, c_b = cell(g_b, c_b)
            out_f[t] = h_f
            out_b[Lc - 1 - t] = h_b
        return [jnp.concatenate([out_f[t], out_b[t]], axis=1) for t in range(Lc)]

    l1 = bilstm_layer(x_t, wih1_ref, whh1_ref, b1_ref)               # (B, 2H) per t
    l2 = bilstm_layer(l1, wih2_ref, whh2_ref, b2_ref)

    # ---------------- Attention pooling over time + MLP head -----------------
    outs = [jnp.concatenate([l2[t][b:b + 1] for t in range(Lp)], axis=0)
            for b in range(B)]                                       # (Lp, 2H) each
    A = jnp.concatenate(outs, axis=0)                                # (B*Lp, 2H)
    att = jnp.tanh(mm(A, aw1_ref[...]) + ab1_ref[...])               # (B*Lp, 2H)
    # N=1 matvec done on the VPU: score = sum(att * w2_row) + b2.
    scores = jnp.sum(att * aw2_ref[...], axis=1, keepdims=True) + ab2_ref[...]
    ctxs = []
    for b in range(B):
        s_b = scores[b * Lp:(b + 1) * Lp]                            # (Lp, 1)
        e = jnp.exp(s_b - jnp.max(s_b, axis=0, keepdims=True))
        attn = e / jnp.sum(e, axis=0, keepdims=True)                 # softmax(time)
        ctxs.append(jnp.sum(attn * outs[b], axis=0, keepdims=True))  # (1, 2H)
    C = jnp.concatenate(ctxs, axis=0)                                # (B, 2H)
    z = jnp.maximum(mm(C, fw1_ref[...]) + fb1_ref[...], 0.0)         # (B, 128)
    out = jnp.sum(z * fw2_ref[...], axis=1, keepdims=True) + fb2_ref[...]
    o_ref[...] = out                                                 # (B, 1)


# ----------------------------------------------------------------------------
# Parameters (deterministic, PyTorch-default-like uniform init; BN at defaults).
# ----------------------------------------------------------------------------
def init_params(key, input_size, hidden=128):
    keys = iter(jax.random.split(key, 64))

    def u(shape, fan_in):
        bound = 1.0 / math.sqrt(fan_in)
        return jax.random.uniform(next(keys), shape, jnp.float32, -bound, bound)

    eps = 1e-5
    p = {}

    def conv(cin, cout):
        # weights stored as (K=3, Cin, Cout) (PyTorch layout is (Cout, Cin, K))
        w = u((3, cin, cout), cin * 3)
        bias = u((cout,), cin * 3)
        gamma = jnp.ones((cout,), jnp.float32)
        beta = jnp.zeros((cout,), jnp.float32)
        mean = jnp.zeros((cout,), jnp.float32)
        var = jnp.ones((cout,), jnp.float32)
        scale = gamma / jnp.sqrt(var + eps)
        shift = beta + scale * (bias - mean)      # eval-mode BN folded over conv bias
        return w, scale.reshape(1, cout), shift.reshape(1, cout)

    p['c1'] = conv(input_size, 64)
    p['c2'] = conv(64, 128)
    p['c3'] = conv(128, 256)

    lstm = []
    for layer in range(2):
        din = 256 if layer == 0 else 2 * hidden
        dirs = []
        for _ in range(2):                        # forward / backward
            wih = u((din, 4 * hidden), hidden)    # W_ih^T
            whh = u((hidden, 4 * hidden), hidden) # W_hh^T
            b = u((1, 4 * hidden), hidden) + u((1, 4 * hidden), hidden)  # b_ih + b_hh
            dirs.append((wih, whh, b))
        lstm.append(tuple(dirs))
    p['lstm'] = lstm

    p['a_w1'] = u((256, 256), 256); p['a_b1'] = u((1, 256), 256)
    p['a_w2'] = u((256, 1), 256);   p['a_b2'] = u((1, 1), 256)
    p['f_w1'] = u((256, 128), 256); p['f_b1'] = u((1, 128), 256)
    p['f_w2'] = u((128, 1), 128);   p['f_b2'] = u((1, 1), 128)
    return p


def pack_params(p, hidden=128, mxu_dtype=jnp.bfloat16):
    """Pack / fuse parameters for the single fused kernel.
    MXU operands are stored in bf16; everything used elementwise stays f32."""
    H = hidden
    pk = {}
    for name, (w, scale, shift) in (('1', p['c1']), ('2', p['c2']), ('3', p['c3'])):
        k, cin, cout = w.shape
        pk['w' + name] = w.reshape(k * cin, cout).astype(mxu_dtype)   # im2col weight
        pk['s' + name] = scale
        pk['t' + name] = shift
    for layer in range(2):
        (wih_f, whh_f, b_f), (wih_b, whh_b, b_b) = p['lstm'][layer]
        wih_cat = jnp.concatenate([wih_f, wih_b], axis=1)             # (Din, 8H)
        whh_blk = jnp.zeros((2 * H, 8 * H), jnp.float32)              # block-diag W_hh
        whh_blk = whh_blk.at[:H, :4 * H].set(whh_f)
        whh_blk = whh_blk.at[H:, 4 * H:].set(whh_b)
        b_cat = jnp.concatenate([b_f, b_b], axis=1)                   # (1, 8H)
        i = str(layer + 1)
        pk['wih' + i] = wih_cat.astype(mxu_dtype)
        pk['whh' + i] = whh_blk.astype(mxu_dtype)
        pk['b' + i] = b_cat
    pk['a_w1'] = p['a_w1'].astype(mxu_dtype); pk['a_b1'] = p['a_b1']
    pk['a_w2'] = p['a_w2'].T;                 pk['a_b2'] = p['a_b2']   # (1, 256) row
    pk['f_w1'] = p['f_w1'].astype(mxu_dtype); pk['f_b1'] = p['f_b1']
    pk['f_w2'] = p['f_w2'].T;                 pk['f_b2'] = p['f_b2']   # (1, 128) row
    return pk


# ----------------------------------------------------------------------------
# Full forward pass: one fused pallas_call, no XLA glue.
# ----------------------------------------------------------------------------
def hybrid_forward(x, pk, hidden=128):
    B, L, _ = x.shape
    kernel = functools.partial(_hybrid_kernel, B=B, L=L, hidden=hidden)
    return pl.pallas_call(
        kernel,
        out_shape=jax.ShapeDtypeStruct((B, 1), jnp.float32),
    )(x,
      pk['w1'], pk['s1'], pk['t1'],
      pk['w2'], pk['s2'], pk['t2'],
      pk['w3'], pk['s3'], pk['t3'],
      pk['wih1'], pk['whh1'], pk['b1'],
      pk['wih2'], pk['whh2'], pk['b2'],
      pk['a_w1'], pk['a_b1'], pk['a_w2'], pk['a_b2'],
      pk['f_w1'], pk['f_b1'], pk['f_w2'], pk['f_b2'])


if __name__ == "__main__":
    input_size = 4
    seq_len = 8          # -> L=4 after MaxPool1d(2)
    batch = 2
    hidden = 128         # fixed by the module (LSTM 2*128 feeds Linear(256, .))

    key = jax.random.PRNGKey(0)
    kx, kp = jax.random.split(key)
    x = jax.random.normal(kx, (batch, seq_len, input_size), jnp.float32)
    params = pack_params(init_params(kp, input_size, hidden), hidden)

    fwd = jax.jit(functools.partial(hybrid_forward, hidden=hidden))
    out = fwd(x, params)
    jax.block_until_ready(out)
    assert out.shape == (batch, 1)
    assert bool(jnp.all(jnp.isfinite(out)))
    print("KERNEL_OK")
</pallas_src>

<mosaic_0001>
module attributes {stable_mosaic.version = 11 : i64} {
  func.func @_hybrid_kernel(%arg0: memref<2x8x4xf32, #tpu.memory_space<vmem>>, %arg1: memref<12x64xbf16, #tpu.memory_space<vmem>>, %arg2: memref<1x64xf32, #tpu.memory_space<vmem>>, %arg3: memref<1x64xf32, #tpu.memory_space<vmem>>, %arg4: memref<192x128xbf16, #tpu.memory_space<vmem>>, %arg5: memref<1x128xf32, #tpu.memory_space<vmem>>, %arg6: memref<1x128xf32, #tpu.memory_space<vmem>>, %arg7: memref<384x256xbf16, #tpu.memory_space<vmem>>, %arg8: memref<1x256xf32, #tpu.memory_space<vmem>>, %arg9: memref<1x256xf32, #tpu.memory_space<vmem>>, %arg10: memref<256x1024xbf16, #tpu.memory_space<vmem>>, %arg11: memref<256x1024xbf16, #tpu.memory_space<vmem>>, %arg12: memref<1x1024xf32, #tpu.memory_space<vmem>>, %arg13: memref<256x1024xbf16, #tpu.memory_space<vmem>>, %arg14: memref<256x1024xbf16, #tpu.memory_space<vmem>>, %arg15: memref<1x1024xf32, #tpu.memory_space<vmem>>, %arg16: memref<256x256xbf16, #tpu.memory_space<vmem>>, %arg17: memref<1x256xf32, #tpu.memory_space<vmem>>, %arg18: memref<1x256xf32, #tpu.memory_space<vmem>>, %arg19: memref<1x1xf32, #tpu.memory_space<vmem>>, %arg20: memref<256x128xbf16, #tpu.memory_space<vmem>>, %arg21: memref<1x128xf32, #tpu.memory_space<vmem>>, %arg22: memref<1x128xf32, #tpu.memory_space<vmem>>, %arg23: memref<1x1xf32, #tpu.memory_space<vmem>>, %arg24: memref<2x1xf32, #tpu.memory_space<vmem>>) attributes {dimension_semantics = [], scalar_prefetch = 0 : i64, scratch_operands = 0 : i64, tpu.core_type = #tpu.core_type<tc>} {
    %c0 = arith.constant 0 : index
    %c0_0 = arith.constant 0 : index
    %c0_1 = arith.constant 0 : index
    %0 = vector.load %arg0[%c0, %c0_0, %c0_1] : memref<2x8x4xf32, #tpu.memory_space<vmem>>, vector<1x8x4xf32>
    %1 = vector.shape_cast %0 : vector<1x8x4xf32> to vector<8x4xf32>
    %c1 = arith.constant 1 : index
    %c0_2 = arith.constant 0 : index
    %c0_3 = arith.constant 0 : index
    %2 = vector.load %arg0[%c1, %c0_2, %c0_3] : memref<2x8x4xf32, #tpu.memory_space<vmem>>, vector<1x8x4xf32>
    %3 = vector.shape_cast %2 : vector<1x8x4xf32> to vector<8x4xf32>
    %cst = arith.constant 0.000000e+00 : f32
    %4 = vector.broadcast %cst : f32 to vector<1x4xf32>
    %5 = vector.extract_strided_slice %1 {offsets = [0, 0], sizes = [7, 4], strides = [1, 1]} : vector<8x4xf32> to vector<7x4xf32>
    %6 = tpu.concatenate %4, %5 in 0 : vector<1x4xf32>, vector<7x4xf32> -> vector<8x4xf32>
    %7 = vector.extract_strided_slice %1 {offsets = [1, 0], sizes = [7, 4], strides = [1, 1]} : vector<8x4xf32> to vector<7x4xf32>
    %8 = tpu.concatenate %7, %4 in 0 : vector<7x4xf32>, vector<1x4xf32> -> vector<8x4xf32>
    %9 = tpu.concatenate %6, %1, %8 in 1 : vector<8x4xf32>, vector<8x4xf32>, vector<8x4xf32> -> vector<8x12xf32>
    %10 = vector.extract_strided_slice %3 {offsets = [0, 0], sizes = [7, 4], strides = [1, 1]} : vector<8x4xf32> to vector<7x4xf32>
    %11 = tpu.concatenate %4, %10 in 0 : vector<1x4xf32>, vector<7x4xf32> -> vector<8x4xf32>
    %12 = vector.extract_strided_slice %3 {offsets = [1, 0], sizes = [7, 4], strides = [1, 1]} : vector<8x4xf32> to vector<7x4xf32>
    %13 = tpu.concatenate %12, %4 in 0 : vector<7x4xf32>, vector<1x4xf32> -> vector<8x4xf32>
    %14 = tpu.concatenate %11, %3, %13 in 1 : vector<8x4xf32>, vector<8x4xf32>, vector<8x4xf32> -> vector<8x12xf32>
    %15 = tpu.concatenate %9, %14 in 0 : vector<8x12xf32>, vector<8x12xf32> -> vector<16x12xf32>
    %c0_4 = arith.constant 0 : index
    %c0_5 = arith.constant 0 : index
    %16 = vector.load %arg1[%c0_4, %c0_5] : memref<12x64xbf16, #tpu.memory_space<vmem>>, vector<12x64xbf16>
    %17 = arith.truncf %15 : vector<16x12xf32> to vector<16x12xbf16>
    %cst_6 = arith.constant dense<0.000000e+00> : vector<16x64xf32>
    %18 = tpu.matmul %17, %16, %cst_6 {dimension_numbers = #tpu.dot_dimension_numbers<[1], [0], [0], [1], [0, 0, 1, 1], [], []>} : vector<16x12xbf16>, vector<12x64xbf16>, vector<16x64xf32> -> vector<16x64xf32>
    %c0_7 = arith.constant 0 : index
    %c0_8 = arith.constant 0 : index
    %19 = vector.load %arg2[%c0_7, %c0_8] : memref<1x64xf32, #tpu.memory_space<vmem>>, vector<1x64xf32>
    %20 = vector.broadcast %19 : vector<1x64xf32> to vector<16x64xf32>
    %21 = arith.mulf %18, %20 : vector<16x64xf32>
    %c0_9 = arith.constant 0 : index
    %c0_10 = arith.constant 0 : index
    %22 = vector.load %arg3[%c0_9, %c0_10] : memref<1x64xf32, #tpu.memory_space<vmem>>, vector<1x64xf32>
    %23 = vector.broadcast %22 : vector<1x64xf32> to vector<16x64xf32>
    %24 = arith.addf %21, %23 : vector<16x64xf32>
    %cst_11 = arith.constant 0.000000e+00 : f32
    %25 = vector.broadcast %cst_11 : f32 to vector<16x64xf32>
    %26 = arith.maximumf %24, %25 : vector<16x64xf32>
    %27 = vector.extract_strided_slice %26 {offsets = [0, 0], sizes = [8, 64], strides = [1, 1]} : vector<16x64xf32> to vector<8x64xf32>
    %28 = vector.extract_strided_slice %26 {offsets = [8, 0], sizes = [8, 64], strides = [1, 1]} : vector<16x64xf32> to vector<8x64xf32>
    %cst_12 = arith.constant 0.000000e+00 : f32
    %29 = vector.broadcast %cst_12 : f32 to vector<1x64xf32>
    %30 = vector.extract_strided_slice %27 {offsets = [0, 0], sizes = [7, 64], strides = [1, 1]} : vector<8x64xf32> to vector<7x64xf32>
    %31 = tpu.concatenate %29, %30 in 0 : vector<1x64xf32>, vector<7x64xf32> -> vector<8x64xf32>
    %32 = vector.extract_strided_slice %27 {offsets = [1, 0], sizes = [7, 64], strides = [1, 1]} : vector<8x64xf32> to vector<7x64xf32>
    %33 = tpu.concatenate %32, %29 in 0 : vector<7x64xf32>, vector<1x64xf32> -> vector<8x64xf32>
    %34 = tpu.concatenate %31, %27, %33 in 1 : vector<8x64xf32>, vector<8x64xf32>, vector<8x64xf32> -> vector<8x192xf32>
    %35 = vector.extract_strided_slice %28 {offsets = [0, 0], sizes = [7, 64], strides = [1, 1]} : vector<8x64xf32> to vector<7x64xf32>
    %36 = tpu.concatenate %29, %35 in 0 : vector<1x64xf32>, vector<7x64xf32> -> vector<8x64xf32>
    %37 = vector.extract_strided_slice %28 {offsets = [1, 0], sizes = [7, 64], strides = [1, 1]} : vector<8x64xf32> to vector<7x64xf32>
    %38 = tpu.concatenate %37, %29 in 0 : vector<7x64xf32>, vector<1x64xf32> -> vector<8x64xf32>
    %39 = tpu.concatenate %36, %28, %38 in 1 : vector<8x64xf32>, vector<8x64xf32>, vector<8x64xf32> -> vector<8x192xf32>
    %40 = tpu.concatenate %34, %39 in 0 : vector<8x192xf32>, vector<8x192xf32> -> vector<16x192xf32>
    %c0_13 = arith.constant 0 : index
    %c0_14 = arith.constant 0 : index
    %41 = vector.load %arg4[%c0_13, %c0_14] : memref<192x128xbf16, #tpu.memory_space<vmem>>, vector<192x128xbf16>
    %42 = arith.truncf %40 : vector<16x192xf32> to vector<16x192xbf16>
    %cst_15 = arith.constant dense<0.000000e+00> : vector<16x128xf32>
    %43 = tpu.matmul %42, %41, %cst_15 {dimension_numbers = #tpu.dot_dimension_numbers<[1], [0], [0], [1], [0, 0, 1, 1], [], []>} : vector<16x192xbf16>, vector<192x128xbf16>, vector<16x128xf32> -> vector<16x128xf32>
    %c0_16 = arith.constant 0 : index
    %c0_17 = arith.constant 0 : index
    %44 = vector.load %arg5[%c0_16, %c0_17] : memref<1x128xf32, #tpu.memory_space<vmem>>, vector<1x128xf32>
    %45 = vector.broadcast %44 : vector<1x128xf32> to vector<16x128xf32>
    %46 = arith.mulf %43, %45 : vector<16x128xf32>
    %c0_18 = arith.constant 0 : index
    %c0_19 = arith.constant 0 : index
    %47 = vector.load %arg6[%c0_18, %c0_19] : memref<1x128xf32, #tpu.memory_space<vmem>>, vector<1x128xf32>
    %48 = vector.broadcast %47 : vector<1x128xf32> to vector<16x128xf32>
    %49 = arith.addf %46, %48 : vector<16x128xf32>
    %cst_20 = arith.constant 0.000000e+00 : f32
    %50 = vector.broadcast %cst_20 : f32 to vector<16x128xf32>
    %51 = arith.maximumf %49, %50 : vector<16x128xf32>
    %52 = vector.extract_strided_slice %51 {offsets = [0, 0], sizes = [8, 128], strides = [1, 1]} : vector<16x128xf32> to vector<8x128xf32>
    %53 = vector.extract_strided_slice %51 {offsets = [8, 0], sizes = [8, 128], strides = [1, 1]} : vector<16x128xf32> to vector<8x128xf32>
    %54 = vector.extract_strided_slice %52 {offsets = [0, 0], sizes = [1, 128], strides = [1, 1]} : vector<8x128xf32> to vector<1x128xf32>
    %55 = vector.extract_strided_slice %52 {offsets = [1, 0], sizes = [1, 128], strides = [1, 1]} : vector<8x128xf32> to vector<1x128xf32>
    %56 = arith.maximumf %54, %55 : vector<1x128xf32>
    %57 = vector.extract_strided_slice %52 {offsets = [2, 0], sizes = [1, 128], strides = [1, 1]} : vector<8x128xf32> to vector<1x128xf32>
    %58 = vector.extract_strided_slice %52 {offsets = [3, 0], sizes = [1, 128], strides = [1, 1]} : vector<8x128xf32> to vector<1x128xf32>
    %59 = arith.maximumf %57, %58 : vector<1x128xf32>
    %60 = vector.extract_strided_slice %52 {offsets = [4, 0], sizes = [1, 128], strides = [1, 1]} : vector<8x128xf32> to vector<1x128xf32>
    %61 = vector.extract_strided_slice %52 {offsets = [5, 0], sizes = [1, 128], strides = [1, 1]} : vector<8x128xf32> to vector<1x128xf32>
    %62 = arith.maximumf %60, %61 : vector<1x128xf32>
    %63 = vector.extract_strided_slice %52 {offsets = [6, 0], sizes = [1, 128], strides = [1, 1]} : vector<8x128xf32> to vector<1x128xf32>
    %64 = vector.extract_strided_slice %52 {offsets = [7, 0], sizes = [1, 128], strides = [1, 1]} : vector<8x128xf32> to vector<1x128xf32>
    %65 = arith.maximumf %63, %64 : vector<1x128xf32>
    %66 = tpu.concatenate %56, %59, %62, %65 in 0 : vector<1x128xf32>, vector<1x128xf32>, vector<1x128xf32>, vector<1x128xf32> -> vector<4x128xf32>
    %67 = vector.extract_strided_slice %53 {offsets = [0, 0], sizes = [1, 128], strides = [1, 1]} : vector<8x128xf32> to vector<1x128xf32>
    %68 = vector.extract_strided_slice %53 {offsets = [1, 0], sizes = [1, 128], strides = [1, 1]} : vector<8x128xf32> to vector<1x128xf32>
    %69 = arith.maximumf %67, %68 : vector<1x128xf32>
    %70 = vector.extract_strided_slice %53 {offsets = [2, 0], sizes = [1, 128], strides = [1, 1]} : vector<8x128xf32> to vector<1x128xf32>
    %71 = vector.extract_strided_slice %53 {offsets = [3, 0], sizes = [1, 128], strides = [1, 1]} : vector<8x128xf32> to vector<1x128xf32>
    %72 = arith.maximumf %70, %71 : vector<1x128xf32>
    %73 = vector.extract_strided_slice %53 {offsets = [4, 0], sizes = [1, 128], strides = [1, 1]} : vector<8x128xf32> to vector<1x128xf32>
    %74 = vector.extract_strided_slice %53 {offsets = [5, 0], sizes = [1, 128], strides = [1, 1]} : vector<8x128xf32> to vector<1x128xf32>
    %75 = arith.maximumf %73, %74 : vector<1x128xf32>
    %76 = vector.extract_strided_slice %53 {offsets = [6, 0], sizes = [1, 128], strides = [1, 1]} : vector<8x128xf32> to vector<1x128xf32>
    %77 = vector.extract_strided_slice %53 {offsets = [7, 0], sizes = [1, 128], strides = [1, 1]} : vector<8x128xf32> to vector<1x128xf32>
    %78 = arith.maximumf %76, %77 : vector<1x128xf32>
    %79 = tpu.concatenate %69, %72, %75, %78 in 0 : vector<1x128xf32>, vector<1x128xf32>, vector<1x128xf32>, vector<1x128xf32> -> vector<4x128xf32>
    %cst_21 = arith.constant 0.000000e+00 : f32
    %80 = vector.broadcast %cst_21 : f32 to vector<1x128xf32>
    %81 = vector.extract_strided_slice %66 {offsets = [0, 0], sizes = [3, 128], strides = [1, 1]} : vector<4x128xf32> to vector<3x128xf32>
    %82 = tpu.concatenate %80, %81 in 0 : vector<1x128xf32>, vector<3x128xf32> -> vector<4x128xf32>
    %83 = vector.extract_strided_slice %66 {offsets = [1, 0], sizes = [3, 128], strides = [1, 1]} : vector<4x128xf32> to vector<3x128xf32>
    %84 = tpu.concatenate %83, %80 in 0 : vector<3x128xf32>, vector<1x128xf32> -> vector<4x128xf32>
    %85 = tpu.concatenate %82, %66, %84 in 1 : vector<4x128xf32>, vector<4x128xf32>, vector<4x128xf32> -> vector<4x384xf32>
    %86 = vector.extract_strided_slice %79 {offsets = [0, 0], sizes = [3, 128], strides = [1, 1]} : vector<4x128xf32> to vector<3x128xf32>
    %87 = tpu.concatenate %80, %86 in 0 : vector<1x128xf32>, vector<3x128xf32> -> vector<4x128xf32>
    %88 = vector.extract_strided_slice %79 {offsets = [1, 0], sizes = [3, 128], strides = [1, 1]} : vector<4x128xf32> to vector<3x128xf32>
    %89 = tpu.concatenate %88, %80 in 0 : vector<3x128xf32>, vector<1x128xf32> -> vector<4x128xf32>
    %90 = tpu.concatenate %87, %79, %89 in 1 : vector<4x128xf32>, vector<4x128xf32>, vector<4x128xf32> -> vector<4x384xf32>
    %91 = tpu.concatenate %85, %90 in 0 : vector<4x384xf32>, vector<4x384xf32> -> vector<8x384xf32>
    %c0_22 = arith.constant 0 : index
    %c0_23 = arith.constant 0 : index
    %92 = vector.load %arg7[%c0_22, %c0_23] : memref<384x256xbf16, #tpu.memory_space<vmem>>, vector<384x256xbf16>
    %93 = arith.truncf %91 : vector<8x384xf32> to vector<8x384xbf16>
    %cst_24 = arith.constant dense<0.000000e+00> : vector<8x256xf32>
    %94 = tpu.matmul %93, %92, %cst_24 {dimension_numbers = #tpu.dot_dimension_numbers<[1], [0], [0], [1], [0, 0, 1, 1], [], []>} : vector<8x384xbf16>, vector<384x256xbf16>, vector<8x256xf32> -> vector<8x256xf32>
    %c0_25 = arith.constant 0 : index
    %c0_26 = arith.constant 0 : index
    %95 = vector.load %arg8[%c0_25, %c0_26] : memref<1x256xf32, #tpu.memory_space<vmem>>, vector<1x256xf32>
    %96 = vector.broadcast %95 : vector<1x256xf32> to vector<8x256xf32>
    %97 = arith.mulf %94, %96 : vector<8x256xf32>
    %c0_27 = arith.constant 0 : index
    %c0_28 = arith.constant 0 : index
    %98 = vector.load %arg9[%c0_27, %c0_28] : memref<1x256xf32, #tpu.memory_space<vmem>>, vector<1x256xf32>
    %99 = vector.broadcast %98 : vector<1x256xf32> to vector<8x256xf32>
    %100 = arith.addf %97, %99 : vector<8x256xf32>
    %cst_29 = arith.constant 0.000000e+00 : f32
    %101 = vector.broadcast %cst_29 : f32 to vector<8x256xf32>
    %102 = arith.maximumf %100, %101 : vector<8x256xf32>
    %103 = vector.extract_strided_slice %102 {offsets = [0, 0], sizes = [4, 256], strides = [1, 1]} : vector<8x256xf32> to vector<4x256xf32>
    %104 = vector.extract_strided_slice %102 {offsets = [4, 0], sizes = [4, 256], strides = [1, 1]} : vector<8x256xf32> to vector<4x256xf32>
    %105 = vector.extract_strided_slice %103 {offsets = [0, 0], sizes = [1, 256], strides = [1, 1]} : vector<4x256xf32> to vector<1x256xf32>
    %106 = vector.extract_strided_slice %104 {offsets = [0, 0], sizes = [1, 256], strides = [1, 1]} : vector<4x256xf32> to vector<1x256xf32>
    %107 = tpu.concatenate %105, %106 in 0 : vector<1x256xf32>, vector<1x256xf32> -> vector<2x256xf32>
    %108 = vector.extract_strided_slice %103 {offsets = [1, 0], sizes = [1, 256], strides = [1, 1]} : vector<4x256xf32> to vector<1x256xf32>
    %109 = vector.extract_strided_slice %104 {offsets = [1, 0], sizes = [1, 256], strides = [1, 1]} : vector<4x256xf32> to vector<1x256xf32>
    %110 = tpu.concatenate %108, %109 in 0 : vector<1x256xf32>, vector<1x256xf32> -> vector<2x256xf32>
    %111 = vector.extract_strided_slice %103 {offsets = [2, 0], sizes = [1, 256], strides = [1, 1]} : vector<4x256xf32> to vector<1x256xf32>
    %112 = vector.extract_strided_slice %104 {offsets = [2, 0], sizes = [1, 256], strides = [1, 1]} : vector<4x256xf32> to vector<1x256xf32>
    %113 = tpu.concatenate %111, %112 in 0 : vector<1x256xf32>, vector<1x256xf32> -> vector<2x256xf32>
    %114 = vector.extract_strided_slice %103 {offsets = [3, 0], sizes = [1, 256], strides = [1, 1]} : vector<4x256xf32> to vector<1x256xf32>
    %115 = vector.extract_strided_slice %104 {offsets = [3, 0], sizes = [1, 256], strides = [1, 1]} : vector<4x256xf32> to vector<1x256xf32>
    %116 = tpu.concatenate %114, %115 in 0 : vector<1x256xf32>, vector<1x256xf32> -> vector<2x256xf32>
    %c0_30 = arith.constant 0 : index
    %c0_31 = arith.constant 0 : index
    %117 = vector.load %arg10[%c0_30, %c0_31] : memref<256x1024xbf16, #tpu.memory_space<vmem>>, vector<256x1024xbf16>
    %c0_32 = arith.constant 0 : index
    %c0_33 = arith.constant 0 : index
    %118 = vector.load %arg11[%c0_32, %c0_33] : memref<256x1024xbf16, #tpu.memory_space<vmem>>, vector<256x1024xbf16>
    %c0_34 = arith.constant 0 : index
    %c0_35 = arith.constant 0 : index
    %119 = vector.load %arg12[%c0_34, %c0_35] : memref<1x1024xf32, #tpu.memory_space<vmem>>, vector<1x1024xf32>
    %120 = tpu.concatenate %107, %110, %113, %116 in 0 : vector<2x256xf32>, vector<2x256xf32>, vector<2x256xf32>, vector<2x256xf32> -> vector<8x256xf32>
    %121 = arith.truncf %120 : vector<8x256xf32> to vector<8x256xbf16>
    %cst_36 = arith.constant dense<0.000000e+00> : vector<8x1024xf32>
    %122 = tpu.matmul %121, %117, %cst_36 {dimension_numbers = #tpu.dot_dimension_numbers<[1], [0], [0], [1], [0, 0, 1, 1], [], []>} : vector<8x256xbf16>, vector<256x1024xbf16>, vector<8x1024xf32> -> vector<8x1024xf32>
    %123 = vector.broadcast %119 : vector<1x1024xf32> to vector<8x1024xf32>
    %124 = arith.addf %122, %123 : vector<8x1024xf32>
    %125 = vector.extract_strided_slice %124 {offsets = [0, 0], sizes = [2, 1024], strides = [1, 1]} : vector<8x1024xf32> to vector<2x1024xf32>
    %126 = vector.extract_strided_slice %124 {offsets = [2, 0], sizes = [2, 1024], strides = [1, 1]} : vector<8x1024xf32> to vector<2x1024xf32>
    %127 = vector.extract_strided_slice %124 {offsets = [4, 0], sizes = [2, 1024], strides = [1, 1]} : vector<8x1024xf32> to vector<2x1024xf32>
    %128 = vector.extract_strided_slice %124 {offsets = [6, 0], sizes = [2, 1024], strides = [1, 1]} : vector<8x1024xf32> to vector<2x1024xf32>
    %cst_37 = arith.constant 0.000000e+00 : f32
    %129 = vector.broadcast %cst_37 : f32 to vector<2x128xf32>
    %cst_38 = arith.constant 0.000000e+00 : f32
    %130 = vector.broadcast %cst_38 : f32 to vector<2x128xf32>
    %cst_39 = arith.constant 0.000000e+00 : f32
    %131 = vector.broadcast %cst_39 : f32 to vector<2x128xf32>
    %cst_40 = arith.constant 0.000000e+00 : f32
    %132 = vector.broadcast %cst_40 : f32 to vector<2x128xf32>
    %133 = tpu.concatenate %129, %131 in 1 : vector<2x128xf32>, vector<2x128xf32> -> vector<2x256xf32>
    %134 = arith.truncf %133 : vector<2x256xf32> to vector<2x256xbf16>
    %cst_41 = arith.constant dense<0.000000e+00> : vector<2x1024xf32>
    %135 = tpu.matmul %134, %118, %cst_41 {dimension_numbers = #tpu.dot_dimension_numbers<[1], [0], [0], [1], [0, 0, 1, 1], [], []>} : vector<2x256xbf16>, vector<256x1024xbf16>, vector<2x1024xf32> -> vector<2x1024xf32>
    %136 = vector.extract_strided_slice %135 {offsets = [0, 0], sizes = [2, 512], strides = [1, 1]} : vector<2x1024xf32> to vector<2x512xf32>
    %137 = vector.extract_strided_slice %125 {offsets = [0, 0], sizes = [2, 512], strides = [1, 1]} : vector<2x1024xf32> to vector<2x512xf32>
    %138 = arith.addf %136, %137 : vector<2x512xf32>
    %139 = vector.extract_strided_slice %135 {offsets = [0, 512], sizes = [2, 512], strides = [1, 1]} : vector<2x1024xf32> to vector<2x512xf32>
    %140 = vector.extract_strided_slice %128 {offsets = [0, 512], sizes = [2, 512], strides = [1, 1]} : vector<2x1024xf32> to vector<2x512xf32>
    %141 = arith.addf %139, %140 : vector<2x512xf32>
    %142 = vector.extract_strided_slice %138 {offsets = [0, 0], sizes = [2, 128], strides = [1, 1]} : vector<2x512xf32> to vector<2x128xf32>
    %143 = arith.negf %142 : vector<2x128xf32>
    %144 = math.exp %143 : vector<2x128xf32>
    %cst_42 = arith.constant 1.000000e+00 : f32
    %145 = vector.broadcast %cst_42 : f32 to vector<2x128xf32>
    %146 = arith.addf %145, %144 : vector<2x128xf32>
    %147 = arith.divf %145, %146 : vector<2x128xf32>
    %148 = vector.extract_strided_slice %138 {offsets = [0, 128], sizes = [2, 128], strides = [1, 1]} : vector<2x512xf32> to vector<2x128xf32>
    %149 = arith.negf %148 : vector<2x128xf32>
    %150 = math.exp %149 : vector<2x128xf32>
    %cst_43 = arith.constant 1.000000e+00 : f32
    %151 = vector.broadcast %cst_43 : f32 to vector<2x128xf32>
    %152 = arith.addf %151, %150 : vector<2x128xf32>
    %153 = arith.divf %151, %152 : vector<2x128xf32>
    %154 = vector.extract_strided_slice %138 {offsets = [0, 256], sizes = [2, 128], strides = [1, 1]} : vector<2x512xf32> to vector<2x128xf32>
    %155 = math.tanh %154 : vector<2x128xf32>
    %156 = vector.extract_strided_slice %138 {offsets = [0, 384], sizes = [2, 128], strides = [1, 1]} : vector<2x512xf32> to vector<2x128xf32>
    %157 = arith.negf %156 : vector<2x128xf32>
    %158 = math.exp %157 : vector<2x128xf32>
    %cst_44 = arith.constant 1.000000e+00 : f32
    %159 = vector.broadcast %cst_44 : f32 to vector<2x128xf32>
    %160 = arith.addf %159, %158 : vector<2x128xf32>
    %161 = arith.divf %159, %160 : vector<2x128xf32>
    %162 = arith.mulf %153, %130 : vector<2x128xf32>
    %163 = arith.mulf %147, %155 : vector<2x128xf32>
    %164 = arith.addf %162, %163 : vector<2x128xf32>
    %165 = math.tanh %164 : vector<2x128xf32>
    %166 = arith.mulf %161, %165 : vector<2x128xf32>
    %167 = vector.extract_strided_slice %141 {offsets = [0, 0], sizes = [2, 128], strides = [1, 1]} : vector<2x512xf32> to vector<2x128xf32>
    %168 = arith.negf %167 : vector<2x128xf32>
    %169 = math.exp %168 : vector<2x128xf32>
    %cst_45 = arith.constant 1.000000e+00 : f32
    %170 = vector.broadcast %cst_45 : f32 to vector<2x128xf32>
    %171 = arith.addf %170, %169 : vector<2x128xf32>
    %172 = arith.divf %170, %171 : vector<2x128xf32>
    %173 = vector.extract_strided_slice %141 {offsets = [0, 128], sizes = [2, 128], strides = [1, 1]} : vector<2x512xf32> to vector<2x128xf32>
    %174 = arith.negf %173 : vector<2x128xf32>
    %175 = math.exp %174 : vector<2x128xf32>
    %cst_46 = arith.constant 1.000000e+00 : f32
    %176 = vector.broadcast %cst_46 : f32 to vector<2x128xf32>
    %177 = arith.addf %176, %175 : vector<2x128xf32>
    %178 = arith.divf %176, %177 : vector<2x128xf32>
    %179 = vector.extract_strided_slice %141 {offsets = [0, 256], sizes = [2, 128], strides = [1, 1]} : vector<2x512xf32> to vector<2x128xf32>
    %180 = math.tanh %179 : vector<2x128xf32>
    %181 = vector.extract_strided_slice %141 {offsets = [0, 384], sizes = [2, 128], strides = [1, 1]} : vector<2x512xf32> to vector<2x128xf32>
    %182 = arith.negf %181 : vector<2x128xf32>
    %183 = math.exp %182 : vector<2x128xf32>
    %cst_47 = arith.constant 1.000000e+00 : f32
    %184 = vector.broadcast %cst_47 : f32 to vector<2x128xf32>
    %185 = arith.addf %184, %183 : vector<2x128xf32>
    %186 = arith.divf %184, %185 : vector<2x128xf32>
    %187 = arith.mulf %178, %132 : vector<2x128xf32>
    %188 = arith.mulf %172, %180 : vector<2x128xf32>
    %189 = arith.addf %187, %188 : vector<2x128xf32>
    %190 = math.tanh %189 : vector<2x128xf32>
    %191 = arith.mulf %186, %190 : vector<2x128xf32>
    %192 = tpu.concatenate %166, %191 in 1 : vector<2x128xf32>, vector<2x128xf32> -> vector<2x256xf32>
    %193 = arith.truncf %192 : vector<2x256xf32> to vector<2x256xbf16>
    %cst_48 = arith.constant dense<0.000000e+00> : vector<2x1024xf32>
    %194 = tpu.matmul %193, %118, %cst_48 {dimension_numbers = #tpu.dot_dimension_numbers<[1], [0], [0], [1], [0, 0, 1, 1], [], []>} : vector<2x256xbf16>, vector<256x1024xbf16>, vector<2x1024xf32> -> vector<2x1024xf32>
    %195 = vector.extract_strided_slice %194 {offsets = [0, 0], sizes = [2, 512], strides = [1, 1]} : vector<2x1024xf32> to vector<2x512xf32>
    %196 = vector.extract_strided_slice %126 {offsets = [0, 0], sizes = [2, 512], strides = [1, 1]} : vector<2x1024xf32> to vector<2x512xf32>
    %197 = arith.addf %195, %196 : vector<2x512xf32>
    %198 = vector.extract_strided_slice %194 {offsets = [0, 512], sizes = [2, 512], strides = [1, 1]} : vector<2x1024xf32> to vector<2x512xf32>
    %199 = vector.extract_strided_slice %127 {offsets = [0, 512], sizes = [2, 512], strides = [1, 1]} : vector<2x1024xf32> to vector<2x512xf32>
    %200 = arith.addf %198, %199 : vector<2x512xf32>
    %201 = vector.extract_strided_slice %197 {offsets = [0, 0], sizes = [2, 128], strides = [1, 1]} : vector<2x512xf32> to vector<2x128xf32>
    %202 = arith.negf %201 : vector<2x128xf32>
    %203 = math.exp %202 : vector<2x128xf32>
    %cst_49 = arith.constant 1.000000e+00 : f32
    %204 = vector.broadcast %cst_49 : f32 to vector<2x128xf32>
    %205 = arith.addf %204, %203 : vector<2x128xf32>
    %206 = arith.divf %204, %205 : vector<2x128xf32>
    %207 = vector.extract_strided_slice %197 {offsets = [0, 128], sizes = [2, 128], strides = [1, 1]} : vector<2x512xf32> to vector<2x128xf32>
    %208 = arith.negf %207 : vector<2x128xf32>
    %209 = math.exp %208 : vector<2x128xf32>
    %cst_50 = arith.constant 1.000000e+00 : f32
    %210 = vector.broadcast %cst_50 : f32 to vector<2x128xf32>
    %211 = arith.addf %210, %209 : vector<2x128xf32>
    %212 = arith.divf %210, %211 : vector<2x128xf32>
    %213 = vector.extract_strided_slice %197 {offsets = [0, 256], sizes = [2, 128], strides = [1, 1]} : vector<2x512xf32> to vector<2x128xf32>
    %214 = math.tanh %213 : vector<2x128xf32>
    %215 = vector.extract_strided_slice %197 {offsets = [0, 384], sizes = [2, 128], strides = [1, 1]} : vector<2x512xf32> to vector<2x128xf32>
    %216 = arith.negf %215 : vector<2x128xf32>
    %217 = math.exp %216 : vector<2x128xf32>
    %cst_51 = arith.constant 1.000000e+00 : f32
    %218 = vector.broadcast %cst_51 : f32 to vector<2x128xf32>
    %219 = arith.addf %218, %217 : vector<2x128xf32>
    %220 = arith.divf %218, %219 : vector<2x128xf32>
    %221 = arith.mulf %212, %164 : vector<2x128xf32>
    %222 = arith.mulf %206, %214 : vector<2x128xf32>
    %223 = arith.addf %221, %222 : vector<2x128xf32>
    %224 = math.tanh %223 : vector<2x128xf32>
    %225 = arith.mulf %220, %224 : vector<2x128xf32>
    %226 = vector.extract_strided_slice %200 {offsets = [0, 0], sizes = [2, 128], strides = [1, 1]} : vector<2x512xf32> to vector<2x128xf32>
    %227 = arith.negf %226 : vector<2x128xf32>
    %228 = math.exp %227 : vector<2x128xf32>
    %cst_52 = arith.constant 1.000000e+00 : f32
    %229 = vector.broadcast %cst_52 : f32 to vector<2x128xf32>
    %230 = arith.addf %229, %228 : vector<2x128xf32>
    %231 = arith.divf %229, %230 : vector<2x128xf32>
    %232 = vector.extract_strided_slice %200 {offsets = [0, 128], sizes = [2, 128], strides = [1, 1]} : vector<2x512xf32> to vector<2x128xf32>
    %233 = arith.negf %232 : vector<2x128xf32>
    %234 = math.exp %233 : vector<2x128xf32>
    %cst_53 = arith.constant 1.000000e+00 : f32
    %235 = vector.broadcast %cst_53 : f32 to vector<2x128xf32>
    %236 = arith.addf %235, %234 : vector<2x128xf32>
    %237 = arith.divf %235, %236 : vector<2x128xf32>
    %238 = vector.extract_strided_slice %200 {offsets = [0, 256], sizes = [2, 128], strides = [1, 1]} : vector<2x512xf32> to vector<2x128xf32>
    %239 = math.tanh %238 : vector<2x128xf32>
    %240 = vector.extract_strided_slice %200 {offsets = [0, 384], sizes = [2, 128], strides = [1, 1]} : vector<2x512xf32> to vector<2x128xf32>
    %241 = arith.negf %240 : vector<2x128xf32>
    %242 = math.exp %241 : vector<2x128xf32>
    %cst_54 = arith.constant 1.000000e+00 : f32
    %243 = vector.broadcast %cst_54 : f32 to vector<2x128xf32>
    %244 = arith.addf %243, %242 : vector<2x128xf32>
    %245 = arith.divf %243, %244 : vector<2x128xf32>
    %246 = arith.mulf %237, %189 : vector<2x128xf32>
    %247 = arith.mulf %231, %239 : vector<2x128xf32>
    %248 = arith.addf %246, %247 : vector<2x128xf32>
    %249 = math.tanh %248 : vector<2x128xf32>
    %250 = arith.mulf %245, %249 : vector<2x128xf32>
    %251 = tpu.concatenate %225, %250 in 1 : vector<2x128xf32>, vector<2x128xf32> -> vector<2x256xf32>
    %252 = arith.truncf %251 : vector<2x256xf32> to vector<2x256xbf16>
    %cst_55 = arith.constant dense<0.000000e+00> : vector<2x1024xf32>
    %253 = tpu.matmul %252, %118, %cst_55 {dimension_numbers = #tpu.dot_dimension_numbers<[1], [0], [0], [1], [0, 0, 1, 1], [], []>} : vector<2x256xbf16>, vector<256x1024xbf16>, vector<2x1024xf32> -> vector<2x1024xf32>
    %254 = vector.extract_strided_slice %253 {offsets = [0, 0], sizes = [2, 512], strides = [1, 1]} : vector<2x1024xf32> to vector<2x512xf32>
    %255 = vector.extract_strided_slice %127 {offsets = [0, 0], sizes = [2, 512], strides = [1, 1]} : vector<2x1024xf32> to vector<2x512xf32>
    %256 = arith.addf %254, %255 : vector<2x512xf32>
    %257 = vector.extract_strided_slice %253 {offsets = [0, 512], sizes = [2, 512], strides = [1, 1]} : vector<2x1024xf32> to vector<2x512xf32>
    %258 = vector.extract_strided_slice %126 {offsets = [0, 512], sizes = [2, 512], strides = [1, 1]} : vector<2x1024xf32> to vector<2x512xf32>
    %259 = arith.addf %257, %258 : vector<2x512xf32>
    %260 = vector.extract_strided_slice %256 {offsets = [0, 0], sizes = [2, 128], strides = [1, 1]} : vector<2x512xf32> to vector<2x128xf32>
    %261 = arith.negf %260 : vector<2x128xf32>
    %262 = math.exp %261 : vector<2x128xf32>
    %cst_56 = arith.constant 1.000000e+00 : f32
    %263 = vector.broadcast %cst_56 : f32 to vector<2x128xf32>
    %264 = arith.addf %263, %262 : vector<2x128xf32>
    %265 = arith.divf %263, %264 : vector<2x128xf32>
    %266 = vector.extract_strided_slice %256 {offsets = [0, 128], sizes = [2, 128], strides = [1, 1]} : vector<2x512xf32> to vector<2x128xf32>
    %267 = arith.negf %266 : vector<2x128xf32>
    %268 = math.exp %267 : vector<2x128xf32>
    %cst_57 = arith.constant 1.000000e+00 : f32
    %269 = vector.broadcast %cst_57 : f32 to vector<2x128xf32>
    %270 = arith.addf %269, %268 : vector<2x128xf32>
    %271 = arith.divf %269, %270 : vector<2x128xf32>
    %272 = vector.extract_strided_slice %256 {offsets = [0, 256], sizes = [2, 128], strides = [1, 1]} : vector<2x512xf32> to vector<2x128xf32>
    %273 = math.tanh %272 : vector<2x128xf32>
    %274 = vector.extract_strided_slice %256 {offsets = [0, 384], sizes = [2, 128], strides = [1, 1]} : vector<2x512xf32> to vector<2x128xf32>
    %275 = arith.negf %274 : vector<2x128xf32>
    %276 = math.exp %275 : vector<2x128xf32>
    %cst_58 = arith.constant 1.000000e+00 : f32
    %277 = vector.broadcast %cst_58 : f32 to vector<2x128xf32>
    %278 = arith.addf %277, %276 : vector<2x128xf32>
    %279 = arith.divf %277, %278 : vector<2x128xf32>
    %280 = arith.mulf %271, %223 : vector<2x128xf32>
    %281 = arith.mulf %265, %273 : vector<2x128xf32>
    %282 = arith.addf %280, %281 : vector<2x128xf32>
    %283 = math.tanh %282 : vector<2x128xf32>
    %284 = arith.mulf %279, %283 : vector<2x128xf32>
    %285 = vector.extract_strided_slice %259 {offsets = [0, 0], sizes = [2, 128], strides = [1, 1]} : vector<2x512xf32> to vector<2x128xf32>
    %286 = arith.negf %285 : vector<2x128xf32>
    %287 = math.exp %286 : vector<2x128xf32>
    %cst_59 = arith.constant 1.000000e+00 : f32
    %288 = vector.broadcast %cst_59 : f32 to vector<2x128xf32>
    %289 = arith.addf %288, %287 : vector<2x128xf32>
    %290 = arith.divf %288, %289 : vector<2x128xf32>
    %291 = vector.extract_strided_slice %259 {offsets = [0, 128], sizes = [2, 128], strides = [1, 1]} : vector<2x512xf32> to vector<2x128xf32>
    %292 = arith.negf %291 : vector<2x128xf32>
    %293 = math.exp %292 : vector<2x128xf32>
    %cst_60 = arith.constant 1.000000e+00 : f32
    %294 = vector.broadcast %cst_60 : f32 to vector<2x128xf32>
    %295 = arith.addf %294, %293 : vector<2x128xf32>
    %296 = arith.divf %294, %295 : vector<2x128xf32>
    %297 = vector.extract_strided_slice %259 {offsets = [0, 256], sizes = [2, 128], strides = [1, 1]} : vector<2x512xf32> to vector<2x128xf32>
    %298 = math.tanh %297 : vector<2x128xf32>
    %299 = vector.extract_strided_slice %259 {offsets = [0, 384], sizes = [2, 128], strides = [1, 1]} : vector<2x512xf32> to vector<2x128xf32>
    %300 = arith.negf %299 : vector<2x128xf32>
    %301 = math.exp %300 : vector<2x128xf32>
    %cst_61 = arith.constant 1.000000e+00 : f32
    %302 = vector.broadcast %cst_61 : f32 to vector<2x128xf32>
    %303 = arith.addf %302, %301 : vector<2x128xf32>
    %304 = arith.divf %302, %303 : vector<2x128xf32>
    %305 = arith.mulf %296, %248 : vector<2x128xf32>
    %306 = arith.mulf %290, %298 : vector<2x128xf32>
    %307 = arith.addf %305, %306 : vector<2x128xf32>
    %308 = math.tanh %307 : vector<2x128xf32>
    %309 = arith.mulf %304, %308 : vector<2x128xf32>
    %310 = tpu.concatenate %284, %309 in 1 : vector<2x128xf32>, vector<2x128xf32> -> vector<2x256xf32>
    %311 = arith.truncf %310 : vector<2x256xf32> to vector<2x256xbf16>
    %cst_62 = arith.constant dense<0.000000e+00> : vector<2x1024xf32>
    %312 = tpu.matmul %311, %118, %cst_62 {dimension_numbers = #tpu.dot_dimension_numbers<[1], [0], [0], [1], [0, 0, 1, 1], [], []>} : vector<2x256xbf16>, vector<256x1024xbf16>, vector<2x1024xf32> -> vector<2x1024xf32>
    %313 = vector.extract_strided_slice %312 {offsets = [0, 0], sizes = [2, 512], strides = [1, 1]} : vector<2x1024xf32> to vector<2x512xf32>
    %314 = vector.extract_strided_slice %128 {offsets = [0, 0], sizes = [2, 512], strides = [1, 1]} : vector<2x1024xf32> to vector<2x512xf32>
    %315 = arith.addf %313, %314 : vector<2x512xf32>
    %316 = vector.extract_strided_slice %312 {offsets = [0, 512], sizes = [2, 512], strides = [1, 1]} : vector<2x1024xf32> to vector<2x512xf32>
    %317 = vector.extract_strided_slice %125 {offsets = [0, 512], sizes = [2, 512], strides = [1, 1]} : vector<2x1024xf32> to vector<2x512xf32>
    %318 = arith.addf %316, %317 : vector<2x512xf32>
    %319 = vector.extract_strided_slice %315 {offsets = [0, 0], sizes = [2, 128], strides = [1, 1]} : vector<2x512xf32> to vector<2x128xf32>
    %320 = arith.negf %319 : vector<2x128xf32>
    %321 = math.exp %320 : vector<2x128xf32>
    %cst_63 = arith.constant 1.000000e+00 : f32
    %322 = vector.broadcast %cst_63 : f32 to vector<2x128xf32>
    %323 = arith.addf %322, %321 : vector<2x128xf32>
    %324 = arith.divf %322, %323 : vector<2x128xf32>
    %325 = vector.extract_strided_slice %315 {offsets = [0, 128], sizes = [2, 128], strides = [1, 1]} : vector<2x512xf32> to vector<2x128xf32>
    %326 = arith.negf %325 : vector<2x128xf32>
    %327 = math.exp %326 : vector<2x128xf32>
    %cst_64 = arith.constant 1.000000e+00 : f32
    %328 = vector.broadcast %cst_64 : f32 to vector<2x128xf32>
    %329 = arith.addf %328, %327 : vector<2x128xf32>
    %330 = arith.divf %328, %329 : vector<2x128xf32>
    %331 = vector.extract_strided_slice %315 {offsets = [0, 256], sizes = [2, 128], strides = [1, 1]} : vector<2x512xf32> to vector<2x128xf32>
    %332 = math.tanh %331 : vector<2x128xf32>
    %333 = vector.extract_strided_slice %315 {offsets = [0, 384], sizes = [2, 128], strides = [1, 1]} : vector<2x512xf32> to vector<2x128xf32>
    %334 = arith.negf %333 : vector<2x128xf32>
    %335 = math.exp %334 : vector<2x128xf32>
    %cst_65 = arith.constant 1.000000e+00 : f32
    %336 = vector.broadcast %cst_65 : f32 to vector<2x128xf32>
    %337 = arith.addf %336, %335 : vector<2x128xf32>
    %338 = arith.divf %336, %337 : vector<2x128xf32>
    %339 = arith.mulf %330, %282 : vector<2x128xf32>
    %340 = arith.mulf %324, %332 : vector<2x128xf32>
    %341 = arith.addf %339, %340 : vector<2x128xf32>
    %342 = math.tanh %341 : vector<2x128xf32>
    %343 = arith.mulf %338, %342 : vector<2x128xf32>
    %344 = vector.extract_strided_slice %318 {offsets = [0, 0], sizes = [2, 128], strides = [1, 1]} : vector<2x512xf32> to vector<2x128xf32>
    %345 = arith.negf %344 : vector<2x128xf32>
    %346 = math.exp %345 : vector<2x128xf32>
    %cst_66 = arith.constant 1.000000e+00 : f32
    %347 = vector.broadcast %cst_66 : f32 to vector<2x128xf32>
    %348 = arith.addf %347, %346 : vector<2x128xf32>
    %349 = arith.divf %347, %348 : vector<2x128xf32>
    %350 = vector.extract_strided_slice %318 {offsets = [0, 128], sizes = [2, 128], strides = [1, 1]} : vector<2x512xf32> to vector<2x128xf32>
    %351 = arith.negf %350 : vector<2x128xf32>
    %352 = math.exp %351 : vector<2x128xf32>
    %cst_67 = arith.constant 1.000000e+00 : f32
    %353 = vector.broadcast %cst_67 : f32 to vector<2x128xf32>
    %354 = arith.addf %353, %352 : vector<2x128xf32>
    %355 = arith.divf %353, %354 : vector<2x128xf32>
    %356 = vector.extract_strided_slice %318 {offsets = [0, 256], sizes = [2, 128], strides = [1, 1]} : vector<2x512xf32> to vector<2x128xf32>
    %357 = math.tanh %356 : vector<2x128xf32>
    %358 = vector.extract_strided_slice %318 {offsets = [0, 384], sizes = [2, 128], strides = [1, 1]} : vector<2x512xf32> to vector<2x128xf32>
    %359 = arith.negf %358 : vector<2x128xf32>
    %360 = math.exp %359 : vector<2x128xf32>
    %cst_68 = arith.constant 1.000000e+00 : f32
    %361 = vector.broadcast %cst_68 : f32 to vector<2x128xf32>
    %362 = arith.addf %361, %360 : vector<2x128xf32>
    %363 = arith.divf %361, %362 : vector<2x128xf32>
    %364 = arith.mulf %355, %307 : vector<2x128xf32>
    %365 = arith.mulf %349, %357 : vector<2x128xf32>
    %366 = arith.addf %364, %365 : vector<2x128xf32>
    %367 = math.tanh %366 : vector<2x128xf32>
    %368 = arith.mulf %363, %367 : vector<2x128xf32>
    %369 = tpu.concatenate %166, %368 in 1 : vector<2x128xf32>, vector<2x128xf32> -> vector<2x256xf32>
    %370 = tpu.concatenate %225, %309 in 1 : vector<2x128xf32>, vector<2x128xf32> -> vector<2x256xf32>
    %371 = tpu.concatenate %284, %250 in 1 : vector<2x128xf32>, vector<2x128xf32> -> vector<2x256xf32>
    %372 = tpu.concatenate %343, %191 in 1 : vector<2x128xf32>, vector<2x128xf32> -> vector<2x256xf32>
    %c0_69 = arith.constant 0 : index
    %c0_70 = arith.constant 0 : index
    %373 = vector.load %arg13[%c0_69, %c0_70] : memref<256x1024xbf16, #tpu.memory_space<vmem>>, vector<256x1024xbf16>
    %c0_71 = arith.constant 0 : index
    %c0_72 = arith.constant 0 : index
    %374 = vector.load %arg14[%c0_71, %c0_72] : memref<256x1024xbf16, #tpu.memory_space<vmem>>, vector<256x1024xbf16>
    %c0_73 = arith.constant 0 : index
    %c0_74 = arith.constant 0 : index
    %375 = vector.load %arg15[%c0_73, %c0_74] : memref<1x1024xf32, #tpu.memory_space<vmem>>, vector<1x1024xf32>
    %376 = tpu.concatenate %369, %370, %371, %372 in 0 : vector<2x256xf32>, vector<2x256xf32>, vector<2x256xf32>, vector<2x256xf32> -> vector<8x256xf32>
    %377 = arith.truncf %376 : vector<8x256xf32> to vector<8x256xbf16>
    %cst_75 = arith.constant dense<0.000000e+00> : vector<8x1024xf32>
    %378 = tpu.matmul %377, %373, %cst_75 {dimension_numbers = #tpu.dot_dimension_numbers<[1], [0], [0], [1], [0, 0, 1, 1], [], []>} : vector<8x256xbf16>, vector<256x1024xbf16>, vector<8x1024xf32> -> vector<8x1024xf32>
    %379 = vector.broadcast %375 : vector<1x1024xf32> to vector<8x1024xf32>
    %380 = arith.addf %378, %379 : vector<8x1024xf32>
    %381 = vector.extract_strided_slice %380 {offsets = [0, 0], sizes = [2, 1024], strides = [1, 1]} : vector<8x1024xf32> to vector<2x1024xf32>
    %382 = vector.extract_strided_slice %380 {offsets = [2, 0], sizes = [2, 1024], strides = [1, 1]} : vector<8x1024xf32> to vector<2x1024xf32>
    %383 = vector.extract_strided_slice %380 {offsets = [4, 0], sizes = [2, 1024], strides = [1, 1]} : vector<8x1024xf32> to vector<2x1024xf32>
    %384 = vector.extract_strided_slice %380 {offsets = [6, 0], sizes = [2, 1024], strides = [1, 1]} : vector<8x1024xf32> to vector<2x1024xf32>
    %cst_76 = arith.constant 0.000000e+00 : f32
    %385 = vector.broadcast %cst_76 : f32 to vector<2x128xf32>
    %cst_77 = arith.constant 0.000000e+00 : f32
    %386 = vector.broadcast %cst_77 : f32 to vector<2x128xf32>
    %cst_78 = arith.constant 0.000000e+00 : f32
    %387 = vector.broadcast %cst_78 : f32 to vector<2x128xf32>
    %cst_79 = arith.constant 0.000000e+00 : f32
    %388 = vector.broadcast %cst_79 : f32 to vector<2x128xf32>
    %389 = tpu.concatenate %385, %387 in 1 : vector<2x128xf32>, vector<2x128xf32> -> vector<2x256xf32>
    %390 = arith.truncf %389 : vector<2x256xf32> to vector<2x256xbf16>
    %cst_80 = arith.constant dense<0.000000e+00> : vector<2x1024xf32>
    %391 = tpu.matmul %390, %374, %cst_80 {dimension_numbers = #tpu.dot_dimension_numbers<[1], [0], [0], [1], [0, 0, 1, 1], [], []>} : vector<2x256xbf16>, vector<256x1024xbf16>, vector<2x1024xf32> -> vector<2x1024xf32>
    %392 = vector.extract_strided_slice %391 {offsets = [0, 0], sizes = [2, 512], strides = [1, 1]} : vector<2x1024xf32> to vector<2x512xf32>
    %393 = vector.extract_strided_slice %381 {offsets = [0, 0], sizes = [2, 512], strides = [1, 1]} : vector<2x1024xf32> to vector<2x512xf32>
    %394 = arith.addf %392, %393 : vector<2x512xf32>
    %395 = vector.extract_strided_slice %391 {offsets = [0, 512], sizes = [2, 512], strides = [1, 1]} : vector<2x1024xf32> to vector<2x512xf32>
    %396 = vector.extract_strided_slice %384 {offsets = [0, 512], sizes = [2, 512], strides = [1, 1]} : vector<2x1024xf32> to vector<2x512xf32>
    %397 = arith.addf %395, %396 : vector<2x512xf32>
    %398 = vector.extract_strided_slice %394 {offsets = [0, 0], sizes = [2, 128], strides = [1, 1]} : vector<2x512xf32> to vector<2x128xf32>
    %399 = arith.negf %398 : vector<2x128xf32>
    %400 = math.exp %399 : vector<2x128xf32>
    %cst_81 = arith.constant 1.000000e+00 : f32
    %401 = vector.broadcast %cst_81 : f32 to vector<2x128xf32>
    %402 = arith.addf %401, %400 : vector<2x128xf32>
    %403 = arith.divf %401, %402 : vector<2x128xf32>
    %404 = vector.extract_strided_slice %394 {offsets = [0, 128], sizes = [2, 128], strides = [1, 1]} : vector<2x512xf32> to vector<2x128xf32>
    %405 = arith.negf %404 : vector<2x128xf32>
    %406 = math.exp %405 : vector<2x128xf32>
    %cst_82 = arith.constant 1.000000e+00 : f32
    %407 = vector.broadcast %cst_82 : f32 to vector<2x128xf32>
    %408 = arith.addf %407, %406 : vector<2x128xf32>
    %409 = arith.divf %407, %408 : vector<2x128xf32>
    %410 = vector.extract_strided_slice %394 {offsets = [0, 256], sizes = [2, 128], strides = [1, 1]} : vector<2x512xf32> to vector<2x128xf32>
    %411 = math.tanh %410 : vector<2x128xf32>
    %412 = vector.extract_strided_slice %394 {offsets = [0, 384], sizes = [2, 128], strides = [1, 1]} : vector<2x512xf32> to vector<2x128xf32>
    %413 = arith.negf %412 : vector<2x128xf32>
    %414 = math.exp %413 : vector<2x128xf32>
    %cst_83 = arith.constant 1.000000e+00 : f32
    %415 = vector.broadcast %cst_83 : f32 to vector<2x128xf32>
    %416 = arith.addf %415, %414 : vector<2x128xf32>
    %417 = arith.divf %415, %416 : vector<2x128xf32>
    %418 = arith.mulf %409, %386 : vector<2x128xf32>
    %419 = arith.mulf %403, %411 : vector<2x128xf32>
    %420 = arith.addf %418, %419 : vector<2x128xf32>
    %421 = math.tanh %420 : vector<2x128xf32>
    %422 = arith.mulf %417, %421 : vector<2x128xf32>
    %423 = vector.extract_strided_slice %397 {offsets = [0, 0], sizes = [2, 128], strides = [1, 1]} : vector<2x512xf32> to vector<2x128xf32>
    %424 = arith.negf %423 : vector<2x128xf32>
    %425 = math.exp %424 : vector<2x128xf32>
    %cst_84 = arith.constant 1.000000e+00 : f32
    %426 = vector.broadcast %cst_84 : f32 to vector<2x128xf32>
    %427 = arith.addf %426, %425 : vector<2x128xf32>
    %428 = arith.divf %426, %427 : vector<2x128xf32>
    %429 = vector.extract_strided_slice %397 {offsets = [0, 128], sizes = [2, 128], strides = [1, 1]} : vector<2x512xf32> to vector<2x128xf32>
    %430 = arith.negf %429 : vector<2x128xf32>
    %431 = math.exp %430 : vector<2x128xf32>
    %cst_85 = arith.constant 1.000000e+00 : f32
    %432 = vector.broadcast %cst_85 : f32 to vector<2x128xf32>
    %433 = arith.addf %432, %431 : vector<2x128xf32>
    %434 = arith.divf %432, %433 : vector<2x128xf32>
    %435 = vector.extract_strided_slice %397 {offsets = [0, 256], sizes = [2, 128], strides = [1, 1]} : vector<2x512xf32> to vector<2x128xf32>
    %436 = math.tanh %435 : vector<2x128xf32>
    %437 = vector.extract_strided_slice %397 {offsets = [0, 384], sizes = [2, 128], strides = [1, 1]} : vector<2x512xf32> to vector<2x128xf32>
    %438 = arith.negf %437 : vector<2x128xf32>
    %439 = math.exp %438 : vector<2x128xf32>
    %cst_86 = arith.constant 1.000000e+00 : f32
    %440 = vector.broadcast %cst_86 : f32 to vector<2x128xf32>
    %441 = arith.addf %440, %439 : vector<2x128xf32>
    %442 = arith.divf %440, %441 : vector<2x128xf32>
    %443 = arith.mulf %434, %388 : vector<2x128xf32>
    %444 = arith.mulf %428, %436 : vector<2x128xf32>
    %445 = arith.addf %443, %444 : vector<2x128xf32>
    %446 = math.tanh %445 : vector<2x128xf32>
    %447 = arith.mulf %442, %446 : vector<2x128xf32>
    %448 = tpu.concatenate %422, %447 in 1 : vector<2x128xf32>, vector<2x128xf32> -> vector<2x256xf32>
    %449 = arith.truncf %448 : vector<2x256xf32> to vector<2x256xbf16>
    %cst_87 = arith.constant dense<0.000000e+00> : vector<2x1024xf32>
    %450 = tpu.matmul %449, %374, %cst_87 {dimension_numbers = #tpu.dot_dimension_numbers<[1], [0], [0], [1], [0, 0, 1, 1], [], []>} : vector<2x256xbf16>, vector<256x1024xbf16>, vector<2x1024xf32> -> vector<2x1024xf32>
    %451 = vector.extract_strided_slice %450 {offsets = [0, 0], sizes = [2, 512], strides = [1, 1]} : vector<2x1024xf32> to vector<2x512xf32>
    %452 = vector.extract_strided_slice %382 {offsets = [0, 0], sizes = [2, 512], strides = [1, 1]} : vector<2x1024xf32> to vector<2x512xf32>
    %453 = arith.addf %451, %452 : vector<2x512xf32>
    %454 = vector.extract_strided_slice %450 {offsets = [0, 512], sizes = [2, 512], strides = [1, 1]} : vector<2x1024xf32> to vector<2x512xf32>
    %455 = vector.extract_strided_slice %383 {offsets = [0, 512], sizes = [2, 512], strides = [1, 1]} : vector<2x1024xf32> to vector<2x512xf32>
    %456 = arith.addf %454, %455 : vector<2x512xf32>
    %457 = vector.extract_strided_slice %453 {offsets = [0, 0], sizes = [2, 128], strides = [1, 1]} : vector<2x512xf32> to vector<2x128xf32>
    %458 = arith.negf %457 : vector<2x128xf32>
    %459 = math.exp %458 : vector<2x128xf32>
    %cst_88 = arith.constant 1.000000e+00 : f32
    %460 = vector.broadcast %cst_88 : f32 to vector<2x128xf32>
    %461 = arith.addf %460, %459 : vector<2x128xf32>
    %462 = arith.divf %460, %461 : vector<2x128xf32>
    %463 = vector.extract_strided_slice %453 {offsets = [0, 128], sizes = [2, 128], strides = [1, 1]} : vector<2x512xf32> to vector<2x128xf32>
    %464 = arith.negf %463 : vector<2x128xf32>
    %465 = math.exp %464 : vector<2x128xf32>
    %cst_89 = arith.constant 1.000000e+00 : f32
    %466 = vector.broadcast %cst_89 : f32 to vector<2x128xf32>
    %467 = arith.addf %466, %465 : vector<2x128xf32>
    %468 = arith.divf %466, %467 : vector<2x128xf32>
    %469 = vector.extract_strided_slice %453 {offsets = [0, 256], sizes = [2, 128], strides = [1, 1]} : vector<2x512xf32> to vector<2x128xf32>
    %470 = math.tanh %469 : vector<2x128xf32>
    %471 = vector.extract_strided_slice %453 {offsets = [0, 384], sizes = [2, 128], strides = [1, 1]} : vector<2x512xf32> to vector<2x128xf32>
    %472 = arith.negf %471 : vector<2x128xf32>
    %473 = math.exp %472 : vector<2x128xf32>
    %cst_90 = arith.constant 1.000000e+00 : f32
    %474 = vector.broadcast %cst_90 : f32 to vector<2x128xf32>
    %475 = arith.addf %474, %473 : vector<2x128xf32>
    %476 = arith.divf %474, %475 : vector<2x128xf32>
    %477 = arith.mulf %468, %420 : vector<2x128xf32>
    %478 = arith.mulf %462, %470 : vector<2x128xf32>
    %479 = arith.addf %477, %478 : vector<2x128xf32>
    %480 = math.tanh %479 : vector<2x128xf32>
    %481 = arith.mulf %476, %480 : vector<2x128xf32>
    %482 = vector.extract_strided_slice %456 {offsets = [0, 0], sizes = [2, 128], strides = [1, 1]} : vector<2x512xf32> to vector<2x128xf32>
    %483 = arith.negf %482 : vector<2x128xf32>
    %484 = math.exp %483 : vector<2x128xf32>
    %cst_91 = arith.constant 1.000000e+00 : f32
    %485 = vector.broadcast %cst_91 : f32 to vector<2x128xf32>
    %486 = arith.addf %485, %484 : vector<2x128xf32>
    %487 = arith.divf %485, %486 : vector<2x128xf32>
    %488 = vector.extract_strided_slice %456 {offsets = [0, 128], sizes = [2, 128], strides = [1, 1]} : vector<2x512xf32> to vector<2x128xf32>
    %489 = arith.negf %488 : vector<2x128xf32>
    %490 = math.exp %489 : vector<2x128xf32>
    %cst_92 = arith.constant 1.000000e+00 : f32
    %491 = vector.broadcast %cst_92 : f32 to vector<2x128xf32>
    %492 = arith.addf %491, %490 : vector<2x128xf32>
    %493 = arith.divf %491, %492 : vector<2x128xf32>
    %494 = vector.extract_strided_slice %456 {offsets = [0, 256], sizes = [2, 128], strides = [1, 1]} : vector<2x512xf32> to vector<2x128xf32>
    %495 = math.tanh %494 : vector<2x128xf32>
    %496 = vector.extract_strided_slice %456 {offsets = [0, 384], sizes = [2, 128], strides = [1, 1]} : vector<2x512xf32> to vector<2x128xf32>
    %497 = arith.negf %496 : vector<2x128xf32>
    %498 = math.exp %497 : vector<2x128xf32>
    %cst_93 = arith.constant 1.000000e+00 : f32
    %499 = vector.broadcast %cst_93 : f32 to vector<2x128xf32>
    %500 = arith.addf %499, %498 : vector<2x128xf32>
    %501 = arith.divf %499, %500 : vector<2x128xf32>
    %502 = arith.mulf %493, %445 : vector<2x128xf32>
    %503 = arith.mulf %487, %495 : vector<2x128xf32>
    %504 = arith.addf %502, %503 : vector<2x128xf32>
    %505 = math.tanh %504 : vector<2x128xf32>
    %506 = arith.mulf %501, %505 : vector<2x128xf32>
    %507 = tpu.concatenate %481, %506 in 1 : vector<2x128xf32>, vector<2x128xf32> -> vector<2x256xf32>
    %508 = arith.truncf %507 : vector<2x256xf32> to vector<2x256xbf16>
    %cst_94 = arith.constant dense<0.000000e+00> : vector<2x1024xf32>
    %509 = tpu.matmul %508, %374, %cst_94 {dimension_numbers = #tpu.dot_dimension_numbers<[1], [0], [0], [1], [0, 0, 1, 1], [], []>} : vector<2x256xbf16>, vector<256x1024xbf16>, vector<2x1024xf32> -> vector<2x1024xf32>
    %510 = vector.extract_strided_slice %509 {offsets = [0, 0], sizes = [2, 512], strides = [1, 1]} : vector<2x1024xf32> to vector<2x512xf32>
    %511 = vector.extract_strided_slice %383 {offsets = [0, 0], sizes = [2, 512], strides = [1, 1]} : vector<2x1024xf32> to vector<2x512xf32>
    %512 = arith.addf %510, %511 : vector<2x512xf32>
    %513 = vector.extract_strided_slice %509 {offsets = [0, 512], sizes = [2, 512], strides = [1, 1]} : vector<2x1024xf32> to vector<2x512xf32>
    %514 = vector.extract_strided_slice %382 {offsets = [0, 512], sizes = [2, 512], strides = [1, 1]} : vector<2x1024xf32> to vector<2x512xf32>
    %515 = arith.addf %513, %514 : vector<2x512xf32>
    %516 = vector.extract_strided_slice %512 {offsets = [0, 0], sizes = [2, 128], strides = [1, 1]} : vector<2x512xf32> to vector<2x128xf32>
    %517 = arith.negf %516 : vector<2x128xf32>
    %518 = math.exp %517 : vector<2x128xf32>
    %cst_95 = arith.constant 1.000000e+00 : f32
    %519 = vector.broadcast %cst_95 : f32 to vector<2x128xf32>
    %520 = arith.addf %519, %518 : vector<2x128xf32>
    %521 = arith.divf %519, %520 : vector<2x128xf32>
    %522 = vector.extract_strided_slice %512 {offsets = [0, 128], sizes = [2, 128], strides = [1, 1]} : vector<2x512xf32> to vector<2x128xf32>
    %523 = arith.negf %522 : vector<2x128xf32>
    %524 = math.exp %523 : vector<2x128xf32>
    %cst_96 = arith.constant 1.000000e+00 : f32
    %525 = vector.broadcast %cst_96 : f32 to vector<2x128xf32>
    %526 = arith.addf %525, %524 : vector<2x128xf32>
    %527 = arith.divf %525, %526 : vector<2x128xf32>
    %528 = vector.extract_strided_slice %512 {offsets = [0, 256], sizes = [2, 128], strides = [1, 1]} : vector<2x512xf32> to vector<2x128xf32>
    %529 = math.tanh %528 : vector<2x128xf32>
    %530 = vector.extract_strided_slice %512 {offsets = [0, 384], sizes = [2, 128], strides = [1, 1]} : vector<2x512xf32> to vector<2x128xf32>
    %531 = arith.negf %530 : vector<2x128xf32>
    %532 = math.exp %531 : vector<2x128xf32>
    %cst_97 = arith.constant 1.000000e+00 : f32
    %533 = vector.broadcast %cst_97 : f32 to vector<2x128xf32>
    %534 = arith.addf %533, %532 : vector<2x128xf32>
    %535 = arith.divf %533, %534 : vector<2x128xf32>
    %536 = arith.mulf %527, %479 : vector<2x128xf32>
    %537 = arith.mulf %521, %529 : vector<2x128xf32>
    %538 = arith.addf %536, %537 : vector<2x128xf32>
    %539 = math.tanh %538 : vector<2x128xf32>
    %540 = arith.mulf %535, %539 : vector<2x128xf32>
    %541 = vector.extract_strided_slice %515 {offsets = [0, 0], sizes = [2, 128], strides = [1, 1]} : vector<2x512xf32> to vector<2x128xf32>
    %542 = arith.negf %541 : vector<2x128xf32>
    %543 = math.exp %542 : vector<2x128xf32>
    %cst_98 = arith.constant 1.000000e+00 : f32
    %544 = vector.broadcast %cst_98 : f32 to vector<2x128xf32>
    %545 = arith.addf %544, %543 : vector<2x128xf32>
    %546 = arith.divf %544, %545 : vector<2x128xf32>
    %547 = vector.extract_strided_slice %515 {offsets = [0, 128], sizes = [2, 128], strides = [1, 1]} : vector<2x512xf32> to vector<2x128xf32>
    %548 = arith.negf %547 : vector<2x128xf32>
    %549 = math.exp %548 : vector<2x128xf32>
    %cst_99 = arith.constant 1.000000e+00 : f32
    %550 = vector.broadcast %cst_99 : f32 to vector<2x128xf32>
    %551 = arith.addf %550, %549 : vector<2x128xf32>
    %552 = arith.divf %550, %551 : vector<2x128xf32>
    %553 = vector.extract_strided_slice %515 {offsets = [0, 256], sizes = [2, 128], strides = [1, 1]} : vector<2x512xf32> to vector<2x128xf32>
    %554 = math.tanh %553 : vector<2x128xf32>
    %555 = vector.extract_strided_slice %515 {offsets = [0, 384], sizes = [2, 128], strides = [1, 1]} : vector<2x512xf32> to vector<2x128xf32>
    %556 = arith.negf %555 : vector<2x128xf32>
    %557 = math.exp %556 : vector<2x128xf32>
    %cst_100 = arith.constant 1.000000e+00 : f32
    %558 = vector.broadcast %cst_100 : f32 to vector<2x128xf32>
    %559 = arith.addf %558, %557 : vector<2x128xf32>
    %560 = arith.divf %558, %559 : vector<2x128xf32>
    %561 = arith.mulf %552, %504 : vector<2x128xf32>
    %562 = arith.mulf %546, %554 : vector<2x128xf32>
    %563 = arith.addf %561, %562 : vector<2x128xf32>
    %564 = math.tanh %563 : vector<2x128xf32>
    %565 = arith.mulf %560, %564 : vector<2x128xf32>
    %566 = tpu.concatenate %540, %565 in 1 : vector<2x128xf32>, vector<2x128xf32> -> vector<2x256xf32>
    %567 = arith.truncf %566 : vector<2x256xf32> to vector<2x256xbf16>
    %cst_101 = arith.constant dense<0.000000e+00> : vector<2x1024xf32>
    %568 = tpu.matmul %567, %374, %cst_101 {dimension_numbers = #tpu.dot_dimension_numbers<[1], [0], [0], [1], [0, 0, 1, 1], [], []>} : vector<2x256xbf16>, vector<256x1024xbf16>, vector<2x1024xf32> -> vector<2x1024xf32>
    %569 = vector.extract_strided_slice %568 {offsets = [0, 0], sizes = [2, 512], strides = [1, 1]} : vector<2x1024xf32> to vector<2x512xf32>
    %570 = vector.extract_strided_slice %384 {offsets = [0, 0], sizes = [2, 512], strides = [1, 1]} : vector<2x1024xf32> to vector<2x512xf32>
    %571 = arith.addf %569, %570 : vector<2x512xf32>
    %572 = vector.extract_strided_slice %568 {offsets = [0, 512], sizes = [2, 512], strides = [1, 1]} : vector<2x1024xf32> to vector<2x512xf32>
    %573 = vector.extract_strided_slice %381 {offsets = [0, 512], sizes = [2, 512], strides = [1, 1]} : vector<2x1024xf32> to vector<2x512xf32>
    %574 = arith.addf %572, %573 : vector<2x512xf32>
    %575 = vector.extract_strided_slice %571 {offsets = [0, 0], sizes = [2, 128], strides = [1, 1]} : vector<2x512xf32> to vector<2x128xf32>
    %576 = arith.negf %575 : vector<2x128xf32>
    %577 = math.exp %576 : vector<2x128xf32>
    %cst_102 = arith.constant 1.000000e+00 : f32
    %578 = vector.broadcast %cst_102 : f32 to vector<2x128xf32>
    %579 = arith.addf %578, %577 : vector<2x128xf32>
    %580 = arith.divf %578, %579 : vector<2x128xf32>
    %581 = vector.extract_strided_slice %571 {offsets = [0, 128], sizes = [2, 128], strides = [1, 1]} : vector<2x512xf32> to vector<2x128xf32>
    %582 = arith.negf %581 : vector<2x128xf32>
    %583 = math.exp %582 : vector<2x128xf32>
    %cst_103 = arith.constant 1.000000e+00 : f32
    %584 = vector.broadcast %cst_103 : f32 to vector<2x128xf32>
    %585 = arith.addf %584, %583 : vector<2x128xf32>
    %586 = arith.divf %584, %585 : vector<2x128xf32>
    %587 = vector.extract_strided_slice %571 {offsets = [0, 256], sizes = [2, 128], strides = [1, 1]} : vector<2x512xf32> to vector<2x128xf32>
    %588 = math.tanh %587 : vector<2x128xf32>
    %589 = vector.extract_strided_slice %571 {offsets = [0, 384], sizes = [2, 128], strides = [1, 1]} : vector<2x512xf32> to vector<2x128xf32>
    %590 = arith.negf %589 : vector<2x128xf32>
    %591 = math.exp %590 : vector<2x128xf32>
    %cst_104 = arith.constant 1.000000e+00 : f32
    %592 = vector.broadcast %cst_104 : f32 to vector<2x128xf32>
    %593 = arith.addf %592, %591 : vector<2x128xf32>
    %594 = arith.divf %592, %593 : vector<2x128xf32>
    %595 = arith.mulf %586, %538 : vector<2x128xf32>
    %596 = arith.mulf %580, %588 : vector<2x128xf32>
    %597 = arith.addf %595, %596 : vector<2x128xf32>
    %598 = math.tanh %597 : vector<2x128xf32>
    %599 = arith.mulf %594, %598 : vector<2x128xf32>
    %600 = vector.extract_strided_slice %574 {offsets = [0, 0], sizes = [2, 128], strides = [1, 1]} : vector<2x512xf32> to vector<2x128xf32>
    %601 = arith.negf %600 : vector<2x128xf32>
    %602 = math.exp %601 : vector<2x128xf32>
    %cst_105 = arith.constant 1.000000e+00 : f32
    %603 = vector.broadcast %cst_105 : f32 to vector<2x128xf32>
    %604 = arith.addf %603, %602 : vector<2x128xf32>
    %605 = arith.divf %603, %604 : vector<2x128xf32>
    %606 = vector.extract_strided_slice %574 {offsets = [0, 128], sizes = [2, 128], strides = [1, 1]} : vector<2x512xf32> to vector<2x128xf32>
    %607 = arith.negf %606 : vector<2x128xf32>
    %608 = math.exp %607 : vector<2x128xf32>
    %cst_106 = arith.constant 1.000000e+00 : f32
    %609 = vector.broadcast %cst_106 : f32 to vector<2x128xf32>
    %610 = arith.addf %609, %608 : vector<2x128xf32>
    %611 = arith.divf %609, %610 : vector<2x128xf32>
    %612 = vector.extract_strided_slice %574 {offsets = [0, 256], sizes = [2, 128], strides = [1, 1]} : vector<2x512xf32> to vector<2x128xf32>
    %613 = math.tanh %612 : vector<2x128xf32>
    %614 = vector.extract_strided_slice %574 {offsets = [0, 384], sizes = [2, 128], strides = [1, 1]} : vector<2x512xf32> to vector<2x128xf32>
    %615 = arith.negf %614 : vector<2x128xf32>
    %616 = math.exp %615 : vector<2x128xf32>
    %cst_107 = arith.constant 1.000000e+00 : f32
    %617 = vector.broadcast %cst_107 : f32 to vector<2x128xf32>
    %618 = arith.addf %617, %616 : vector<2x128xf32>
    %619 = arith.divf %617, %618 : vector<2x128xf32>
    %620 = arith.mulf %611, %563 : vector<2x128xf32>
    %621 = arith.mulf %605, %613 : vector<2x128xf32>
    %622 = arith.addf %620, %621 : vector<2x128xf32>
    %623 = math.tanh %622 : vector<2x128xf32>
    %624 = arith.mulf %619, %623 : vector<2x128xf32>
    %625 = tpu.concatenate %422, %624 in 1 : vector<2x128xf32>, vector<2x128xf32> -> vector<2x256xf32>
    %626 = tpu.concatenate %481, %565 in 1 : vector<2x128xf32>, vector<2x128xf32> -> vector<2x256xf32>
    %627 = tpu.concatenate %540, %506 in 1 : vector<2x128xf32>, vector<2x128xf32> -> vector<2x256xf32>
    %628 = tpu.concatenate %599, %447 in 1 : vector<2x128xf32>, vector<2x128xf32> -> vector<2x256xf32>
    %629 = vector.extract_strided_slice %625 {offsets = [0, 0], sizes = [1, 256], strides = [1, 1]} : vector<2x256xf32> to vector<1x256xf32>
    %630 = vector.extract_strided_slice %626 {offsets = [0, 0], sizes = [1, 256], strides = [1, 1]} : vector<2x256xf32> to vector<1x256xf32>
    %631 = vector.extract_strided_slice %627 {offsets = [0, 0], sizes = [1, 256], strides = [1, 1]} : vector<2x256xf32> to vector<1x256xf32>
    %632 = vector.extract_strided_slice %628 {offsets = [0, 0], sizes = [1, 256], strides = [1, 1]} : vector<2x256xf32> to vector<1x256xf32>
    %633 = tpu.concatenate %629, %630, %631, %632 in 0 : vector<1x256xf32>, vector<1x256xf32>, vector<1x256xf32>, vector<1x256xf32> -> vector<4x256xf32>
    %634 = vector.extract_strided_slice %625 {offsets = [1, 0], sizes = [1, 256], strides = [1, 1]} : vector<2x256xf32> to vector<1x256xf32>
    %635 = vector.extract_strided_slice %626 {offsets = [1, 0], sizes = [1, 256], strides = [1, 1]} : vector<2x256xf32> to vector<1x256xf32>
    %636 = vector.extract_strided_slice %627 {offsets = [1, 0], sizes = [1, 256], strides = [1, 1]} : vector<2x256xf32> to vector<1x256xf32>
    %637 = vector.extract_strided_slice %628 {offsets = [1, 0], sizes = [1, 256], strides = [1, 1]} : vector<2x256xf32> to vector<1x256xf32>
    %638 = tpu.concatenate %634, %635, %636, %637 in 0 : vector<1x256xf32>, vector<1x256xf32>, vector<1x256xf32>, vector<1x256xf32> -> vector<4x256xf32>
    %639 = tpu.concatenate %633, %638 in 0 : vector<4x256xf32>, vector<4x256xf32> -> vector<8x256xf32>
    %c0_108 = arith.constant 0 : index
    %c0_109 = arith.constant 0 : index
    %640 = vector.load %arg16[%c0_108, %c0_109] : memref<256x256xbf16, #tpu.memory_space<vmem>>, vector<256x256xbf16>
    %641 = arith.truncf %639 : vector<8x256xf32> to vector<8x256xbf16>
    %cst_110 = arith.constant dense<0.000000e+00> : vector<8x256xf32>
    %642 = tpu.matmul %641, %640, %cst_110 {dimension_numbers = #tpu.dot_dimension_numbers<[1], [0], [0], [1], [0, 0, 1, 1], [], []>} : vector<8x256xbf16>, vector<256x256xbf16>, vector<8x256xf32> -> vector<8x256xf32>
    %c0_111 = arith.constant 0 : index
    %c0_112 = arith.constant 0 : index
    %643 = vector.load %arg17[%c0_111, %c0_112] : memref<1x256xf32, #tpu.memory_space<vmem>>, vector<1x256xf32>
    %644 = vector.broadcast %643 : vector<1x256xf32> to vector<8x256xf32>
    %645 = arith.addf %642, %644 : vector<8x256xf32>
    %646 = math.tanh %645 : vector<8x256xf32>
    %c0_113 = arith.constant 0 : index
    %c0_114 = arith.constant 0 : index
    %647 = vector.load %arg18[%c0_113, %c0_114] : memref<1x256xf32, #tpu.memory_space<vmem>>, vector<1x256xf32>
    %648 = vector.broadcast %647 : vector<1x256xf32> to vector<8x256xf32>
    %649 = arith.mulf %646, %648 : vector<8x256xf32>
    %cst_115 = arith.constant dense<0.000000e+00> : vector<8xf32>
    %650 = vector.multi_reduction <add>, %649, %cst_115 [1] : vector<8x256xf32> to vector<8xf32>
    %651 = vector.shape_cast %650 : vector<8xf32> to vector<8x1xf32>
    %c0_116 = arith.constant 0 : index
    %c0_117 = arith.constant 0 : index
    %652 = vector.load %arg19[%c0_116, %c0_117] : memref<1x1xf32, #tpu.memory_space<vmem>>, vector<1x1xf32>
    %653 = vector.broadcast %652 : vector<1x1xf32> to vector<8x1xf32>
    %654 = arith.addf %651, %653 : vector<8x1xf32>
    %655 = vector.extract_strided_slice %654 {offsets = [0, 0], sizes = [4, 1], strides = [1, 1]} : vector<8x1xf32> to vector<4x1xf32>
    %cst_118 = arith.constant dense<0xFF800000> : vector<1xf32>
    %656 = vector.multi_reduction <maximumf>, %655, %cst_118 [0] : vector<4x1xf32> to vector<1xf32>
    %657 = vector.shape_cast %656 : vector<1xf32> to vector<1x1xf32>
    %658 = vector.broadcast %657 : vector<1x1xf32> to vector<4x1xf32>
    %659 = arith.subf %655, %658 : vector<4x1xf32>
    %660 = math.exp %659 : vector<4x1xf32>
    %cst_119 = arith.constant dense<0.000000e+00> : vector<1xf32>
    %661 = vector.multi_reduction <add>, %660, %cst_119 [0] : vector<4x1xf32> to vector<1xf32>
    %662 = vector.shape_cast %661 : vector<1xf32> to vector<1x1xf32>
    %663 = vector.broadcast %662 : vector<1x1xf32> to vector<4x1xf32>
    %664 = arith.divf %660, %663 : vector<4x1xf32>
    %665 = vector.broadcast %664 : vector<4x1xf32> to vector<4x256xf32>
    %666 = arith.mulf %665, %633 : vector<4x256xf32>
    %cst_120 = arith.constant dense<0.000000e+00> : vector<256xf32>
    %667 = vector.multi_reduction <add>, %666, %cst_120 [0] : vector<4x256xf32> to vector<256xf32>
    %668 = vector.shape_cast %667 : vector<256xf32> to vector<1x256xf32>
    %669 = vector.extract_strided_slice %654 {offsets = [4, 0], sizes = [4, 1], strides = [1, 1]} : vector<8x1xf32> to vector<4x1xf32>
    %cst_121 = arith.constant dense<0xFF800000> : vector<1xf32>
    %670 = vector.multi_reduction <maximumf>, %669, %cst_121 [0] : vector<4x1xf32> to vector<1xf32>
    %671 = vector.shape_cast %670 : vector<1xf32> to vector<1x1xf32>
    %672 = vector.broadcast %671 : vector<1x1xf32> to vector<4x1xf32>
    %673 = arith.subf %669, %672 : vector<4x1xf32>
    %674 = math.exp %673 : vector<4x1xf32>
    %cst_122 = arith.constant dense<0.000000e+00> : vector<1xf32>
    %675 = vector.multi_reduction <add>, %674, %cst_122 [0] : vector<4x1xf32> to vector<1xf32>
    %676 = vector.shape_cast %675 : vector<1xf32> to vector<1x1xf32>
    %677 = vector.broadcast %676 : vector<1x1xf32> to vector<4x1xf32>
    %678 = arith.divf %674, %677 : vector<4x1xf32>
    %679 = vector.broadcast %678 : vector<4x1xf32> to vector<4x256xf32>
    %680 = arith.mulf %679, %638 : vector<4x256xf32>
    %cst_123 = arith.constant dense<0.000000e+00> : vector<256xf32>
    %681 = vector.multi_reduction <add>, %680, %cst_123 [0] : vector<4x256xf32> to vector<256xf32>
    %682 = vector.shape_cast %681 : vector<256xf32> to vector<1x256xf32>
    %683 = tpu.concatenate %668, %682 in 0 : vector<1x256xf32>, vector<1x256xf32> -> vector<2x256xf32>
    %c0_124 = arith.constant 0 : index
    %c0_125 = arith.constant 0 : index
    %684 = vector.load %arg20[%c0_124, %c0_125] : memref<256x128xbf16, #tpu.memory_space<vmem>>, vector<256x128xbf16>
    %685 = arith.truncf %683 : vector<2x256xf32> to vector<2x256xbf16>
    %cst_126 = arith.constant dense<0.000000e+00> : vector<2x128xf32>
    %686 = tpu.matmul %685, %684, %cst_126 {dimension_numbers = #tpu.dot_dimension_numbers<[1], [0], [0], [1], [0, 0, 1, 1], [], []>} : vector<2x256xbf16>, vector<256x128xbf16>, vector<2x128xf32> -> vector<2x128xf32>
    %c0_127 = arith.constant 0 : index
    %c0_128 = arith.constant 0 : index
    %687 = vector.load %arg21[%c0_127, %c0_128] : memref<1x128xf32, #tpu.memory_space<vmem>>, vector<1x128xf32>
    %688 = vector.broadcast %687 : vector<1x128xf32> to vector<2x128xf32>
    %689 = arith.addf %686, %688 : vector<2x128xf32>
    %cst_129 = arith.constant 0.000000e+00 : f32
    %690 = vector.broadcast %cst_129 : f32 to vector<2x128xf32>
    %691 = arith.maximumf %689, %690 : vector<2x128xf32>
    %c0_130 = arith.constant 0 : index
    %c0_131 = arith.constant 0 : index
    %692 = vector.load %arg22[%c0_130, %c0_131] : memref<1x128xf32, #tpu.memory_space<vmem>>, vector<1x128xf32>
    %693 = vector.broadcast %692 : vector<1x128xf32> to vector<2x128xf32>
    %694 = arith.mulf %691, %693 : vector<2x128xf32>
    %cst_132 = arith.constant dense<0.000000e+00> : vector<2xf32>
    %695 = vector.multi_reduction <add>, %694, %cst_132 [1] : vector<2x128xf32> to vector<2xf32>
    %696 = vector.shape_cast %695 : vector<2xf32> to vector<2x1xf32>
    %c0_133 = arith.constant 0 : index
    %c0_134 = arith.constant 0 : index
    %697 = vector.load %arg23[%c0_133, %c0_134] : memref<1x1xf32, #tpu.memory_space<vmem>>, vector<1x1xf32>
    %698 = vector.broadcast %697 : vector<1x1xf32> to vector<2x1xf32>
    %699 = arith.addf %696, %698 : vector<2x1xf32>
    %c0_135 = arith.constant 0 : index
    %c0_136 = arith.constant 0 : index
    %700 = vector.load %arg24[%c0_135, %c0_136] : memref<2x1xf32, #tpu.memory_space<vmem>>, vector<2x1xf32>
    tpu.vector_store %arg24[%c0_135, %c0_136], %699 {strides = array<i32>} : memref<2x1xf32, #tpu.memory_space<vmem>>, vector<2x1xf32>,
    return
  }
}

</mosaic_0001>

<bundles_post_ra>
// kernel: hybrid_forward.1
= control target key start
LH: loop header
LB: loop body
LE: loop exit
PB: predicated region body
PF: predicated region fallthrough
CT: control target
= control target key end

     0   :  { %s10749_s0 = inlined_call_operand.vmem [shape: f32[2,8,4], index: 0, kind: input, shape index: {}]   ;;  %s10750_s1 = inlined_call_operand.vmem [shape: bf16[12,64], index: 1, kind: input, shape index: {}]   ;;  %s10751_s2 = inlined_call_operand.vmem [shape: f32[1,64], index: 2, kind: input, shape index: {}]   ;;  %s10752_s3 = inlined_call_operand.vmem [shape: f32[1,64], index: 3, kind: input, shape index: {}]   ;;  %s10753_s4 = inlined_call_operand.hbm [shape: bf16[192,128], index: 4, kind: input, shape index: {}]   ;;  %s10754_s5 = inlined_call_operand.vmem [shape: f32[1,128], index: 5, kind: input, shape index: {}]   ;;  %s10755_s6 = inlined_call_operand.vmem [shape: f32[1,128], index: 6, kind: input, shape index: {}]   ;;  %s10756_s7 = inlined_call_operand.hbm [shape: bf16[384,256], index: 7, kind: input, shape index: {}]   ;;  %s10757_s8 = inlined_call_operand.vmem [shape: f32[1,256], index: 8, kind: input, shape index: {}]   ;;  %s10758_s9 = inlined_call_operand.vmem [shape: f32[1,256], index: 9, kind: input, shape index: {}]   ;;  %s10759_s10 = inlined_call_operand.hbm [shape: bf16[256,1024], index: 10, kind: input, shape index: {}]   ;;  %s10760_s11 = inlined_call_operand.hbm [shape: bf16[256,1024], index: 11, kind: input, shape index: {}]   ;;  %s10761_s12 = inlined_call_operand.vmem [shape: f32[1,1024], index: 12, kind: input, shape index: {}]   ;;  %s10762_s13 = inlined_call_operand.hbm [shape: bf16[256,1024], index: 13, kind: input, shape index: {}]   ;;  %s10763_s14 = inlined_call_operand.hbm [shape: bf16[256,1024], index: 14, kind: input, shape index: {}]   ;;  %s10764_s15 = inlined_call_operand.vmem [shape: f32[1,1024], index: 15, kind: input, shape index: {}]   ;;  %s10765_s16 = inlined_call_operand.hbm [shape: bf16[256,256], index: 16, kind: input, shape index: {}]   ;;  %s10766_s17 = inlined_call_operand.vmem [shape: f32[1,256], index: 17, kind: input, shape index: {}]   ;;  %s10767_s18 = inlined_call_operand.vmem [shape: f32[1,256], index: 18, kind: input, shape index: {}]   ;;  %s10768_s19 = inlined_call_operand.<no memory space> [shape: f32[1,1], index: 19, kind: input, shape index: {}]   ;;  %s10769_s20 = inlined_call_operand.hbm [shape: bf16[256,128], index: 20, kind: input, shape index: {}]   ;;  %s10770_s21 = inlined_call_operand.vmem [shape: f32[1,128], index: 21, kind: input, shape index: {}]   ;;  %s10771_s22 = inlined_call_operand.vmem [shape: f32[1,128], index: 22, kind: input, shape index: {}]   ;;  %s10772_s24 = inlined_call_operand.vmem [shape: f32[2,1], index: 24, kind: output, shape index: {}]   ;;  %s10773_s23 = inlined_call_operand.<no memory space> [shape: f32[1,1], index: 23, kind: input, shape index: {}]  }
   0x1   :  { %11271 = sst [smem:[#allocation157_spill]] %s10749_s0  ;;  %v29_v0 = vstv %s10768_s19  ;;  %v31_v1 = vstv %s10773_s23 }
   0x2   :  { %11272 = sst [smem:[#allocation158_spill]] %s10750_s1  ;;  %30 = vst [vmem:[#allocation2] sm:$0x1] %v29_v0  ;;  %32 = vst [vmem:[#allocation3] sm:$0x1] %v31_v1 }
   0x3   :  { %11273 = sst [smem:[#allocation159_spill]] %s10751_s2 }
   0x4   :  { %11274 = sst [smem:[#allocation160_spill]] %s10752_s3 }
   0x5   :  { %11275 = sst [smem:[#allocation161_spill]] %s10753_s4 }
   0x6   :  { %11276 = sst [smem:[#allocation162_spill]] %s10754_s5 }
   0x7   :  { %11277 = sst [smem:[#allocation163_spill]] %s10755_s6 }
   0x8   :  { %11278 = sst [smem:[#allocation164_spill]] %s10756_s7 }
   0x9   :  { %11279 = sst [smem:[#allocation165_spill]] %s10757_s8 }
   0xa   :  { %33 = vsyncpa [#allocation5], 0 }
   0xb   :  { %34 = vsyncpa [#allocation7], 0 }
   0xc   :  { %35 = vsyncpa [#allocation10], 0 }
   0xd   :  { %36 = vsyncpa [#allocation13], 0 }
   0xe   :  { %37 = vsyncpa [#allocation16], 0  ;;  %s8384_s6 = smov [#allocation6]   ;;  %s11280_s7 = sld [smem:[#allocation164_spill]] }
   0xf   :  { %s67_s2 = sshll.u32 %s8384_s6, 4  ;;  %s68_s2 = int_to_ptr.vmem [resolvable:$true] %s67_s2 }
  0x14   :  { %s8198_s30 = scalar_lea.hbm %s11280_s7, 6144 }
  0x15   :  { %p8199_p0 = scmp.ne.s32.totalorder %s11280_s7, %s8198_s30  ;;  %p8202_p1 = scmp.lt.u32.totalorder %s8198_s30, %s11280_s7 }
  0x17   :  { %p8204_p2 = pnand %p8202_p1, %p8199_p0 }
  0x19   :  { %8207 = shalt.err (!%p8204_p2)
}
  0x1a   :  { %s8208_s8 = scalar_lea.vmem %s68_s2, 6144  ;;  %p8213_p4 = scmp.lt.s32.totalorder %s68_s2, %s68_s2 }
  0x1b   :  { %p8209_p3 = scmp.ne.s32.totalorder %s68_s2, %s8208_s8  ;;  %p8214_p5 = scmp.lt.s32.totalorder %s8208_s8, %s8208_s8 }
  0x1d   :  { %p8215_p6 = por %p8214_p5, %p8213_p4 }
  0x1f   :  { %p8216_p7 = pnand %p8215_p6, %p8209_p3 }
  0x21   :  { %8219 = shalt.err (!%p8216_p7)
}
  0x22   :  { %s10777_s4 = smov 128   ;;  %s10778_s1 = smov 8  }
  0x23   :  { %73 = dma.hbm_to_vmem [thread:$0]  %s11280_s7, 6144, %s68_s2, [#allocation7], %s10777_s4, %s10777_s4, %s10778_s1  }
  0x24   :  { %s8387_s27 = smov [#allocation9]   ;;  %s8388_s6 = smov [#allocation12]  }
  0x25   :  { %s95_s28 = sshll.u32 %s8387_s27, 4  ;;  %s121_s29 = sshll.u32 %s8388_s6, 4  ;;  %s96_s28 = int_to_ptr.vmem [resolvable:$true] %s95_s28  ;;  %s122_s29 = int_to_ptr.vmem [resolvable:$true] %s121_s29 }
  0x26   :  { %s8220_s3 = scalar_lea.hbm %s10760_s11, 16384 }
  0x27   :  { %p8221_p8 = scmp.ne.s32.totalorder %s10760_s11, %s8220_s3  ;;  %p8224_p9 = scmp.lt.u32.totalorder %s8220_s3, %s10760_s11 }
  0x29   :  { %p8226_p10 = pnand %p8224_p9, %p8221_p8 }
  0x2b   :  { %8229 = shalt.err (!%p8226_p10)
}
  0x2c   :  { %s8230_s2 = scalar_lea.vmem %s96_s28, 16384  ;;  %p8235_p12 = scmp.lt.s32.totalorder %s96_s28, %s96_s28 }
  0x2d   :  { %p8231_p11 = scmp.ne.s32.totalorder %s96_s28, %s8230_s2  ;;  %p8236_p13 = scmp.lt.s32.totalorder %s8230_s2, %s8230_s2 }
  0x2f   :  { %p8237_p0 = por %p8236_p13, %p8235_p12 }
  0x31   :  { %p8238_p1 = pnand %p8237_p0, %p8231_p11 }
  0x33   :  { %8241 = shalt.err (!%p8238_p1)
}
  0x34   :  { %s8389_s7 = smov 512   ;;  %s8390_s5 = smov 32  }
  0x35   :  { %101 = dma.hbm_to_vmem [thread:$0]  %s10760_s11, 16384, %s96_s28, [#allocation10], %s8389_s7, %s8389_s7, %s8390_s5  }
  0x36   :  { %s8242_s30 = scalar_lea.hbm %s10763_s14, 16384 }
  0x37   :  { %p8243_p2 = scmp.ne.s32.totalorder %s10763_s14, %s8242_s30  ;;  %p8246_p3 = scmp.lt.u32.totalorder %s8242_s30, %s10763_s14 }
  0x39   :  { %p8248_p4 = pnand %p8246_p3, %p8243_p2 }
  0x3b   :  { %8251 = shalt.err (!%p8248_p4)
}
  0x3c   :  { %s8252_s8 = scalar_lea.vmem %s122_s29, 16384  ;;  %p8257_p6 = scmp.lt.s32.totalorder %s122_s29, %s122_s29 }
  0x3d   :  { %p8253_p5 = scmp.ne.s32.totalorder %s122_s29, %s8252_s8  ;;  %p8258_p7 = scmp.lt.s32.totalorder %s8252_s8, %s8252_s8 }
  0x3f   :  { %p8259_p8 = por %p8258_p7, %p8257_p6 }
  0x41   :  { %p8260_p9 = pnand %p8259_p8, %p8253_p5 }
  0x43   :  { %8263 = shalt.err (!%p8260_p9)
}
  0x44   :  { %127 = dma.hbm_to_vmem [thread:$0]  %s10763_s14, 16384, %s122_s29, [#allocation13], %s8389_s7, %s8389_s7, %s8390_s5  }
  0x45   :  { %s8391_s2 = smov [#allocation4]   ;;  %s11281_s0 = sld [smem:[#allocation161_spill]] }
  0x46   :  { %s51_s26 = sshll.u32 %s8391_s2, 4  ;;  %s52_s26 = int_to_ptr.vmem [resolvable:$true] %s51_s26 }
  0x4b   :  { %s8264_s30 = scalar_lea.hbm %s11281_s0, 1536 }
  0x4c   :  { %p8265_p10 = scmp.ne.s32.totalorder %s11281_s0, %s8264_s30  ;;  %p8268_p11 = scmp.lt.u32.totalorder %s8264_s30, %s11281_s0 }
  0x4e   :  { %p8270_p12 = pnand %p8268_p11, %p8265_p10 }
  0x50   :  { %8273 = shalt.err (!%p8270_p12)
}
  0x51   :  { %s8274_s8 = scalar_lea.vmem %s52_s26, 1536  ;;  %p8279_p0 = scmp.lt.s32.totalorder %s52_s26, %s52_s26 }
  0x52   :  { %p8275_p13 = scmp.ne.s32.totalorder %s52_s26, %s8274_s8  ;;  %p8280_p1 = scmp.lt.s32.totalorder %s8274_s8, %s8274_s8 }
  0x54   :  { %p8281_p2 = por %p8280_p1, %p8279_p0 }
  0x56   :  { %p8282_p3 = pnand %p8281_p2, %p8275_p13 }
  0x58   :  { %8285 = shalt.err (!%p8282_p3)
}
  0x59   :  { %s8392_s14 = smov 64   ;;  %s8393_s29 = smov 4  }
  0x5a   :  { %57 = dma.hbm_to_vmem [thread:$0]  %s11281_s0, 1536, %s52_s26, [#allocation5], %s8392_s14, %s8392_s14, %s8393_s29  }
  0x5b   :  { %s8394_s2 = smov [#allocation8]   ;;  %s8395_s6 = smov [#allocation11]  }
  0x5c   :  { %s83_s27 = sshll.u32 %s8394_s2, 4  ;;  %s109_s30 = sshll.u32 %s8395_s6, 4  ;;  %s84_s27 = int_to_ptr.vmem [resolvable:$true] %s83_s27  ;;  %s8593_s30 = int_to_ptr.vmem [resolvable:$true] %s109_s30 }
  0x5d   :  { %s8286_s25 = scalar_lea.hbm %s10759_s10, 16384 }
  0x5e   :  { %p8287_p4 = scmp.ne.s32.totalorder %s10759_s10, %s8286_s25  ;;  %p8290_p5 = scmp.lt.u32.totalorder %s8286_s25, %s10759_s10 }
  0x60   :  { %p8292_p6 = pnand %p8290_p5, %p8287_p4 }
  0x62   :  { %8295 = shalt.err (!%p8292_p6)
}
  0x63   :  { %s8296_s26 = scalar_lea.vmem %s84_s27, 16384  ;;  %p8301_p8 = scmp.lt.s32.totalorder %s84_s27, %s84_s27 }
  0x64   :  { %p8297_p7 = scmp.ne.s32.totalorder %s84_s27, %s8296_s26  ;;  %p8302_p9 = scmp.lt.s32.totalorder %s8296_s26, %s8296_s26 }
  0x66   :  { %p8303_p10 = por %p8302_p9, %p8301_p8 }
  0x68   :  { %p8304_p11 = pnand %p8303_p10, %p8297_p7 }
  0x6a   :  { %8307 = shalt.err (!%p8304_p11)
}
  0x6b   :  { %89 = dma.hbm_to_vmem [thread:$0]  %s10759_s10, 16384, %s84_s27, [#allocation7], %s8389_s7, %s8389_s7, %s8390_s5  }
  0x6c   :  { %s8308_s4 = scalar_lea.hbm %s10762_s13, 16384 }
  0x6d   :  { %p8309_p12 = scmp.ne.s32.totalorder %s10762_s13, %s8308_s4  ;;  %p8312_p13 = scmp.lt.u32.totalorder %s8308_s4, %s10762_s13 }
  0x6f   :  { %p8314_p0 = pnand %p8312_p13, %p8309_p12 }
  0x71   :  { %8317 = shalt.err (!%p8314_p0)
}
  0x72   :  { %s8318_s25 = scalar_lea.vmem %s8593_s30, 16384  ;;  %p8323_p2 = scmp.lt.s32.totalorder %s8593_s30, %s8593_s30 }
  0x73   :  { %p8319_p1 = scmp.ne.s32.totalorder %s8593_s30, %s8318_s25  ;;  %p8324_p3 = scmp.lt.s32.totalorder %s8318_s25, %s8318_s25 }
  0x75   :  { %p8325_p4 = por %p8324_p3, %p8323_p2 }
  0x77   :  { %p8326_p5 = pnand %p8325_p4, %p8319_p1 }
  0x79   :  { %8329 = shalt.err (!%p8326_p5)
}
  0x7a   :  { %115 = dma.hbm_to_vmem [thread:$0]  %s10762_s13, 16384, %s8593_s30, [#allocation10], %s8389_s7, %s8389_s7, %s8390_s5  }
  0x7b   :  { %s8396_s23 = smov [#allocation14]   ;;  %s8397_s26 = smov [#allocation15]  }
  0x7c   :  { %s135_s8 = sshll.u32 %s8396_s23, 4  ;;  %s153_s0 = sshll.u32 %s8397_s26, 4  ;;  %s136_s8 = int_to_ptr.vmem [resolvable:$true] %s135_s8  ;;  %s8630_s0 = int_to_ptr.vmem [resolvable:$true] %s153_s0 }
  0x7d   :  { %s8330_s2 = scalar_lea.hbm %s10765_s16, 4096 }
  0x7e   :  { %p8331_p6 = scmp.ne.s32.totalorder %s10765_s16, %s8330_s2  ;;  %p8334_p7 = scmp.lt.u32.totalorder %s8330_s2, %s10765_s16 }
  0x80   :  { %p8336_p8 = pnand %p8334_p7, %p8331_p6 }
  0x82   :  { %8339 = shalt.err (!%p8336_p8)
}
  0x83   :  { %s8340_s13 = scalar_lea.vmem %s136_s8, 4096  ;;  %p8345_p10 = scmp.lt.s32.totalorder %s136_s8, %s136_s8 }
  0x84   :  { %p8341_p9 = scmp.ne.s32.totalorder %s136_s8, %s8340_s13  ;;  %p8346_p11 = scmp.lt.s32.totalorder %s8340_s13, %s8340_s13 }
  0x86   :  { %p8347_p12 = por %p8346_p11, %p8345_p10 }
  0x88   :  { %p8348_p13 = pnand %p8347_p12, %p8341_p9 }
  0x8a   :  { %8351 = shalt.err (!%p8348_p13)
}
  0x8b   :  { %s11282_s7 = smov 8   ;;  %s11283_s5 = smov 128  }
  0x8c   :  { %141 = dma.hbm_to_vmem [thread:$0]  %s10765_s16, 4096, %s136_s8, [#allocation13], %s11283_s5, %s11283_s5, %s11282_s7  }
  0x8d   :  { %s8352_s27 = scalar_lea.hbm %s10769_s20, 2048 }
  0x8e   :  { %p8353_p0 = scmp.ne.s32.totalorder %s10769_s20, %s8352_s27  ;;  %p8356_p1 = scmp.lt.u32.totalorder %s8352_s27, %s10769_s20 }
  0x90   :  { %p8358_p2 = pnand %p8356_p1, %p8353_p0 }
  0x92   :  { %8361 = shalt.err (!%p8358_p2)
}
  0x93   :  { %s8362_s2 = scalar_lea.vmem %s8630_s0, 2048  ;;  %p8367_p4 = scmp.lt.s32.totalorder %s8630_s0, %s8630_s0 }
  0x94   :  { %p8363_p3 = scmp.ne.s32.totalorder %s8630_s0, %s8362_s2  ;;  %p8368_p5 = scmp.lt.s32.totalorder %s8362_s2, %s8362_s2 }
  0x96   :  { %p8369_p6 = por %p8368_p5, %p8367_p4 }
  0x98   :  { %p8370_p7 = pnand %p8369_p6, %p8363_p3 }
  0x9a   :  { %8373 = shalt.err (!%p8370_p7)
}
  0x9b   :  { %159 = dma.hbm_to_vmem [thread:$0]  %s10769_s20, 2048, %s8630_s0, [#allocation16], %s8392_s14, %s8392_s14, %s8393_s29  }
  0x9c   :  { %8374 = dma.done.wait [#allocation5], 1536  }
  0x9d   :  { %8375 = vsyncadd [#allocation5], 4294965760 }
  0x9e   :  { %8376 = dma.done.wait [#allocation7], 22528  }
  0x9f   :  { %8377 = vsyncadd [#allocation7], 4294944768 }
  0xa0   :  { %8378 = dma.done.wait [#allocation10], 32768  }
  0xa1   :  { %8379 = vsyncadd [#allocation10], 4294934528 }
  0xa2   :  { %8380 = dma.done.wait [#allocation13], 20480  }
  0xa3   :  { %8381 = vsyncadd [#allocation13], 4294946816 }
  0xa4   :  { %8382 = dma.done.wait [#allocation16], 2048  }
  0xa5   :  { %8383 = vsyncadd [#allocation16], 4294965248  ;;  %v8398_v2 = vmov 0.0   ;;  %vm8399_vm0 = vmmov 0   ;;  %s11284_s6 = sld [smem:[#allocation157_spill]]  ;;  %vm201_vm1 = vcmask 1046528  }
  0xa6   :  { %7737 = vmatprep.subr.bf16.mxu1 %v8398_v2  ;;  %7739 = vmatprep.mubr.msk.bf16.mxu1 %vm8399_vm0, %v8398_v2  ;;  %vm242_vm2 = vcmask 1045504   ;;  %s11285_s5 = sld [smem:[#allocation158_spill]]  ;;  %vm197_vm3 = vcmask 1040384   ;;  %vm210_vm4 = vcmask 31744   ;;  %vm212_vm5 = vcmask 64512   ;;  %v7782_v28 = vld [vmem:[#allocation4] sm:$0xff]  }
  0xa7   :  { %vm238_vm6 = vcmask 97280   ;;  %v8400_v29 = vmov 0   ;;  %v7783_v30 = vld [vmem:[#allocation4 + $0x8] sm:$0xff]   ;;  %v7784_v31 = vld [vmem:[#allocation4 + $0x10] sm:$0xff]   ;;  %v7785_v32 = vld [vmem:[#allocation4 + $0x18] sm:$0xff]   ;;  %s11286_s30 = sld [smem:[#allocation159_spill]] }
  0xa8   :  { %7780 = vset.pattern.permute.xlu0 %v8400_v29  ;;  %v7786_v33 = vld [vmem:[#allocation4 + $0x20] sm:$0xff]   ;;  %v7787_v34 = vld [vmem:[#allocation4 + $0x28] sm:$0xff]   ;;  %v7788_v35 = vld [vmem:[#allocation4 + $0x30] sm:$0xff]   ;;  %s11287_s10 = sld [smem:[#allocation160_spill]]  ;;  %vm317_vm7 = vcmask 523264   ;;  %s11288_s23 = sld [smem:[#allocation162_spill]] }
  0xa9   :  { %v7789_v36 = vld [vmem:[#allocation4 + $0x38] sm:$0xff]   ;;  %v7790_v37 = vld [vmem:[#allocation4 + $0x40] sm:$0xff]   ;;  %v7791_v38 = vld [vmem:[#allocation4 + $0x48] sm:$0xff]   ;;  %s11289_s28 = sld [smem:[#allocation163_spill]]  ;;  %vm504_vm8 = vcmask 1041408   ;;  %vm506_vm9 = vcmask 1042432  }
  0xaa   :  { %v7792_v39 = vld [vmem:[#allocation4 + $0x50] sm:$0xff]   ;;  %v7793_v41 = vld [vmem:[#allocation4 + $0x58] sm:$0xff]   ;;  %v7794_v50 = vld [vmem:[#allocation6 + $0x4] ss:$8 sps:$4 sm:$0xff]   ;;  %vm544_vm10 = vcmask 1043456   ;;  %s11292_s8 = sld [smem:[#allocation165_spill]] }
  0xab   :  { %v191_v3 = vld [vmem:[%s11284_s6] sm:$0xff]  ;;  %v7033_v4 = vld [vmem:[%s11284_s6 + $0x8] sm:$0xff]  ;;  %839 = vmatprep.subr.bf16.mxu0 %v7794_v50  ;;  %v7799_v55 = vld [vmem:[#allocation6 + $0x10] ss:$8 sps:$4 sm:$0xff]   ;;  %vm6732_vm11 = vcmask 3072   ;;  %vm6773_vm12 = vcmask 7172  }
  0xac   :  { %v7765_v5 = vpack.i.bf16 %v7033_v4, %v191_v3  ;;  %v199_v6 = vrot.slane %v191_v3, 1  ;;  %v218_v7 = vrot.slane %v7033_v4, 1  ;;  %v7781_v8 = vld [vmem:[%s11285_s5] sm:$0x3f]   ;;  %v215_v13 = vrot.slane %v7033_v4, 7 }
  0xad   :  { %v244_v11 = vsel %vm242_vm2, %v7781_v8, 0  ;;  %v195_v14 = vrot.slane %v191_v3, 7  ;;  %v7036_v40 = vld [vmem:[%s11286_s30] ss:$0 sm:$0xff]  ;;  %v7796_v51 = vld [vmem:[#allocation6] ss:$8 sps:$4 sm:$0xff]  }
  0xae   :  { %7766 = vrot.lane.b32.xlu0 %v7765_v5, %s8393_s29  ;;  %v202_v9 = vsel %vm201_vm1, %v199_v6, 0.0  ;;  %v220_v10 = vsel %vm201_vm1, %v218_v7, 0.0  ;;  %7738 = vmatpush3.bf16.msra.mxu1 %v244_v11  ;;  %v217_v18 = vsel %vm197_vm3, 0.0, %v215_v13  ;;  %v7037_v43 = vld [vmem:[%s11287_s10] ss:$0 sm:$0xff]  ;;  %vm7022_vm13 = vcmask 1024  }
  0xaf   :  { %v7770_v12 = vpack.i.bf16 %v220_v10, %v202_v9  ;;  %v198_v19 = vsel %vm197_vm3, 0.0, %v195_v14  ;;  %431 = vmatprep.subr.bf16.mxu1 %v8400_v29  ;;  %v7797_v52 = vld [vmem:[#allocation6 + $0x14] ss:$8 sps:$4 sm:$0xff]   ;;  %840 = vmatpush1.bf16.msra.mxu0 %v7796_v51  ;;  %v7800_v58 = vld [vmem:[#allocation6 + $0x24] ss:$8 sps:$4 sm:$0xff]  }
  0xb0   :  { %841 = vmatprep.subr.bf16.mxu0 %v7797_v52  ;;  %v7802_v61 = vld [vmem:[#allocation6 + $0x20] ss:$8 sps:$4 sm:$0xff]   ;;  %v7803_v0 = vld [vmem:[#allocation6 + $0x34] ss:$8 sps:$4 sm:$0xff]   ;;  %v7805_v2 = vld [vmem:[#allocation6 + $0x30] ss:$8 sps:$4 sm:$0xff]  }
  0xb1   :  { %v7806_v3 = vld [vmem:[#allocation6 + $0x44] ss:$8 sps:$4 sm:$0xff]   ;;  %v7808_v4 = vld [vmem:[#allocation6 + $0x40] ss:$8 sps:$4 sm:$0xff]   ;;  %v7809_v5 = vld [vmem:[#allocation6 + $0x54] ss:$8 sps:$4 sm:$0xff]  }
  0xb2   :  { %7771 = vrot.lane.b32.xlu0 %v7770_v12, %s11282_s7  ;;  %v7811_v6 = vld [vmem:[#allocation6 + $0x50] ss:$8 sps:$4 sm:$0xff]   ;;  %v7812_v7 = vld [vmem:[#allocation6 + $0x64] ss:$8 sps:$4 sm:$0xff]   ;;  %v7814_v8 = vld [vmem:[#allocation6 + $0x60] ss:$8 sps:$4 sm:$0xff]  }
  0xb3   :  { %842 = vmatpush1.bf16.msra.mxu0 %v7799_v55  ;;  %v7815_v9 = vld [vmem:[#allocation6 + $0x74] ss:$8 sps:$4 sm:$0xff]   ;;  %v7817_v10 = vld [vmem:[#allocation6 + $0x70] ss:$8 sps:$4 sm:$0xff]   ;;  %v7818_v11 = vld [vmem:[#allocation6 + $0x84] ss:$8 sps:$4 sm:$0xff]  }
  0xb4   :  { %843 = vmatprep.subr.bf16.mxu0 %v7800_v58  ;;  %v7820_v12 = vld [vmem:[#allocation6 + $0x80] ss:$8 sps:$4 sm:$0xff]   ;;  %v7821_v13 = vld [vmem:[#allocation6 + $0x94] ss:$8 sps:$4 sm:$0xff]   ;;  %v7823_v14 = vld [vmem:[#allocation6 + $0x90] ss:$8 sps:$4 sm:$0xff]  }
  0xb5   :  { %v1009_v51 = vld [vmem:[#allocation8 + $0xc0] sm:$0xff] }
  0xb6   :  { %v1013_v52 = vld [vmem:[#allocation8 + $0xe0] sm:$0xff] }
  0xb7   :  { %844 = vmatpush1.bf16.msra.mxu0 %v7802_v61  ;;  %v1017_v55 = vld [vmem:[#allocation8 + $0x100] sm:$0xff] }
  0xb8   :  { %845 = vmatprep.subr.bf16.mxu0 %v7803_v0  ;;  %v1037_v0 = vld [vmem:[#allocation8 + $0x1a0] sm:$0xff] }
  0xbb   :  { %846 = vmatpush1.bf16.msra.mxu0 %v7805_v2 }
  0xbc   :  { %847 = vmatprep.subr.bf16.mxu0 %v7806_v3  ;;  %v1041_v3 = vld [vmem:[#allocation8 + $0x1c0] sm:$0xff] }
  0xbf   :  { %848 = vmatpush1.bf16.msra.mxu0 %v7808_v4  ;;  %v1045_v4 = vld [vmem:[#allocation8 + $0x1e0] sm:$0xff] }
  0xc0   :  { %849 = vmatprep.subr.bf16.mxu0 %v7809_v5  ;;  %v7158_v5 = vcombine.high %v1041_v3, %v1045_v4 }
  0xc3   :  { %850 = vmatpush1.bf16.msra.mxu0 %v7811_v6  ;;  %v7157_v6 = vcombine.low %v1041_v3, %v1045_v4 }
  0xc4   :  { %851 = vmatprep.subr.bf16.mxu0 %v7812_v7  ;;  %v1049_v7 = vld [vmem:[#allocation8 + $0x200] sm:$0xff] }
  0xc7   :  { %852 = vmatpush1.bf16.msra.mxu0 %v7814_v8  ;;  %v1053_v8 = vld [vmem:[#allocation8 + $0x220] sm:$0xff] }
  0xc8   :  { %853 = vmatprep.subr.bf16.mxu0 %v7815_v9  ;;  %v7166_v9 = vcombine.high %v1049_v7, %v1053_v8 }
  0xcb   :  { %854 = vmatpush1.bf16.msra.mxu0 %v7817_v10  ;;  %v7165_v10 = vcombine.low %v1049_v7, %v1053_v8  ;;  %v7850_v7 = vld [vmem:[#allocation6 + $0x124] ss:$8 sps:$4 sm:$0xff]   ;;  %v7848_v8 = vld [vmem:[#allocation6 + $0x120] ss:$8 sps:$4 sm:$0xff]  }
  0xcc   :  { %855 = vmatprep.subr.bf16.mxu0 %v7818_v11  ;;  %v1057_v11 = vld [vmem:[#allocation8 + $0x240] sm:$0xff] }
  0xcf   :  { %856 = vmatpush1.bf16.msra.mxu0 %v7820_v12  ;;  %v1061_v12 = vld [vmem:[#allocation8 + $0x260] sm:$0xff] }
  0xd0   :  { %857 = vmatprep.subr.bf16.mxu0 %v7821_v13  ;;  %v7174_v13 = vcombine.high %v1057_v11, %v1061_v12 }
  0xd3   :  { %858 = vmatpush1.bf16.msra.mxu0 %v7823_v14  ;;  %v7173_v14 = vcombine.low %v1057_v11, %v1061_v12  ;;  %v7856_v11 = vld [vmem:[#allocation6 + $0x144] ss:$8 sps:$4 sm:$0xff]   ;;  %v7854_v12 = vld [vmem:[#allocation6 + $0x140] ss:$8 sps:$4 sm:$0xff]  }
 0x120   :  { %v7767_v15 = vpop.permute.xlu0 %7766 }
 0x121   :  { %v7769_v16 = vunpack.i.h.bf16 %v7767_v15  ;;  %v7768_v17 = vunpack.i.l.bf16 %v7767_v15 }
 0x123   :  { %v228_v23 = vsel %vm210_vm4, %v217_v18, %v7769_v16  ;;  %v211_v24 = vsel %vm210_vm4, %v198_v19, %v7768_v17 }
 0x124   :  { %v7772_v20 = vpop.permute.xlu0 %7771 }
 0x125   :  { %v7774_v21 = vunpack.i.h.bf16 %v7772_v20  ;;  %v7773_v22 = vunpack.i.l.bf16 %v7772_v20 }
 0x127   :  { %v229_v25 = vsel %vm212_vm5, %v228_v23, %v7774_v21  ;;  %v213_v26 = vsel %vm212_vm5, %v211_v24, %v7773_v22 }
 0x128   :  { %v232_v27 = vpack.c.bf16 %v229_v25, %v213_v26  ;;  %v7824_v25 = vld [vmem:[#allocation6 + $0xa4] ss:$8 sps:$4 sm:$0xff]   ;;  %v7826_v26 = vld [vmem:[#allocation6 + $0xa0] ss:$8 sps:$4 sm:$0xff]  }
 0x129   :  { %859 = vmatprep.subr.bf16.mxu0 %v7824_v25  ;;  %v7052_v25 = vld [vmem:[%s11289_s28] ss:$0 sm:$0xff] }
 0x12a   :  { %7740 = vmatmul.mubr.msk.bf16.vlgmr.msra.gmra.mrb[0].mxu1 %vm238_vm6, %v232_v27  ;;  %860 = vmatpush1.bf16.msra.mxu0 %v7826_v26  ;;  %v7827_v27 = vld [vmem:[#allocation6 + $0xb4] ss:$8 sps:$4 sm:$0xff]  }
 0x12b   :  { %432 = vmatpush1.bf16.msra.mxu1 %v7782_v28  ;;  %v7829_v28 = vld [vmem:[#allocation6 + $0xb0] ss:$8 sps:$4 sm:$0xff]   ;;  %861 = vmatprep.subr.bf16.mxu0 %v7827_v27 }
 0x12c   :  { %433 = vmatprep.subr.bf16.mxu1 %v8400_v29 }
 0x12e   :  { %862 = vmatpush1.bf16.msra.mxu0 %v7829_v28 }
 0x12f   :  { %434 = vmatpush1.bf16.msra.mxu1 %v7783_v30  ;;  %v7830_v30 = vld [vmem:[#allocation6 + $0xc4] ss:$8 sps:$4 sm:$0xff]  }
 0x130   :  { %435 = vmatprep.subr.bf16.mxu1 %v8400_v29  ;;  %863 = vmatprep.subr.bf16.mxu0 %v7830_v30 }
 0x133   :  { %436 = vmatpush1.bf16.msra.mxu1 %v7784_v31  ;;  %v7832_v31 = vld [vmem:[#allocation6 + $0xc0] ss:$8 sps:$4 sm:$0xff]  }
 0x134   :  { %437 = vmatprep.subr.bf16.mxu1 %v8400_v29  ;;  %864 = vmatpush1.bf16.msra.mxu0 %v7832_v31 }
 0x137   :  { %438 = vmatpush1.bf16.msra.mxu1 %v7785_v32  ;;  %v7833_v32 = vld [vmem:[#allocation6 + $0xd4] ss:$8 sps:$4 sm:$0xff]  }
 0x138   :  { %439 = vmatprep.subr.bf16.mxu1 %v8400_v29  ;;  %865 = vmatprep.subr.bf16.mxu0 %v7833_v32 }
 0x13b   :  { %440 = vmatpush1.bf16.msra.mxu1 %v7786_v33  ;;  %v7835_v33 = vld [vmem:[#allocation6 + $0xd0] ss:$8 sps:$4 sm:$0xff]  }
 0x13c   :  { %441 = vmatprep.subr.bf16.mxu1 %v8400_v29  ;;  %866 = vmatpush1.bf16.msra.mxu0 %v7835_v33 }
 0x13f   :  { %442 = vmatpush1.bf16.msra.mxu1 %v7787_v34  ;;  %v7836_v34 = vld [vmem:[#allocation6 + $0xe4] ss:$8 sps:$4 sm:$0xff]  }
 0x140   :  { %443 = vmatprep.subr.bf16.mxu1 %v8400_v29  ;;  %867 = vmatprep.subr.bf16.mxu0 %v7836_v34 }
 0x143   :  { %444 = vmatpush1.bf16.msra.mxu1 %v7788_v35  ;;  %v7838_v35 = vld [vmem:[#allocation6 + $0xe0] ss:$8 sps:$4 sm:$0xff]  }
 0x144   :  { %445 = vmatprep.subr.bf16.mxu1 %v8400_v29  ;;  %868 = vmatpush1.bf16.msra.mxu0 %v7838_v35 }
 0x147   :  { %446 = vmatpush1.bf16.msra.mxu1 %v7789_v36  ;;  %v7839_v36 = vld [vmem:[#allocation6 + $0xf4] ss:$8 sps:$4 sm:$0xff]  }
 0x148   :  { %447 = vmatprep.subr.bf16.mxu1 %v8400_v29  ;;  %869 = vmatprep.subr.bf16.mxu0 %v7839_v36 }
 0x14b   :  { %448 = vmatpush1.bf16.msra.mxu1 %v7790_v37  ;;  %v7841_v37 = vld [vmem:[#allocation6 + $0xf0] ss:$8 sps:$4 sm:$0xff]  }
 0x14c   :  { %449 = vmatprep.subr.bf16.mxu1 %v8400_v29  ;;  %870 = vmatpush1.bf16.msra.mxu0 %v7841_v37 }
 0x14f   :  { %450 = vmatpush1.bf16.msra.mxu1 %v7791_v38  ;;  %v7844_v38 = vld [vmem:[#allocation6 + $0x104] ss:$8 sps:$4 sm:$0xff]  }
 0x150   :  { %451 = vmatprep.subr.bf16.mxu1 %v8400_v29  ;;  %880 = vmatprep.subr.bf16.mxu0 %v7844_v38 }
 0x153   :  { %452 = vmatpush1.bf16.msra.mxu1 %v7792_v39  ;;  %v985_v39 = vld [vmem:[#allocation8] sm:$0xff] }
 0x154   :  { %453 = vmatprep.subr.bf16.mxu1 %v8400_v29 }
 0x157   :  { %454 = vmatpush1.bf16.msra.mxu1 %v7793_v41 }
 0x1fd   :  { %v280_v42 = vpop.f32.mrb[0].mxu1 }
 0x1fe   :  { %v294_v44 = vmul.f32 %v7036_v40, %v280_v42  ;;  %v7741_v45 = vpop.f32.mrb[1].mxu1 }
 0x1ff   :  { %v283_v46 = vpop.f32.mrb[2].mxu1 }
 0x200   :  { %v303_v47 = vadd.f32 %v7037_v43, %v294_v44  ;;  %v295_v48 = vmul.f32 %v7036_v40, %v283_v46  ;;  %v7742_v49 = vpop.f32.mrb[3].mxu1  ;;  %v989_v40 = vld [vmem:[#allocation8 + $0x20] sm:$0xff] }
 0x201   :  { %v7101_v41 = vcombine.low %v985_v39, %v989_v40  ;;  %v7102_v42 = vcombine.high %v985_v39, %v989_v40  ;;  %v997_v44 = vld [vmem:[#allocation8 + $0x60] sm:$0xff] }
 0x202   :  { %v305_v53 = vmax.f32 %v303_v47, 0.0  ;;  %v304_v54 = vadd.f32 %v7037_v43, %v295_v48  ;;  %v993_v43 = vld [vmem:[#allocation8 + $0x40] sm:$0xff] }
 0x203   :  { %v7110_v45 = vcombine.high %v993_v43, %v997_v44  ;;  %1949 = vmatprep.subr.bf16.mxu1 %v7102_v42  ;;  %v7109_v46 = vcombine.low %v993_v43, %v997_v44  ;;  %v1001_v47 = vld [vmem:[#allocation8 + $0x80] sm:$0xff] }
 0x204   :  { %v311_v56 = vrot.slane %v305_v53, 1  ;;  %v306_v57 = vmax.f32 %v304_v54, 0.0  ;;  %v308_v15 = vrot.slane %v305_v53, 7  ;;  %v1005_v48 = vld [vmem:[#allocation8 + $0xa0] sm:$0xff]  ;;  %v7125_v54 = vcombine.low %v1009_v51, %v1013_v52 }
 0x205   :  { %v7118_v49 = vcombine.high %v1001_v47, %v1005_v48  ;;  %v7117_v50 = vcombine.low %v1001_v47, %v1005_v48 }
 0x206   :  { %v323_v59 = vrot.slane %v306_v57, 1  ;;  %v7775_v60 = vpack.i.bf16 %v306_v57, %v305_v53  ;;  %v313_v62 = vsel %vm201_vm1, %v311_v56, 0.0  ;;  %v320_v16 = vrot.slane %v306_v57, 7  ;;  %v1021_v56 = vld [vmem:[#allocation8 + $0x120] sm:$0xff] }
 0x207   :  { %v310_v20 = vsel %vm197_vm3, 0.0, %v308_v15  ;;  %v7126_v53 = vcombine.high %v1009_v51, %v1013_v52  ;;  %v7134_v57 = vcombine.high %v1017_v55, %v1021_v56  ;;  %v7133_v58 = vcombine.low %v1017_v55, %v1021_v56  ;;  %v1065_v15 = vld [vmem:[#allocation8 + $0x280] sm:$0xff] }
 0x208   :  { %7776 = vrot.lane.b32.xlu1 %v7775_v60, %s8392_s14  ;;  %v325_v63 = vsel %vm201_vm1, %v323_v59, 0.0  ;;  %v322_v21 = vsel %vm197_vm3, 0.0, %v320_v16  ;;  %v1025_v59 = vld [vmem:[#allocation8 + $0x140] sm:$0xff] }
 0x209   :  { %v355_v1 = vpack.c.bf16 %v325_v63, %v313_v62  ;;  %v1029_v60 = vld [vmem:[#allocation8 + $0x160] sm:$0xff] }
 0x20a   :  { %v7142_v61 = vcombine.high %v1025_v59, %v1029_v60  ;;  %v7141_v62 = vcombine.low %v1025_v59, %v1029_v60  ;;  %v1033_v63 = vld [vmem:[#allocation8 + $0x180] sm:$0xff] }
 0x20b   :  { %7050 = vmatprep.mubr.msk.bf16.mxu1 %vm317_vm7, %v355_v1  ;;  %v7150_v1 = vcombine.high %v1033_v63, %v1037_v0  ;;  %v7149_v2 = vcombine.low %v1033_v63, %v1037_v0  ;;  %v1069_v16 = vld [vmem:[#allocation8 + $0x2a0] sm:$0xff] }
 0x27a   :  { %v7777_v17 = vpop.permute.xlu1 %7776 }
 0x27b   :  { %v7779_v18 = vunpack.i.h.bf16 %v7777_v17  ;;  %v7778_v19 = vunpack.i.l.bf16 %v7777_v17  ;;  %v7182_v17 = vcombine.high %v1065_v15, %v1069_v16 }
 0x27d   :  { %v318_v22 = vsel %vm317_vm7, %v310_v20, %v7778_v19  ;;  %v329_v23 = vsel %vm317_vm7, %v322_v21, %v7779_v18  ;;  %v7181_v18 = vcombine.low %v1065_v15, %v1069_v16  ;;  %v1073_v19 = vld [vmem:[#allocation8 + $0x2c0] sm:$0xff]  ;;  %v7865_v16 = vld [vmem:[#allocation6 + $0x174] ss:$8 sps:$4 sm:$0xff]  }
 0x27e   :  { %v354_v24 = vpack.c.bf16 %v329_v23, %v318_v22  ;;  %v1077_v20 = vld [vmem:[#allocation8 + $0x2e0] sm:$0xff]  ;;  %v7051_v23 = vld [vmem:[%s11288_s23] ss:$0 sm:$0xff] }
 0x27f   :  { %v7190_v21 = vcombine.high %v1073_v19, %v1077_v20  ;;  %v7189_v22 = vcombine.low %v1073_v19, %v1077_v20  ;;  %v7862_v15 = vld [vmem:[#allocation6 + $0x164] ss:$8 sps:$4 sm:$0xff]   ;;  %v7863_v19 = vld [vmem:[#allocation6 + $0x170] ss:$8 sps:$4 sm:$0xff]  }
 0x280   :  { %464 = vmatmul.mubr.bf16.vlgmr.msra.gmra.mrb[4].mxu1 %v354_v24 }
 0x281   :  { %1950 = vmatpush1.bf16.msra.mxu1 %v7101_v41 }
 0x282   :  { %1951 = vmatprep.subr.bf16.mxu1 %v7110_v45 }
 0x285   :  { %1952 = vmatpush1.bf16.msra.mxu1 %v7109_v46 }
 0x286   :  { %1953 = vmatprep.subr.bf16.mxu1 %v7118_v49 }
 0x289   :  { %1954 = vmatpush1.bf16.msra.mxu1 %v7117_v50 }
 0x28a   :  { %1955 = vmatprep.subr.bf16.mxu1 %v7126_v53 }
 0x28d   :  { %1956 = vmatpush1.bf16.msra.mxu1 %v7125_v54 }
 0x28e   :  { %1957 = vmatprep.subr.bf16.mxu1 %v7134_v57 }
 0x291   :  { %1958 = vmatpush1.bf16.msra.mxu1 %v7133_v58 }
 0x292   :  { %1959 = vmatprep.subr.bf16.mxu1 %v7142_v61 }
 0x295   :  { %1960 = vmatpush1.bf16.msra.mxu1 %v7141_v62 }
 0x296   :  { %1961 = vmatprep.subr.bf16.mxu1 %v7150_v1  ;;  %v7842_v1 = vld [vmem:[#allocation6 + $0x100] ss:$8 sps:$4 sm:$0xff]  }
 0x299   :  { %1962 = vmatpush1.bf16.msra.mxu1 %v7149_v2 }
 0x29a   :  { %1963 = vmatprep.subr.bf16.mxu1 %v7158_v5  ;;  %v7847_v5 = vld [vmem:[#allocation6 + $0x114] ss:$8 sps:$4 sm:$0xff]  }
 0x29d   :  { %1964 = vmatpush1.bf16.msra.mxu1 %v7157_v6  ;;  %v7845_v6 = vld [vmem:[#allocation6 + $0x110] ss:$8 sps:$4 sm:$0xff]  }
 0x29e   :  { %1965 = vmatprep.subr.bf16.mxu1 %v7166_v9  ;;  %v7853_v9 = vld [vmem:[#allocation6 + $0x134] ss:$8 sps:$4 sm:$0xff]  }
 0x2a1   :  { %1966 = vmatpush1.bf16.msra.mxu1 %v7165_v10  ;;  %v7851_v10 = vld [vmem:[#allocation6 + $0x130] ss:$8 sps:$4 sm:$0xff]  }
 0x2a2   :  { %1967 = vmatprep.subr.bf16.mxu1 %v7174_v13  ;;  %v7859_v13 = vld [vmem:[#allocation6 + $0x154] ss:$8 sps:$4 sm:$0xff]  }
 0x2a5   :  { %1968 = vmatpush1.bf16.msra.mxu1 %v7173_v14  ;;  %v7857_v14 = vld [vmem:[#allocation6 + $0x150] ss:$8 sps:$4 sm:$0xff]  }
 0x2a6   :  { %1969 = vmatprep.subr.bf16.mxu1 %v7182_v17  ;;  %v986_v17 = vld [vmem:[#allocation8 + $0x8] sm:$0xff] }
 0x2a9   :  { %1970 = vmatpush1.bf16.msra.mxu1 %v7181_v18  ;;  %v990_v18 = vld [vmem:[#allocation8 + $0x28] sm:$0xff] }
 0x2aa   :  { %1971 = vmatprep.subr.bf16.mxu1 %v7190_v21  ;;  %v7104_v20 = vcombine.high %v986_v17, %v990_v18  ;;  %v994_v21 = vld [vmem:[#allocation8 + $0x48] sm:$0xff] }
 0x2ad   :  { %1972 = vmatpush1.bf16.msra.mxu1 %v7189_v22  ;;  %v998_v22 = vld [vmem:[#allocation8 + $0x68] sm:$0xff] }
 0x353   :  { %v465_v24 = vpop.f32.mrb[4].mxu1 }
 0x354   :  { %v479_v26 = vmul.f32 %v7051_v23, %v465_v24  ;;  %v467_v27 = vpop.f32.mrb[5].mxu1 }
 0x355   :  { %v468_v28 = vpop.f32.mrb[6].mxu1  ;;  %v1006_v27 = vld [vmem:[#allocation8 + $0xa8] sm:$0xff] }
 0x356   :  { %v488_v30 = vadd.f32 %v7052_v25, %v479_v26  ;;  %v480_v31 = vmul.f32 %v7051_v23, %v468_v28  ;;  %v470_v32 = vpop.f32.mrb[7].mxu1  ;;  %v7103_v23 = vcombine.low %v986_v17, %v990_v18  ;;  %v1002_v26 = vld [vmem:[#allocation8 + $0x88] sm:$0xff]  ;;  %v7111_v28 = vcombine.low %v994_v21, %v998_v22 }
 0x357   :  { %v1014_v32 = vld [vmem:[#allocation8 + $0xe8] sm:$0xff] }
 0x358   :  { %v490_v33 = vmax.f32 %v488_v30, 0.0  ;;  %v489_v34 = vadd.f32 %v7052_v25, %v480_v31  ;;  %v7112_v25 = vcombine.high %v994_v21, %v998_v22  ;;  %v7120_v30 = vcombine.high %v1002_v26, %v1006_v27  ;;  %v1010_v31 = vld [vmem:[#allocation8 + $0xc8] sm:$0xff] }
 0x359   :  { %v1098_v21 = vld [vmem:[#allocation8 + $0x388] sm:$0xff] }
 0x35a   :  { %v493_v35 = vrot.slane %v490_v33, 1  ;;  %v491_v36 = vmax.f32 %v489_v34, 0.0  ;;  %v7128_v34 = vcombine.high %v1010_v31, %v1014_v32 }
 0x35c   :  { %v495_v37 = vmax.f32 %v490_v33, %v493_v35  ;;  %v509_v38 = vrot.slane %v491_v36, 1  ;;  %v7119_v33 = vcombine.low %v1002_v26, %v1006_v27  ;;  %v1018_v35 = vld [vmem:[#allocation8 + $0x108] sm:$0xff]  ;;  %v1109_v26 = vld [vmem:[#allocation8 + $0x3e0] sm:$0xff] }
 0x35e   :  { %v511_v39 = vmax.f32 %v491_v36, %v509_v38  ;;  %v497_v40 = vrot.slane %v495_v37, 1  ;;  %v499_v41 = vrot.slane %v495_v37, 2  ;;  %v501_v44 = vrot.slane %v495_v37, 3  ;;  %v1022_v36 = vld [vmem:[#allocation8 + $0x128] sm:$0xff] }
 0x35f   :  { %v7136_v38 = vcombine.high %v1018_v35, %v1022_v36 }
 0x360   :  { %v513_v42 = vrot.slane %v511_v39, 1  ;;  %v515_v43 = vrot.slane %v511_v39, 2  ;;  %v503_v45 = vsel %vm197_vm3, %v495_v37, %v497_v40  ;;  %v517_v48 = vrot.slane %v511_v39, 3  ;;  %v1030_v40 = vld [vmem:[#allocation8 + $0x168] sm:$0xff] }
 0x361   :  { %v505_v46 = vsel %vm504_vm8, %v503_v45, %v499_v41  ;;  %v7127_v37 = vcombine.low %v1010_v31, %v1014_v32  ;;  %v7135_v41 = vcombine.low %v1018_v35, %v1022_v36  ;;  %v1106_v31 = vld [vmem:[#allocation8 + $0x3c8] sm:$0xff]  ;;  %v8730_v36 = vld [vmem:[#allocation8 + $0x10] sm:$0xff] }
 0x362   :  { %v507_v47 = vsel %vm506_vm9, %v505_v46, %v501_v44  ;;  %v519_v49 = vsel %vm197_vm3, %v511_v39, %v513_v42  ;;  %v1026_v39 = vld [vmem:[#allocation8 + $0x148] sm:$0xff] }
 0x363   :  { %v520_v50 = vsel %vm504_vm8, %v519_v49, %v515_v43  ;;  %v523_v52 = vrot.slane %v507_v47, 7  ;;  %v526_v53 = vrot.slane %v507_v47, 1  ;;  %v7144_v42 = vcombine.high %v1026_v39, %v1030_v40  ;;  %v1034_v43 = vld [vmem:[#allocation8 + $0x188] sm:$0xff] }
 0x364   :  { %v521_v51 = vsel %vm506_vm9, %v520_v50, %v517_v48  ;;  %v1038_v44 = vld [vmem:[#allocation8 + $0x1a8] sm:$0xff]  ;;  %v7143_v45 = vcombine.low %v1026_v39, %v1030_v40  ;;  %v8738_v40 = vld [vmem:[#allocation8 + $0x38] sm:$0xff] }
 0x365   :  { %v530_v54 = vrot.slane %v521_v51, 7  ;;  %v533_v55 = vrot.slane %v521_v51, 1  ;;  %v539_v56 = vrot.slane %v521_v51, 4  ;;  %v528_v63 = vsel %vm506_vm9, %v526_v53, 0.0  ;;  %v1046_v48 = vld [vmem:[#allocation8 + $0x1e8] sm:$0xff] }
 0x366   :  { %v525_v0 = vsel %vm197_vm3, 0.0, %v523_v52  ;;  %v7152_v46 = vcombine.high %v1034_v43, %v1038_v44  ;;  %v7151_v49 = vcombine.low %v1034_v43, %v1038_v44  ;;  %v1050_v51 = vld [vmem:[#allocation8 + $0x208] sm:$0xff]  ;;  %v923_v44 = vlaneseq }
 0x367   :  { %v535_v57 = vsel %vm506_vm9, %v533_v55, 0.0  ;;  %v546_v58 = vsel %vm544_vm10, %v507_v47, %v539_v56  ;;  %v532_v59 = vsel %vm197_vm3, 0.0, %v530_v54  ;;  %v1042_v47 = vld [vmem:[#allocation8 + $0x1c8] sm:$0xff] }
 0x368   :  { %v540_v60 = vrot.slane %v535_v57, 4  ;;  %v597_v61 = vpack.c.bf16 %v546_v58, %v546_v58  ;;  %v538_v62 = vrot.slane %v532_v59, 4  ;;  %v7160_v50 = vcombine.high %v1042_v47, %v1046_v48  ;;  %v1054_v52 = vld [vmem:[#allocation8 + $0x228] sm:$0xff] }
 0x369   :  { %v7159_v53 = vcombine.low %v1042_v47, %v1046_v48  ;;  %v7168_v54 = vcombine.high %v1050_v51, %v1054_v52  ;;  %v1058_v55 = vld [vmem:[#allocation8 + $0x248] sm:$0xff]  ;;  %v7167_v57 = vcombine.low %v1050_v51, %v1054_v52  ;;  %v921_v47 = vld [vmem:[%s11292_s8] sm:$0x3] }
 0x36a   :  { %871 = vmatprep.mubr.bf16.mxu0 %v597_v61  ;;  %v545_v2 = vsel %vm544_vm10, %v525_v0, %v538_v62  ;;  %v547_v3 = vsel %vm544_vm10, %v528_v63, %v540_v60  ;;  %v1062_v56 = vld [vmem:[#allocation8 + $0x268] sm:$0xff] }
 0x36b   :  { %v596_v4 = vpack.c.bf16 %v545_v2, %v545_v2  ;;  %v598_v24 = vpack.c.bf16 %v547_v3, %v547_v3  ;;  %v7176_v58 = vcombine.high %v1058_v55, %v1062_v56  ;;  %v1066_v59 = vld [vmem:[#allocation8 + $0x288] sm:$0xff]  ;;  %v7175_v61 = vcombine.low %v1058_v55, %v1062_v56 }
 0x36c   :  { %v1070_v60 = vld [vmem:[#allocation8 + $0x2a8] sm:$0xff] }
 0x36d   :  { %872 = vmatmul.mubr.bf16.vlgmr.msra.gmra.mrb[0].mxu0 %v596_v4  ;;  %v7184_v62 = vcombine.high %v1066_v59, %v1070_v60  ;;  %v1074_v63 = vld [vmem:[#allocation8 + $0x2c8] sm:$0xff]  ;;  %v1081_v4 = vld [vmem:[#allocation8 + $0x300] sm:$0xff] }
 0x36e   :  { %881 = vmatpush1.bf16.msra.mxu0 %v7842_v1  ;;  %912 = vmatprep.mubr.bf16.mxu0 %v8400_v29  ;;  %v7860_v29 = vld [vmem:[#allocation6 + $0x160] ss:$8 sps:$4 sm:$0xff]   ;;  %v7183_v1 = vcombine.low %v1066_v59, %v1070_v60 }
 0x36f   :  { %882 = vmatprep.subr.bf16.mxu0 %v7847_v5  ;;  %v1078_v0 = vld [vmem:[#allocation8 + $0x2e8] sm:$0xff]  ;;  %v1085_v5 = vld [vmem:[#allocation8 + $0x320] sm:$0xff] }
 0x370   :  { %v7192_v2 = vcombine.high %v1074_v63, %v1078_v0  ;;  %v7191_v3 = vcombine.low %v1074_v63, %v1078_v0  ;;  %v1110_v32 = vld [vmem:[#allocation8 + $0x3e8] sm:$0xff] }
 0x371   :  { %v7223_v35 = vcombine.low %v1106_v31, %v1110_v32 }
 0x372   :  { %883 = vmatpush1.bf16.msra.mxu0 %v7845_v6  ;;  %v1082_v6 = vld [vmem:[#allocation8 + $0x308] sm:$0xff] }
 0x373   :  { %884 = vmatprep.subr.bf16.mxu0 %v7850_v7  ;;  %v7198_v7 = vcombine.high %v1081_v4, %v1085_v5 }
 0x375   :  { %1973 = vmatprep.subr.bf16.mxu1 %v7198_v7 }
 0x376   :  { %885 = vmatpush1.bf16.msra.mxu0 %v7848_v8  ;;  %v1086_v8 = vld [vmem:[#allocation8 + $0x328] sm:$0xff] }
 0x377   :  { %886 = vmatprep.subr.bf16.mxu0 %v7853_v9  ;;  %v7197_v9 = vcombine.low %v1081_v4, %v1085_v5 }
 0x379   :  { %1974 = vmatpush1.bf16.msra.mxu1 %v7197_v9 }
 0x37a   :  { %887 = vmatpush1.bf16.msra.mxu0 %v7851_v10  ;;  %v7199_v10 = vcombine.low %v1082_v6, %v1086_v8 }
 0x37b   :  { %888 = vmatprep.subr.bf16.mxu0 %v7856_v11  ;;  %v7200_v11 = vcombine.high %v1082_v6, %v1086_v8 }
 0x37e   :  { %889 = vmatpush1.bf16.msra.mxu0 %v7854_v12  ;;  %v1089_v12 = vld [vmem:[#allocation8 + $0x340] sm:$0xff] }
 0x37f   :  { %890 = vmatprep.subr.bf16.mxu0 %v7859_v13  ;;  %v1093_v13 = vld [vmem:[#allocation8 + $0x360] sm:$0xff] }
 0x382   :  { %891 = vmatpush1.bf16.msra.mxu0 %v7857_v14  ;;  %v1090_v14 = vld [vmem:[#allocation8 + $0x348] sm:$0xff] }
 0x383   :  { %892 = vmatprep.subr.bf16.mxu0 %v7862_v15  ;;  %v7206_v15 = vcombine.high %v1089_v12, %v1093_v13 }
 0x385   :  { %1975 = vmatprep.subr.bf16.mxu1 %v7206_v15 }
 0x386   :  { %893 = vmatpush1.bf16.msra.mxu0 %v7860_v29  ;;  %v1094_v29 = vld [vmem:[#allocation8 + $0x368] sm:$0xff] }
 0x387   :  { %894 = vmatprep.subr.bf16.mxu0 %v7865_v16  ;;  %v7205_v16 = vcombine.low %v1089_v12, %v1093_v13  ;;  %v7207_v17 = vcombine.low %v1090_v14, %v1094_v29  ;;  %v7208_v18 = vcombine.high %v1090_v14, %v1094_v29 }
 0x389   :  { %1976 = vmatpush1.bf16.msra.mxu1 %v7205_v16 }
 0x38a   :  { %895 = vmatpush1.bf16.msra.mxu0 %v7863_v19  ;;  %v1097_v19 = vld [vmem:[#allocation8 + $0x380] sm:$0xff] }
 0x38b   :  { %1990 = vmatprep.subr.bf16.mxu0 %v7104_v20  ;;  %v1101_v20 = vld [vmem:[#allocation8 + $0x3a0] sm:$0xff] }
 0x38c   :  { %v7213_v22 = vcombine.low %v1097_v19, %v1101_v20 }
 0x38d   :  { %913 = vmatmul.mubr.bf16.vlgmr.msra.gmra.mrb[0].mxu0 %v598_v24  ;;  %v1102_v24 = vld [vmem:[#allocation8 + $0x3a8] sm:$0xff] }
 0x38e   :  { %1991 = vmatpush1.bf16.msra.mxu0 %v7103_v23  ;;  %v7214_v23 = vcombine.high %v1097_v19, %v1101_v20  ;;  %v7215_v27 = vcombine.low %v1098_v21, %v1102_v24 }
 0x38f   :  { %1992 = vmatprep.subr.bf16.mxu0 %v7112_v25  ;;  %v1105_v25 = vld [vmem:[#allocation8 + $0x3c0] sm:$0xff] }
 0x390   :  { %1977 = vmatprep.subr.bf16.mxu1 %v7214_v23 }
 0x391   :  { %1978 = vmatpush1.bf16.msra.mxu1 %v7213_v22 }
 0x392   :  { %1993 = vmatpush1.bf16.msra.mxu0 %v7111_v28  ;;  %v7216_v28 = vcombine.high %v1098_v21, %v1102_v24 }
 0x393   :  { %1994 = vmatprep.subr.bf16.mxu0 %v7120_v30  ;;  %v7222_v30 = vcombine.high %v1105_v25, %v1109_v26 }
 0x395   :  { %1979 = vmatprep.subr.bf16.mxu1 %v7222_v30 }
 0x396   :  { %1995 = vmatpush1.bf16.msra.mxu0 %v7119_v33  ;;  %v7224_v33 = vcombine.high %v1106_v31, %v1110_v32  ;;  %v999_v32 = vld [vmem:[#allocation8 + $0x70] sm:$0xff] }
 0x397   :  { %1996 = vmatprep.subr.bf16.mxu0 %v7128_v34  ;;  %v7221_v34 = vcombine.low %v1105_v25, %v1109_v26 }
 0x399   :  { %1980 = vmatpush1.bf16.msra.mxu1 %v7221_v34  ;;  %v1000_v34 = vld [vmem:[#allocation8 + $0x78] sm:$0xff] }
 0x39a   :  { %1997 = vmatpush1.bf16.msra.mxu0 %v7127_v37  ;;  %v8732_v37 = vld [vmem:[#allocation8 + $0x30] sm:$0xff] }
 0x39b   :  { %1998 = vmatprep.subr.bf16.mxu0 %v7136_v38  ;;  %v8734_v38 = vld [vmem:[#allocation8 + $0x18] sm:$0xff]  ;;  %v7106_v39 = vcombine.high %v8730_v36, %v8732_v37 }
 0x39c   :  { %v7108_v43 = vcombine.high %v8734_v38, %v8738_v40 }
 0x39d   :  { %2031 = vmatprep.subr.bf16.mxu1 %v7106_v39 }
 0x39e   :  { %1999 = vmatpush1.bf16.msra.mxu0 %v7135_v41  ;;  %v7105_v41 = vcombine.low %v8730_v36, %v8732_v37 }
 0x39f   :  { %2000 = vmatprep.subr.bf16.mxu0 %v7144_v42  ;;  %v7107_v42 = vcombine.low %v8734_v38, %v8738_v40 }
 0x3a2   :  { %2001 = vmatpush1.bf16.msra.mxu0 %v7143_v45  ;;  %v8746_v45 = vshrl.u32 %v923_v44, 7  ;;  %v1003_v44 = vld [vmem:[#allocation8 + $0x90] sm:$0xff] }
 0x3a3   :  { %2002 = vmatprep.subr.bf16.mxu0 %v7152_v46 }
 0x3a4   :  { %11290 = vst [vmem:[#allocation22_spill] sm:$0xff] %v8746_v45  ;;  %v8749_v46 = vsub.s32 0, %v8746_v45  ;;  %v8755_v48 = vsub.s32 1, %v8746_v45  ;;  %v1222_v45 = vld [vmem:[#allocation9 + $0x368] sm:$0xff] }
 0x3a6   :  { %2003 = vmatpush1.bf16.msra.mxu0 %v7151_v49  ;;  %11291 = vst [vmem:[#allocation23_spill] sm:$0xff] %v8749_v46  ;;  %11293 = vst [vmem:[#allocation24_spill] sm:$0xff] %v8755_v48  ;;  %v935_v49 = vld [vmem:[%s10758_s9] sm:$0x3]  ;;  %v930_v51 = vrot.slane %v921_v47, %v8755_v48 }
 0x3a7   :  { %2004 = vmatprep.subr.bf16.mxu0 %v7160_v50  ;;  %v926_v50 = vrot.slane %v921_v47, %v8749_v46  ;;  %v940_v52 = vrot.slane %v935_v49, %v8749_v46  ;;  %v1229_v46 = vld [vmem:[#allocation9 + $0x3a0] sm:$0xff] }
 0x3aa   :  { %2005 = vmatpush1.bf16.msra.mxu0 %v7159_v53 }
 0x3ab   :  { %2006 = vmatprep.subr.bf16.mxu0 %v7168_v54  ;;  %v944_v54 = vrot.slane %v935_v49, %v8755_v48  ;;  %v1225_v48 = vld [vmem:[#allocation9 + $0x380] sm:$0xff] }
 0x3ae   :  { %2007 = vmatpush1.bf16.msra.mxu0 %v7167_v57 }
 0x3af   :  { %2008 = vmatprep.subr.bf16.mxu0 %v7176_v58 }
 0x3b2   :  { %2009 = vmatpush1.bf16.msra.mxu0 %v7175_v61 }
 0x3b3   :  { %2010 = vmatprep.subr.bf16.mxu0 %v7184_v62 }
 0x3b6   :  { %2011 = vmatpush1.bf16.msra.mxu0 %v7183_v1 }
 0x3b7   :  { %2012 = vmatprep.subr.bf16.mxu0 %v7192_v2 }
 0x3ba   :  { %2013 = vmatpush1.bf16.msra.mxu0 %v7191_v3 }
 0x3bb   :  { %2014 = vmatprep.subr.bf16.mxu0 %v7200_v11 }
 0x3be   :  { %2015 = vmatpush1.bf16.msra.mxu0 %v7199_v10 }
 0x3bf   :  { %2016 = vmatprep.subr.bf16.mxu0 %v7208_v18 }
 0x3c2   :  { %2017 = vmatpush1.bf16.msra.mxu0 %v7207_v17 }
 0x3c3   :  { %2018 = vmatprep.subr.bf16.mxu0 %v7216_v28  ;;  %v995_v28 = vld [vmem:[#allocation8 + $0x50] sm:$0xff] }
 0x3c4   :  { %v7114_v47 = vcombine.high %v995_v28, %v999_v32 }
 0x3c6   :  { %2019 = vmatpush1.bf16.msra.mxu0 %v7215_v27 }
 0x3c7   :  { %2020 = vmatprep.subr.bf16.mxu0 %v7224_v33  ;;  %v996_v33 = vld [vmem:[#allocation8 + $0x58] sm:$0xff] }
 0x3c8   :  { %v7116_v49 = vcombine.high %v996_v33, %v1000_v34 }
 0x3ca   :  { %2021 = vmatpush1.bf16.msra.mxu0 %v7223_v35 }
 0x3cb   :  { %2072 = vmatprep.subr.bf16.mxu0 %v7108_v43 }
 0x460   :  { %v914_v53 = vpop.f32.mrb[0].mxu0 }
 0x461   :  { %v933_v55 = vmul.f32 %v926_v50, %v914_v53  ;;  %v916_v56 = vpop.f32.mrb[1].mxu0  ;;  %v1007_v50 = vld [vmem:[#allocation8 + $0xb0] sm:$0xff]  ;;  %v7113_v53 = vcombine.low %v995_v28, %v999_v32  ;;  %v1052_v28 = vld [vmem:[#allocation8 + $0x218] sm:$0xff] }
 0x462   :  { %v934_v57 = vmul.f32 %v930_v51, %v916_v56  ;;  %v918_v58 = vpop.f32.mrb[2].mxu0  ;;  %v1004_v51 = vld [vmem:[#allocation8 + $0x98] sm:$0xff]  ;;  %v7121_v36 = vcombine.low %v1003_v44, %v1007_v50 }
 0x463   :  { %v947_v59 = vadd.f32 %v940_v52, %v933_v55  ;;  %v919_v60 = vpop.f32.mrb[3].mxu0  ;;  %v1008_v52 = vld [vmem:[#allocation8 + $0xb8] sm:$0xff]  ;;  %v7122_v55 = vcombine.high %v1003_v44, %v1007_v50  ;;  %v1015_v58 = vld [vmem:[#allocation8 + $0xf0] sm:$0xff] }
 0x464   :  { %v948_v61 = vadd.f32 %v944_v54, %v934_v57  ;;  %v7115_v54 = vcombine.low %v996_v33, %v1000_v34  ;;  %v7124_v56 = vcombine.high %v1004_v51, %v1008_v52  ;;  %v1011_v57 = vld [vmem:[#allocation8 + $0xd0] sm:$0xff]  ;;  %v1016_v60 = vld [vmem:[#allocation8 + $0xf8] sm:$0xff]  ;;  %v7123_v37 = vcombine.low %v1004_v51, %v1008_v52 }
 0x465   :  { %v949_v62 = vmax.f32 %v947_v59, 0.0  ;;  %v1012_v59 = vld [vmem:[#allocation8 + $0xd8] sm:$0xff]  ;;  %v7130_v38 = vcombine.high %v1011_v57, %v1015_v58 }
 0x466   :  { %v950_v63 = vmax.f32 %v948_v61, 0.0  ;;  %v7132_v40 = vcombine.high %v1012_v59, %v1016_v60  ;;  %v1020_v61 = vld [vmem:[#allocation8 + $0x118] sm:$0xff] }
 0x467   :  { %v953_v0 = vrot.slane %v949_v62, 3  ;;  %v959_v1 = vrot.slane %v949_v62, 1  ;;  %v963_v2 = vrot.slane %v949_v62, 4  ;;  %v969_v3 = vrot.slane %v949_v62, 2  ;;  %v1060_v44 = vld [vmem:[#allocation8 + $0x258] sm:$0xff] }
 0x468   :  { %v954_v4 = vrot.slane %v950_v63, 3  ;;  %v960_v5 = vrot.slane %v950_v63, 1  ;;  %v964_v6 = vrot.slane %v950_v63, 4  ;;  %v970_v7 = vrot.slane %v950_v63, 2 }
 0x469   :  { %v974_v8 = vrot.slane %v950_v63, 5  ;;  %v980_v9 = vrot.slane %v950_v63, 6  ;;  %v967_v10 = vsel %vm197_vm3, %v959_v1, %v963_v2  ;;  %v957_v12 = vsel %vm197_vm3, %v949_v62, %v953_v0 }
 0x46a   :  { %v968_v11 = vsel %vm197_vm3, %v960_v5, %v964_v6  ;;  %v973_v13 = vrot.slane %v949_v62, 5  ;;  %v979_v14 = vrot.slane %v949_v62, 6  ;;  %v1244_v17 = vrot.slane %v967_v10, 6  ;;  %v1024_v62 = vld [vmem:[#allocation8 + $0x138] sm:$0xff] }
 0x46b   :  { %v978_v15 = vsel %vm197_vm3, %v970_v7, %v974_v8  ;;  %v984_v29 = vsel %vm197_vm3, %v954_v4, %v980_v9  ;;  %v1245_v16 = vrot.slane %v968_v11, 6  ;;  %v958_v18 = vsel %vm197_vm3, %v950_v63, %v954_v4  ;;  %v1031_v4 = vld [vmem:[#allocation8 + $0x170] sm:$0xff]  ;;  %v1028_v5 = vld [vmem:[#allocation8 + $0x158] sm:$0xff] }
 0x46c   :  { %v1251_v19 = vrot.slane %v978_v15, 4  ;;  %v977_v20 = vsel %vm197_vm3, %v969_v3, %v973_v13  ;;  %v983_v21 = vsel %vm197_vm3, %v953_v0, %v979_v14  ;;  %v1257_v22 = vrot.slane %v984_v29, 2  ;;  %v1027_v3 = vld [vmem:[#allocation8 + $0x150] sm:$0xff]  ;;  %v1032_v6 = vld [vmem:[#allocation8 + $0x178] sm:$0xff] }
 0x46d   :  { %v1261_v23 = vsel %vm504_vm8, %v958_v18, %v1245_v16  ;;  %v1250_v24 = vrot.slane %v977_v20, 4  ;;  %v1260_v25 = vsel %vm504_vm8, %v957_v12, %v1244_v17  ;;  %v1256_v27 = vrot.slane %v983_v21, 2  ;;  %v1035_v11 = vld [vmem:[#allocation8 + $0x190] sm:$0xff]  ;;  %v1036_v13 = vld [vmem:[#allocation8 + $0x198] sm:$0xff] }
 0x46e   :  { %v1263_v26 = vsel %vm544_vm10, %v1261_v23, %v1251_v19  ;;  %v7129_v63 = vcombine.low %v1011_v57, %v1015_v58  ;;  %v7131_v0 = vcombine.low %v1012_v59, %v1016_v60  ;;  %v7140_v2 = vcombine.high %v1020_v61, %v1024_v62  ;;  %v1039_v12 = vld [vmem:[#allocation8 + $0x1b0] sm:$0xff]  ;;  %v1040_v14 = vld [vmem:[#allocation8 + $0x1b8] sm:$0xff] }
 0x46f   :  { %v1265_v30 = vsel %vm242_vm2, %v1263_v26, %v1257_v22  ;;  %v1262_v31 = vsel %vm544_vm10, %v1260_v25, %v1250_v24  ;;  %v7139_v8 = vcombine.low %v1020_v61, %v1024_v62  ;;  %v7146_v9 = vcombine.high %v1027_v3, %v1031_v4  ;;  %v1043_v18 = vld [vmem:[#allocation8 + $0x1d0] sm:$0xff]  ;;  %v1044_v20 = vld [vmem:[#allocation8 + $0x1d8] sm:$0xff] }
 0x470   :  { %v1267_v35 = vpack.c.bf16 %v1265_v30, %v1265_v30  ;;  %v1264_v39 = vsel %vm242_vm2, %v1262_v31, %v1256_v27  ;;  %v7148_v10 = vcombine.high %v1028_v5, %v1032_v6  ;;  %v7145_v15 = vcombine.low %v1027_v3, %v1031_v4  ;;  %v1047_v19 = vld [vmem:[#allocation8 + $0x1f0] sm:$0xff]  ;;  %v1048_v21 = vld [vmem:[#allocation8 + $0x1f8] sm:$0xff] }
 0x471   :  { %v8778_v43 = vpack.c.bf16 %v1264_v39, %v1264_v39  ;;  %v7147_v29 = vcombine.low %v1028_v5, %v1032_v6  ;;  %v7154_v16 = vcombine.high %v1035_v11, %v1039_v12  ;;  %v7156_v17 = vcombine.high %v1036_v13, %v1040_v14  ;;  %v1051_v26 = vld [vmem:[#allocation8 + $0x210] sm:$0xff]  ;;  %v1056_v30 = vld [vmem:[#allocation8 + $0x238] sm:$0xff] }
 0x472   :  { %1981 = vmatprep.mubr.bf16.mxu1 %v1267_v35  ;;  %2022 = vmatprep.mubr.bf16.mxu0 %v1267_v35  ;;  %v7153_v22 = vcombine.low %v1035_v11, %v1039_v12  ;;  %v7155_v23 = vcombine.low %v1036_v13, %v1040_v14  ;;  %v7162_v24 = vcombine.high %v1043_v18, %v1047_v19  ;;  %v1055_v27 = vld [vmem:[#allocation8 + $0x230] sm:$0xff] }
 0x473   :  { %1982 = vmatmul.mubr.bf16.vlgmr.msra.gmra.mrb[8].mxu1 %v8778_v43  ;;  %2023 = vmatmul.mubr.bf16.vlgmr.msra.gmra.mrb[4].mxu0 %v8778_v43  ;;  %v7164_v25 = vcombine.high %v1044_v20, %v1048_v21  ;;  %v7161_v31 = vcombine.low %v1043_v18, %v1047_v19  ;;  %v7163_v32 = vcombine.low %v1044_v20, %v1048_v21  ;;  %v1063_v39 = vld [vmem:[#allocation8 + $0x270] sm:$0xff] }
 0x474   :  { %2032 = vmatpush1.bf16.msra.mxu1 %v7105_v41  ;;  %2073 = vmatpush1.bf16.msra.mxu0 %v7107_v42  ;;  %v1019_v41 = vld [vmem:[#allocation8 + $0x110] sm:$0xff]  ;;  %v7170_v33 = vcombine.high %v1051_v26, %v1055_v27  ;;  %v7172_v34 = vcombine.high %v1052_v28, %v1056_v30  ;;  %v7171_v50 = vcombine.low %v1052_v28, %v1056_v30 }
 0x475   :  { %2063 = vmatprep.mubr.bf16.mxu1 %v1267_v35  ;;  %2104 = vmatprep.mubr.bf16.mxu0 %v1267_v35  ;;  %v1023_v42 = vld [vmem:[#allocation8 + $0x130] sm:$0xff] }
 0x476   :  { %2033 = vmatprep.subr.bf16.mxu1 %v7114_v47  ;;  %2074 = vmatprep.subr.bf16.mxu0 %v7116_v49  ;;  %v7138_v1 = vcombine.high %v1019_v41, %v1023_v42  ;;  %v7137_v7 = vcombine.low %v1019_v41, %v1023_v42  ;;  %v1059_v35 = vld [vmem:[#allocation8 + $0x250] sm:$0xff]  ;;  %v1064_v47 = vld [vmem:[#allocation8 + $0x278] sm:$0xff]  ;;  %v7169_v49 = vcombine.low %v1051_v26, %v1055_v27 }
 0x477   :  { %v7178_v51 = vcombine.high %v1059_v35, %v1063_v39  ;;  %v7180_v52 = vcombine.high %v1060_v44, %v1064_v47  ;;  %v7177_v57 = vcombine.low %v1059_v35, %v1063_v39  ;;  %v7179_v58 = vcombine.low %v1060_v44, %v1064_v47 }
 0x478   :  { %2034 = vmatpush1.bf16.msra.mxu1 %v7113_v53  ;;  %2075 = vmatpush1.bf16.msra.mxu0 %v7115_v54  ;;  %v1067_v53 = vld [vmem:[#allocation8 + $0x290] sm:$0xff] }
 0x479   :  { %2035 = vmatprep.subr.bf16.mxu1 %v7122_v55  ;;  %2076 = vmatprep.subr.bf16.mxu0 %v7124_v56  ;;  %v1071_v54 = vld [vmem:[#allocation8 + $0x2b0] sm:$0xff]  ;;  %v1068_v55 = vld [vmem:[#allocation8 + $0x298] sm:$0xff] }
 0x47a   :  { %v1072_v56 = vld [vmem:[#allocation8 + $0x2b8] sm:$0xff]  ;;  %v7186_v59 = vcombine.high %v1067_v53, %v1071_v54  ;;  %v7185_v41 = vcombine.low %v1067_v53, %v1071_v54 }
 0x47b   :  { %v7188_v60 = vcombine.high %v1068_v55, %v1072_v56  ;;  %v7187_v42 = vcombine.low %v1068_v55, %v1072_v56 }
 0x47c   :  { %2036 = vmatpush1.bf16.msra.mxu1 %v7121_v36  ;;  %2077 = vmatpush1.bf16.msra.mxu0 %v7123_v37  ;;  %v1075_v36 = vld [vmem:[#allocation8 + $0x2d0] sm:$0xff] }
 0x47d   :  { %2037 = vmatprep.subr.bf16.mxu1 %v7130_v38  ;;  %2078 = vmatprep.subr.bf16.mxu0 %v7132_v40  ;;  %v1079_v37 = vld [vmem:[#allocation8 + $0x2f0] sm:$0xff]  ;;  %v1076_v38 = vld [vmem:[#allocation8 + $0x2d8] sm:$0xff] }
 0x47e   :  { %v1080_v40 = vld [vmem:[#allocation8 + $0x2f8] sm:$0xff]  ;;  %v7194_v61 = vcombine.high %v1075_v36, %v1079_v37  ;;  %v7193_v3 = vcombine.low %v1075_v36, %v1079_v37 }
 0x47f   :  { %v7196_v62 = vcombine.high %v1076_v38, %v1080_v40  ;;  %v7195_v4 = vcombine.low %v1076_v38, %v1080_v40 }
 0x480   :  { %2038 = vmatpush1.bf16.msra.mxu1 %v7129_v63  ;;  %2079 = vmatpush1.bf16.msra.mxu0 %v7131_v0  ;;  %v1083_v63 = vld [vmem:[#allocation8 + $0x310] sm:$0xff] }
 0x481   :  { %2039 = vmatprep.subr.bf16.mxu1 %v7138_v1  ;;  %2080 = vmatprep.subr.bf16.mxu0 %v7140_v2  ;;  %v1087_v0 = vld [vmem:[#allocation8 + $0x330] sm:$0xff]  ;;  %v1084_v1 = vld [vmem:[#allocation8 + $0x318] sm:$0xff] }
 0x482   :  { %v1088_v2 = vld [vmem:[#allocation8 + $0x338] sm:$0xff]  ;;  %v7202_v5 = vcombine.high %v1083_v63, %v1087_v0  ;;  %v7201_v11 = vcombine.low %v1083_v63, %v1087_v0 }
 0x483   :  { %v7204_v6 = vcombine.high %v1084_v1, %v1088_v2  ;;  %v7203_v12 = vcombine.low %v1084_v1, %v1088_v2 }
 0x484   :  { %2040 = vmatpush1.bf16.msra.mxu1 %v7137_v7  ;;  %2081 = vmatpush1.bf16.msra.mxu0 %v7139_v8  ;;  %v1091_v7 = vld [vmem:[#allocation8 + $0x350] sm:$0xff] }
 0x485   :  { %2041 = vmatprep.subr.bf16.mxu1 %v7146_v9  ;;  %2082 = vmatprep.subr.bf16.mxu0 %v7148_v10  ;;  %v1095_v8 = vld [vmem:[#allocation8 + $0x370] sm:$0xff]  ;;  %v1092_v9 = vld [vmem:[#allocation8 + $0x358] sm:$0xff] }
 0x486   :  { %v1096_v10 = vld [vmem:[#allocation8 + $0x378] sm:$0xff]  ;;  %v7210_v13 = vcombine.high %v1091_v7, %v1095_v8  ;;  %v7209_v18 = vcombine.low %v1091_v7, %v1095_v8 }
 0x487   :  { %v7212_v14 = vcombine.high %v1092_v9, %v1096_v10  ;;  %v7211_v19 = vcombine.low %v1092_v9, %v1096_v10 }
 0x488   :  { %2042 = vmatpush1.bf16.msra.mxu1 %v7145_v15  ;;  %2083 = vmatpush1.bf16.msra.mxu0 %v7147_v29  ;;  %v1099_v15 = vld [vmem:[#allocation8 + $0x390] sm:$0xff] }
 0x489   :  { %2043 = vmatprep.subr.bf16.mxu1 %v7154_v16  ;;  %2084 = vmatprep.subr.bf16.mxu0 %v7156_v17  ;;  %v1103_v29 = vld [vmem:[#allocation8 + $0x3b0] sm:$0xff]  ;;  %v1100_v16 = vld [vmem:[#allocation8 + $0x398] sm:$0xff] }
 0x48a   :  { %v1104_v17 = vld [vmem:[#allocation8 + $0x3b8] sm:$0xff]  ;;  %v7218_v20 = vcombine.high %v1099_v15, %v1103_v29  ;;  %v7217_v26 = vcombine.low %v1099_v15, %v1103_v29 }
 0x48b   :  { %v7220_v21 = vcombine.high %v1100_v16, %v1104_v17  ;;  %v7219_v27 = vcombine.low %v1100_v16, %v1104_v17 }
 0x48c   :  { %2044 = vmatpush1.bf16.msra.mxu1 %v7153_v22  ;;  %2085 = vmatpush1.bf16.msra.mxu0 %v7155_v23  ;;  %v1107_v22 = vld [vmem:[#allocation8 + $0x3d0] sm:$0xff] }
 0x48d   :  { %2045 = vmatprep.subr.bf16.mxu1 %v7162_v24  ;;  %2086 = vmatprep.subr.bf16.mxu0 %v7164_v25  ;;  %v1111_v23 = vld [vmem:[#allocation8 + $0x3f0] sm:$0xff]  ;;  %v1108_v24 = vld [vmem:[#allocation8 + $0x3d8] sm:$0xff] }
 0x48e   :  { %v1112_v25 = vld [vmem:[#allocation8 + $0x3f8] sm:$0xff]  ;;  %v7226_v28 = vcombine.high %v1107_v22, %v1111_v23  ;;  %v7225_v35 = vcombine.low %v1107_v22, %v1111_v23 }
 0x48f   :  { %v7228_v30 = vcombine.high %v1108_v24, %v1112_v25  ;;  %v7227_v39 = vcombine.low %v1108_v24, %v1112_v25 }
 0x490   :  { %2046 = vmatpush1.bf16.msra.mxu1 %v7161_v31  ;;  %2087 = vmatpush1.bf16.msra.mxu0 %v7163_v32  ;;  %v1113_v31 = vld [vmem:[#allocation9] sm:$0xff] }
 0x491   :  { %2047 = vmatprep.subr.bf16.mxu1 %v7170_v33  ;;  %2088 = vmatprep.subr.bf16.mxu0 %v7172_v34  ;;  %v1117_v32 = vld [vmem:[#allocation9 + $0x20] sm:$0xff]  ;;  %v1114_v33 = vld [vmem:[#allocation9 + $0x8] sm:$0xff] }
 0x492   :  { %v1118_v34 = vld [vmem:[#allocation9 + $0x28] sm:$0xff]  ;;  %v8788_v44 = vcombine.high %v1113_v31, %v1117_v32  ;;  %v8792_v53 = vcombine.low %v1113_v31, %v1117_v32 }
 0x493   :  { %v8790_v47 = vcombine.high %v1114_v33, %v1118_v34  ;;  %v8794_v54 = vcombine.low %v1114_v33, %v1118_v34 }
 0x494   :  { %2048 = vmatpush1.bf16.msra.mxu1 %v7169_v49  ;;  %2089 = vmatpush1.bf16.msra.mxu0 %v7171_v50  ;;  %v1121_v49 = vld [vmem:[#allocation9 + $0x40] sm:$0xff] }
 0x495   :  { %2049 = vmatprep.subr.bf16.mxu1 %v7178_v51  ;;  %2090 = vmatprep.subr.bf16.mxu0 %v7180_v52  ;;  %v1125_v50 = vld [vmem:[#allocation9 + $0x60] sm:$0xff]  ;;  %v1122_v51 = vld [vmem:[#allocation9 + $0x48] sm:$0xff]  ;;  %11294 = vst [vmem:[#allocation25_spill] sm:$0xff] %v8794_v54 }
 0x496   :  { %v1126_v52 = vld [vmem:[#allocation9 + $0x68] sm:$0xff]  ;;  %v8798_v55 = vcombine.high %v1121_v49, %v1125_v50  ;;  %v8806_v36 = vcombine.low %v1121_v49, %v1125_v50 }
 0x497   :  { %v8800_v56 = vcombine.high %v1122_v51, %v1126_v52  ;;  %v8808_v37 = vcombine.low %v1122_v51, %v1126_v52  ;;  %v1178_v49 = vld [vmem:[#allocation9 + $0x208] sm:$0xff] }
 0x498   :  { %2050 = vmatpush1.bf16.msra.mxu1 %v7177_v57  ;;  %2091 = vmatpush1.bf16.msra.mxu0 %v7179_v58  ;;  %11295 = vst [vmem:[#allocation26_spill] sm:$0xff] %v8798_v55  ;;  %v1129_v57 = vld [vmem:[#allocation9 + $0x80] sm:$0xff]  ;;  %11297 = vst [vmem:[#allocation28_spill] sm:$0xff] %v8806_v36  ;;  %v1182_v50 = vld [vmem:[#allocation9 + $0x228] sm:$0xff] }
 0x499   :  { %2051 = vmatprep.subr.bf16.mxu1 %v7186_v59  ;;  %2092 = vmatprep.subr.bf16.mxu0 %v7188_v60  ;;  %11296 = vst [vmem:[#allocation27_spill] sm:$0xff] %v8800_v56  ;;  %v1133_v58 = vld [vmem:[#allocation9 + $0xa0] sm:$0xff]  ;;  %v1130_v59 = vld [vmem:[#allocation9 + $0x88] sm:$0xff]  ;;  %11298 = vst [vmem:[#allocation29_spill] sm:$0xff] %v8808_v37 }
 0x49a   :  { %v1134_v60 = vld [vmem:[#allocation9 + $0xa8] sm:$0xff]  ;;  %v8812_v38 = vcombine.high %v1129_v57, %v1133_v58  ;;  %v8820_v63 = vcombine.low %v1129_v57, %v1133_v58  ;;  %v8888_v58 = vcombine.high %v1178_v49, %v1182_v50 }
 0x49b   :  { %v8814_v40 = vcombine.high %v1130_v59, %v1134_v60  ;;  %v8822_v0 = vcombine.low %v1130_v59, %v1134_v60  ;;  %v1185_v59 = vld [vmem:[#allocation9 + $0x240] sm:$0xff] }
 0x49c   :  { %2052 = vmatpush1.bf16.msra.mxu1 %v7185_v41  ;;  %2093 = vmatpush1.bf16.msra.mxu0 %v7187_v42  ;;  %11299 = vst [vmem:[#allocation30_spill] sm:$0xff] %v8812_v38  ;;  %v1137_v41 = vld [vmem:[#allocation9 + $0xc0] sm:$0xff]  ;;  %11301 = vst [vmem:[#allocation32_spill] sm:$0xff] %v8820_v63 }
 0x49d   :  { %2053 = vmatprep.subr.bf16.mxu1 %v7194_v61  ;;  %2094 = vmatprep.subr.bf16.mxu0 %v7196_v62  ;;  %11300 = vst [vmem:[#allocation31_spill] sm:$0xff] %v8814_v40  ;;  %v1141_v42 = vld [vmem:[#allocation9 + $0xe0] sm:$0xff]  ;;  %v1138_v61 = vld [vmem:[#allocation9 + $0xc8] sm:$0xff]  ;;  %v10780_v62 = vmov 0.0|0.0   ;;  %11302 = vst [vmem:[#allocation33_spill] sm:$0xff] %v8822_v0 }
 0x49e   :  { %v8826_v1 = vcombine.high %v1137_v41, %v1141_v42  ;;  %v8832_v7 = vcombine.low %v1137_v41, %v1141_v42  ;;  %11324 = vst [vmem:[#allocation55_spill] sm:$0xff] %v8888_v58  ;;  %v1189_v60 = vld [vmem:[#allocation9 + $0x260] sm:$0xff]  ;;  %v1186_v41 = vld [vmem:[#allocation9 + $0x248] sm:$0xff] }
 0x49f   :  { %v1190_v42 = vld [vmem:[#allocation9 + $0x268] sm:$0xff] }
 0x4a0   :  { %2054 = vmatpush1.bf16.msra.mxu1 %v7193_v3  ;;  %2095 = vmatpush1.bf16.msra.mxu0 %v7195_v4  ;;  %11303 = vst [vmem:[#allocation34_spill] sm:$0xff] %v8826_v1  ;;  %v1145_v3 = vld [vmem:[#allocation9 + $0x100] sm:$0xff]  ;;  %11305 = vst [vmem:[#allocation36_spill] sm:$0xff] %v8832_v7 }
 0x4a1   :  { %2055 = vmatprep.subr.bf16.mxu1 %v7202_v5  ;;  %2096 = vmatprep.subr.bf16.mxu0 %v7204_v6  ;;  %v1149_v4 = vld [vmem:[#allocation9 + $0x120] sm:$0xff]  ;;  %v1146_v5 = vld [vmem:[#allocation9 + $0x108] sm:$0xff] }
 0x4a2   :  { %v1150_v6 = vld [vmem:[#allocation9 + $0x128] sm:$0xff]  ;;  %v8838_v9 = vcombine.high %v1145_v3, %v1149_v4  ;;  %v8844_v15 = vcombine.low %v1145_v3, %v1149_v4  ;;  %v8898_v3 = vcombine.high %v1185_v59, %v1189_v60  ;;  %v8900_v4 = vcombine.high %v1186_v41, %v1190_v42 }
 0x4a3   :  { %v8840_v10 = vcombine.high %v1146_v5, %v1150_v6  ;;  %v8846_v29 = vcombine.low %v1146_v5, %v1150_v6  ;;  %v1193_v5 = vld [vmem:[#allocation9 + $0x280] sm:$0xff] }
 0x4a4   :  { %2056 = vmatpush1.bf16.msra.mxu1 %v7201_v11  ;;  %2097 = vmatpush1.bf16.msra.mxu0 %v7203_v12  ;;  %11307 = vst [vmem:[#allocation38_spill] sm:$0xff] %v8838_v9  ;;  %v1153_v11 = vld [vmem:[#allocation9 + $0x140] sm:$0xff]  ;;  %11309 = vst [vmem:[#allocation40_spill] sm:$0xff] %v8844_v15 }
 0x4a5   :  { %2057 = vmatprep.subr.bf16.mxu1 %v7210_v13  ;;  %2098 = vmatprep.subr.bf16.mxu0 %v7212_v14  ;;  %11308 = vst [vmem:[#allocation39_spill] sm:$0xff] %v8840_v10  ;;  %v1157_v12 = vld [vmem:[#allocation9 + $0x160] sm:$0xff]  ;;  %v1154_v13 = vld [vmem:[#allocation9 + $0x148] sm:$0xff]  ;;  %11310 = vst [vmem:[#allocation41_spill] sm:$0xff] %v8846_v29 }
 0x4a6   :  { %v1158_v14 = vld [vmem:[#allocation9 + $0x168] sm:$0xff]  ;;  %v8850_v16 = vcombine.high %v1153_v11, %v1157_v12  ;;  %v8856_v22 = vcombine.low %v1153_v11, %v1157_v12  ;;  %11327 = vst [vmem:[#allocation58_spill] sm:$0xff] %v8898_v3  ;;  %11328 = vst [vmem:[#allocation59_spill] sm:$0xff] %v8900_v4  ;;  %v1197_v6 = vld [vmem:[#allocation9 + $0x2a0] sm:$0xff] }
 0x4a7   :  { %v8852_v17 = vcombine.high %v1154_v13, %v1158_v14  ;;  %v8858_v23 = vcombine.low %v1154_v13, %v1158_v14  ;;  %v1194_v11 = vld [vmem:[#allocation9 + $0x288] sm:$0xff]  ;;  %v8904_v13 = vcombine.low %v1185_v59, %v1189_v60  ;;  %v8906_v14 = vcombine.low %v1186_v41, %v1190_v42 }
 0x4a8   :  { %2058 = vmatpush1.bf16.msra.mxu1 %v7209_v18  ;;  %2099 = vmatpush1.bf16.msra.mxu0 %v7211_v19  ;;  %11311 = vst [vmem:[#allocation42_spill] sm:$0xff] %v8850_v16  ;;  %v1161_v18 = vld [vmem:[#allocation9 + $0x180] sm:$0xff]  ;;  %11313 = vst [vmem:[#allocation44_spill] sm:$0xff] %v8856_v22  ;;  %v1198_v12 = vld [vmem:[#allocation9 + $0x2a8] sm:$0xff] }
 0x4a9   :  { %2059 = vmatprep.subr.bf16.mxu1 %v7218_v20  ;;  %2100 = vmatprep.subr.bf16.mxu0 %v7220_v21  ;;  %11312 = vst [vmem:[#allocation43_spill] sm:$0xff] %v8852_v17  ;;  %v1165_v19 = vld [vmem:[#allocation9 + $0x1a0] sm:$0xff]  ;;  %v1162_v20 = vld [vmem:[#allocation9 + $0x188] sm:$0xff]  ;;  %11314 = vst [vmem:[#allocation45_spill] sm:$0xff] %v8858_v23 }
 0x4aa   :  { %v1166_v21 = vld [vmem:[#allocation9 + $0x1a8] sm:$0xff]  ;;  %v8862_v24 = vcombine.high %v1161_v18, %v1165_v19  ;;  %v8868_v31 = vcombine.low %v1161_v18, %v1165_v19  ;;  %11329 = vst [vmem:[#allocation60_spill] sm:$0xff] %v8904_v13  ;;  %11330 = vst [vmem:[#allocation61_spill] sm:$0xff] %v8906_v14  ;;  %v8910_v18 = vcombine.high %v1193_v5, %v1197_v6 }
 0x4ab   :  { %v8864_v25 = vcombine.high %v1162_v20, %v1166_v21  ;;  %v8870_v32 = vcombine.low %v1162_v20, %v1166_v21  ;;  %v8912_v19 = vcombine.high %v1194_v11, %v1198_v12  ;;  %v1201_v20 = vld [vmem:[#allocation9 + $0x2c0] sm:$0xff]  ;;  %v1210_v59 = vld [vmem:[#allocation9 + $0x308] sm:$0xff] }
 0x4ac   :  { %2060 = vmatpush1.bf16.msra.mxu1 %v7217_v26  ;;  %2101 = vmatpush1.bf16.msra.mxu0 %v7219_v27  ;;  %11315 = vst [vmem:[#allocation46_spill] sm:$0xff] %v8862_v24  ;;  %v1169_v26 = vld [vmem:[#allocation9 + $0x1c0] sm:$0xff]  ;;  %11317 = vst [vmem:[#allocation48_spill] sm:$0xff] %v8868_v31  ;;  %v1214_v60 = vld [vmem:[#allocation9 + $0x328] sm:$0xff] }
 0x4ad   :  { %2061 = vmatprep.subr.bf16.mxu1 %v7226_v28  ;;  %2102 = vmatprep.subr.bf16.mxu0 %v7228_v30  ;;  %11316 = vst [vmem:[#allocation47_spill] sm:$0xff] %v8864_v25  ;;  %v1173_v27 = vld [vmem:[#allocation9 + $0x1e0] sm:$0xff]  ;;  %v1170_v28 = vld [vmem:[#allocation9 + $0x1c8] sm:$0xff]  ;;  %11318 = vst [vmem:[#allocation49_spill] sm:$0xff] %v8870_v32 }
 0x4ae   :  { %v1174_v30 = vld [vmem:[#allocation9 + $0x1e8] sm:$0xff]  ;;  %v8874_v33 = vcombine.high %v1169_v26, %v1173_v27  ;;  %v8880_v51 = vcombine.low %v1169_v26, %v1173_v27  ;;  %11331 = vst [vmem:[#allocation62_spill] sm:$0xff] %v8910_v18  ;;  %11332 = vst [vmem:[#allocation63_spill] sm:$0xff] %v8912_v19  ;;  %v1205_v21 = vld [vmem:[#allocation9 + $0x2e0] sm:$0xff] }
 0x4af   :  { %v8876_v34 = vcombine.high %v1170_v28, %v1174_v30  ;;  %v8882_v52 = vcombine.low %v1170_v28, %v1174_v30  ;;  %v1202_v26 = vld [vmem:[#allocation9 + $0x2c8] sm:$0xff]  ;;  %v8916_v28 = vcombine.low %v1193_v5, %v1197_v6  ;;  %v8918_v30 = vcombine.low %v1194_v11, %v1198_v12  ;;  %v1217_v11 = vld [vmem:[#allocation9 + $0x340] sm:$0xff] }
 0x4b0   :  { %2062 = vmatpush1.bf16.msra.mxu1 %v7225_v35  ;;  %2103 = vmatpush1.bf16.msra.mxu0 %v7227_v39  ;;  %11319 = vst [vmem:[#allocation50_spill] sm:$0xff] %v8874_v33  ;;  %v1177_v35 = vld [vmem:[#allocation9 + $0x200] sm:$0xff]  ;;  %11321 = vst [vmem:[#allocation52_spill] sm:$0xff] %v8880_v51  ;;  %v1206_v27 = vld [vmem:[#allocation9 + $0x2e8] sm:$0xff]  ;;  %v8928_v41 = vcombine.low %v1201_v20, %v1205_v21  ;;  %v8936_v6 = vcombine.high %v1210_v59, %v1214_v60 }
 0x4b1   :  { %2754 = vmatprep.subr.bf16.mxu1 %v8788_v44  ;;  %2795 = vmatprep.subr.bf16.mxu0 %v8790_v47  ;;  %11320 = vst [vmem:[#allocation51_spill] sm:$0xff] %v8876_v34  ;;  %v1181_v39 = vld [vmem:[#allocation9 + $0x220] sm:$0xff]  ;;  %11322 = vst [vmem:[#allocation53_spill] sm:$0xff] %v8882_v52  ;;  %v8930_v42 = vcombine.low %v1202_v26, %v1206_v27 }
 0x4b2   :  { %v8886_v57 = vcombine.high %v1177_v35, %v1181_v39  ;;  %11333 = vst [vmem:[#allocation64_spill] sm:$0xff] %v8916_v28  ;;  %11334 = vst [vmem:[#allocation65_spill] sm:$0xff] %v8918_v30  ;;  %v1221_v12 = vld [vmem:[#allocation9 + $0x360] sm:$0xff] }
 0x4b3   :  { %2064 = vmatmul.mubr.bf16.vlgmr.msra.gmra.mrb[12].mxu1 %v8778_v43  ;;  %2105 = vmatmul.mubr.bf16.vlgmr.msra.gmra.mrb[8].mxu0 %v8778_v43  ;;  %v1142_v43 = vld [vmem:[#allocation9 + $0xe8] sm:$0xff]  ;;  %11337 = vst [vmem:[#allocation68_spill] sm:$0xff] %v8928_v41  ;;  %11338 = vst [vmem:[#allocation69_spill] sm:$0xff] %v8930_v42 }
 0x4b4   :  { %2755 = vmatpush1.bf16.msra.mxu1 %v8792_v53  ;;  %2796 = vmatpush1.bf16.msra.mxu0 %v8794_v54  ;;  %v8828_v2 = vcombine.high %v1138_v61, %v1142_v43  ;;  %v8834_v8 = vcombine.low %v1138_v61, %v1142_v43  ;;  %11323 = vst [vmem:[#allocation54_spill] sm:$0xff] %v8886_v57  ;;  %11340 = vst [vmem:[#allocation71_spill] sm:$0xff] %v8936_v6 }
 0x4b5   :  { %2756 = vmatprep.subr.bf16.mxu1 %v8798_v55  ;;  %2797 = vmatprep.subr.bf16.mxu0 %v8800_v56  ;;  %v8892_v61 = vcombine.low %v1177_v35, %v1181_v39  ;;  %v8894_v43 = vcombine.low %v1178_v49, %v1182_v50  ;;  %v8922_v35 = vcombine.high %v1201_v20, %v1205_v21  ;;  %v1209_v49 = vld [vmem:[#allocation9 + $0x300] sm:$0xff] }
 0x4b6   :  { %2786 = vmatprep.mubr.bf16.mxu1 %v10780_v62  ;;  %2827 = vmatprep.mubr.bf16.mxu0 %v10780_v62  ;;  %11304 = vst [vmem:[#allocation35_spill] sm:$0xff] %v8828_v2  ;;  %11306 = vst [vmem:[#allocation37_spill] sm:$0xff] %v8834_v8  ;;  %v8924_v39 = vcombine.high %v1202_v26, %v1206_v27  ;;  %v1213_v50 = vld [vmem:[#allocation9 + $0x320] sm:$0xff]  ;;  %v1218_v62 = vld [vmem:[#allocation9 + $0x348] sm:$0xff]  ;;  %v8942_v21 = vcombine.low %v1210_v59, %v1214_v60 }
 0x4b7   :  { %11325 = vst [vmem:[#allocation56_spill] sm:$0xff] %v8892_v61  ;;  %11326 = vst [vmem:[#allocation57_spill] sm:$0xff] %v8894_v43  ;;  %v8934_v5 = vcombine.high %v1209_v49, %v1213_v50  ;;  %v8940_v20 = vcombine.low %v1209_v49, %v1213_v50  ;;  %v8946_v26 = vcombine.high %v1217_v11, %v1221_v12 }
 0x4b8   :  { %2757 = vmatpush1.bf16.msra.mxu1 %v8806_v36  ;;  %2798 = vmatpush1.bf16.msra.mxu0 %v8808_v37  ;;  %11335 = vst [vmem:[#allocation66_spill] sm:$0xff] %v8922_v35  ;;  %11336 = vst [vmem:[#allocation67_spill] sm:$0xff] %v8924_v39  ;;  %v8948_v27 = vcombine.high %v1218_v62, %v1222_v45  ;;  %v8952_v49 = vcombine.low %v1217_v11, %v1221_v12 }
 0x4b9   :  { %2758 = vmatprep.subr.bf16.mxu1 %v8812_v38  ;;  %2799 = vmatprep.subr.bf16.mxu0 %v8814_v40  ;;  %11339 = vst [vmem:[#allocation70_spill] sm:$0xff] %v8934_v5  ;;  %11341 = vst [vmem:[#allocation72_spill] sm:$0xff] %v8940_v20  ;;  %v8954_v50 = vcombine.low %v1218_v62, %v1222_v45  ;;  %v8958_v59 = vcombine.high %v1225_v48, %v1229_v46 }
 0x4ba   :  { %11342 = vst [vmem:[#allocation73_spill] sm:$0xff] %v8942_v21  ;;  %11343 = vst [vmem:[#allocation74_spill] sm:$0xff] %v8946_v26  ;;  %v8964_v11 = vcombine.low %v1225_v48, %v1229_v46 }
 0x4bb   :  { %11344 = vst [vmem:[#allocation75_spill] sm:$0xff] %v8948_v27  ;;  %11345 = vst [vmem:[#allocation76_spill] sm:$0xff] %v8952_v49 }
 0x4bc   :  { %2759 = vmatpush1.bf16.msra.mxu1 %v8820_v63  ;;  %2800 = vmatpush1.bf16.msra.mxu0 %v8822_v0  ;;  %11346 = vst [vmem:[#allocation77_spill] sm:$0xff] %v8954_v50  ;;  %11347 = vst [vmem:[#allocation78_spill] sm:$0xff] %v8958_v59 }
 0x4bd   :  { %2760 = vmatprep.subr.bf16.mxu1 %v8826_v1  ;;  %2801 = vmatprep.subr.bf16.mxu0 %v8828_v2  ;;  %11349 = vst [vmem:[#allocation80_spill] sm:$0xff] %v8964_v11 }
 0x4c0   :  { %2761 = vmatpush1.bf16.msra.mxu1 %v8832_v7  ;;  %2802 = vmatpush1.bf16.msra.mxu0 %v8834_v8 }
 0x4c1   :  { %2762 = vmatprep.subr.bf16.mxu1 %v8838_v9  ;;  %2803 = vmatprep.subr.bf16.mxu0 %v8840_v10 }
 0x4c4   :  { %2763 = vmatpush1.bf16.msra.mxu1 %v8844_v15  ;;  %2804 = vmatpush1.bf16.msra.mxu0 %v8846_v29 }
 0x4c5   :  { %2764 = vmatprep.subr.bf16.mxu1 %v8850_v16  ;;  %2805 = vmatprep.subr.bf16.mxu0 %v8852_v17 }
 0x4c8   :  { %2765 = vmatpush1.bf16.msra.mxu1 %v8856_v22  ;;  %2806 = vmatpush1.bf16.msra.mxu0 %v8858_v23 }
 0x4c9   :  { %2766 = vmatprep.subr.bf16.mxu1 %v8862_v24  ;;  %2807 = vmatprep.subr.bf16.mxu0 %v8864_v25 }
 0x4cc   :  { %2767 = vmatpush1.bf16.msra.mxu1 %v8868_v31  ;;  %2808 = vmatpush1.bf16.msra.mxu0 %v8870_v32 }
 0x4cd   :  { %2768 = vmatprep.subr.bf16.mxu1 %v8874_v33  ;;  %2809 = vmatprep.subr.bf16.mxu0 %v8876_v34 }
 0x4d0   :  { %2769 = vmatpush1.bf16.msra.mxu1 %v8880_v51  ;;  %2810 = vmatpush1.bf16.msra.mxu0 %v8882_v52 }
 0x4d1   :  { %2770 = vmatprep.subr.bf16.mxu1 %v8886_v57  ;;  %2811 = vmatprep.subr.bf16.mxu0 %v8888_v58 }
 0x4d4   :  { %2771 = vmatpush1.bf16.msra.mxu1 %v8892_v61  ;;  %2812 = vmatpush1.bf16.msra.mxu0 %v8894_v43 }
 0x4d5   :  { %2772 = vmatprep.subr.bf16.mxu1 %v8898_v3  ;;  %2813 = vmatprep.subr.bf16.mxu0 %v8900_v4 }
 0x4d8   :  { %2773 = vmatpush1.bf16.msra.mxu1 %v8904_v13  ;;  %2814 = vmatpush1.bf16.msra.mxu0 %v8906_v14 }
 0x4d9   :  { %2774 = vmatprep.subr.bf16.mxu1 %v8910_v18  ;;  %2815 = vmatprep.subr.bf16.mxu0 %v8912_v19 }
 0x4dc   :  { %2775 = vmatpush1.bf16.msra.mxu1 %v8916_v28  ;;  %2816 = vmatpush1.bf16.msra.mxu0 %v8918_v30  ;;  %v11361_v30 = vmov 0.0|0.0  }
 0x4dd   :  { %2776 = vmatprep.subr.bf16.mxu1 %v8922_v35  ;;  %2817 = vmatprep.subr.bf16.mxu0 %v8924_v39  ;;  %v1226_v39 = vld [vmem:[#allocation9 + $0x388] sm:$0xff] }
 0x4de   :  { %v1230_v35 = vld [vmem:[#allocation9 + $0x3a8] sm:$0xff] }
 0x4df   :  { %v8960_v60 = vcombine.high %v1226_v39, %v1230_v35  ;;  %v8966_v45 = vcombine.low %v1226_v39, %v1230_v35 }
 0x4e0   :  { %2777 = vmatpush1.bf16.msra.mxu1 %v8928_v41  ;;  %2818 = vmatpush1.bf16.msra.mxu0 %v8930_v42  ;;  %v1234_v42 = vld [vmem:[#allocation9 + $0x3c8] sm:$0xff] }
 0x4e1   :  { %2778 = vmatprep.subr.bf16.mxu1 %v8934_v5  ;;  %2819 = vmatprep.subr.bf16.mxu0 %v8936_v6  ;;  %11348 = vst [vmem:[#allocation79_spill] sm:$0xff] %v8960_v60  ;;  %v1233_v6 = vld [vmem:[#allocation9 + $0x3c0] sm:$0xff]  ;;  %v1238_v41 = vld [vmem:[#allocation9 + $0x3e8] sm:$0xff]  ;;  %11350 = vst [vmem:[#allocation81_spill] sm:$0xff] %v8966_v45 }
 0x4e2   :  { %v1237_v5 = vld [vmem:[#allocation9 + $0x3e0] sm:$0xff]  ;;  %v8972_v12 = vcombine.high %v1234_v42, %v1238_v41  ;;  %v8978_v48 = vcombine.low %v1234_v42, %v1238_v41 }
 0x4e3   :  { %v8970_v62 = vcombine.high %v1233_v6, %v1237_v5  ;;  %v8976_v46 = vcombine.low %v1233_v6, %v1237_v5 }
 0x4e4   :  { %2779 = vmatpush1.bf16.msra.mxu1 %v8940_v20  ;;  %2820 = vmatpush1.bf16.msra.mxu0 %v8942_v21  ;;  %11352 = vst [vmem:[#allocation83_spill] sm:$0xff] %v8972_v12  ;;  %v1116_v21 = vld [vmem:[#allocation9 + $0x18] sm:$0xff]  ;;  %11354 = vst [vmem:[#allocation85_spill] sm:$0xff] %v8978_v48 }
 0x4e5   :  { %2780 = vmatprep.subr.bf16.mxu1 %v8946_v26  ;;  %2821 = vmatprep.subr.bf16.mxu0 %v8948_v27  ;;  %11351 = vst [vmem:[#allocation82_spill] sm:$0xff] %v8970_v62  ;;  %v1115_v27 = vld [vmem:[#allocation9 + $0x10] sm:$0xff]  ;;  %v1120_v20 = vld [vmem:[#allocation9 + $0x38] sm:$0xff]  ;;  %11353 = vst [vmem:[#allocation84_spill] sm:$0xff] %v8976_v46 }
 0x4e6   :  { %v1119_v26 = vld [vmem:[#allocation9 + $0x30] sm:$0xff]  ;;  %v8984_v39 = vcombine.high %v1116_v21, %v1120_v20  ;;  %v8990_v41 = vcombine.low %v1116_v21, %v1120_v20 }
 0x4e7   :  { %v8982_v35 = vcombine.high %v1115_v27, %v1119_v26  ;;  %v8988_v5 = vcombine.low %v1115_v27, %v1119_v26 }
 0x4e8   :  { %2781 = vmatpush1.bf16.msra.mxu1 %v8952_v49  ;;  %2822 = vmatpush1.bf16.msra.mxu0 %v8954_v50  ;;  %11356 = vst [vmem:[#allocation87_spill] sm:$0xff] %v8984_v39  ;;  %v1124_v50 = vld [vmem:[#allocation9 + $0x58] sm:$0xff]  ;;  %11358 = vst [vmem:[#allocation89_spill] sm:$0xff] %v8990_v41 }
 0x4e9   :  { %2782 = vmatprep.subr.bf16.mxu1 %v8958_v59  ;;  %2823 = vmatprep.subr.bf16.mxu0 %v8960_v60  ;;  %11355 = vst [vmem:[#allocation86_spill] sm:$0xff] %v8982_v35  ;;  %v1123_v60 = vld [vmem:[#allocation9 + $0x50] sm:$0xff]  ;;  %v1128_v49 = vld [vmem:[#allocation9 + $0x78] sm:$0xff]  ;;  %11357 = vst [vmem:[#allocation88_spill] sm:$0xff] %v8988_v5 }
 0x4ea   :  { %v1127_v59 = vld [vmem:[#allocation9 + $0x70] sm:$0xff]  ;;  %v8996_v6 = vcombine.high %v1124_v50, %v1128_v49  ;;  %v9004_v21 = vcombine.low %v1124_v50, %v1128_v49 }
 0x4eb   :  { %v8994_v42 = vcombine.high %v1123_v60, %v1127_v59  ;;  %v9002_v20 = vcombine.low %v1123_v60, %v1127_v59 }
 0x4ec   :  { %2783 = vmatpush1.bf16.msra.mxu1 %v8964_v11  ;;  %2824 = vmatpush1.bf16.msra.mxu0 %v8966_v45  ;;  %11360 = vst [vmem:[#allocation91_spill] sm:$0xff] %v8996_v6  ;;  %v1132_v45 = vld [vmem:[#allocation9 + $0x98] sm:$0xff]  ;;  %11363 = vst [vmem:[#allocation93_spill] sm:$0xff] %v9004_v21 }
 0x4ed   :  { %2784 = vmatprep.subr.bf16.mxu1 %v8970_v62  ;;  %2825 = vmatprep.subr.bf16.mxu0 %v8972_v12  ;;  %11359 = vst [vmem:[#allocation90_spill] sm:$0xff] %v8994_v42  ;;  %v1131_v12 = vld [vmem:[#allocation9 + $0x90] sm:$0xff]  ;;  %v1136_v11 = vld [vmem:[#allocation9 + $0xb8] sm:$0xff]  ;;  %11362 = vst [vmem:[#allocation92_spill] sm:$0xff] %v9002_v20 }
 0x4ee   :  { %v1135_v62 = vld [vmem:[#allocation9 + $0xb0] sm:$0xff]  ;;  %v9010_v27 = vcombine.high %v1132_v45, %v1136_v11  ;;  %v9018_v50 = vcombine.low %v1132_v45, %v1136_v11 }
 0x4ef   :  { %v9008_v26 = vcombine.high %v1131_v12, %v1135_v62  ;;  %v9016_v49 = vcombine.low %v1131_v12, %v1135_v62 }
 0x4f0   :  { %2785 = vmatpush1.bf16.msra.mxu1 %v8976_v46  ;;  %2826 = vmatpush1.bf16.msra.mxu0 %v8978_v48  ;;  %11365 = vst [vmem:[#allocation95_spill] sm:$0xff] %v9010_v27  ;;  %v1140_v48 = vld [vmem:[#allocation9 + $0xd8] sm:$0xff]  ;;  %11367 = vst [vmem:[#allocation97_spill] sm:$0xff] %v9018_v50 }
 0x4f1   :  { %2836 = vmatprep.subr.bf16.mxu1 %v8982_v35  ;;  %2877 = vmatprep.subr.bf16.mxu0 %v8984_v39  ;;  %11364 = vst [vmem:[#allocation94_spill] sm:$0xff] %v9008_v26  ;;  %v1139_v39 = vld [vmem:[#allocation9 + $0xd0] sm:$0xff]  ;;  %v1144_v46 = vld [vmem:[#allocation9 + $0xf8] sm:$0xff]  ;;  %11366 = vst [vmem:[#allocation96_spill] sm:$0xff] %v9016_v49 }
 0x4f2   :  { %v1143_v35 = vld [vmem:[#allocation9 + $0xf0] sm:$0xff]  ;;  %v9024_v60 = vcombine.high %v1140_v48, %v1144_v46  ;;  %v9030_v11 = vcombine.low %v1140_v48, %v1144_v46 }
 0x4f3   :  { %2787 = vmatmul.mubr.bf16.vlgmr.msra.gmra.mrb[16].mxu1 %v11361_v30  ;;  %2828 = vmatmul.mubr.bf16.vlgmr.msra.gmra.mrb[12].mxu0 %v11361_v30  ;;  %v9022_v59 = vcombine.high %v1139_v39, %v1143_v35  ;;  %v9028_v62 = vcombine.low %v1139_v39, %v1143_v35 }
 0x4f4   :  { %2837 = vmatpush1.bf16.msra.mxu1 %v8988_v5  ;;  %2878 = vmatpush1.bf16.msra.mxu0 %v8990_v41  ;;  %11369 = vst [vmem:[#allocation99_spill] sm:$0xff] %v9024_v60  ;;  %v1148_v41 = vld [vmem:[#allocation9 + $0x118] sm:$0xff]  ;;  %11371 = vst [vmem:[#allocation101_spill] sm:$0xff] %v9030_v11 }
 0x4f5   :  { %2838 = vmatprep.subr.bf16.mxu1 %v8994_v42  ;;  %2879 = vmatprep.subr.bf16.mxu0 %v8996_v6  ;;  %11368 = vst [vmem:[#allocation98_spill] sm:$0xff] %v9022_v59  ;;  %v1147_v6 = vld [vmem:[#allocation9 + $0x110] sm:$0xff]  ;;  %v1152_v5 = vld [vmem:[#allocation9 + $0x138] sm:$0xff]  ;;  %11370 = vst [vmem:[#allocation100_spill] sm:$0xff] %v9028_v62 }
 0x4f6   :  { %2868 = vmatprep.mubr.bf16.mxu1 %v11361_v30  ;;  %2909 = vmatprep.mubr.bf16.mxu0 %v11361_v30  ;;  %v1151_v42 = vld [vmem:[#allocation9 + $0x130] sm:$0xff]  ;;  %v9036_v12 = vcombine.high %v1148_v41, %v1152_v5  ;;  %v9042_v46 = vcombine.low %v1148_v41, %v1152_v5 }
 0x4f7   :  { %v9034_v45 = vcombine.high %v1147_v6, %v1151_v42  ;;  %v9040_v35 = vcombine.low %v1147_v6, %v1151_v42 }
 0x4f8   :  { %2839 = vmatpush1.bf16.msra.mxu1 %v9002_v20  ;;  %2880 = vmatpush1.bf16.msra.mxu0 %v9004_v21  ;;  %11373 = vst [vmem:[#allocation103_spill] sm:$0xff] %v9036_v12  ;;  %v1156_v21 = vld [vmem:[#allocation9 + $0x158] sm:$0xff]  ;;  %11375 = vst [vmem:[#allocation105_spill] sm:$0xff] %v9042_v46 }
 0x4f9   :  { %2840 = vmatprep.subr.bf16.mxu1 %v9008_v26  ;;  %2881 = vmatprep.subr.bf16.mxu0 %v9010_v27  ;;  %11372 = vst [vmem:[#allocation102_spill] sm:$0xff] %v9034_v45  ;;  %v1155_v27 = vld [vmem:[#allocation9 + $0x150] sm:$0xff]  ;;  %v1160_v20 = vld [vmem:[#allocation9 + $0x178] sm:$0xff]  ;;  %11374 = vst [vmem:[#allocation104_spill] sm:$0xff] %v9040_v35 }
 0x4fa   :  { %v1159_v26 = vld [vmem:[#allocation9 + $0x170] sm:$0xff]  ;;  %v9048_v39 = vcombine.high %v1156_v21, %v1160_v20  ;;  %v9054_v5 = vcombine.low %v1156_v21, %v1160_v20 }
 0x4fb   :  { %v9046_v48 = vcombine.high %v1155_v27, %v1159_v26  ;;  %v9052_v42 = vcombine.low %v1155_v27, %v1159_v26 }
 0x4fc   :  { %2841 = vmatpush1.bf16.msra.mxu1 %v9016_v49  ;;  %2882 = vmatpush1.bf16.msra.mxu0 %v9018_v50  ;;  %11377 = vst [vmem:[#allocation107_spill] sm:$0xff] %v9048_v39  ;;  %v1164_v50 = vld [vmem:[#allocation9 + $0x198] sm:$0xff]  ;;  %11379 = vst [vmem:[#allocation109_spill] sm:$0xff] %v9054_v5 }
 0x4fd   :  { %2842 = vmatprep.subr.bf16.mxu1 %v9022_v59  ;;  %2883 = vmatprep.subr.bf16.mxu0 %v9024_v60  ;;  %11376 = vst [vmem:[#allocation106_spill] sm:$0xff] %v9046_v48  ;;  %v1163_v60 = vld [vmem:[#allocation9 + $0x190] sm:$0xff]  ;;  %v1168_v49 = vld [vmem:[#allocation9 + $0x1b8] sm:$0xff]  ;;  %11378 = vst [vmem:[#allocation108_spill] sm:$0xff] %v9052_v42 }
 0x4fe   :  { %v1167_v59 = vld [vmem:[#allocation9 + $0x1b0] sm:$0xff]  ;;  %v9060_v6 = vcombine.high %v1164_v50, %v1168_v49  ;;  %v9066_v20 = vcombine.low %v1164_v50, %v1168_v49 }
 0x4ff   :  { %v9058_v41 = vcombine.high %v1163_v60, %v1167_v59  ;;  %v9064_v26 = vcombine.low %v1163_v60, %v1167_v59 }
 0x500   :  { %2843 = vmatpush1.bf16.msra.mxu1 %v9028_v62  ;;  %2884 = vmatpush1.bf16.msra.mxu0 %v9030_v11  ;;  %11381 = vst [vmem:[#allocation111_spill] sm:$0xff] %v9060_v6  ;;  %v1172_v11 = vld [vmem:[#allocation9 + $0x1d8] sm:$0xff]  ;;  %11383 = vst [vmem:[#allocation113_spill] sm:$0xff] %v9066_v20 }
 0x501   :  { %2844 = vmatprep.subr.bf16.mxu1 %v9034_v45  ;;  %2885 = vmatprep.subr.bf16.mxu0 %v9036_v12  ;;  %11380 = vst [vmem:[#allocation110_spill] sm:$0xff] %v9058_v41  ;;  %v1171_v12 = vld [vmem:[#allocation9 + $0x1d0] sm:$0xff]  ;;  %v1176_v62 = vld [vmem:[#allocation9 + $0x1f8] sm:$0xff]  ;;  %11382 = vst [vmem:[#allocation112_spill] sm:$0xff] %v9064_v26 }
 0x502   :  { %v1175_v45 = vld [vmem:[#allocation9 + $0x1f0] sm:$0xff]  ;;  %v9072_v27 = vcombine.high %v1172_v11, %v1176_v62  ;;  %v9078_v49 = vcombine.low %v1172_v11, %v1176_v62 }
 0x503   :  { %v9070_v21 = vcombine.high %v1171_v12, %v1175_v45  ;;  %v9076_v59 = vcombine.low %v1171_v12, %v1175_v45 }
 0x504   :  { %2845 = vmatpush1.bf16.msra.mxu1 %v9040_v35  ;;  %2886 = vmatpush1.bf16.msra.mxu0 %v9042_v46  ;;  %11385 = vst [vmem:[#allocation115_spill] sm:$0xff] %v9072_v27  ;;  %v1180_v46 = vld [vmem:[#allocation9 + $0x218] sm:$0xff]  ;;  %11387 = vst [vmem:[#allocation117_spill] sm:$0xff] %v9078_v49 }
 0x505   :  { %2846 = vmatprep.subr.bf16.mxu1 %v9046_v48  ;;  %2887 = vmatprep.subr.bf16.mxu0 %v9048_v39  ;;  %11384 = vst [vmem:[#allocation114_spill] sm:$0xff] %v9070_v21  ;;  %v1179_v39 = vld [vmem:[#allocation9 + $0x210] sm:$0xff]  ;;  %v1184_v35 = vld [vmem:[#allocation9 + $0x238] sm:$0xff]  ;;  %11386 = vst [vmem:[#allocation116_spill] sm:$0xff] %v9076_v59 }
 0x506   :  { %v1183_v48 = vld [vmem:[#allocation9 + $0x230] sm:$0xff]  ;;  %v9084_v60 = vcombine.high %v1180_v46, %v1184_v35  ;;  %v9090_v62 = vcombine.low %v1180_v46, %v1184_v35 }
 0x507   :  { %v9082_v50 = vcombine.high %v1179_v39, %v1183_v48  ;;  %v9088_v45 = vcombine.low %v1179_v39, %v1183_v48 }
 0x508   :  { %2847 = vmatpush1.bf16.msra.mxu1 %v9052_v42  ;;  %2888 = vmatpush1.bf16.msra.mxu0 %v9054_v5  ;;  %11389 = vst [vmem:[#allocation119_spill] sm:$0xff] %v9084_v60  ;;  %v1188_v5 = vld [vmem:[#allocation9 + $0x258] sm:$0xff]  ;;  %11391 = vst [vmem:[#allocation121_spill] sm:$0xff] %v9090_v62 }
 0x509   :  { %2848 = vmatprep.subr.bf16.mxu1 %v9058_v41  ;;  %2889 = vmatprep.subr.bf16.mxu0 %v9060_v6  ;;  %11388 = vst [vmem:[#allocation118_spill] sm:$0xff] %v9082_v50  ;;  %v1187_v6 = vld [vmem:[#allocation9 + $0x250] sm:$0xff]  ;;  %v1192_v42 = vld [vmem:[#allocation9 + $0x278] sm:$0xff]  ;;  %11390 = vst [vmem:[#allocation120_spill] sm:$0xff] %v9088_v45 }
 0x50a   :  { %v1191_v41 = vld [vmem:[#allocation9 + $0x270] sm:$0xff]  ;;  %v9096_v12 = vcombine.high %v1188_v5, %v1192_v42  ;;  %v9102_v35 = vcombine.low %v1188_v5, %v1192_v42 }
 0x50b   :  { %v9094_v11 = vcombine.high %v1187_v6, %v1191_v41  ;;  %v9100_v48 = vcombine.low %v1187_v6, %v1191_v41 }
 0x50c   :  { %2849 = vmatpush1.bf16.msra.mxu1 %v9064_v26  ;;  %2890 = vmatpush1.bf16.msra.mxu0 %v9066_v20  ;;  %11393 = vst [vmem:[#allocation123_spill] sm:$0xff] %v9096_v12  ;;  %v1196_v20 = vld [vmem:[#allocation9 + $0x298] sm:$0xff]  ;;  %11395 = vst [vmem:[#allocation125_spill] sm:$0xff] %v9102_v35 }
 0x50d   :  { %2850 = vmatprep.subr.bf16.mxu1 %v9070_v21  ;;  %2891 = vmatprep.subr.bf16.mxu0 %v9072_v27  ;;  %11392 = vst [vmem:[#allocation122_spill] sm:$0xff] %v9094_v11  ;;  %v1195_v27 = vld [vmem:[#allocation9 + $0x290] sm:$0xff]  ;;  %v1200_v26 = vld [vmem:[#allocation9 + $0x2b8] sm:$0xff]  ;;  %11394 = vst [vmem:[#allocation124_spill] sm:$0xff] %v9100_v48 }
 0x50e   :  { %v1199_v21 = vld [vmem:[#allocation9 + $0x2b0] sm:$0xff]  ;;  %v9108_v39 = vcombine.high %v1196_v20, %v1200_v26  ;;  %v9114_v42 = vcombine.low %v1196_v20, %v1200_v26 }
 0x50f   :  { %v9106_v46 = vcombine.high %v1195_v27, %v1199_v21  ;;  %v9112_v41 = vcombine.low %v1195_v27, %v1199_v21 }
 0x510   :  { %2851 = vmatpush1.bf16.msra.mxu1 %v9076_v59  ;;  %2892 = vmatpush1.bf16.msra.mxu0 %v9078_v49  ;;  %11397 = vst [vmem:[#allocation127_spill] sm:$0xff] %v9108_v39  ;;  %v1204_v49 = vld [vmem:[#allocation9 + $0x2d8] sm:$0xff]  ;;  %11399 = vst [vmem:[#allocation129_spill] sm:$0xff] %v9114_v42 }
 0x511   :  { %2852 = vmatprep.subr.bf16.mxu1 %v9082_v50  ;;  %2893 = vmatprep.subr.bf16.mxu0 %v9084_v60  ;;  %11396 = vst [vmem:[#allocation126_spill] sm:$0xff] %v9106_v46  ;;  %v1203_v60 = vld [vmem:[#allocation9 + $0x2d0] sm:$0xff]  ;;  %v1208_v59 = vld [vmem:[#allocation9 + $0x2f8] sm:$0xff]  ;;  %11398 = vst [vmem:[#allocation128_spill] sm:$0xff] %v9112_v41 }
 0x512   :  { %v1207_v50 = vld [vmem:[#allocation9 + $0x2f0] sm:$0xff]  ;;  %v9120_v6 = vcombine.high %v1204_v49, %v1208_v59  ;;  %v9126_v26 = vcombine.low %v1204_v49, %v1208_v59 }
 0x513   :  { %v9118_v5 = vcombine.high %v1203_v60, %v1207_v50  ;;  %v9124_v21 = vcombine.low %v1203_v60, %v1207_v50 }
 0x514   :  { %2853 = vmatpush1.bf16.msra.mxu1 %v9088_v45  ;;  %2894 = vmatpush1.bf16.msra.mxu0 %v9090_v62  ;;  %11401 = vst [vmem:[#allocation131_spill] sm:$0xff] %v9120_v6  ;;  %v1212_v62 = vld [vmem:[#allocation9 + $0x318] sm:$0xff]  ;;  %11403 = vst [vmem:[#allocation133_spill] sm:$0xff] %v9126_v26 }
 0x515   :  { %2854 = vmatprep.subr.bf16.mxu1 %v9094_v11  ;;  %2895 = vmatprep.subr.bf16.mxu0 %v9096_v12  ;;  %11400 = vst [vmem:[#allocation130_spill] sm:$0xff] %v9118_v5  ;;  %v1211_v12 = vld [vmem:[#allocation9 + $0x310] sm:$0xff]  ;;  %v1216_v45 = vld [vmem:[#allocation9 + $0x338] sm:$0xff]  ;;  %11402 = vst [vmem:[#allocation132_spill] sm:$0xff] %v9124_v21 }
 0x516   :  { %v1215_v11 = vld [vmem:[#allocation9 + $0x330] sm:$0xff]  ;;  %v9132_v27 = vcombine.high %v1212_v62, %v1216_v45  ;;  %v9138_v59 = vcombine.low %v1212_v62, %v1216_v45 }
 0x517   :  { %v9130_v20 = vcombine.high %v1211_v12, %v1215_v11  ;;  %v9136_v50 = vcombine.low %v1211_v12, %v1215_v11 }
 0x518   :  { %2855 = vmatpush1.bf16.msra.mxu1 %v9100_v48  ;;  %2896 = vmatpush1.bf16.msra.mxu0 %v9102_v35  ;;  %11405 = vst [vmem:[#allocation135_spill] sm:$0xff] %v9132_v27  ;;  %v1220_v35 = vld [vmem:[#allocation9 + $0x358] sm:$0xff]  ;;  %11407 = vst [vmem:[#allocation137_spill] sm:$0xff] %v9138_v59 }
 0x519   :  { %2856 = vmatprep.subr.bf16.mxu1 %v9106_v46  ;;  %2897 = vmatprep.subr.bf16.mxu0 %v9108_v39  ;;  %11404 = vst [vmem:[#allocation134_spill] sm:$0xff] %v9130_v20  ;;  %v1219_v39 = vld [vmem:[#allocation9 + $0x350] sm:$0xff]  ;;  %v1224_v48 = vld [vmem:[#allocation9 + $0x378] sm:$0xff]  ;;  %11406 = vst [vmem:[#allocation136_spill] sm:$0xff] %v9136_v50 }
 0x51a   :  { %v1223_v46 = vld [vmem:[#allocation9 + $0x370] sm:$0xff]  ;;  %v9144_v60 = vcombine.high %v1220_v35, %v1224_v48  ;;  %v9150_v45 = vcombine.low %v1220_v35, %v1224_v48 }
 0x51b   :  { %v9142_v49 = vcombine.high %v1219_v39, %v1223_v46  ;;  %v9148_v11 = vcombine.low %v1219_v39, %v1223_v46 }
 0x51c   :  { %2857 = vmatpush1.bf16.msra.mxu1 %v9112_v41  ;;  %2898 = vmatpush1.bf16.msra.mxu0 %v9114_v42  ;;  %11409 = vst [vmem:[#allocation139_spill] sm:$0xff] %v9144_v60  ;;  %v1228_v42 = vld [vmem:[#allocation9 + $0x398] sm:$0xff]  ;;  %11411 = vst [vmem:[#allocation141_spill] sm:$0xff] %v9150_v45 }
 0x51d   :  { %2858 = vmatprep.subr.bf16.mxu1 %v9118_v5  ;;  %2899 = vmatprep.subr.bf16.mxu0 %v9120_v6  ;;  %11408 = vst [vmem:[#allocation138_spill] sm:$0xff] %v9142_v49  ;;  %v1227_v6 = vld [vmem:[#allocation9 + $0x390] sm:$0xff]  ;;  %v1232_v41 = vld [vmem:[#allocation9 + $0x3b8] sm:$0xff]  ;;  %11410 = vst [vmem:[#allocation140_spill] sm:$0xff] %v9148_v11 }
 0x51e   :  { %v1231_v5 = vld [vmem:[#allocation9 + $0x3b0] sm:$0xff]  ;;  %v9156_v12 = vcombine.high %v1228_v42, %v1232_v41  ;;  %v9162_v48 = vcombine.low %v1228_v42, %v1232_v41 }
 0x51f   :  { %v9154_v62 = vcombine.high %v1227_v6, %v1231_v5  ;;  %v9160_v46 = vcombine.low %v1227_v6, %v1231_v5 }
 0x520   :  { %2859 = vmatpush1.bf16.msra.mxu1 %v9124_v21  ;;  %2900 = vmatpush1.bf16.msra.mxu0 %v9126_v26  ;;  %11413 = vst [vmem:[#allocation143_spill] sm:$0xff] %v9156_v12  ;;  %v1236_v26 = vld [vmem:[#allocation9 + $0x3d8] sm:$0xff]  ;;  %11415 = vst [vmem:[#allocation145_spill] sm:$0xff] %v9162_v48 }
 0x521   :  { %2860 = vmatprep.subr.bf16.mxu1 %v9130_v20  ;;  %2901 = vmatprep.subr.bf16.mxu0 %v9132_v27  ;;  %11412 = vst [vmem:[#allocation142_spill] sm:$0xff] %v9154_v62  ;;  %v1235_v27 = vld [vmem:[#allocation9 + $0x3d0] sm:$0xff]  ;;  %v1240_v21 = vld [vmem:[#allocation9 + $0x3f8] sm:$0xff]  ;;  %11414 = vst [vmem:[#allocation144_spill] sm:$0xff] %v9160_v46 }
 0x522   :  { %v1239_v20 = vld [vmem:[#allocation9 + $0x3f0] sm:$0xff]  ;;  %v9168_v39 = vcombine.high %v1236_v26, %v1240_v21 }
 0x523   :  { %v9166_v35 = vcombine.high %v1235_v27, %v1239_v20 }
 0x524   :  { %2861 = vmatpush1.bf16.msra.mxu1 %v9136_v50  ;;  %2902 = vmatpush1.bf16.msra.mxu0 %v9138_v59  ;;  %11417 = vst [vmem:[#allocation147_spill] sm:$0xff] %v9168_v39 }
 0x525   :  { %2862 = vmatprep.subr.bf16.mxu1 %v9142_v49  ;;  %2903 = vmatprep.subr.bf16.mxu0 %v9144_v60  ;;  %11416 = vst [vmem:[#allocation146_spill] sm:$0xff] %v9166_v35  ;;  %v9172_v60 = vcombine.low %v1235_v27, %v1239_v20 }
 0x527   :  { %11418 = vst [vmem:[#allocation148_spill] sm:$0xff] %v9172_v60 }
 0x528   :  { %2863 = vmatpush1.bf16.msra.mxu1 %v9148_v11  ;;  %2904 = vmatpush1.bf16.msra.mxu0 %v9150_v45  ;;  %v9174_v11 = vcombine.low %v1236_v26, %v1240_v21 }
 0x529   :  { %2864 = vmatprep.subr.bf16.mxu1 %v9154_v62  ;;  %2905 = vmatprep.subr.bf16.mxu0 %v9156_v12 }
 0x52a   :  { %11419 = vst [vmem:[#allocation149_spill] sm:$0xff] %v9174_v11 }
 0x52c   :  { %2865 = vmatpush1.bf16.msra.mxu1 %v9160_v46  ;;  %2906 = vmatpush1.bf16.msra.mxu0 %v9162_v48 }
 0x52d   :  { %2866 = vmatprep.subr.bf16.mxu1 %v9166_v35  ;;  %2907 = vmatprep.subr.bf16.mxu0 %v9168_v39 }
 0x530   :  { %2867 = vmatpush1.bf16.msra.mxu1 %v9172_v60  ;;  %2908 = vmatpush1.bf16.msra.mxu0 %v9174_v11 }
 0x531   :  { %2988 = vmatprep.subr.bf16.mxu1 %v8788_v44  ;;  %3029 = vmatprep.subr.bf16.mxu0 %v8790_v47 }
 0x533   :  { %2869 = vmatmul.mubr.bf16.vlgmr.msra.gmra.mrb[20].mxu1 %v11361_v30  ;;  %2910 = vmatmul.mubr.bf16.vlgmr.msra.gmra.mrb[16].mxu0 %v11361_v30  ;;  %v11424_v30 = vld [vmem:[#allocation69_spill] sm:$0xff] }
 0x534   :  { %2989 = vmatpush1.bf16.msra.mxu1 %v8792_v53  ;;  %3030 = vmatpush1.bf16.msra.mxu0 %v8794_v54 }
 0x535   :  { %2990 = vmatprep.subr.bf16.mxu1 %v8798_v55  ;;  %3031 = vmatprep.subr.bf16.mxu0 %v8800_v56 }
 0x538   :  { %2991 = vmatpush1.bf16.msra.mxu1 %v8806_v36  ;;  %3032 = vmatpush1.bf16.msra.mxu0 %v8808_v37 }
 0x539   :  { %2992 = vmatprep.subr.bf16.mxu1 %v8812_v38  ;;  %3033 = vmatprep.subr.bf16.mxu0 %v8814_v40 }
 0x53c   :  { %2993 = vmatpush1.bf16.msra.mxu1 %v8820_v63  ;;  %3034 = vmatpush1.bf16.msra.mxu0 %v8822_v0 }
 0x53d   :  { %2994 = vmatprep.subr.bf16.mxu1 %v8826_v1  ;;  %3035 = vmatprep.subr.bf16.mxu0 %v8828_v2 }
 0x540   :  { %2995 = vmatpush1.bf16.msra.mxu1 %v8832_v7  ;;  %3036 = vmatpush1.bf16.msra.mxu0 %v8834_v8 }
 0x541   :  { %2996 = vmatprep.subr.bf16.mxu1 %v8838_v9  ;;  %3037 = vmatprep.subr.bf16.mxu0 %v8840_v10 }
 0x544   :  { %2997 = vmatpush1.bf16.msra.mxu1 %v8844_v15  ;;  %3038 = vmatpush1.bf16.msra.mxu0 %v8846_v29 }
 0x545   :  { %2998 = vmatprep.subr.bf16.mxu1 %v8850_v16  ;;  %3039 = vmatprep.subr.bf16.mxu0 %v8852_v17 }
 0x546   :  { %v9204_v41 = vpop.f32.mrb[8].mxu1  ;;  %v9206_v42 = vpop.f32.mrb[4].mxu0 }
 0x547   :  { %v1985_v5 = vpop.f32.mrb[9].mxu1  ;;  %v9208_v6 = vpop.f32.mrb[5].mxu0 }
 0x548   :  { %v1987_v21 = vpop.f32.mrb[10].mxu1  ;;  %v2028_v26 = vpop.f32.mrb[6].mxu0  ;;  %2999 = vmatpush1.bf16.msra.mxu1 %v8856_v22  ;;  %3040 = vmatpush1.bf16.msra.mxu0 %v8858_v23 }
 0x549   :  { %v1988_v20 = vpop.f32.mrb[11].mxu1  ;;  %v2029_v27 = vpop.f32.mrb[7].mxu0  ;;  %3000 = vmatprep.subr.bf16.mxu1 %v8862_v24  ;;  %3041 = vmatprep.subr.bf16.mxu0 %v8864_v25  ;;  %v11420_v21 = vld [vmem:[#allocation65_spill] sm:$0xff]  ;;  %v11421_v26 = vld [vmem:[#allocation66_spill] sm:$0xff] }
 0x54a   :  { %v11422_v20 = vld [vmem:[#allocation67_spill] sm:$0xff]  ;;  %v11423_v27 = vld [vmem:[#allocation68_spill] sm:$0xff] }
 0x54c   :  { %3001 = vmatpush1.bf16.msra.mxu1 %v8868_v31  ;;  %3042 = vmatpush1.bf16.msra.mxu0 %v8870_v32 }
 0x54d   :  { %3002 = vmatprep.subr.bf16.mxu1 %v8874_v33  ;;  %3043 = vmatprep.subr.bf16.mxu0 %v8876_v34  ;;  %v11447_v33 = vld [vmem:[#allocation22_spill] sm:$0xff] }
 0x54e   :  { %v10973_v32 = vsub.s32 2, %v11447_v33 }
 0x550   :  { %3003 = vmatpush1.bf16.msra.mxu1 %v8880_v51  ;;  %3044 = vmatpush1.bf16.msra.mxu0 %v8882_v52 }
 0x551   :  { %3004 = vmatprep.subr.bf16.mxu1 %v8886_v57  ;;  %3045 = vmatprep.subr.bf16.mxu0 %v8888_v58 }
 0x554   :  { %3005 = vmatpush1.bf16.msra.mxu1 %v8892_v61  ;;  %3046 = vmatpush1.bf16.msra.mxu0 %v8894_v43 }
 0x555   :  { %3006 = vmatprep.subr.bf16.mxu1 %v8898_v3  ;;  %3047 = vmatprep.subr.bf16.mxu0 %v8900_v4  ;;  %v11425_v4 = vld [vmem:[#allocation70_spill] sm:$0xff] }
 0x558   :  { %3007 = vmatpush1.bf16.msra.mxu1 %v8904_v13  ;;  %3048 = vmatpush1.bf16.msra.mxu0 %v8906_v14  ;;  %v11426_v13 = vld [vmem:[#allocation71_spill] sm:$0xff]  ;;  %v11427_v14 = vld [vmem:[#allocation72_spill] sm:$0xff] }
 0x559   :  { %3008 = vmatprep.subr.bf16.mxu1 %v8910_v18  ;;  %3049 = vmatprep.subr.bf16.mxu0 %v8912_v19  ;;  %v11428_v18 = vld [vmem:[#allocation73_spill] sm:$0xff]  ;;  %v11429_v19 = vld [vmem:[#allocation74_spill] sm:$0xff] }
 0x55c   :  { %3009 = vmatpush1.bf16.msra.mxu1 %v8916_v28  ;;  %3050 = vmatpush1.bf16.msra.mxu0 %v11420_v21  ;;  %v11430_v28 = vld [vmem:[#allocation75_spill] sm:$0xff]  ;;  %v11431_v21 = vld [vmem:[#allocation76_spill] sm:$0xff] }
 0x55d   :  { %3010 = vmatprep.subr.bf16.mxu1 %v11421_v26  ;;  %3051 = vmatprep.subr.bf16.mxu0 %v11422_v20  ;;  %v11432_v26 = vld [vmem:[#allocation77_spill] sm:$0xff]  ;;  %v11433_v20 = vld [vmem:[#allocation78_spill] sm:$0xff] }
 0x560   :  { %3011 = vmatpush1.bf16.msra.mxu1 %v11423_v27  ;;  %3052 = vmatpush1.bf16.msra.mxu0 %v11424_v30  ;;  %v11434_v27 = vld [vmem:[#allocation79_spill] sm:$0xff]  ;;  %v11435_v30 = vld [vmem:[#allocation80_spill] sm:$0xff] }
 0x561   :  { %3012 = vmatprep.subr.bf16.mxu1 %v11425_v4  ;;  %3053 = vmatprep.subr.bf16.mxu0 %v11426_v13  ;;  %v11436_v4 = vld [vmem:[#allocation81_spill] sm:$0xff]  ;;  %v11437_v13 = vld [vmem:[#allocation82_spill] sm:$0xff] }
 0x564   :  { %3013 = vmatpush1.bf16.msra.mxu1 %v11427_v14  ;;  %3054 = vmatpush1.bf16.msra.mxu0 %v11428_v18  ;;  %v11438_v14 = vld [vmem:[#allocation83_spill] sm:$0xff]  ;;  %v11439_v18 = vld [vmem:[#allocation84_spill] sm:$0xff] }
 0x565   :  { %3014 = vmatprep.subr.bf16.mxu1 %v11429_v19  ;;  %3055 = vmatprep.subr.bf16.mxu0 %v11430_v28  ;;  %v11440_v19 = vld [vmem:[#allocation85_spill] sm:$0xff]  ;;  %v11441_v28 = vld [vmem:[#allocation86_spill] sm:$0xff] }
 0x568   :  { %3015 = vmatpush1.bf16.msra.mxu1 %v11431_v21  ;;  %3056 = vmatpush1.bf16.msra.mxu0 %v11432_v26  ;;  %v11442_v21 = vld [vmem:[#allocation87_spill] sm:$0xff] }
 0x569   :  { %3016 = vmatprep.subr.bf16.mxu1 %v11433_v20  ;;  %3057 = vmatprep.subr.bf16.mxu0 %v11434_v27 }
 0x56c   :  { %3017 = vmatpush1.bf16.msra.mxu1 %v11435_v30  ;;  %3058 = vmatpush1.bf16.msra.mxu0 %v11436_v4 }
 0x56d   :  { %3018 = vmatprep.subr.bf16.mxu1 %v11437_v13  ;;  %3059 = vmatprep.subr.bf16.mxu0 %v11438_v14  ;;  %v1241_v14 = vld [vmem:[%s10761_s12] sm:$0xff] }
 0x570   :  { %3019 = vmatpush1.bf16.msra.mxu1 %v11439_v18  ;;  %3060 = vmatpush1.bf16.msra.mxu0 %v11440_v19  ;;  %v11443_v18 = vld [vmem:[#allocation23_spill] sm:$0xff]  ;;  %v11444_v19 = vld [vmem:[#allocation24_spill] sm:$0xff] }
 0x571   :  { %3070 = vmatprep.subr.bf16.mxu1 %v11441_v28  ;;  %3111 = vmatprep.subr.bf16.mxu0 %v11442_v21  ;;  %v1272_v13 = vrot.slane %v1241_v14, %v11443_v18  ;;  %v1276_v58 = vrot.slane %v1241_v14, %v11444_v19 }
 0x573   :  { %v9262_v28 = vadd.f32 %v9204_v41, %v1272_v13  ;;  %v9264_v21 = vadd.f32 %v1985_v5, %v1276_v58  ;;  %v1280_v58 = vrot.slane %v1241_v14, %v10973_v32 }
 0x575   :  { %11445 = vst [vmem:[#allocation150_spill] sm:$0xff] %v9262_v28  ;;  %11446 = vst [vmem:[#allocation151_spill] sm:$0xff] %v9264_v21  ;;  %v9272_v13 = vadd.f32 %v9206_v42, %v1280_v58  ;;  %v10971_v42 = vsub.s32 5, %v11447_v33 }
 0x577   :  { %11448 = vst [vmem:[#allocation152_spill] sm:$0xff] %v9272_v13  ;;  %v1292_v58 = vrot.slane %v1241_v14, %v10971_v42 }
 0x586   :  { %v2065_v26 = vpop.f32.mrb[12].mxu1  ;;  %v9254_v20 = vpop.f32.mrb[8].mxu0 }
 0x587   :  { %v2067_v27 = vpop.f32.mrb[13].mxu1  ;;  %v2108_v3 = vpop.f32.mrb[9].mxu0 }
 0x588   :  { %v2069_v30 = vpop.f32.mrb[14].mxu1  ;;  %v2110_v43 = vpop.f32.mrb[10].mxu0 }
 0x589   :  { %v2070_v4 = vpop.f32.mrb[15].mxu1  ;;  %v2111_v61 = vpop.f32.mrb[11].mxu0 }
 0x5c6   :  { %v2788_v57 = vpop.f32.mrb[16].mxu1  ;;  %v2829_v52 = vpop.f32.mrb[12].mxu0 }
 0x5c7   :  { %v2918_v30 = vadd.f32 %v2788_v57, %v9262_v28  ;;  %v2790_v43 = vpop.f32.mrb[17].mxu1  ;;  %v2831_v4 = vpop.f32.mrb[13].mxu0  ;;  %v2920_v57 = vadd.f32 %v2829_v52, %v9272_v13 }
 0x5c8   :  { %v2919_v61 = vadd.f32 %v2790_v43, %v9264_v21  ;;  %v2792_v51 = vpop.f32.mrb[18].mxu1  ;;  %v2833_v34 = vpop.f32.mrb[14].mxu0 }
 0x5c9   :  { %v7357_v18 = vmul.f32 -1.442695, %v2918_v30  ;;  %v2793_v31 = vpop.f32.mrb[19].mxu1  ;;  %v2834_v19 = vpop.f32.mrb[15].mxu0 }
 0x5ca   :  { %v7358_v25 = vmul.f32 -1.442695, %v2919_v61  ;;  %v10972_v61 = vsub.s32 4, %v11447_v33 }
 0x5cb   :  { %7930 = vpow2.f32 %v7357_v18 }
 0x5cc   :  { %7932 = vpow2.f32 %v7358_v25  ;;  %v1288_v52 = vrot.slane %v1241_v14, %v10972_v61 }
 0x5cd   :  { %7934 = vtanh.f32 %v2920_v57  ;;  %v10976_v57 = vsub.s32 7, %v11447_v33 }
 0x5d5   :  { %v7931_v41 = vpop.eup %7930 }
 0x5d6   :  { %v7933_v5 = vpop.eup %7932  ;;  %v2941_v51 = vadd.f32 1.0, %v7931_v41  ;;  %v9284_v41 = vadd.f32 %v2065_v26, %v1288_v52 }
 0x5d7   :  { %v2947_v34 = vadd.f32 1.0, %v7933_v5  ;;  %v7935_v31 = vpop.eup %7934  ;;  %v9286_v5 = vadd.f32 %v2067_v27, %v1292_v58 }
 0x5d8   :  { %7936 = vrcp.f32 %v2941_v51  ;;  %11449 = vst [vmem:[#allocation153_spill] sm:$0xff] %v9284_v41  ;;  %v10988_v51 = vsub.s32 3, %v11447_v33 }
 0x5d9   :  { %7938 = vrcp.f32 %v2947_v34  ;;  %11450 = vst [vmem:[#allocation154_spill] sm:$0xff] %v9286_v5  ;;  %v1300_v34 = vrot.slane %v1241_v14, %v10976_v57 }
 0x5da   :  { %v1284_v42 = vrot.slane %v1241_v14, %v10988_v51  ;;  %v11471_v51 = vld [vmem:[#allocation106_spill] sm:$0xff] }
 0x5db   :  { %v9296_v58 = vadd.f32 %v2108_v3, %v1300_v34 }
 0x5e2   :  { %v7937_v19 = vpop.eup %7936 }
 0x5e3   :  { %v7939_v30 = vpop.eup %7938  ;;  %v2958_v18 = vmul.f32 %v7937_v19, %v7935_v31  ;;  %v10987_v31 = vsub.s32 6, %v11447_v33  ;;  %v2926_v19 = vrot.slane %v9284_v41, 6  ;;  %v11472_v33 = vld [vmem:[#allocation107_spill] sm:$0xff] }
 0x5e4   :  { %v2957_v25 = vmul.f32 0.0, %v7939_v30 }
 0x5e5   :  { %v1296_v57 = vrot.slane %v1241_v14, %v10987_v31  ;;  %v11470_v31 = vld [vmem:[#allocation105_spill] sm:$0xff] }
 0x5e6   :  { %v9275_v43 = vadd.f32 %v2958_v18, %v2957_v25  ;;  %v2927_v25 = vrot.slane %v9286_v5, 6  ;;  %v9301_v5 = vadd.f32 %v9208_v6, %v1284_v42 }
 0x5e7   :  { %v9305_v3 = vadd.f32 %v9254_v20, %v1296_v57 }
 0x5e9   :  { %v2928_v14 = vrot.slane %v9305_v3, 6 }
 0x606   :  { %v2870_v30 = vpop.f32.mrb[20].mxu1  ;;  %v2911_v18 = vpop.f32.mrb[16].mxu0 }
 0x607   :  { %v2934_v26 = vadd.f32 %v2926_v19, %v2870_v30  ;;  %v2872_v52 = vpop.f32.mrb[21].mxu1  ;;  %v2913_v27 = vpop.f32.mrb[17].mxu0  ;;  %v2929_v19 = vrot.slane %v9296_v58, 6 }
 0x608   :  { %v2935_v61 = vadd.f32 %v2927_v25, %v2872_v52  ;;  %v2874_v32 = vpop.f32.mrb[22].mxu1  ;;  %v2915_v13 = vpop.f32.mrb[18].mxu0 }
 0x609   :  { %v7360_v21 = vmul.f32 -1.442695, %v2934_v26  ;;  %v2875_v41 = vpop.f32.mrb[23].mxu1  ;;  %v2916_v28 = vpop.f32.mrb[19].mxu0  ;;  %v2921_v32 = vadd.f32 %v2831_v4, %v9301_v5  ;;  %v2937_v13 = vadd.f32 %v2929_v19, %v2913_v27 }
 0x60a   :  { %v7361_v24 = vmul.f32 -1.442695, %v2935_v61  ;;  %v2936_v41 = vadd.f32 %v2928_v14, %v2911_v18 }
 0x60b   :  { %7940 = vpow2.f32 %v7360_v21  ;;  %v7359_v34 = vmul.f32 -1.442695, %v2921_v32  ;;  %v7362_v30 = vmul.f32 -1.442695, %v2937_v13 }
 0x60c   :  { %7942 = vpow2.f32 %v7361_v24 }
 0x60d   :  { %7944 = vpow2.f32 %v7359_v34 }
 0x60e   :  { %7946 = vpow2.f32 %v7362_v30 }
 0x60f   :  { %7948 = vtanh.f32 %v2936_v41 }
 0x615   :  { %v7941_v28 = vpop.eup %7940 }
 0x616   :  { %v7943_v61 = vpop.eup %7942  ;;  %v2965_v6 = vadd.f32 1.0, %v7941_v28 }
 0x617   :  { %v2971_v24 = vadd.f32 1.0, %v7943_v61  ;;  %v7945_v21 = vpop.eup %7944  ;;  %v11453_v61 = vld [vmem:[#allocation88_spill] sm:$0xff] }
 0x618   :  { %7950 = vrcp.f32 %v2965_v6  ;;  %v7947_v20 = vpop.eup %7946  ;;  %v2954_v4 = vadd.f32 1.0, %v7945_v21  ;;  %v11454_v6 = vld [vmem:[#allocation89_spill] sm:$0xff]  ;;  %v11456_v21 = vld [vmem:[#allocation91_spill] sm:$0xff] }
 0x619   :  { %7952 = vrcp.f32 %v2971_v24  ;;  %v7949_v42 = vpop.eup %7948  ;;  %v2978_v52 = vadd.f32 1.0, %v7947_v20  ;;  %v11455_v24 = vld [vmem:[#allocation90_spill] sm:$0xff]  ;;  %v11457_v20 = vld [vmem:[#allocation92_spill] sm:$0xff] }
 0x61a   :  { %7954 = vtanh.f32 %v9275_v43 }
 0x61b   :  { %7956 = vrcp.f32 %v2954_v4  ;;  %v11460_v4 = vld [vmem:[#allocation95_spill] sm:$0xff] }
 0x61c   :  { %7958 = vrcp.f32 %v2978_v52  ;;  %v11463_v52 = vld [vmem:[#allocation98_spill] sm:$0xff] }
 0x622   :  { %v7951_v57 = vpop.eup %7950 }
 0x623   :  { %v7953_v25 = vpop.eup %7952  ;;  %v2982_v26 = vmul.f32 %v7951_v57, %v7949_v42  ;;  %v11458_v42 = vld [vmem:[#allocation93_spill] sm:$0xff]  ;;  %v11459_v57 = vld [vmem:[#allocation94_spill] sm:$0xff] }
 0x624   :  { %v2981_v27 = vmul.f32 0.0, %v7953_v25  ;;  %v7955_v19 = vpop.eup %7954  ;;  %v11461_v25 = vld [vmem:[#allocation96_spill] sm:$0xff] }
 0x625   :  { %v7957_v32 = vpop.eup %7956 }
 0x626   :  { %v9310_v18 = vadd.f32 %v2982_v26, %v2981_v27  ;;  %v7959_v13 = vpop.eup %7958  ;;  %v9313_v14 = vmul.f32 %v7957_v32, %v7955_v19  ;;  %v11462_v26 = vld [vmem:[#allocation97_spill] sm:$0xff]  ;;  %v11464_v27 = vld [vmem:[#allocation99_spill] sm:$0xff]  ;;  %v11465_v19 = vld [vmem:[#allocation100_spill] sm:$0xff] }
 0x627   :  { %v11466_v32 = vld [vmem:[#allocation101_spill] sm:$0xff] }
 0x628   :  { %7960 = vtanh.f32 %v9310_v18  ;;  %11451 = vst [vmem:[#allocation155_spill] sm:$0xff] %v9313_v14  ;;  %v9321_v28 = vpack.c.bf16 %v9313_v14, %v9313_v14  ;;  %v11474_v14 = vld [vmem:[#allocation109_spill] sm:$0xff] }
 0x632   :  { %v7961_v34 = vpop.eup %7960 }
 0x633   :  { %v9315_v30 = vmul.f32 %v7961_v34, %v7959_v13  ;;  %v11467_v13 = vld [vmem:[#allocation102_spill] sm:$0xff]  ;;  %v11468_v34 = vld [vmem:[#allocation103_spill] sm:$0xff] }
 0x635   :  { %11452 = vst [vmem:[#allocation156_spill] sm:$0xff] %v9315_v30  ;;  %v2987_v41 = vpack.c.bf16 %v9315_v30, %v9315_v30  ;;  %v11473_v30 = vld [vmem:[#allocation108_spill] sm:$0xff] }
 0x637   :  { %3020 = vmatprep.mubr.bf16.mxu1 %v2987_v41  ;;  %3061 = vmatprep.mubr.bf16.mxu0 %v2987_v41 }
 0x638   :  { %3021 = vmatmul.mubr.bf16.vlgmr.msra.gmra.mrb[24].mxu1 %v9321_v28  ;;  %3062 = vmatmul.mubr.bf16.vlgmr.msra.gmra.mrb[20].mxu0 %v9321_v28 }
 0x639   :  { %3071 = vmatpush1.bf16.msra.mxu1 %v11453_v61  ;;  %3112 = vmatpush1.bf16.msra.mxu0 %v11454_v6 }
 0x63a   :  { %3102 = vmatprep.mubr.bf16.mxu1 %v2987_v41  ;;  %3143 = vmatprep.mubr.bf16.mxu0 %v2987_v41  ;;  %v11469_v41 = vld [vmem:[#allocation104_spill] sm:$0xff] }
 0x63b   :  { %3072 = vmatprep.subr.bf16.mxu1 %v11455_v24  ;;  %3113 = vmatprep.subr.bf16.mxu0 %v11456_v21 }
 0x63d   :  { %3073 = vmatpush1.bf16.msra.mxu1 %v11457_v20  ;;  %3114 = vmatpush1.bf16.msra.mxu0 %v11458_v42 }
 0x63e   :  { %3074 = vmatprep.subr.bf16.mxu1 %v11459_v57  ;;  %3115 = vmatprep.subr.bf16.mxu0 %v11460_v4 }
 0x641   :  { %3075 = vmatpush1.bf16.msra.mxu1 %v11461_v25  ;;  %3116 = vmatpush1.bf16.msra.mxu0 %v11462_v26 }
 0x642   :  { %3076 = vmatprep.subr.bf16.mxu1 %v11463_v52  ;;  %3117 = vmatprep.subr.bf16.mxu0 %v11464_v27  ;;  %v11475_v27 = vld [vmem:[#allocation110_spill] sm:$0xff] }
 0x645   :  { %3077 = vmatpush1.bf16.msra.mxu1 %v11465_v19  ;;  %3118 = vmatpush1.bf16.msra.mxu0 %v11466_v32  ;;  %v11476_v19 = vld [vmem:[#allocation111_spill] sm:$0xff]  ;;  %v11477_v32 = vld [vmem:[#allocation112_spill] sm:$0xff] }
 0x646   :  { %3078 = vmatprep.subr.bf16.mxu1 %v11467_v13  ;;  %3119 = vmatprep.subr.bf16.mxu0 %v11468_v34  ;;  %v11478_v13 = vld [vmem:[#allocation113_spill] sm:$0xff]  ;;  %v11479_v34 = vld [vmem:[#allocation114_spill] sm:$0xff] }
 0x649   :  { %3079 = vmatpush1.bf16.msra.mxu1 %v11469_v41  ;;  %3120 = vmatpush1.bf16.msra.mxu0 %v11470_v31  ;;  %v11480_v41 = vld [vmem:[#allocation115_spill] sm:$0xff]  ;;  %v11481_v31 = vld [vmem:[#allocation116_spill] sm:$0xff] }
 0x64a   :  { %3080 = vmatprep.subr.bf16.mxu1 %v11471_v51  ;;  %3121 = vmatprep.subr.bf16.mxu0 %v11472_v33  ;;  %v11482_v51 = vld [vmem:[#allocation117_spill] sm:$0xff]  ;;  %v11483_v33 = vld [vmem:[#allocation118_spill] sm:$0xff] }
 0x64d   :  { %3081 = vmatpush1.bf16.msra.mxu1 %v11473_v30  ;;  %3122 = vmatpush1.bf16.msra.mxu0 %v11474_v14  ;;  %v11484_v30 = vld [vmem:[#allocation119_spill] sm:$0xff]  ;;  %v11485_v14 = vld [vmem:[#allocation120_spill] sm:$0xff] }
 0x64e   :  { %3082 = vmatprep.subr.bf16.mxu1 %v11475_v27  ;;  %3123 = vmatprep.subr.bf16.mxu0 %v11476_v19  ;;  %v11486_v27 = vld [vmem:[#allocation121_spill] sm:$0xff]  ;;  %v11487_v19 = vld [vmem:[#allocation122_spill] sm:$0xff] }
 0x651   :  { %3083 = vmatpush1.bf16.msra.mxu1 %v11477_v32  ;;  %3124 = vmatpush1.bf16.msra.mxu0 %v11478_v13  ;;  %v11488_v32 = vld [vmem:[#allocation123_spill] sm:$0xff]  ;;  %v11489_v13 = vld [vmem:[#allocation124_spill] sm:$0xff] }
 0x652   :  { %3084 = vmatprep.subr.bf16.mxu1 %v11479_v34  ;;  %3125 = vmatprep.subr.bf16.mxu0 %v11480_v41  ;;  %v11490_v34 = vld [vmem:[#allocation125_spill] sm:$0xff]  ;;  %v11491_v41 = vld [vmem:[#allocation126_spill] sm:$0xff] }
 0x655   :  { %3085 = vmatpush1.bf16.msra.mxu1 %v11481_v31  ;;  %3126 = vmatpush1.bf16.msra.mxu0 %v11482_v51  ;;  %v11492_v31 = vld [vmem:[#allocation127_spill] sm:$0xff]  ;;  %v11493_v51 = vld [vmem:[#allocation128_spill] sm:$0xff] }
 0x656   :  { %3086 = vmatprep.subr.bf16.mxu1 %v11483_v33  ;;  %3127 = vmatprep.subr.bf16.mxu0 %v11484_v30  ;;  %v11494_v33 = vld [vmem:[#allocation129_spill] sm:$0xff]  ;;  %v11495_v30 = vld [vmem:[#allocation130_spill] sm:$0xff] }
 0x659   :  { %3087 = vmatpush1.bf16.msra.mxu1 %v11485_v14  ;;  %3128 = vmatpush1.bf16.msra.mxu0 %v11486_v27  ;;  %v11496_v14 = vld [vmem:[#allocation131_spill] sm:$0xff]  ;;  %v11497_v27 = vld [vmem:[#allocation132_spill] sm:$0xff] }
 0x65a   :  { %3088 = vmatprep.subr.bf16.mxu1 %v11487_v19  ;;  %3129 = vmatprep.subr.bf16.mxu0 %v11488_v32  ;;  %v11498_v19 = vld [vmem:[#allocation133_spill] sm:$0xff]  ;;  %v11499_v32 = vld [vmem:[#allocation134_spill] sm:$0xff] }
 0x65d   :  { %3089 = vmatpush1.bf16.msra.mxu1 %v11489_v13  ;;  %3130 = vmatpush1.bf16.msra.mxu0 %v11490_v34  ;;  %v11500_v13 = vld [vmem:[#allocation135_spill] sm:$0xff] }
 0x65e   :  { %3090 = vmatprep.subr.bf16.mxu1 %v11491_v41  ;;  %3131 = vmatprep.subr.bf16.mxu0 %v11492_v31 }
 0x661   :  { %3091 = vmatpush1.bf16.msra.mxu1 %v11493_v51  ;;  %3132 = vmatpush1.bf16.msra.mxu0 %v11494_v33  ;;  %v11501_v51 = vld [vmem:[#allocation139_spill] sm:$0xff]  ;;  %v11502_v33 = vld [vmem:[#allocation140_spill] sm:$0xff] }
 0x662   :  { %3092 = vmatprep.subr.bf16.mxu1 %v11495_v30  ;;  %3133 = vmatprep.subr.bf16.mxu0 %v11496_v14 }
 0x665   :  { %3093 = vmatpush1.bf16.msra.mxu1 %v11497_v27  ;;  %3134 = vmatpush1.bf16.msra.mxu0 %v11498_v19 }
 0x666   :  { %3094 = vmatprep.subr.bf16.mxu1 %v11499_v32  ;;  %3135 = vmatprep.subr.bf16.mxu0 %v11500_v13 }
 0x669   :  { %3095 = vmatpush1.bf16.msra.mxu1 %v9136_v50  ;;  %3136 = vmatpush1.bf16.msra.mxu0 %v9138_v59 }
 0x66a   :  { %3096 = vmatprep.subr.bf16.mxu1 %v9142_v49  ;;  %3137 = vmatprep.subr.bf16.mxu0 %v11501_v51 }
 0x66d   :  { %3097 = vmatpush1.bf16.msra.mxu1 %v11502_v33  ;;  %3138 = vmatpush1.bf16.msra.mxu0 %v9150_v45 }
 0x66e   :  { %3098 = vmatprep.subr.bf16.mxu1 %v9154_v62  ;;  %3139 = vmatprep.subr.bf16.mxu0 %v9156_v12 }
 0x671   :  { %3099 = vmatpush1.bf16.msra.mxu1 %v9160_v46  ;;  %3140 = vmatpush1.bf16.msra.mxu0 %v9162_v48 }
 0x672   :  { %3100 = vmatprep.subr.bf16.mxu1 %v9166_v35  ;;  %3141 = vmatprep.subr.bf16.mxu0 %v9168_v39 }
 0x675   :  { %3101 = vmatpush1.bf16.msra.mxu1 %v9172_v60  ;;  %3142 = vmatpush1.bf16.msra.mxu0 %v9174_v11 }
 0x676   :  { %3230 = vmatprep.subr.bf16.mxu1 %v8788_v44  ;;  %3271 = vmatprep.subr.bf16.mxu0 %v8790_v47 }
 0x678   :  { %3103 = vmatmul.mubr.bf16.vlgmr.msra.gmra.mrb[28].mxu1 %v9321_v28  ;;  %3144 = vmatmul.mubr.bf16.vlgmr.msra.gmra.mrb[24].mxu0 %v9321_v28  ;;  %v11503_v28 = vld [vmem:[#allocation46_spill] sm:$0xff] }
 0x679   :  { %3231 = vmatpush1.bf16.msra.mxu1 %v8792_v53  ;;  %3272 = vmatpush1.bf16.msra.mxu0 %v8794_v54 }
 0x67a   :  { %3232 = vmatprep.subr.bf16.mxu1 %v8798_v55  ;;  %3273 = vmatprep.subr.bf16.mxu0 %v8800_v56 }
 0x67d   :  { %3233 = vmatpush1.bf16.msra.mxu1 %v8806_v36  ;;  %3274 = vmatpush1.bf16.msra.mxu0 %v8808_v37 }
 0x67e   :  { %3234 = vmatprep.subr.bf16.mxu1 %v8812_v38  ;;  %3275 = vmatprep.subr.bf16.mxu0 %v8814_v40 }
 0x681   :  { %3235 = vmatpush1.bf16.msra.mxu1 %v8820_v63  ;;  %3276 = vmatpush1.bf16.msra.mxu0 %v8822_v0 }
 0x682   :  { %3236 = vmatprep.subr.bf16.mxu1 %v8826_v1  ;;  %3277 = vmatprep.subr.bf16.mxu0 %v8828_v2  ;;  %v11546_v1 = vld [vmem:[#allocation151_spill] sm:$0xff] }
 0x685   :  { %3237 = vmatpush1.bf16.msra.mxu1 %v8832_v7  ;;  %3278 = vmatpush1.bf16.msra.mxu0 %v8834_v8  ;;  %v11504_v7 = vld [vmem:[#allocation47_spill] sm:$0xff]  ;;  %v11505_v8 = vld [vmem:[#allocation48_spill] sm:$0xff] }
 0x686   :  { %3238 = vmatprep.subr.bf16.mxu1 %v8838_v9  ;;  %3279 = vmatprep.subr.bf16.mxu0 %v8840_v10  ;;  %v11506_v9 = vld [vmem:[#allocation49_spill] sm:$0xff]  ;;  %v11507_v10 = vld [vmem:[#allocation50_spill] sm:$0xff] }
 0x689   :  { %3239 = vmatpush1.bf16.msra.mxu1 %v8844_v15  ;;  %3280 = vmatpush1.bf16.msra.mxu0 %v8846_v29  ;;  %v11508_v15 = vld [vmem:[#allocation51_spill] sm:$0xff]  ;;  %v11509_v29 = vld [vmem:[#allocation52_spill] sm:$0xff] }
 0x68a   :  { %3240 = vmatprep.subr.bf16.mxu1 %v8850_v16  ;;  %3281 = vmatprep.subr.bf16.mxu0 %v8852_v17  ;;  %v11510_v16 = vld [vmem:[#allocation53_spill] sm:$0xff]  ;;  %v11511_v17 = vld [vmem:[#allocation54_spill] sm:$0xff] }
 0x68d   :  { %3241 = vmatpush1.bf16.msra.mxu1 %v8856_v22  ;;  %3282 = vmatpush1.bf16.msra.mxu0 %v8858_v23  ;;  %v11512_v22 = vld [vmem:[#allocation55_spill] sm:$0xff]  ;;  %v11513_v23 = vld [vmem:[#allocation56_spill] sm:$0xff] }
 0x68e   :  { %3242 = vmatprep.subr.bf16.mxu1 %v11503_v28  ;;  %3283 = vmatprep.subr.bf16.mxu0 %v11504_v7  ;;  %v11514_v28 = vld [vmem:[#allocation57_spill] sm:$0xff]  ;;  %v11515_v7 = vld [vmem:[#allocation58_spill] sm:$0xff] }
 0x691   :  { %3243 = vmatpush1.bf16.msra.mxu1 %v11505_v8  ;;  %3284 = vmatpush1.bf16.msra.mxu0 %v11506_v9  ;;  %v11516_v8 = vld [vmem:[#allocation59_spill] sm:$0xff]  ;;  %v11517_v9 = vld [vmem:[#allocation60_spill] sm:$0xff] }
 0x692   :  { %3244 = vmatprep.subr.bf16.mxu1 %v11507_v10  ;;  %3285 = vmatprep.subr.bf16.mxu0 %v11508_v15  ;;  %v11518_v10 = vld [vmem:[#allocation61_spill] sm:$0xff]  ;;  %v11519_v15 = vld [vmem:[#allocation62_spill] sm:$0xff] }
 0x695   :  { %3245 = vmatpush1.bf16.msra.mxu1 %v11509_v29  ;;  %3286 = vmatpush1.bf16.msra.mxu0 %v11510_v16  ;;  %v11520_v29 = vld [vmem:[#allocation63_spill] sm:$0xff]  ;;  %v11521_v16 = vld [vmem:[#allocation64_spill] sm:$0xff] }
 0x696   :  { %3246 = vmatprep.subr.bf16.mxu1 %v11511_v17  ;;  %3287 = vmatprep.subr.bf16.mxu0 %v11512_v22  ;;  %v11522_v17 = vld [vmem:[#allocation65_spill] sm:$0xff]  ;;  %v11523_v22 = vld [vmem:[#allocation66_spill] sm:$0xff] }
 0x699   :  { %3247 = vmatpush1.bf16.msra.mxu1 %v11513_v23  ;;  %3288 = vmatpush1.bf16.msra.mxu0 %v11514_v28  ;;  %v11524_v23 = vld [vmem:[#allocation67_spill] sm:$0xff]  ;;  %v11525_v28 = vld [vmem:[#allocation68_spill] sm:$0xff] }
 0x69a   :  { %3248 = vmatprep.subr.bf16.mxu1 %v11515_v7  ;;  %3289 = vmatprep.subr.bf16.mxu0 %v11516_v8  ;;  %v11526_v7 = vld [vmem:[#allocation69_spill] sm:$0xff]  ;;  %v11527_v8 = vld [vmem:[#allocation70_spill] sm:$0xff] }
 0x69d   :  { %3249 = vmatpush1.bf16.msra.mxu1 %v11517_v9  ;;  %3290 = vmatpush1.bf16.msra.mxu0 %v11518_v10  ;;  %v11528_v9 = vld [vmem:[#allocation71_spill] sm:$0xff]  ;;  %v11529_v10 = vld [vmem:[#allocation72_spill] sm:$0xff] }
 0x69e   :  { %3250 = vmatprep.subr.bf16.mxu1 %v11519_v15  ;;  %3291 = vmatprep.subr.bf16.mxu0 %v11520_v29  ;;  %v11530_v15 = vld [vmem:[#allocation73_spill] sm:$0xff]  ;;  %v11531_v29 = vld [vmem:[#allocation74_spill] sm:$0xff] }
 0x6a1   :  { %3251 = vmatpush1.bf16.msra.mxu1 %v11521_v16  ;;  %3292 = vmatpush1.bf16.msra.mxu0 %v11522_v17  ;;  %v11532_v16 = vld [vmem:[#allocation75_spill] sm:$0xff]  ;;  %v11533_v17 = vld [vmem:[#allocation76_spill] sm:$0xff] }
 0x6a2   :  { %3252 = vmatprep.subr.bf16.mxu1 %v11523_v22  ;;  %3293 = vmatprep.subr.bf16.mxu0 %v11524_v23  ;;  %v11534_v22 = vld [vmem:[#allocation77_spill] sm:$0xff]  ;;  %v11535_v23 = vld [vmem:[#allocation78_spill] sm:$0xff] }
 0x6a5   :  { %3253 = vmatpush1.bf16.msra.mxu1 %v11525_v28  ;;  %3294 = vmatpush1.bf16.msra.mxu0 %v11526_v7  ;;  %v11536_v28 = vld [vmem:[#allocation79_spill] sm:$0xff]  ;;  %v11537_v7 = vld [vmem:[#allocation80_spill] sm:$0xff] }
 0x6a6   :  { %3254 = vmatprep.subr.bf16.mxu1 %v11527_v8  ;;  %3295 = vmatprep.subr.bf16.mxu0 %v11528_v9  ;;  %v11538_v8 = vld [vmem:[#allocation81_spill] sm:$0xff]  ;;  %v11539_v9 = vld [vmem:[#allocation82_spill] sm:$0xff] }
 0x6a9   :  { %3255 = vmatpush1.bf16.msra.mxu1 %v11529_v10  ;;  %3296 = vmatpush1.bf16.msra.mxu0 %v11530_v15  ;;  %v11540_v10 = vld [vmem:[#allocation83_spill] sm:$0xff]  ;;  %v11541_v15 = vld [vmem:[#allocation84_spill] sm:$0xff] }
 0x6aa   :  { %3256 = vmatprep.subr.bf16.mxu1 %v11531_v29  ;;  %3297 = vmatprep.subr.bf16.mxu0 %v11532_v16  ;;  %v11542_v29 = vld [vmem:[#allocation85_spill] sm:$0xff]  ;;  %v11543_v16 = vld [vmem:[#allocation86_spill] sm:$0xff] }
 0x6ad   :  { %3257 = vmatpush1.bf16.msra.mxu1 %v11533_v17  ;;  %3298 = vmatpush1.bf16.msra.mxu0 %v11534_v22  ;;  %v11544_v17 = vld [vmem:[#allocation87_spill] sm:$0xff]  ;;  %v11545_v22 = vld [vmem:[#allocation150_spill] sm:$0xff] }
 0x6ae   :  { %3258 = vmatprep.subr.bf16.mxu1 %v11535_v23  ;;  %3299 = vmatprep.subr.bf16.mxu0 %v11536_v28  ;;  %v3156_v23 = vrot.slane %v11545_v22, 2 }
 0x6b1   :  { %3259 = vmatpush1.bf16.msra.mxu1 %v11537_v7  ;;  %3300 = vmatpush1.bf16.msra.mxu0 %v11538_v8  ;;  %v3157_v7 = vrot.slane %v11546_v1, 2 }
 0x6b2   :  { %3260 = vmatprep.subr.bf16.mxu1 %v11539_v9  ;;  %3301 = vmatprep.subr.bf16.mxu0 %v11540_v10 }
 0x6b5   :  { %3261 = vmatpush1.bf16.msra.mxu1 %v11541_v15  ;;  %3302 = vmatpush1.bf16.msra.mxu0 %v11542_v29 }
 0x6b6   :  { %3312 = vmatprep.subr.bf16.mxu1 %v11543_v16  ;;  %3353 = vmatprep.subr.bf16.mxu0 %v11544_v17  ;;  %v11547_v16 = vld [vmem:[#allocation152_spill] sm:$0xff] }
 0x6b7   :  { %v3158_v17 = vrot.slane %v11547_v16, 2 }
 0x70b   :  { %v3022_v2 = vpop.f32.mrb[24].mxu1  ;;  %v3063_v28 = vpop.f32.mrb[20].mxu0 }
 0x70c   :  { %v3164_v0 = vadd.f32 %v3156_v23, %v3022_v2  ;;  %v3024_v8 = vpop.f32.mrb[25].mxu1  ;;  %v3065_v63 = vpop.f32.mrb[21].mxu0  ;;  %v3166_v36 = vadd.f32 %v3158_v17, %v3063_v28 }
 0x70d   :  { %v3165_v9 = vadd.f32 %v3157_v7, %v3024_v8  ;;  %v3026_v40 = vpop.f32.mrb[26].mxu1  ;;  %v3067_v10 = vpop.f32.mrb[22].mxu0 }
 0x70e   :  { %v7363_v38 = vmul.f32 -1.442695, %v3164_v0  ;;  %v3027_v15 = vpop.f32.mrb[27].mxu1  ;;  %v3068_v37 = vpop.f32.mrb[23].mxu0 }
 0x70f   :  { %v7364_v29 = vmul.f32 -1.442695, %v3165_v9 }
 0x710   :  { %7962 = vpow2.f32 %v7363_v38  ;;  %v11548_v38 = vld [vmem:[#allocation153_spill] sm:$0xff] }
 0x711   :  { %7964 = vpow2.f32 %v7364_v29  ;;  %v3168_v9 = vrot.slane %v11548_v38, 4  ;;  %v11549_v29 = vld [vmem:[#allocation154_spill] sm:$0xff] }
 0x712   :  { %7966 = vtanh.f32 %v3166_v36  ;;  %v3169_v17 = vrot.slane %v11549_v29, 4 }
 0x71a   :  { %v7963_v22 = vpop.eup %7962 }
 0x71b   :  { %v7965_v56 = vpop.eup %7964  ;;  %v3183_v55 = vadd.f32 1.0, %v7963_v22 }
 0x71c   :  { %v3189_v1 = vadd.f32 1.0, %v7965_v56  ;;  %v7967_v2 = vpop.eup %7966 }
 0x71d   :  { %7968 = vrcp.f32 %v3183_v55 }
 0x71e   :  { %7970 = vrcp.f32 %v3189_v1 }
 0x727   :  { %v7969_v7 = vpop.eup %7968 }
 0x728   :  { %v7971_v40 = vpop.eup %7970  ;;  %v3200_v8 = vmul.f32 %v7969_v7, %v7967_v2  ;;  %v3171_v7 = vrot.slane %v9296_v58, 4 }
 0x729   :  { %v3199_v0 = vmul.f32 %v7971_v40, %v9275_v43  ;;  %v3159_v43 = vrot.slane %v9301_v5, 2 }
 0x72b   :  { %v9459_v37 = vadd.f32 %v3200_v8, %v3199_v0  ;;  %v3167_v40 = vadd.f32 %v3159_v43, %v3065_v63 }
 0x72d   :  { %v7365_v0 = vmul.f32 -1.442695, %v3167_v40 }
 0x74b   :  { %v3104_v10 = vpop.f32.mrb[28].mxu1  ;;  %v3145_v15 = vpop.f32.mrb[24].mxu0 }
 0x74c   :  { %v3176_v23 = vadd.f32 %v3168_v9, %v3104_v10  ;;  %v3106_v22 = vpop.f32.mrb[29].mxu1  ;;  %v3147_v36 = vpop.f32.mrb[25].mxu0  ;;  %v3170_v9 = vrot.slane %v9305_v3, 4 }
 0x74d   :  { %v3177_v56 = vadd.f32 %v3169_v17, %v3106_v22  ;;  %v3108_v55 = vpop.f32.mrb[30].mxu1  ;;  %v3149_v1 = vpop.f32.mrb[26].mxu0  ;;  %v3179_v8 = vadd.f32 %v3171_v7, %v3147_v36 }
 0x74e   :  { %v7366_v28 = vmul.f32 -1.442695, %v3176_v23  ;;  %v3109_v16 = vpop.f32.mrb[31].mxu1  ;;  %v3150_v54 = vpop.f32.mrb[27].mxu0  ;;  %v3178_v29 = vadd.f32 %v3170_v9, %v3145_v15 }
 0x74f   :  { %v7367_v2 = vmul.f32 -1.442695, %v3177_v56  ;;  %v7368_v10 = vmul.f32 -1.442695, %v3179_v8 }
 0x750   :  { %7972 = vpow2.f32 %v7366_v28 }
 0x751   :  { %7974 = vpow2.f32 %v7367_v2 }
 0x752   :  { %7976 = vpow2.f32 %v7365_v0 }
 0x753   :  { %7978 = vpow2.f32 %v7368_v10 }
 0x754   :  { %7980 = vtanh.f32 %v3178_v29 }
 0x75a   :  { %v7973_v17 = vpop.eup %7972 }
 0x75b   :  { %v7975_v22 = vpop.eup %7974  ;;  %v3207_v23 = vadd.f32 1.0, %v7973_v17  ;;  %v11551_v17 = vld [vmem:[#allocation99_spill] sm:$0xff] }
 0x75c   :  { %v3213_v54 = vadd.f32 1.0, %v7975_v22  ;;  %v7977_v16 = vpop.eup %7976  ;;  %v11552_v22 = vld [vmem:[#allocation100_spill] sm:$0xff] }
 0x75d   :  { %7982 = vrcp.f32 %v3207_v23  ;;  %v7979_v56 = vpop.eup %7978  ;;  %v3196_v63 = vadd.f32 1.0, %v7977_v16  ;;  %v11553_v23 = vld [vmem:[#allocation101_spill] sm:$0xff]  ;;  %v11555_v16 = vld [vmem:[#allocation103_spill] sm:$0xff] }
 0x75e   :  { %7984 = vrcp.f32 %v3213_v54  ;;  %v7981_v55 = vpop.eup %7980  ;;  %v3220_v2 = vadd.f32 1.0, %v7979_v56  ;;  %v11554_v54 = vld [vmem:[#allocation102_spill] sm:$0xff]  ;;  %v11556_v56 = vld [vmem:[#allocation104_spill] sm:$0xff] }
 0x75f   :  { %7986 = vtanh.f32 %v9459_v37 }
 0x760   :  { %7988 = vrcp.f32 %v3196_v63  ;;  %v11559_v63 = vld [vmem:[#allocation107_spill] sm:$0xff] }
 0x761   :  { %7990 = vrcp.f32 %v3220_v2  ;;  %v11562_v2 = vld [vmem:[#allocation110_spill] sm:$0xff] }
 0x767   :  { %v7983_v1 = vpop.eup %7982 }
 0x768   :  { %v7985_v36 = vpop.eup %7984  ;;  %v3224_v28 = vmul.f32 %v7983_v1, %v7981_v55  ;;  %v11557_v55 = vld [vmem:[#allocation105_spill] sm:$0xff]  ;;  %v11558_v1 = vld [vmem:[#allocation106_spill] sm:$0xff] }
 0x769   :  { %v3223_v43 = vmul.f32 %v7985_v36, %v9310_v18  ;;  %v7987_v29 = vpop.eup %7986  ;;  %v11560_v36 = vld [vmem:[#allocation108_spill] sm:$0xff] }
 0x76a   :  { %v7989_v7 = vpop.eup %7988 }
 0x76b   :  { %v9468_v15 = vadd.f32 %v3224_v28, %v3223_v43  ;;  %v7991_v40 = vpop.eup %7990  ;;  %v9471_v0 = vmul.f32 %v7989_v7, %v7987_v29  ;;  %v11561_v28 = vld [vmem:[#allocation109_spill] sm:$0xff]  ;;  %v11563_v43 = vld [vmem:[#allocation111_spill] sm:$0xff]  ;;  %v11564_v29 = vld [vmem:[#allocation112_spill] sm:$0xff] }
 0x76c   :  { %v11565_v7 = vld [vmem:[#allocation113_spill] sm:$0xff] }
 0x76d   :  { %7992 = vtanh.f32 %v9468_v15  ;;  %v9479_v18 = vpack.c.bf16 %v9471_v0, %v9471_v0 }
 0x777   :  { %v7993_v8 = vpop.eup %7992 }
 0x778   :  { %v9473_v9 = vmul.f32 %v7993_v8, %v7991_v40  ;;  %v11566_v40 = vld [vmem:[#allocation114_spill] sm:$0xff]  ;;  %v11567_v8 = vld [vmem:[#allocation115_spill] sm:$0xff] }
 0x77a   :  { %11550 = vst [vmem:[#allocation88_spill] sm:$0xff] %v9473_v9  ;;  %v3229_v10 = vpack.c.bf16 %v9473_v9, %v9473_v9  ;;  %v11569_v9 = vld [vmem:[#allocation117_spill] sm:$0xff] }
 0x77c   :  { %3262 = vmatprep.mubr.bf16.mxu1 %v3229_v10  ;;  %3303 = vmatprep.mubr.bf16.mxu0 %v3229_v10 }
 0x77d   :  { %3263 = vmatmul.mubr.bf16.vlgmr.msra.gmra.mrb[32].mxu1 %v9479_v18  ;;  %3304 = vmatmul.mubr.bf16.vlgmr.msra.gmra.mrb[28].mxu0 %v9479_v18 }
 0x77e   :  { %3313 = vmatpush1.bf16.msra.mxu1 %v11453_v61  ;;  %3354 = vmatpush1.bf16.msra.mxu0 %v11454_v6 }
 0x77f   :  { %3344 = vmatprep.mubr.bf16.mxu1 %v3229_v10  ;;  %3385 = vmatprep.mubr.bf16.mxu0 %v3229_v10  ;;  %v11568_v10 = vld [vmem:[#allocation116_spill] sm:$0xff] }
 0x780   :  { %3314 = vmatprep.subr.bf16.mxu1 %v11455_v24  ;;  %3355 = vmatprep.subr.bf16.mxu0 %v11456_v21 }
 0x782   :  { %3315 = vmatpush1.bf16.msra.mxu1 %v11457_v20  ;;  %3356 = vmatpush1.bf16.msra.mxu0 %v11458_v42 }
 0x783   :  { %3316 = vmatprep.subr.bf16.mxu1 %v11459_v57  ;;  %3357 = vmatprep.subr.bf16.mxu0 %v11460_v4 }
 0x786   :  { %3317 = vmatpush1.bf16.msra.mxu1 %v11461_v25  ;;  %3358 = vmatpush1.bf16.msra.mxu0 %v11462_v26 }
 0x787   :  { %3318 = vmatprep.subr.bf16.mxu1 %v11463_v52  ;;  %3359 = vmatprep.subr.bf16.mxu0 %v11551_v17 }
 0x78a   :  { %3319 = vmatpush1.bf16.msra.mxu1 %v11552_v22  ;;  %3360 = vmatpush1.bf16.msra.mxu0 %v11553_v23 }
 0x78b   :  { %3320 = vmatprep.subr.bf16.mxu1 %v11554_v54  ;;  %3361 = vmatprep.subr.bf16.mxu0 %v11555_v16 }
 0x78e   :  { %3321 = vmatpush1.bf16.msra.mxu1 %v11556_v56  ;;  %3362 = vmatpush1.bf16.msra.mxu0 %v11557_v55 }
 0x78f   :  { %3322 = vmatprep.subr.bf16.mxu1 %v11558_v1  ;;  %3363 = vmatprep.subr.bf16.mxu0 %v11559_v63  ;;  %v11570_v63 = vld [vmem:[#allocation118_spill] sm:$0xff] }
 0x792   :  { %3323 = vmatpush1.bf16.msra.mxu1 %v11560_v36  ;;  %3364 = vmatpush1.bf16.msra.mxu0 %v11561_v28  ;;  %v11571_v36 = vld [vmem:[#allocation119_spill] sm:$0xff]  ;;  %v11572_v28 = vld [vmem:[#allocation120_spill] sm:$0xff] }
 0x793   :  { %3324 = vmatprep.subr.bf16.mxu1 %v11562_v2  ;;  %3365 = vmatprep.subr.bf16.mxu0 %v11563_v43  ;;  %v11573_v2 = vld [vmem:[#allocation121_spill] sm:$0xff]  ;;  %v11574_v43 = vld [vmem:[#allocation122_spill] sm:$0xff] }
 0x796   :  { %3325 = vmatpush1.bf16.msra.mxu1 %v11564_v29  ;;  %3366 = vmatpush1.bf16.msra.mxu0 %v11565_v7  ;;  %v11575_v29 = vld [vmem:[#allocation123_spill] sm:$0xff]  ;;  %v11576_v7 = vld [vmem:[#allocation124_spill] sm:$0xff] }
 0x797   :  { %3326 = vmatprep.subr.bf16.mxu1 %v11566_v40  ;;  %3367 = vmatprep.subr.bf16.mxu0 %v11567_v8 }
 0x79a   :  { %3327 = vmatpush1.bf16.msra.mxu1 %v11568_v10  ;;  %3368 = vmatpush1.bf16.msra.mxu0 %v11569_v9  ;;  %v11577_v9 = vld [vmem:[#allocation128_spill] sm:$0xff] }
 0x79b   :  { %3328 = vmatprep.subr.bf16.mxu1 %v11570_v63  ;;  %3369 = vmatprep.subr.bf16.mxu0 %v11571_v36  ;;  %v11578_v63 = vld [vmem:[#allocation129_spill] sm:$0xff] }
 0x79e   :  { %3329 = vmatpush1.bf16.msra.mxu1 %v11572_v28  ;;  %3370 = vmatpush1.bf16.msra.mxu0 %v11573_v2 }
 0x79f   :  { %3330 = vmatprep.subr.bf16.mxu1 %v11574_v43  ;;  %3371 = vmatprep.subr.bf16.mxu0 %v11575_v29 }
 0x7a2   :  { %3331 = vmatpush1.bf16.msra.mxu1 %v11576_v7  ;;  %3372 = vmatpush1.bf16.msra.mxu0 %v11490_v34 }
 0x7a3   :  { %3332 = vmatprep.subr.bf16.mxu1 %v11491_v41  ;;  %3373 = vmatprep.subr.bf16.mxu0 %v11492_v31 }
 0x7a6   :  { %3333 = vmatpush1.bf16.msra.mxu1 %v11577_v9  ;;  %3374 = vmatpush1.bf16.msra.mxu0 %v11578_v63 }
 0x7a7   :  { %3334 = vmatprep.subr.bf16.mxu1 %v11495_v30  ;;  %3375 = vmatprep.subr.bf16.mxu0 %v11496_v14 }
 0x7aa   :  { %3335 = vmatpush1.bf16.msra.mxu1 %v11497_v27  ;;  %3376 = vmatpush1.bf16.msra.mxu0 %v11498_v19 }
 0x7ab   :  { %3336 = vmatprep.subr.bf16.mxu1 %v11499_v32  ;;  %3377 = vmatprep.subr.bf16.mxu0 %v11500_v13 }
 0x7ae   :  { %3337 = vmatpush1.bf16.msra.mxu1 %v9136_v50  ;;  %3378 = vmatpush1.bf16.msra.mxu0 %v9138_v59 }
 0x7af   :  { %3338 = vmatprep.subr.bf16.mxu1 %v9142_v49  ;;  %3379 = vmatprep.subr.bf16.mxu0 %v11501_v51 }
 0x7b2   :  { %3339 = vmatpush1.bf16.msra.mxu1 %v11502_v33  ;;  %3380 = vmatpush1.bf16.msra.mxu0 %v9150_v45  ;;  %v11643_v45 = vld [vmem:[#allocation151_spill] sm:$0xff] }
 0x7b3   :  { %3340 = vmatprep.subr.bf16.mxu1 %v9154_v62  ;;  %3381 = vmatprep.subr.bf16.mxu0 %v9156_v12  ;;  %v11587_v12 = vld [vmem:[#allocation33_spill] sm:$0xff] }
 0x7b6   :  { %3341 = vmatpush1.bf16.msra.mxu1 %v9160_v46  ;;  %3382 = vmatpush1.bf16.msra.mxu0 %v9162_v48  ;;  %v11579_v46 = vld [vmem:[#allocation25_spill] sm:$0xff]  ;;  %v11580_v48 = vld [vmem:[#allocation26_spill] sm:$0xff] }
 0x7b7   :  { %3342 = vmatprep.subr.bf16.mxu1 %v9166_v35  ;;  %3383 = vmatprep.subr.bf16.mxu0 %v9168_v39  ;;  %v11581_v35 = vld [vmem:[#allocation27_spill] sm:$0xff]  ;;  %v11582_v39 = vld [vmem:[#allocation28_spill] sm:$0xff] }
 0x7ba   :  { %3343 = vmatpush1.bf16.msra.mxu1 %v9172_v60  ;;  %3384 = vmatpush1.bf16.msra.mxu0 %v9174_v11  ;;  %v11583_v60 = vld [vmem:[#allocation29_spill] sm:$0xff]  ;;  %v11584_v11 = vld [vmem:[#allocation30_spill] sm:$0xff] }
 0x7bb   :  { %3468 = vmatprep.subr.bf16.mxu1 %v8788_v44  ;;  %3509 = vmatprep.subr.bf16.mxu0 %v8790_v47  ;;  %v11585_v44 = vld [vmem:[#allocation31_spill] sm:$0xff]  ;;  %v11586_v47 = vld [vmem:[#allocation32_spill] sm:$0xff] }
 0x7bd   :  { %3345 = vmatmul.mubr.bf16.vlgmr.msra.gmra.mrb[36].mxu1 %v9479_v18  ;;  %3386 = vmatmul.mubr.bf16.vlgmr.msra.gmra.mrb[32].mxu0 %v9479_v18  ;;  %v11588_v18 = vld [vmem:[#allocation34_spill] sm:$0xff] }
 0x7be   :  { %3469 = vmatpush1.bf16.msra.mxu1 %v8792_v53  ;;  %3510 = vmatpush1.bf16.msra.mxu0 %v11579_v46  ;;  %v11589_v53 = vld [vmem:[#allocation35_spill] sm:$0xff]  ;;  %v11590_v46 = vld [vmem:[#allocation36_spill] sm:$0xff] }
 0x7bf   :  { %3470 = vmatprep.subr.bf16.mxu1 %v11580_v48  ;;  %3511 = vmatprep.subr.bf16.mxu0 %v11581_v35  ;;  %v11591_v48 = vld [vmem:[#allocation37_spill] sm:$0xff]  ;;  %v11592_v35 = vld [vmem:[#allocation38_spill] sm:$0xff] }
 0x7c2   :  { %3471 = vmatpush1.bf16.msra.mxu1 %v11582_v39  ;;  %3512 = vmatpush1.bf16.msra.mxu0 %v11583_v60  ;;  %v11593_v39 = vld [vmem:[#allocation39_spill] sm:$0xff]  ;;  %v11594_v60 = vld [vmem:[#allocation40_spill] sm:$0xff] }
 0x7c3   :  { %3472 = vmatprep.subr.bf16.mxu1 %v11584_v11  ;;  %3513 = vmatprep.subr.bf16.mxu0 %v11585_v44  ;;  %v11595_v11 = vld [vmem:[#allocation41_spill] sm:$0xff]  ;;  %v11596_v44 = vld [vmem:[#allocation42_spill] sm:$0xff] }
 0x7c6   :  { %3473 = vmatpush1.bf16.msra.mxu1 %v11586_v47  ;;  %3514 = vmatpush1.bf16.msra.mxu0 %v11587_v12  ;;  %v11597_v47 = vld [vmem:[#allocation43_spill] sm:$0xff]  ;;  %v11598_v12 = vld [vmem:[#allocation44_spill] sm:$0xff] }
 0x7c7   :  { %3474 = vmatprep.subr.bf16.mxu1 %v11588_v18  ;;  %3515 = vmatprep.subr.bf16.mxu0 %v11589_v53  ;;  %v11599_v18 = vld [vmem:[#allocation45_spill] sm:$0xff]  ;;  %v11600_v53 = vld [vmem:[#allocation46_spill] sm:$0xff] }
 0x7ca   :  { %3475 = vmatpush1.bf16.msra.mxu1 %v11590_v46  ;;  %3516 = vmatpush1.bf16.msra.mxu0 %v11591_v48  ;;  %v11601_v46 = vld [vmem:[#allocation47_spill] sm:$0xff]  ;;  %v11602_v48 = vld [vmem:[#allocation48_spill] sm:$0xff] }
 0x7cb   :  { %3476 = vmatprep.subr.bf16.mxu1 %v11592_v35  ;;  %3517 = vmatprep.subr.bf16.mxu0 %v11593_v39  ;;  %v11603_v35 = vld [vmem:[#allocation49_spill] sm:$0xff]  ;;  %v11604_v39 = vld [vmem:[#allocation50_spill] sm:$0xff] }
 0x7ce   :  { %3477 = vmatpush1.bf16.msra.mxu1 %v11594_v60  ;;  %3518 = vmatpush1.bf16.msra.mxu0 %v11595_v11  ;;  %v11605_v60 = vld [vmem:[#allocation51_spill] sm:$0xff]  ;;  %v11606_v11 = vld [vmem:[#allocation52_spill] sm:$0xff] }
 0x7cf   :  { %3478 = vmatprep.subr.bf16.mxu1 %v11596_v44  ;;  %3519 = vmatprep.subr.bf16.mxu0 %v11597_v47  ;;  %v11607_v44 = vld [vmem:[#allocation53_spill] sm:$0xff]  ;;  %v11608_v47 = vld [vmem:[#allocation54_spill] sm:$0xff] }
 0x7d2   :  { %3479 = vmatpush1.bf16.msra.mxu1 %v11598_v12  ;;  %3520 = vmatpush1.bf16.msra.mxu0 %v11599_v18  ;;  %v11609_v12 = vld [vmem:[#allocation55_spill] sm:$0xff]  ;;  %v11610_v18 = vld [vmem:[#allocation56_spill] sm:$0xff] }
 0x7d3   :  { %3480 = vmatprep.subr.bf16.mxu1 %v11600_v53  ;;  %3521 = vmatprep.subr.bf16.mxu0 %v11601_v46  ;;  %v11611_v53 = vld [vmem:[#allocation57_spill] sm:$0xff]  ;;  %v11612_v46 = vld [vmem:[#allocation58_spill] sm:$0xff] }
 0x7d6   :  { %3481 = vmatpush1.bf16.msra.mxu1 %v11602_v48  ;;  %3522 = vmatpush1.bf16.msra.mxu0 %v11603_v35  ;;  %v11613_v48 = vld [vmem:[#allocation59_spill] sm:$0xff]  ;;  %v11614_v35 = vld [vmem:[#allocation60_spill] sm:$0xff] }
 0x7d7   :  { %3482 = vmatprep.subr.bf16.mxu1 %v11604_v39  ;;  %3523 = vmatprep.subr.bf16.mxu0 %v11605_v60  ;;  %v11615_v39 = vld [vmem:[#allocation61_spill] sm:$0xff]  ;;  %v11616_v60 = vld [vmem:[#allocation62_spill] sm:$0xff] }
 0x7da   :  { %3483 = vmatpush1.bf16.msra.mxu1 %v11606_v11  ;;  %3524 = vmatpush1.bf16.msra.mxu0 %v11607_v44  ;;  %v11617_v11 = vld [vmem:[#allocation63_spill] sm:$0xff]  ;;  %v11618_v44 = vld [vmem:[#allocation64_spill] sm:$0xff] }
 0x7db   :  { %3484 = vmatprep.subr.bf16.mxu1 %v11608_v47  ;;  %3525 = vmatprep.subr.bf16.mxu0 %v11609_v12  ;;  %v11619_v47 = vld [vmem:[#allocation65_spill] sm:$0xff]  ;;  %v11620_v12 = vld [vmem:[#allocation66_spill] sm:$0xff] }
 0x7de   :  { %3485 = vmatpush1.bf16.msra.mxu1 %v11610_v18  ;;  %3526 = vmatpush1.bf16.msra.mxu0 %v11611_v53  ;;  %v11621_v18 = vld [vmem:[#allocation67_spill] sm:$0xff]  ;;  %v11622_v53 = vld [vmem:[#allocation68_spill] sm:$0xff] }
 0x7df   :  { %3486 = vmatprep.subr.bf16.mxu1 %v11612_v46  ;;  %3527 = vmatprep.subr.bf16.mxu0 %v11613_v48  ;;  %v11623_v46 = vld [vmem:[#allocation69_spill] sm:$0xff]  ;;  %v11624_v48 = vld [vmem:[#allocation70_spill] sm:$0xff] }
 0x7e2   :  { %3487 = vmatpush1.bf16.msra.mxu1 %v11614_v35  ;;  %3528 = vmatpush1.bf16.msra.mxu0 %v11615_v39  ;;  %v11625_v35 = vld [vmem:[#allocation71_spill] sm:$0xff]  ;;  %v11626_v39 = vld [vmem:[#allocation72_spill] sm:$0xff] }
 0x7e3   :  { %3488 = vmatprep.subr.bf16.mxu1 %v11616_v60  ;;  %3529 = vmatprep.subr.bf16.mxu0 %v11617_v11  ;;  %v11627_v60 = vld [vmem:[#allocation73_spill] sm:$0xff]  ;;  %v11628_v11 = vld [vmem:[#allocation74_spill] sm:$0xff] }
 0x7e6   :  { %3489 = vmatpush1.bf16.msra.mxu1 %v11618_v44  ;;  %3530 = vmatpush1.bf16.msra.mxu0 %v11619_v47  ;;  %v11629_v44 = vld [vmem:[#allocation75_spill] sm:$0xff]  ;;  %v11630_v47 = vld [vmem:[#allocation76_spill] sm:$0xff] }
 0x7e7   :  { %3490 = vmatprep.subr.bf16.mxu1 %v11620_v12  ;;  %3531 = vmatprep.subr.bf16.mxu0 %v11621_v18  ;;  %v11631_v12 = vld [vmem:[#allocation77_spill] sm:$0xff]  ;;  %v11632_v18 = vld [vmem:[#allocation78_spill] sm:$0xff] }
 0x7ea   :  { %3491 = vmatpush1.bf16.msra.mxu1 %v11622_v53  ;;  %3532 = vmatpush1.bf16.msra.mxu0 %v11623_v46  ;;  %v11633_v53 = vld [vmem:[#allocation79_spill] sm:$0xff]  ;;  %v11634_v46 = vld [vmem:[#allocation80_spill] sm:$0xff] }
 0x7eb   :  { %3492 = vmatprep.subr.bf16.mxu1 %v11624_v48  ;;  %3533 = vmatprep.subr.bf16.mxu0 %v11625_v35  ;;  %v11635_v48 = vld [vmem:[#allocation81_spill] sm:$0xff]  ;;  %v11636_v35 = vld [vmem:[#allocation82_spill] sm:$0xff] }
 0x7ee   :  { %3493 = vmatpush1.bf16.msra.mxu1 %v11626_v39  ;;  %3534 = vmatpush1.bf16.msra.mxu0 %v11627_v60  ;;  %v11637_v39 = vld [vmem:[#allocation83_spill] sm:$0xff]  ;;  %v11638_v60 = vld [vmem:[#allocation84_spill] sm:$0xff] }
 0x7ef   :  { %3494 = vmatprep.subr.bf16.mxu1 %v11628_v11  ;;  %3535 = vmatprep.subr.bf16.mxu0 %v11629_v44  ;;  %v11639_v11 = vld [vmem:[#allocation85_spill] sm:$0xff]  ;;  %v11640_v44 = vld [vmem:[#allocation86_spill] sm:$0xff] }
 0x7f2   :  { %3495 = vmatpush1.bf16.msra.mxu1 %v11630_v47  ;;  %3536 = vmatpush1.bf16.msra.mxu0 %v11631_v12  ;;  %v11641_v47 = vld [vmem:[#allocation87_spill] sm:$0xff]  ;;  %v11642_v12 = vld [vmem:[#allocation150_spill] sm:$0xff] }
 0x7f3   :  { %3496 = vmatprep.subr.bf16.mxu1 %v11632_v18  ;;  %3537 = vmatprep.subr.bf16.mxu0 %v11633_v53  ;;  %v3394_v18 = vrot.slane %v11642_v12, 4  ;;  %v11644_v12 = vld [vmem:[#allocation152_spill] sm:$0xff] }
 0x7f4   :  { %v3396_v13 = vrot.slane %v11644_v12, 4 }
 0x7f6   :  { %3497 = vmatpush1.bf16.msra.mxu1 %v11634_v46  ;;  %3538 = vmatpush1.bf16.msra.mxu0 %v11635_v48  ;;  %v3395_v46 = vrot.slane %v11643_v45, 4 }
 0x7f7   :  { %3498 = vmatprep.subr.bf16.mxu1 %v11636_v35  ;;  %3539 = vmatprep.subr.bf16.mxu0 %v11637_v39 }
 0x7fa   :  { %3499 = vmatpush1.bf16.msra.mxu1 %v11638_v60  ;;  %3540 = vmatpush1.bf16.msra.mxu0 %v11639_v11 }
 0x7fb   :  { %3550 = vmatprep.subr.bf16.mxu1 %v11640_v44  ;;  %3591 = vmatprep.subr.bf16.mxu0 %v11641_v47  ;;  %v3397_v44 = vrot.slane %v9301_v5, 4 }
 0x850   :  { %v3264_v62 = vpop.f32.mrb[32].mxu1  ;;  %v3305_v53 = vpop.f32.mrb[28].mxu0 }
 0x851   :  { %v3402_v33 = vadd.f32 %v3394_v18, %v3264_v62  ;;  %v3266_v48 = vpop.f32.mrb[33].mxu1  ;;  %v3307_v51 = vpop.f32.mrb[29].mxu0  ;;  %v3404_v19 = vadd.f32 %v3396_v13, %v3305_v53 }
 0x852   :  { %v3403_v35 = vadd.f32 %v3395_v46, %v3266_v48  ;;  %v3268_v49 = vpop.f32.mrb[34].mxu1  ;;  %v3309_v39 = vpop.f32.mrb[30].mxu0  ;;  %v3405_v47 = vadd.f32 %v3397_v44, %v3307_v51 }
 0x853   :  { %v7369_v59 = vmul.f32 -1.442695, %v3402_v33  ;;  %v3269_v60 = vpop.f32.mrb[35].mxu1  ;;  %v3310_v50 = vpop.f32.mrb[31].mxu0 }
 0x854   :  { %v7370_v11 = vmul.f32 -1.442695, %v3403_v35  ;;  %v7371_v32 = vmul.f32 -1.442695, %v3405_v47  ;;  %v11645_v60 = vld [vmem:[#allocation155_spill] sm:$0xff]  ;;  %v3406_v47 = vrot.slane %v11548_v38, 2 }
 0x855   :  { %7994 = vpow2.f32 %v7369_v59 }
 0x856   :  { %7996 = vpow2.f32 %v7370_v11 }
 0x857   :  { %7998 = vpow2.f32 %v7371_v32 }
 0x858   :  { %8000 = vtanh.f32 %v3404_v19  ;;  %v3955_v19 = vrot.slane %v9471_v0, 6 }
 0x85a   :  { %v3971_v11 = vsel %vm504_vm8, %v11645_v60, %v3955_v19  ;;  %v3409_v19 = vrot.slane %v9296_v58, 2  ;;  %v3408_v60 = vrot.slane %v9305_v3, 2 }
 0x85f   :  { %v7995_v45 = vpop.eup %7994 }
 0x860   :  { %v7997_v62 = vpop.eup %7996  ;;  %v3421_v18 = vadd.f32 1.0, %v7995_v45 }
 0x861   :  { %v3427_v49 = vadd.f32 1.0, %v7997_v62  ;;  %v7999_v33 = vpop.eup %7998 }
 0x862   :  { %8002 = vrcp.f32 %v3421_v18  ;;  %v8001_v50 = vpop.eup %8000  ;;  %v3434_v35 = vadd.f32 1.0, %v7999_v33  ;;  %v11646_v18 = vld [vmem:[#allocation154_spill] sm:$0xff] }
 0x863   :  { %8004 = vrcp.f32 %v3427_v49  ;;  %v3407_v49 = vrot.slane %v11646_v18, 2 }
 0x864   :  { %8006 = vrcp.f32 %v3434_v35 }
 0x86c   :  { %v8003_v46 = vpop.eup %8002 }
 0x86d   :  { %v8005_v59 = vpop.eup %8004  ;;  %v3438_v48 = vmul.f32 %v8003_v46, %v8001_v50 }
 0x86e   :  { %v3437_v51 = vmul.f32 %v8005_v59, %v9459_v37  ;;  %v8007_v13 = vpop.eup %8006 }
 0x870   :  { %v9618_v39 = vadd.f32 %v3438_v48, %v3437_v51 }
 0x872   :  { %8008 = vtanh.f32 %v9618_v39 }
 0x87c   :  { %v8009_v45 = vpop.eup %8008 }
 0x87d   :  { %v3441_v32 = vmul.f32 %v8009_v45, %v8007_v13 }
 0x87f   :  { %v3961_v53 = vrot.slane %v3441_v32, 4 }
 0x881   :  { %v9625_v44 = vsel %vm544_vm10, %v3971_v11, %v3961_v53 }
 0x890   :  { %v3346_v37 = vpop.f32.mrb[36].mxu1  ;;  %v3387_v62 = vpop.f32.mrb[32].mxu0 }
 0x891   :  { %v3414_v33 = vadd.f32 %v3406_v47, %v3346_v37  ;;  %v3348_v50 = vpop.f32.mrb[37].mxu1  ;;  %v3389_v46 = vpop.f32.mrb[33].mxu0  ;;  %v3416_v38 = vadd.f32 %v3408_v60, %v3387_v62 }
 0x892   :  { %v3415_v59 = vadd.f32 %v3407_v49, %v3348_v50  ;;  %v3350_v48 = vpop.f32.mrb[38].mxu1  ;;  %v3391_v0 = vpop.f32.mrb[34].mxu0  ;;  %v3417_v53 = vadd.f32 %v3409_v19, %v3389_v46  ;;  %v3709_v19 = vld [vmem:[#allocation11 + $0x68] sm:$0xff] }
 0x893   :  { %v7372_v35 = vmul.f32 -1.442695, %v3414_v33  ;;  %v3351_v51 = vpop.f32.mrb[39].mxu1  ;;  %v3392_v13 = vpop.f32.mrb[35].mxu0 }
 0x894   :  { %v7373_v45 = vmul.f32 -1.442695, %v3415_v59  ;;  %v7374_v11 = vmul.f32 -1.442695, %v3417_v53  ;;  %v3712_v53 = vld [vmem:[#allocation11 + $0x80] sm:$0xff] }
 0x895   :  { %8010 = vpow2.f32 %v7372_v35 }
 0x896   :  { %8012 = vpow2.f32 %v7373_v45  ;;  %v9639_v45 = vpack.c.bf16 %v3441_v32, %v3441_v32  ;;  %v3705_v32 = vld [vmem:[#allocation11 + $0x48] sm:$0xff] }
 0x897   :  { %8014 = vpow2.f32 %v7374_v11  ;;  %v7392_v60 = vcombine.high %v3705_v32, %v3709_v19  ;;  %v3716_v11 = vld [vmem:[#allocation11 + $0xa0] sm:$0xff] }
 0x898   :  { %8016 = vtanh.f32 %v3416_v38 }
 0x89f   :  { %v8011_v18 = vpop.eup %8010 }
 0x8a0   :  { %v8013_v47 = vpop.eup %8012  ;;  %v3445_v37 = vadd.f32 1.0, %v8011_v18 }
 0x8a1   :  { %v3451_v49 = vadd.f32 1.0, %v8013_v47  ;;  %v8015_v33 = vpop.eup %8014  ;;  %v3713_v47 = vld [vmem:[#allocation11 + $0x88] sm:$0xff] }
 0x8a2   :  { %8018 = vrcp.f32 %v3445_v37  ;;  %v8017_v50 = vpop.eup %8016  ;;  %v3458_v35 = vadd.f32 1.0, %v8015_v33  ;;  %v3717_v37 = vld [vmem:[#allocation11 + $0xa8] sm:$0xff]  ;;  %v7391_v33 = vcombine.low %v3705_v32, %v3709_v19 }
 0x8a3   :  { %8020 = vrcp.f32 %v3451_v49  ;;  %v3765_v19 = vld [vmem:[#allocation11 + $0x228] sm:$0xff] }
 0x8a4   :  { %8022 = vrcp.f32 %v3458_v35  ;;  %v3720_v35 = vld [vmem:[#allocation11 + $0xc0] sm:$0xff] }
 0x8ac   :  { %v8019_v59 = vpop.eup %8018 }
 0x8ad   :  { %v8021_v48 = vpop.eup %8020  ;;  %v3462_v0 = vmul.f32 %v8019_v59, %v8017_v50  ;;  %v7398_v50 = vcombine.high %v3712_v53, %v3716_v11  ;;  %v7400_v59 = vcombine.high %v3713_v47, %v3717_v37 }
 0x8ae   :  { %v3461_v46 = vmul.f32 %v8021_v48, %v9468_v15  ;;  %v8023_v62 = vpop.eup %8022  ;;  %v11658_v15 = vld [vmem:[#allocation135_spill] sm:$0xff]  ;;  %v7397_v48 = vcombine.low %v3712_v53, %v3716_v11 }
 0x8b0   :  { %v9632_v51 = vadd.f32 %v3462_v0, %v3461_v46  ;;  %v7399_v0 = vcombine.low %v3713_v47, %v3717_v37  ;;  %v3724_v46 = vld [vmem:[#allocation11 + $0xe0] sm:$0xff] }
 0x8b1   :  { %v3768_v47 = vld [vmem:[#allocation11 + $0x240] sm:$0xff] }
 0x8b2   :  { %8024 = vtanh.f32 %v9632_v51  ;;  %v3772_v37 = vld [vmem:[#allocation11 + $0x260] sm:$0xff] }
 0x8bc   :  { %v8025_v18 = vpop.eup %8024 }
 0x8bd   :  { %v9635_v13 = vmul.f32 %v8025_v18, %v8023_v62  ;;  %v3721_v62 = vld [vmem:[#allocation11 + $0xc8] sm:$0xff]  ;;  %v7406_v18 = vcombine.high %v3720_v35, %v3724_v46 }
 0x8bf   :  { %v3467_v38 = vpack.c.bf16 %v9635_v13, %v9635_v13 }
 0x8c1   :  { %3500 = vmatprep.mubr.bf16.mxu1 %v3467_v38  ;;  %3541 = vmatprep.mubr.bf16.mxu0 %v3467_v38 }
 0x8c2   :  { %3501 = vmatmul.mubr.bf16.vlgmr.msra.gmra.mrb[40].mxu1 %v9639_v45  ;;  %3542 = vmatmul.mubr.bf16.vlgmr.msra.gmra.mrb[36].mxu0 %v9639_v45 }
 0x8c3   :  { %3551 = vmatpush1.bf16.msra.mxu1 %v11453_v61  ;;  %3592 = vmatpush1.bf16.msra.mxu0 %v11454_v6  ;;  %v11647_v61 = vld [vmem:[#allocation107_spill] sm:$0xff]  ;;  %v11648_v6 = vld [vmem:[#allocation108_spill] sm:$0xff] }
 0x8c4   :  { %3582 = vmatprep.mubr.bf16.mxu1 %v3467_v38  ;;  %3623 = vmatprep.mubr.bf16.mxu0 %v3467_v38  ;;  %v3725_v38 = vld [vmem:[#allocation11 + $0xe8] sm:$0xff] }
 0x8c5   :  { %3552 = vmatprep.subr.bf16.mxu1 %v11455_v24  ;;  %3593 = vmatprep.subr.bf16.mxu0 %v11456_v21  ;;  %v11649_v24 = vld [vmem:[#allocation109_spill] sm:$0xff]  ;;  %v11650_v21 = vld [vmem:[#allocation110_spill] sm:$0xff] }
 0x8c7   :  { %3553 = vmatpush1.bf16.msra.mxu1 %v11457_v20  ;;  %3594 = vmatpush1.bf16.msra.mxu0 %v11458_v42  ;;  %v11651_v20 = vld [vmem:[#allocation111_spill] sm:$0xff]  ;;  %v11652_v42 = vld [vmem:[#allocation112_spill] sm:$0xff] }
 0x8c8   :  { %3554 = vmatprep.subr.bf16.mxu1 %v11459_v57  ;;  %3595 = vmatprep.subr.bf16.mxu0 %v11460_v4  ;;  %v11653_v57 = vld [vmem:[#allocation113_spill] sm:$0xff] }
 0x8c9   :  { %v11654_v4 = vld [vmem:[#allocation117_spill] sm:$0xff] }
 0x8cb   :  { %3555 = vmatpush1.bf16.msra.mxu1 %v11461_v25  ;;  %3596 = vmatpush1.bf16.msra.mxu0 %v11462_v26  ;;  %v11655_v25 = vld [vmem:[#allocation118_spill] sm:$0xff]  ;;  %v11656_v26 = vld [vmem:[#allocation133_spill] sm:$0xff] }
 0x8cc   :  { %3556 = vmatprep.subr.bf16.mxu1 %v11463_v52  ;;  %3597 = vmatprep.subr.bf16.mxu0 %v11551_v17  ;;  %v11657_v52 = vld [vmem:[#allocation134_spill] sm:$0xff]  ;;  %v11663_v17 = vld [vmem:[#allocation140_spill] sm:$0xff] }
 0x8cf   :  { %3557 = vmatpush1.bf16.msra.mxu1 %v11552_v22  ;;  %3598 = vmatpush1.bf16.msra.mxu0 %v11553_v23  ;;  %v11667_v22 = vld [vmem:[#allocation144_spill] sm:$0xff]  ;;  %v11668_v23 = vld [vmem:[#allocation145_spill] sm:$0xff] }
 0x8d0   :  { %3558 = vmatprep.subr.bf16.mxu1 %v11554_v54  ;;  %3599 = vmatprep.subr.bf16.mxu0 %v11555_v16  ;;  %v11669_v54 = vld [vmem:[#allocation146_spill] sm:$0xff]  ;;  %v11670_v16 = vld [vmem:[#allocation147_spill] sm:$0xff] }
 0x8d3   :  { %3559 = vmatpush1.bf16.msra.mxu1 %v11556_v56  ;;  %3600 = vmatpush1.bf16.msra.mxu0 %v11557_v55  ;;  %v11671_v56 = vld [vmem:[#allocation148_spill] sm:$0xff]  ;;  %v11672_v55 = vld [vmem:[#allocation149_spill] sm:$0xff] }
 0x8d4   :  { %3560 = vmatprep.subr.bf16.mxu1 %v11558_v1  ;;  %3601 = vmatprep.subr.bf16.mxu0 %v11647_v61  ;;  %v3696_v1 = vld [vmem:[#allocation11] sm:$0xff]  ;;  %v7407_v61 = vcombine.low %v3721_v62, %v3725_v38 }
 0x8d7   :  { %3561 = vmatpush1.bf16.msra.mxu1 %v11648_v6  ;;  %3602 = vmatpush1.bf16.msra.mxu0 %v11649_v24  ;;  %v7408_v6 = vcombine.high %v3721_v62, %v3725_v38  ;;  %v3728_v24 = vld [vmem:[#allocation11 + $0x100] sm:$0xff]  ;;  %v3777_v62 = vld [vmem:[#allocation11 + $0x288] sm:$0xff] }
 0x8d8   :  { %3562 = vmatprep.subr.bf16.mxu1 %v11650_v21  ;;  %3603 = vmatprep.subr.bf16.mxu0 %v11651_v20  ;;  %v3732_v21 = vld [vmem:[#allocation11 + $0x120] sm:$0xff]  ;;  %v3729_v20 = vld [vmem:[#allocation11 + $0x108] sm:$0xff] }
 0x8d9   :  { %v3781_v38 = vld [vmem:[#allocation11 + $0x2a8] sm:$0xff] }
 0x8db   :  { %3563 = vmatpush1.bf16.msra.mxu1 %v11652_v42  ;;  %3604 = vmatpush1.bf16.msra.mxu0 %v11653_v57  ;;  %v7414_v42 = vcombine.high %v3728_v24, %v3732_v21  ;;  %v3733_v57 = vld [vmem:[#allocation11 + $0x128] sm:$0xff] }
 0x8dc   :  { %3564 = vmatprep.subr.bf16.mxu1 %v11566_v40  ;;  %3605 = vmatprep.subr.bf16.mxu0 %v11567_v8 }
 0x8df   :  { %3565 = vmatpush1.bf16.msra.mxu1 %v11568_v10  ;;  %3606 = vmatpush1.bf16.msra.mxu0 %v11654_v4  ;;  %v7413_v4 = vcombine.low %v3728_v24, %v3732_v21  ;;  %v3784_v24 = vld [vmem:[#allocation11 + $0x2c0] sm:$0xff] }
 0x8e0   :  { %3566 = vmatprep.subr.bf16.mxu1 %v11655_v25  ;;  %3607 = vmatprep.subr.bf16.mxu0 %v11571_v36  ;;  %v3697_v36 = vld [vmem:[#allocation11 + $0x8] sm:$0xff]  ;;  %v7415_v25 = vcombine.low %v3729_v20, %v3733_v57  ;;  %v3788_v21 = vld [vmem:[#allocation11 + $0x2e0] sm:$0xff] }
 0x8e3   :  { %3567 = vmatpush1.bf16.msra.mxu1 %v11572_v28  ;;  %3608 = vmatpush1.bf16.msra.mxu0 %v11573_v2 }
 0x8e4   :  { %3568 = vmatprep.subr.bf16.mxu1 %v11574_v43  ;;  %3609 = vmatprep.subr.bf16.mxu0 %v11575_v29  ;;  %v3701_v43 = vld [vmem:[#allocation11 + $0x28] sm:$0xff]  ;;  %v3704_v29 = vld [vmem:[#allocation11 + $0x40] sm:$0xff] }
 0x8e5   :  { %v7383_v40 = vcombine.low %v3697_v36, %v3701_v43  ;;  %v7384_v8 = vcombine.high %v3697_v36, %v3701_v43  ;;  %v3753_v36 = vld [vmem:[#allocation11 + $0x1c8] sm:$0xff] }
 0x8e7   :  { %3569 = vmatpush1.bf16.msra.mxu1 %v11576_v7  ;;  %3610 = vmatpush1.bf16.msra.mxu0 %v11490_v34  ;;  %v11659_v34 = vld [vmem:[#allocation136_spill] sm:$0xff]  ;;  %v3708_v7 = vld [vmem:[#allocation11 + $0x60] sm:$0xff] }
 0x8e8   :  { %3570 = vmatprep.subr.bf16.mxu1 %v11491_v41  ;;  %3611 = vmatprep.subr.bf16.mxu0 %v11492_v31  ;;  %v11660_v41 = vld [vmem:[#allocation137_spill] sm:$0xff]  ;;  %v11661_v31 = vld [vmem:[#allocation138_spill] sm:$0xff]  ;;  %v7390_v10 = vcombine.high %v3704_v29, %v3708_v7  ;;  %v7389_v49 = vcombine.low %v3704_v29, %v3708_v7 }
 0x8eb   :  { %3571 = vmatpush1.bf16.msra.mxu1 %v11577_v9  ;;  %3612 = vmatpush1.bf16.msra.mxu0 %v11578_v63  ;;  %v11662_v9 = vld [vmem:[#allocation139_spill] sm:$0xff]  ;;  %v3700_v63 = vld [vmem:[#allocation11 + $0x20] sm:$0xff] }
 0x8ec   :  { %3572 = vmatprep.subr.bf16.mxu1 %v11495_v30  ;;  %3613 = vmatprep.subr.bf16.mxu0 %v11496_v14  ;;  %v11664_v30 = vld [vmem:[#allocation141_spill] sm:$0xff]  ;;  %v11665_v14 = vld [vmem:[#allocation142_spill] sm:$0xff]  ;;  %v7381_v28 = vcombine.low %v3696_v1, %v3700_v63  ;;  %v7382_v2 = vcombine.high %v3696_v1, %v3700_v63 }
 0x8ed   :  { %v3752_v1 = vld [vmem:[#allocation11 + $0x1c0] sm:$0xff] }
 0x8ee   :  { %v3756_v63 = vld [vmem:[#allocation11 + $0x1e0] sm:$0xff] }
 0x8ef   :  { %3573 = vmatpush1.bf16.msra.mxu1 %v11497_v27  ;;  %3614 = vmatpush1.bf16.msra.mxu0 %v11656_v26  ;;  %v11666_v27 = vld [vmem:[#allocation143_spill] sm:$0xff]  ;;  %v7416_v26 = vcombine.high %v3729_v20, %v3733_v57  ;;  %v7437_v43 = vcombine.low %v3752_v1, %v3756_v63 }
 0x8f0   :  { %3574 = vmatprep.subr.bf16.mxu1 %v11657_v52  ;;  %3615 = vmatprep.subr.bf16.mxu0 %v11658_v15  ;;  %v3736_v52 = vld [vmem:[#allocation11 + $0x140] sm:$0xff]  ;;  %v3785_v20 = vld [vmem:[#allocation11 + $0x2c8] sm:$0xff] }
 0x8f1   :  { %v3740_v15 = vld [vmem:[#allocation11 + $0x160] sm:$0xff]  ;;  %v3789_v57 = vld [vmem:[#allocation11 + $0x2e8] sm:$0xff] }
 0x8f3   :  { %3575 = vmatpush1.bf16.msra.mxu1 %v11659_v34  ;;  %3616 = vmatpush1.bf16.msra.mxu0 %v11660_v41  ;;  %v3737_v34 = vld [vmem:[#allocation11 + $0x148] sm:$0xff]  ;;  %v7422_v41 = vcombine.high %v3736_v52, %v3740_v15 }
 0x8f4   :  { %3576 = vmatprep.subr.bf16.mxu1 %v11661_v31  ;;  %3617 = vmatprep.subr.bf16.mxu0 %v11662_v9  ;;  %v3741_v31 = vld [vmem:[#allocation11 + $0x168] sm:$0xff]  ;;  %v7421_v9 = vcombine.low %v3736_v52, %v3740_v15  ;;  %v3792_v52 = vld [vmem:[#allocation11 + $0x300] sm:$0xff] }
 0x8f5   :  { %v3796_v15 = vld [vmem:[#allocation11 + $0x320] sm:$0xff] }
 0x8f7   :  { %3577 = vmatpush1.bf16.msra.mxu1 %v11663_v17  ;;  %3618 = vmatpush1.bf16.msra.mxu0 %v11664_v30  ;;  %v7423_v17 = vcombine.low %v3737_v34, %v3741_v31  ;;  %v7424_v30 = vcombine.high %v3737_v34, %v3741_v31  ;;  %v3793_v34 = vld [vmem:[#allocation11 + $0x308] sm:$0xff] }
 0x8f8   :  { %3578 = vmatprep.subr.bf16.mxu1 %v11665_v14  ;;  %3619 = vmatprep.subr.bf16.mxu0 %v11666_v27  ;;  %v3744_v14 = vld [vmem:[#allocation11 + $0x180] sm:$0xff]  ;;  %v3797_v31 = vld [vmem:[#allocation11 + $0x328] sm:$0xff] }
 0x8f9   :  { %v3748_v27 = vld [vmem:[#allocation11 + $0x1a0] sm:$0xff] }
 0x8fb   :  { %3579 = vmatpush1.bf16.msra.mxu1 %v11667_v22  ;;  %3620 = vmatpush1.bf16.msra.mxu0 %v11668_v23  ;;  %v3745_v22 = vld [vmem:[#allocation11 + $0x188] sm:$0xff]  ;;  %v7430_v23 = vcombine.high %v3744_v14, %v3748_v27 }
 0x8fc   :  { %3580 = vmatprep.subr.bf16.mxu1 %v11669_v54  ;;  %3621 = vmatprep.subr.bf16.mxu0 %v11670_v16  ;;  %v3749_v54 = vld [vmem:[#allocation11 + $0x1a8] sm:$0xff]  ;;  %v7429_v16 = vcombine.low %v3744_v14, %v3748_v27  ;;  %v3800_v14 = vld [vmem:[#allocation11 + $0x340] sm:$0xff] }
 0x8fd   :  { %v3804_v27 = vld [vmem:[#allocation11 + $0x360] sm:$0xff] }
 0x8ff   :  { %3581 = vmatpush1.bf16.msra.mxu1 %v11671_v56  ;;  %3622 = vmatpush1.bf16.msra.mxu0 %v11672_v55  ;;  %v7431_v56 = vcombine.low %v3745_v22, %v3749_v54  ;;  %v7432_v55 = vcombine.high %v3745_v22, %v3749_v54  ;;  %v3801_v22 = vld [vmem:[#allocation11 + $0x348] sm:$0xff] }
 0x900   :  { %4660 = vmatprep.subr.bf16.mxu1 %v7382_v2  ;;  %4701 = vmatprep.subr.bf16.mxu0 %v7384_v8  ;;  %v3757_v2 = vld [vmem:[#allocation11 + $0x1e8] sm:$0xff]  ;;  %v3764_v8 = vld [vmem:[#allocation11 + $0x220] sm:$0xff] }
 0x901   :  { %v7439_v29 = vcombine.low %v3753_v36, %v3757_v2  ;;  %v7440_v7 = vcombine.high %v3753_v36, %v3757_v2  ;;  %v3805_v54 = vld [vmem:[#allocation11 + $0x368] sm:$0xff] }
 0x902   :  { %3583 = vmatmul.mubr.bf16.vlgmr.msra.gmra.mrb[44].mxu1 %v9639_v45  ;;  %3624 = vmatmul.mubr.bf16.vlgmr.msra.gmra.mrb[40].mxu0 %v9639_v45  ;;  %v7405_v45 = vcombine.low %v3720_v35, %v3724_v46  ;;  %v3776_v35 = vld [vmem:[#allocation11 + $0x280] sm:$0xff]  ;;  %v3809_v36 = vld [vmem:[#allocation11 + $0x388] sm:$0xff] }
 0x903   :  { %4661 = vmatpush1.bf16.msra.mxu1 %v7381_v28  ;;  %4702 = vmatpush1.bf16.msra.mxu0 %v7383_v40  ;;  %v7438_v28 = vcombine.high %v3752_v1, %v3756_v63  ;;  %v3760_v40 = vld [vmem:[#allocation11 + $0x200] sm:$0xff]  ;;  %v3813_v2 = vld [vmem:[#allocation11 + $0x3a8] sm:$0xff] }
 0x904   :  { %4662 = vmatprep.subr.bf16.mxu1 %v7390_v10  ;;  %4703 = vmatprep.subr.bf16.mxu0 %v7392_v60  ;;  %v3761_v10 = vld [vmem:[#allocation11 + $0x208] sm:$0xff]  ;;  %v7446_v32 = vcombine.high %v3760_v40, %v3764_v8  ;;  %v7445_v53 = vcombine.low %v3760_v40, %v3764_v8  ;;  %v3780_v46 = vld [vmem:[#allocation11 + $0x2a0] sm:$0xff] }
 0x905   :  { %v7447_v60 = vcombine.low %v3761_v10, %v3765_v19  ;;  %v7448_v11 = vcombine.high %v3761_v10, %v3765_v19  ;;  %v3808_v1 = vld [vmem:[#allocation11 + $0x380] sm:$0xff]  ;;  %v3817_v10 = vld [vmem:[#allocation11 + $0x3c8] sm:$0xff] }
 0x906   :  { %v3812_v63 = vld [vmem:[#allocation11 + $0x3a0] sm:$0xff] }
 0x907   :  { %4663 = vmatpush1.bf16.msra.mxu1 %v7389_v49  ;;  %4704 = vmatpush1.bf16.msra.mxu0 %v7391_v33  ;;  %v3769_v49 = vld [vmem:[#allocation11 + $0x248] sm:$0xff]  ;;  %v7454_v33 = vcombine.high %v3768_v47, %v3772_v37  ;;  %v3816_v40 = vld [vmem:[#allocation11 + $0x3c0] sm:$0xff] }
 0x908   :  { %4664 = vmatprep.subr.bf16.mxu1 %v7398_v50  ;;  %4705 = vmatprep.subr.bf16.mxu0 %v7400_v59  ;;  %v3773_v50 = vld [vmem:[#allocation11 + $0x268] sm:$0xff]  ;;  %v7453_v59 = vcombine.low %v3768_v47, %v3772_v37  ;;  %v3820_v8 = vld [vmem:[#allocation11 + $0x3e0] sm:$0xff]  ;;  %v9707_v47 = vld [vmem:[#allocation11 + $0x10] sm:$0xff] }
 0x909   :  { %v7502_v19 = vcombine.high %v3816_v40, %v3820_v8  ;;  %v9709_v37 = vld [vmem:[#allocation11 + $0x30] sm:$0xff] }
 0x90b   :  { %4665 = vmatpush1.bf16.msra.mxu1 %v7397_v48  ;;  %4706 = vmatpush1.bf16.msra.mxu0 %v7399_v0  ;;  %v7455_v48 = vcombine.low %v3769_v49, %v3773_v50  ;;  %v7456_v0 = vcombine.high %v3769_v49, %v3773_v50  ;;  %v9711_v49 = vld [vmem:[#allocation11 + $0x18] sm:$0xff] }
 0x90c   :  { %4666 = vmatprep.subr.bf16.mxu1 %v7406_v18  ;;  %4707 = vmatprep.subr.bf16.mxu0 %v7408_v6  ;;  %v7462_v18 = vcombine.high %v3776_v35, %v3780_v46  ;;  %v7464_v6 = vcombine.high %v3777_v62, %v3781_v38  ;;  %v9715_v50 = vld [vmem:[#allocation11 + $0x38] sm:$0xff] }
 0x90f   :  { %4667 = vmatpush1.bf16.msra.mxu1 %v7405_v45  ;;  %4708 = vmatpush1.bf16.msra.mxu0 %v7407_v61  ;;  %v7461_v45 = vcombine.low %v3776_v35, %v3780_v46  ;;  %v7463_v61 = vcombine.low %v3777_v62, %v3781_v38  ;;  %v11673_v35 = vld [vmem:[#allocation150_spill] sm:$0xff]  ;;  %v11674_v38 = vld [vmem:[#allocation151_spill] sm:$0xff] }
 0x910   :  { %4668 = vmatprep.subr.bf16.mxu1 %v7414_v42  ;;  %4709 = vmatprep.subr.bf16.mxu0 %v7416_v26  ;;  %v7470_v42 = vcombine.high %v3784_v24, %v3788_v21  ;;  %v7472_v26 = vcombine.high %v3785_v20, %v3789_v57  ;;  %v3632_v46 = vrot.slane %v11673_v35, 6 }
 0x913   :  { %4669 = vmatpush1.bf16.msra.mxu1 %v7413_v4  ;;  %4710 = vmatpush1.bf16.msra.mxu0 %v7415_v25  ;;  %v7469_v4 = vcombine.low %v3784_v24, %v3788_v21  ;;  %v7471_v25 = vcombine.low %v3785_v20, %v3789_v57 }
 0x914   :  { %4670 = vmatprep.subr.bf16.mxu1 %v7422_v41  ;;  %4711 = vmatprep.subr.bf16.mxu0 %v7424_v30  ;;  %v7478_v41 = vcombine.high %v3792_v52, %v3796_v15  ;;  %v7480_v30 = vcombine.high %v3793_v34, %v3797_v31 }
 0x917   :  { %4671 = vmatpush1.bf16.msra.mxu1 %v7421_v9  ;;  %4712 = vmatpush1.bf16.msra.mxu0 %v7423_v17  ;;  %v7477_v9 = vcombine.low %v3792_v52, %v3796_v15  ;;  %v7479_v17 = vcombine.low %v3793_v34, %v3797_v31  ;;  %v3635_v52 = vrot.slane %v9301_v5, 6  ;;  %v3634_v34 = vrot.slane %v11644_v12, 6 }
 0x918   :  { %4672 = vmatprep.subr.bf16.mxu1 %v7430_v23  ;;  %4713 = vmatprep.subr.bf16.mxu0 %v7432_v55  ;;  %v7486_v23 = vcombine.high %v3800_v14, %v3804_v27  ;;  %v7488_v55 = vcombine.high %v3801_v22, %v3805_v54 }
 0x91b   :  { %4673 = vmatpush1.bf16.msra.mxu1 %v7429_v16  ;;  %4714 = vmatpush1.bf16.msra.mxu0 %v7431_v56  ;;  %v7485_v16 = vcombine.low %v3800_v14, %v3804_v27  ;;  %v7487_v56 = vcombine.low %v3801_v22, %v3805_v54 }
 0x91c   :  { %4674 = vmatprep.subr.bf16.mxu1 %v7438_v28  ;;  %4715 = vmatprep.subr.bf16.mxu0 %v7440_v7  ;;  %v7494_v28 = vcombine.high %v3808_v1, %v3812_v63  ;;  %v7496_v7 = vcombine.high %v3809_v36, %v3813_v2 }
 0x91f   :  { %4675 = vmatpush1.bf16.msra.mxu1 %v7437_v43  ;;  %4716 = vmatpush1.bf16.msra.mxu0 %v7439_v29  ;;  %v7493_v43 = vcombine.low %v3808_v1, %v3812_v63  ;;  %v7495_v29 = vcombine.low %v3809_v36, %v3813_v2 }
 0x920   :  { %4676 = vmatprep.subr.bf16.mxu1 %v7446_v32  ;;  %4717 = vmatprep.subr.bf16.mxu0 %v7448_v11  ;;  %v7501_v32 = vcombine.low %v3816_v40, %v3820_v8 }
 0x923   :  { %4677 = vmatpush1.bf16.msra.mxu1 %v7445_v53  ;;  %4718 = vmatpush1.bf16.msra.mxu0 %v7447_v60  ;;  %v3821_v53 = vld [vmem:[#allocation11 + $0x3e8] sm:$0xff] }
 0x924   :  { %4678 = vmatprep.subr.bf16.mxu1 %v7454_v33  ;;  %4719 = vmatprep.subr.bf16.mxu0 %v7456_v0  ;;  %v7503_v60 = vcombine.low %v3817_v10, %v3821_v53  ;;  %v7504_v11 = vcombine.high %v3817_v10, %v3821_v53  ;;  %v7386_v33 = vcombine.high %v9707_v47, %v9709_v37  ;;  %v11676_v10 = vld [vmem:[#allocation154_spill] sm:$0xff] }
 0x925   :  { %v7388_v0 = vcombine.high %v9711_v49, %v9715_v50 }
 0x927   :  { %4679 = vmatpush1.bf16.msra.mxu1 %v7453_v59  ;;  %4720 = vmatpush1.bf16.msra.mxu0 %v7455_v48  ;;  %v7385_v59 = vcombine.low %v9707_v47, %v9709_v37  ;;  %v7387_v48 = vcombine.low %v9711_v49, %v9715_v50 }
 0x928   :  { %4680 = vmatprep.subr.bf16.mxu1 %v7462_v18  ;;  %4721 = vmatprep.subr.bf16.mxu0 %v7464_v6 }
 0x92b   :  { %4681 = vmatpush1.bf16.msra.mxu1 %v7461_v45  ;;  %4722 = vmatpush1.bf16.msra.mxu0 %v7463_v61  ;;  %v3633_v45 = vrot.slane %v11674_v38, 6 }
 0x92c   :  { %4682 = vmatprep.subr.bf16.mxu1 %v7470_v42  ;;  %4723 = vmatprep.subr.bf16.mxu0 %v7472_v26 }
 0x92f   :  { %4683 = vmatpush1.bf16.msra.mxu1 %v7469_v4  ;;  %4724 = vmatpush1.bf16.msra.mxu0 %v7471_v25 }
 0x930   :  { %4684 = vmatprep.subr.bf16.mxu1 %v7478_v41  ;;  %4725 = vmatprep.subr.bf16.mxu0 %v7480_v30 }
 0x933   :  { %4685 = vmatpush1.bf16.msra.mxu1 %v7477_v9  ;;  %4726 = vmatpush1.bf16.msra.mxu0 %v7479_v17 }
 0x934   :  { %4686 = vmatprep.subr.bf16.mxu1 %v7486_v23  ;;  %4727 = vmatprep.subr.bf16.mxu0 %v7488_v55 }
 0x937   :  { %4687 = vmatpush1.bf16.msra.mxu1 %v7485_v16  ;;  %4728 = vmatpush1.bf16.msra.mxu0 %v7487_v56 }
 0x938   :  { %4688 = vmatprep.subr.bf16.mxu1 %v7494_v28  ;;  %4729 = vmatprep.subr.bf16.mxu0 %v7496_v7 }
 0x93b   :  { %4689 = vmatpush1.bf16.msra.mxu1 %v7493_v43  ;;  %4730 = vmatpush1.bf16.msra.mxu0 %v7495_v29  ;;  %v11675_v29 = vld [vmem:[#allocation153_spill] sm:$0xff] }
 0x93c   :  { %4690 = vmatprep.subr.bf16.mxu1 %v7502_v19  ;;  %4731 = vmatprep.subr.bf16.mxu0 %v7504_v11 }
 0x93f   :  { %4691 = vmatpush1.bf16.msra.mxu1 %v7501_v32  ;;  %4732 = vmatpush1.bf16.msra.mxu0 %v7503_v60 }
 0x940   :  { %4742 = vmatprep.subr.bf16.mxu1 %v7386_v33  ;;  %4783 = vmatprep.subr.bf16.mxu0 %v7388_v0 }
 0x995   :  { %v3502_v62 = vpop.f32.mrb[40].mxu1  ;;  %v3543_v18 = vpop.f32.mrb[36].mxu0 }
 0x996   :  { %v3640_v61 = vadd.f32 %v3632_v46, %v3502_v62  ;;  %v3504_v6 = vpop.f32.mrb[41].mxu1  ;;  %v3545_v24 = vpop.f32.mrb[37].mxu0  ;;  %v3642_v31 = vadd.f32 %v3634_v34, %v3543_v18 }
 0x997   :  { %v3641_v21 = vadd.f32 %v3633_v45, %v3504_v6  ;;  %v3506_v20 = vpop.f32.mrb[42].mxu1  ;;  %v3547_v42 = vpop.f32.mrb[38].mxu0  ;;  %v3643_v15 = vadd.f32 %v3635_v52, %v3545_v24 }
 0x998   :  { %v7375_v57 = vmul.f32 -1.442695, %v3640_v61  ;;  %v3507_v4 = vpop.f32.mrb[43].mxu1  ;;  %v3548_v25 = vpop.f32.mrb[39].mxu0 }
 0x999   :  { %v7376_v26 = vmul.f32 -1.442695, %v3641_v21  ;;  %v7377_v41 = vmul.f32 -1.442695, %v3643_v15  ;;  %v3956_v4 = vrot.slane %v9635_v13, 6  ;;  %v11678_v15 = vld [vmem:[#allocation156_spill] sm:$0xff] }
 0x99a   :  { %8026 = vpow2.f32 %v7375_v57  ;;  %v3968_v34 = vrot.slane %v11678_v15, 2  ;;  %v3767_v15 = vld [vmem:[#allocation11 + $0x238] sm:$0xff] }
 0x99b   :  { %8028 = vpow2.f32 %v7376_v26  ;;  %v11677_v26 = vld [vmem:[#allocation88_spill] sm:$0xff] }
 0x99c   :  { %8030 = vpow2.f32 %v7377_v41  ;;  %v3962_v52 = vrot.slane %v11677_v26, 4  ;;  %v3766_v26 = vld [vmem:[#allocation11 + $0x230] sm:$0xff] }
 0x99d   :  { %8032 = vtanh.f32 %v3642_v31 }
 0x9a4   :  { %v8027_v9 = vpop.eup %8026 }
 0x9a5   :  { %v8029_v17 = vpop.eup %8028  ;;  %v3651_v30 = vadd.f32 1.0, %v8027_v9  ;;  %v3706_v9 = vld [vmem:[#allocation11 + $0x50] sm:$0xff] }
 0x9a6   :  { %v3657_v14 = vadd.f32 1.0, %v8029_v17  ;;  %v8031_v27 = vpop.eup %8030 }
 0x9a7   :  { %8034 = vrcp.f32 %v3651_v30  ;;  %v8033_v22 = vpop.eup %8032  ;;  %v3664_v56 = vadd.f32 1.0, %v8031_v27  ;;  %v3707_v30 = vld [vmem:[#allocation11 + $0x58] sm:$0xff] }
 0x9a8   :  { %8036 = vrcp.f32 %v3657_v14  ;;  %v3711_v14 = vld [vmem:[#allocation11 + $0x78] sm:$0xff] }
 0x9a9   :  { %8038 = vrcp.f32 %v3664_v56  ;;  %v3715_v56 = vld [vmem:[#allocation11 + $0x98] sm:$0xff] }
 0x9b1   :  { %v8035_v23 = vpop.eup %8034 }
 0x9b2   :  { %v8037_v54 = vpop.eup %8036  ;;  %v3668_v16 = vmul.f32 %v8035_v23, %v8033_v22  ;;  %v3714_v23 = vld [vmem:[#allocation11 + $0x90] sm:$0xff] }
 0x9b3   :  { %v3667_v5 = vmul.f32 %v8037_v54, %v9618_v39  ;;  %v8039_v12 = vpop.eup %8038  ;;  %v7396_v54 = vcombine.high %v3707_v30, %v3711_v14 }
 0x9b5   :  { %v3669_v55 = vadd.f32 %v3668_v16, %v3667_v5  ;;  %v3718_v16 = vld [vmem:[#allocation11 + $0xb0] sm:$0xff]  ;;  %v3719_v5 = vld [vmem:[#allocation11 + $0xb8] sm:$0xff] }
 0x9b6   :  { %v7401_v47 = vcombine.low %v3714_v23, %v3718_v16  ;;  %v7403_v37 = vcombine.low %v3715_v56, %v3719_v5 }
 0x9b7   :  { %8040 = vtanh.f32 %v3669_v55 }
 0x9c1   :  { %v8041_v1 = vpop.eup %8040 }
 0x9c2   :  { %v3671_v63 = vmul.f32 %v8041_v1, %v8039_v12  ;;  %v7395_v12 = vcombine.low %v3707_v30, %v3711_v14  ;;  %v7402_v1 = vcombine.high %v3714_v23, %v3718_v16  ;;  %v3771_v30 = vld [vmem:[#allocation11 + $0x258] sm:$0xff]  ;;  %v3778_v16 = vld [vmem:[#allocation11 + $0x290] sm:$0xff] }
 0x9c3   :  { %v3775_v14 = vld [vmem:[#allocation11 + $0x278] sm:$0xff] }
 0x9c4   :  { %v3967_v36 = vrot.slane %v3671_v63, 2  ;;  %v7404_v63 = vcombine.high %v3715_v56, %v3719_v5  ;;  %v3782_v56 = vld [vmem:[#allocation11 + $0x2b0] sm:$0xff]  ;;  %v3779_v5 = vld [vmem:[#allocation11 + $0x298] sm:$0xff] }
 0x9c6   :  { %v3975_v28 = vsel %vm242_vm2, %v9625_v44, %v3967_v36  ;;  %v3722_v36 = vld [vmem:[#allocation11 + $0xd0] sm:$0xff] }
 0x9c7   :  { %v9741_v22 = vpack.c.bf16 %v3975_v28, %v3975_v28  ;;  %v3726_v28 = vld [vmem:[#allocation11 + $0xf0] sm:$0xff] }
 0x9c8   :  { %v7410_v49 = vcombine.high %v3722_v36, %v3726_v28 }
 0x9d5   :  { %v3584_v2 = vpop.f32.mrb[44].mxu1  ;;  %v3625_v43 = vpop.f32.mrb[40].mxu0 }
 0x9d6   :  { %v3644_v7 = vadd.f32 %v3584_v2, %v11675_v29  ;;  %v3586_v40 = vpop.f32.mrb[45].mxu1  ;;  %v3627_v8 = vpop.f32.mrb[41].mxu0  ;;  %v3646_v44 = vadd.f32 %v3625_v43, %v9305_v3  ;;  %v3723_v2 = vld [vmem:[#allocation11 + $0xd8] sm:$0xff] }
 0x9d7   :  { %v3645_v32 = vadd.f32 %v3586_v40, %v11676_v10  ;;  %v3588_v19 = vpop.f32.mrb[46].mxu1  ;;  %v3629_v39 = vpop.f32.mrb[42].mxu0  ;;  %v3647_v0 = vadd.f32 %v3627_v8, %v9296_v58  ;;  %v3727_v43 = vld [vmem:[#allocation11 + $0xf8] sm:$0xff]  ;;  %v7409_v40 = vcombine.low %v3722_v36, %v3726_v28  ;;  %v3786_v28 = vld [vmem:[#allocation11 + $0x2d0] sm:$0xff] }
 0x9d8   :  { %v7378_v53 = vmul.f32 -1.442695, %v3644_v7  ;;  %v3589_v60 = vpop.f32.mrb[47].mxu1  ;;  %v3630_v11 = vpop.f32.mrb[43].mxu0  ;;  %v7412_v50 = vcombine.high %v3723_v2, %v3727_v43  ;;  %v3731_v29 = vld [vmem:[#allocation11 + $0x118] sm:$0xff]  ;;  %v7411_v8 = vcombine.low %v3723_v2, %v3727_v43  ;;  %v3738_v19 = vld [vmem:[#allocation11 + $0x150] sm:$0xff] }
 0x9d9   :  { %v7379_v33 = vmul.f32 -1.442695, %v3645_v32  ;;  %v7380_v35 = vmul.f32 -1.442695, %v3647_v0  ;;  %v3735_v7 = vld [vmem:[#allocation11 + $0x138] sm:$0xff]  ;;  %v3742_v39 = vld [vmem:[#allocation11 + $0x170] sm:$0xff] }
 0x9da   :  { %8042 = vpow2.f32 %v7378_v53  ;;  %v7420_v32 = vcombine.high %v3731_v29, %v3735_v7  ;;  %v3739_v53 = vld [vmem:[#allocation11 + $0x158] sm:$0xff]  ;;  %v7426_v0 = vcombine.high %v3738_v19, %v3742_v39  ;;  %v3790_v2 = vld [vmem:[#allocation11 + $0x2f0] sm:$0xff] }
 0x9db   :  { %8044 = vpow2.f32 %v7379_v33  ;;  %v3743_v60 = vld [vmem:[#allocation11 + $0x178] sm:$0xff]  ;;  %v7419_v33 = vcombine.low %v3731_v29, %v3735_v7  ;;  %v3798_v29 = vld [vmem:[#allocation11 + $0x330] sm:$0xff] }
 0x9dc   :  { %8046 = vpow2.f32 %v7380_v35  ;;  %v7428_v35 = vcombine.high %v3739_v53, %v3743_v60  ;;  %v3787_v43 = vld [vmem:[#allocation11 + $0x2d8] sm:$0xff] }
 0x9dd   :  { %8048 = vtanh.f32 %v3646_v44  ;;  %v3746_v44 = vld [vmem:[#allocation11 + $0x190] sm:$0xff]  ;;  %v3795_v7 = vld [vmem:[#allocation11 + $0x318] sm:$0xff] }
 0x9e4   :  { %v8043_v46 = vpop.eup %8042 }
 0x9e5   :  { %v8045_v62 = vpop.eup %8044  ;;  %v3675_v18 = vadd.f32 1.0, %v8043_v46  ;;  %v3750_v46 = vld [vmem:[#allocation11 + $0x1b0] sm:$0xff] }
 0x9e6   :  { %v3681_v38 = vadd.f32 1.0, %v8045_v62  ;;  %v8047_v45 = vpop.eup %8046  ;;  %v3747_v62 = vld [vmem:[#allocation11 + $0x198] sm:$0xff] }
 0x9e7   :  { %8050 = vrcp.f32 %v3675_v18  ;;  %v8049_v61 = vpop.eup %8048  ;;  %v3688_v20 = vadd.f32 1.0, %v8047_v45  ;;  %v3751_v18 = vld [vmem:[#allocation11 + $0x1b8] sm:$0xff]  ;;  %v7427_v45 = vcombine.low %v3739_v53, %v3743_v60  ;;  %v3806_v53 = vld [vmem:[#allocation11 + $0x370] sm:$0xff] }
 0x9e8   :  { %8052 = vrcp.f32 %v3681_v38  ;;  %v7425_v38 = vcombine.low %v3738_v19, %v3742_v39  ;;  %v3802_v39 = vld [vmem:[#allocation11 + $0x350] sm:$0xff]  ;;  %v3803_v60 = vld [vmem:[#allocation11 + $0x358] sm:$0xff] }
 0x9e9   :  { %8054 = vrcp.f32 %v3688_v20  ;;  %v3755_v20 = vld [vmem:[#allocation11 + $0x1d8] sm:$0xff] }
 0x9f1   :  { %v8051_v6 = vpop.eup %8050 }
 0x9f2   :  { %v8053_v24 = vpop.eup %8052  ;;  %v3692_v21 = vmul.f32 %v8051_v6, %v8049_v61  ;;  %v7434_v61 = vcombine.high %v3746_v44, %v3750_v46  ;;  %v7436_v6 = vcombine.high %v3747_v62, %v3751_v18 }
 0x9f3   :  { %v3691_v42 = vmul.f32 %v8053_v24, %v9632_v51  ;;  %v8055_v3 = vpop.eup %8054  ;;  %v3710_v51 = vld [vmem:[#allocation11 + $0x70] sm:$0xff] }
 0x9f4   :  { %v7394_v13 = vcombine.high %v3706_v9, %v3710_v51  ;;  %v7393_v55 = vcombine.low %v3706_v9, %v3710_v51  ;;  %v3754_v24 = vld [vmem:[#allocation11 + $0x1d0] sm:$0xff] }
 0x9f5   :  { %v3693_v58 = vadd.f32 %v3692_v21, %v3691_v42  ;;  %v3758_v21 = vld [vmem:[#allocation11 + $0x1f0] sm:$0xff]  ;;  %v3759_v42 = vld [vmem:[#allocation11 + $0x1f8] sm:$0xff] }
 0x9f6   :  { %v3774_v51 = vld [vmem:[#allocation11 + $0x270] sm:$0xff] }
 0x9f7   :  { %8056 = vtanh.f32 %v3693_v58  ;;  %v7433_v58 = vcombine.low %v3746_v44, %v3750_v46  ;;  %v3810_v46 = vld [vmem:[#allocation11 + $0x390] sm:$0xff] }
 0xa01   :  { %v8057_v57 = vpop.eup %8056 }
 0xa02   :  { %v3695_v25 = vmul.f32 %v8057_v57, %v8055_v3  ;;  %v7435_v3 = vcombine.low %v3747_v62, %v3751_v18  ;;  %v7442_v57 = vcombine.high %v3754_v24, %v3758_v21  ;;  %v3814_v62 = vld [vmem:[#allocation11 + $0x3b0] sm:$0xff]  ;;  %v3811_v18 = vld [vmem:[#allocation11 + $0x398] sm:$0xff] }
 0xa04   :  { %v3972_v41 = vsel %vm504_vm8, %v3695_v25, %v3956_v4  ;;  %v7444_v4 = vcombine.high %v3755_v20, %v3759_v42  ;;  %v3762_v25 = vld [vmem:[#allocation11 + $0x210] sm:$0xff] }
 0xa05   :  { %v3974_v31 = vsel %vm544_vm10, %v3972_v41, %v3962_v52  ;;  %v3763_v52 = vld [vmem:[#allocation11 + $0x218] sm:$0xff]  ;;  %v7443_v41 = vcombine.low %v3755_v20, %v3759_v42  ;;  %v3822_v20 = vld [vmem:[#allocation11 + $0x3f0] sm:$0xff] }
 0xa06   :  { %v3976_v17 = vsel %vm242_vm2, %v3974_v31, %v3968_v34  ;;  %v7441_v34 = vcombine.low %v3754_v24, %v3758_v21  ;;  %v7450_v31 = vcombine.high %v3762_v25, %v3766_v26  ;;  %v7452_v9 = vcombine.high %v3763_v52, %v3767_v15  ;;  %v3818_v21 = vld [vmem:[#allocation11 + $0x3d0] sm:$0xff]  ;;  %v3819_v42 = vld [vmem:[#allocation11 + $0x3d8] sm:$0xff] }
 0xa07   :  { %v3978_v27 = vpack.c.bf16 %v3976_v17, %v3976_v17  ;;  %v3770_v17 = vld [vmem:[#allocation11 + $0x250] sm:$0xff]  ;;  %v7451_v23 = vcombine.low %v3763_v52, %v3767_v15  ;;  %v3828_v52 = vld [vmem:[#allocation12 + $0x20] sm:$0xff]  ;;  %v3825_v15 = vld [vmem:[#allocation12 + $0x8] sm:$0xff] }
 0xa09   :  { %4692 = vmatprep.mubr.bf16.mxu1 %v3978_v27  ;;  %4733 = vmatprep.mubr.bf16.mxu0 %v3978_v27 }
 0xa0a   :  { %4693 = vmatmul.mubr.bf16.vlgmr.msra.gmra.mrb[48].mxu1 %v9741_v22  ;;  %4734 = vmatmul.mubr.bf16.vlgmr.msra.gmra.mrb[44].mxu0 %v9741_v22 }
 0xa0b   :  { %4743 = vmatpush1.bf16.msra.mxu1 %v7385_v59  ;;  %4784 = vmatpush1.bf16.msra.mxu0 %v7387_v48  ;;  %v3730_v59 = vld [vmem:[#allocation11 + $0x110] sm:$0xff] }
 0xa0c   :  { %4774 = vmatprep.mubr.bf16.mxu1 %v3978_v27  ;;  %4815 = vmatprep.mubr.bf16.mxu0 %v3978_v27  ;;  %v3734_v48 = vld [vmem:[#allocation11 + $0x130] sm:$0xff]  ;;  %v7449_v27 = vcombine.low %v3762_v25, %v3766_v26  ;;  %v3824_v26 = vld [vmem:[#allocation12] sm:$0xff] }
 0xa0d   :  { %4744 = vmatprep.subr.bf16.mxu1 %v7394_v13  ;;  %4785 = vmatprep.subr.bf16.mxu0 %v7396_v54  ;;  %v7418_v10 = vcombine.high %v3730_v59, %v3734_v48  ;;  %v7417_v11 = vcombine.low %v3730_v59, %v3734_v48  ;;  %v7458_v13 = vcombine.high %v3770_v17, %v3774_v51  ;;  %v3794_v48 = vld [vmem:[#allocation11 + $0x310] sm:$0xff] }
 0xa0e   :  { %v7460_v54 = vcombine.high %v3771_v30, %v3775_v14 }
 0xa0f   :  { %4745 = vmatpush1.bf16.msra.mxu1 %v7393_v55  ;;  %4786 = vmatpush1.bf16.msra.mxu0 %v7395_v12  ;;  %v3783_v55 = vld [vmem:[#allocation11 + $0x2b8] sm:$0xff]  ;;  %v7457_v12 = vcombine.low %v3770_v17, %v3774_v51  ;;  %v3832_v51 = vld [vmem:[#allocation12 + $0x40] sm:$0xff] }
 0xa10   :  { %4746 = vmatprep.subr.bf16.mxu1 %v7402_v1  ;;  %4787 = vmatprep.subr.bf16.mxu0 %v7404_v63  ;;  %v7459_v1 = vcombine.low %v3771_v30, %v3775_v14  ;;  %v7466_v63 = vcombine.high %v3778_v16, %v3782_v56  ;;  %v7468_v36 = vcombine.high %v3779_v5, %v3783_v55  ;;  %v3836_v30 = vld [vmem:[#allocation12 + $0x60] sm:$0xff]  ;;  %v3833_v14 = vld [vmem:[#allocation12 + $0x48] sm:$0xff] }
 0xa13   :  { %4747 = vmatpush1.bf16.msra.mxu1 %v7401_v47  ;;  %4788 = vmatpush1.bf16.msra.mxu0 %v7403_v37  ;;  %v3791_v47 = vld [vmem:[#allocation11 + $0x2f8] sm:$0xff]  ;;  %v7465_v37 = vcombine.low %v3778_v16, %v3782_v56  ;;  %v3840_v56 = vld [vmem:[#allocation12 + $0x80] sm:$0xff] }
 0xa14   :  { %4748 = vmatprep.subr.bf16.mxu1 %v7410_v49  ;;  %4789 = vmatprep.subr.bf16.mxu0 %v7412_v50  ;;  %v7467_v49 = vcombine.low %v3779_v5, %v3783_v55  ;;  %v7474_v50 = vcombine.high %v3786_v28, %v3790_v2  ;;  %v7476_v59 = vcombine.high %v3787_v43, %v3791_v47  ;;  %v3844_v5 = vld [vmem:[#allocation12 + $0xa0] sm:$0xff]  ;;  %v3841_v55 = vld [vmem:[#allocation12 + $0x88] sm:$0xff] }
 0xa17   :  { %4749 = vmatpush1.bf16.msra.mxu1 %v7409_v40  ;;  %4790 = vmatpush1.bf16.msra.mxu0 %v7411_v8  ;;  %v3799_v40 = vld [vmem:[#allocation11 + $0x338] sm:$0xff]  ;;  %v7473_v8 = vcombine.low %v3786_v28, %v3790_v2  ;;  %v3848_v2 = vld [vmem:[#allocation12 + $0xc0] sm:$0xff] }
 0xa18   :  { %4750 = vmatprep.subr.bf16.mxu1 %v7418_v10  ;;  %4791 = vmatprep.subr.bf16.mxu0 %v7420_v32  ;;  %v7475_v10 = vcombine.low %v3787_v43, %v3791_v47  ;;  %v7482_v32 = vcombine.high %v3794_v48, %v3798_v29  ;;  %v7484_v19 = vcombine.high %v3795_v7, %v3799_v40  ;;  %v3852_v43 = vld [vmem:[#allocation12 + $0xe0] sm:$0xff]  ;;  %v3849_v47 = vld [vmem:[#allocation12 + $0xc8] sm:$0xff] }
 0xa1b   :  { %4751 = vmatpush1.bf16.msra.mxu1 %v7417_v11  ;;  %4792 = vmatpush1.bf16.msra.mxu0 %v7419_v33  ;;  %v3807_v11 = vld [vmem:[#allocation11 + $0x378] sm:$0xff]  ;;  %v7481_v33 = vcombine.low %v3794_v48, %v3798_v29  ;;  %v3856_v29 = vld [vmem:[#allocation12 + $0x100] sm:$0xff] }
 0xa1c   :  { %4752 = vmatprep.subr.bf16.mxu1 %v7426_v0  ;;  %4793 = vmatprep.subr.bf16.mxu0 %v7428_v35  ;;  %v7483_v0 = vcombine.low %v3795_v7, %v3799_v40  ;;  %v7490_v35 = vcombine.high %v3802_v39, %v3806_v53  ;;  %v7492_v44 = vcombine.high %v3803_v60, %v3807_v11  ;;  %v3860_v7 = vld [vmem:[#allocation12 + $0x120] sm:$0xff]  ;;  %v3857_v40 = vld [vmem:[#allocation12 + $0x108] sm:$0xff] }
 0xa1f   :  { %4753 = vmatpush1.bf16.msra.mxu1 %v7425_v38  ;;  %4794 = vmatpush1.bf16.msra.mxu0 %v7427_v45  ;;  %v3815_v38 = vld [vmem:[#allocation11 + $0x3b8] sm:$0xff]  ;;  %v7489_v45 = vcombine.low %v3802_v39, %v3806_v53  ;;  %v3864_v53 = vld [vmem:[#allocation12 + $0x140] sm:$0xff] }
 0xa20   :  { %4754 = vmatprep.subr.bf16.mxu1 %v7434_v61  ;;  %4795 = vmatprep.subr.bf16.mxu0 %v7436_v6  ;;  %v7491_v61 = vcombine.low %v3803_v60, %v3807_v11  ;;  %v7498_v6 = vcombine.high %v3810_v46, %v3814_v62  ;;  %v7500_v24 = vcombine.high %v3811_v18, %v3815_v38  ;;  %v3868_v60 = vld [vmem:[#allocation12 + $0x160] sm:$0xff]  ;;  %v3865_v11 = vld [vmem:[#allocation12 + $0x148] sm:$0xff] }
 0xa23   :  { %4755 = vmatpush1.bf16.msra.mxu1 %v7433_v58  ;;  %4796 = vmatpush1.bf16.msra.mxu0 %v7435_v3  ;;  %v3823_v58 = vld [vmem:[#allocation11 + $0x3f8] sm:$0xff]  ;;  %v7497_v3 = vcombine.low %v3810_v46, %v3814_v62  ;;  %v3872_v62 = vld [vmem:[#allocation12 + $0x180] sm:$0xff] }
 0xa24   :  { %4756 = vmatprep.subr.bf16.mxu1 %v7442_v57  ;;  %4797 = vmatprep.subr.bf16.mxu0 %v7444_v4  ;;  %v7499_v57 = vcombine.low %v3811_v18, %v3815_v38  ;;  %v7506_v4 = vcombine.high %v3818_v21, %v3822_v20  ;;  %v7508_v25 = vcombine.high %v3819_v42, %v3823_v58  ;;  %v3876_v18 = vld [vmem:[#allocation12 + $0x1a0] sm:$0xff]  ;;  %v3873_v38 = vld [vmem:[#allocation12 + $0x188] sm:$0xff] }
 0xa27   :  { %4757 = vmatpush1.bf16.msra.mxu1 %v7441_v34  ;;  %4798 = vmatpush1.bf16.msra.mxu0 %v7443_v41  ;;  %v3829_v34 = vld [vmem:[#allocation12 + $0x28] sm:$0xff]  ;;  %v7505_v41 = vcombine.low %v3818_v21, %v3822_v20  ;;  %v3880_v20 = vld [vmem:[#allocation12 + $0x1c0] sm:$0xff] }
 0xa28   :  { %4758 = vmatprep.subr.bf16.mxu1 %v7450_v31  ;;  %4799 = vmatprep.subr.bf16.mxu0 %v7452_v9  ;;  %v7507_v31 = vcombine.low %v3819_v42, %v3823_v58  ;;  %v9751_v9 = vcombine.high %v3824_v26, %v3828_v52  ;;  %v9753_v17 = vcombine.high %v3825_v15, %v3829_v34  ;;  %v3884_v42 = vld [vmem:[#allocation12 + $0x1e0] sm:$0xff]  ;;  %v3881_v58 = vld [vmem:[#allocation12 + $0x1c8] sm:$0xff] }
 0xa2b   :  { %4759 = vmatpush1.bf16.msra.mxu1 %v7449_v27  ;;  %4800 = vmatpush1.bf16.msra.mxu0 %v7451_v23  ;;  %v3837_v27 = vld [vmem:[#allocation12 + $0x68] sm:$0xff]  ;;  %v9755_v23 = vcombine.low %v3824_v26, %v3828_v52  ;;  %v3888_v52 = vld [vmem:[#allocation12 + $0x200] sm:$0xff] }
 0xa2c   :  { %4760 = vmatprep.subr.bf16.mxu1 %v7458_v13  ;;  %4801 = vmatprep.subr.bf16.mxu0 %v7460_v54  ;;  %v9757_v13 = vcombine.low %v3825_v15, %v3829_v34  ;;  %v9761_v54 = vcombine.high %v3832_v51, %v3836_v30  ;;  %v9763_v16 = vcombine.high %v3833_v14, %v3837_v27  ;;  %v3892_v15 = vld [vmem:[#allocation12 + $0x220] sm:$0xff]  ;;  %v3889_v34 = vld [vmem:[#allocation12 + $0x208] sm:$0xff] }
 0xa2e   :  { %11679 = vst [vmem:[#allocation89_spill] sm:$0xff] %v9757_v13  ;;  %11680 = vst [vmem:[#allocation90_spill] sm:$0xff] %v9761_v54 }
 0xa2f   :  { %4761 = vmatpush1.bf16.msra.mxu1 %v7457_v12  ;;  %4802 = vmatpush1.bf16.msra.mxu0 %v7459_v1  ;;  %11681 = vst [vmem:[#allocation91_spill] sm:$0xff] %v9763_v16  ;;  %v3845_v12 = vld [vmem:[#allocation12 + $0xa8] sm:$0xff]  ;;  %v9769_v1 = vcombine.low %v3832_v51, %v3836_v30  ;;  %v9849_v30 = vcombine.high %v3888_v52, %v3892_v15 }
 0xa30   :  { %4762 = vmatprep.subr.bf16.mxu1 %v7466_v63  ;;  %4803 = vmatprep.subr.bf16.mxu0 %v7468_v36  ;;  %v9771_v63 = vcombine.low %v3833_v14, %v3837_v27  ;;  %v9775_v36 = vcombine.high %v3840_v56, %v3844_v5  ;;  %v9777_v28 = vcombine.high %v3841_v55, %v3845_v12  ;;  %v3896_v27 = vld [vmem:[#allocation12 + $0x240] sm:$0xff] }
 0xa31   :  { %11682 = vst [vmem:[#allocation92_spill] sm:$0xff] %v9769_v1  ;;  %11709 = vst [vmem:[#allocation121_spill] sm:$0xff] %v9849_v30 }
 0xa32   :  { %11683 = vst [vmem:[#allocation93_spill] sm:$0xff] %v9771_v63  ;;  %11684 = vst [vmem:[#allocation94_spill] sm:$0xff] %v9775_v36 }
 0xa33   :  { %4763 = vmatpush1.bf16.msra.mxu1 %v7465_v37  ;;  %4804 = vmatpush1.bf16.msra.mxu0 %v7467_v49  ;;  %11685 = vst [vmem:[#allocation95_spill] sm:$0xff] %v9777_v28  ;;  %v11686_v37 = vmov 0.0|0.0   ;;  %v9783_v49 = vcombine.low %v3840_v56, %v3844_v5  ;;  %v3900_v56 = vld [vmem:[#allocation12 + $0x260] sm:$0xff]  ;;  %v3897_v5 = vld [vmem:[#allocation12 + $0x248] sm:$0xff] }
 0xa34   :  { %4764 = vmatprep.subr.bf16.mxu1 %v7474_v50  ;;  %4805 = vmatprep.subr.bf16.mxu0 %v7476_v59  ;;  %v9785_v50 = vcombine.low %v3841_v55, %v3845_v12  ;;  %v9789_v59 = vcombine.high %v3848_v2, %v3852_v43  ;;  %v3901_v55 = vld [vmem:[#allocation12 + $0x268] sm:$0xff]  ;;  %v9855_v12 = vcombine.low %v3888_v52, %v3892_v15  ;;  %v3924_v52 = vld [vmem:[#allocation12 + $0x320] sm:$0xff] }
 0xa35   :  { %11687 = vst [vmem:[#allocation96_spill] sm:$0xff] %v9783_v49  ;;  %v3921_v15 = vld [vmem:[#allocation12 + $0x308] sm:$0xff] }
 0xa36   :  { %11688 = vst [vmem:[#allocation97_spill] sm:$0xff] %v9785_v50  ;;  %11689 = vst [vmem:[#allocation98_spill] sm:$0xff] %v9789_v59 }
 0xa37   :  { %4765 = vmatpush1.bf16.msra.mxu1 %v7473_v8  ;;  %4806 = vmatpush1.bf16.msra.mxu0 %v7475_v10  ;;  %v3861_v8 = vld [vmem:[#allocation12 + $0x128] sm:$0xff]  ;;  %v9795_v10 = vcombine.low %v3848_v2, %v3852_v43  ;;  %11711 = vst [vmem:[#allocation123_spill] sm:$0xff] %v9855_v12  ;;  %v9861_v43 = vcombine.high %v3896_v27, %v3900_v56 }
 0xa38   :  { %4766 = vmatprep.subr.bf16.mxu1 %v7482_v32  ;;  %4807 = vmatprep.subr.bf16.mxu0 %v7484_v19  ;;  %v9801_v19 = vcombine.high %v3856_v29, %v3860_v7  ;;  %v9803_v39 = vcombine.high %v3857_v40, %v3861_v8 }
 0xa39   :  { %11691 = vst [vmem:[#allocation126_spill] sm:$0xff] %v9795_v10  ;;  %11713 = vst [vmem:[#allocation128_spill] sm:$0xff] %v9861_v43 }
 0xa3a   :  { %11693 = vst [vmem:[#allocation130_spill] sm:$0xff] %v9801_v19  ;;  %11694 = vst [vmem:[#allocation131_spill] sm:$0xff] %v9803_v39 }
 0xa3b   :  { %4767 = vmatpush1.bf16.msra.mxu1 %v7481_v33  ;;  %4808 = vmatpush1.bf16.msra.mxu0 %v7483_v0  ;;  %v3869_v33 = vld [vmem:[#allocation12 + $0x168] sm:$0xff]  ;;  %v9807_v0 = vcombine.low %v3856_v29, %v3860_v7  ;;  %v3908_v29 = vld [vmem:[#allocation12 + $0x2a0] sm:$0xff] }
 0xa3c   :  { %4768 = vmatprep.subr.bf16.mxu1 %v7490_v35  ;;  %4809 = vmatprep.subr.bf16.mxu0 %v7492_v44  ;;  %v9809_v35 = vcombine.low %v3857_v40, %v3861_v8  ;;  %v9813_v44 = vcombine.high %v3864_v53, %v3868_v60  ;;  %v9815_v46 = vcombine.high %v3865_v11, %v3869_v33  ;;  %v3905_v7 = vld [vmem:[#allocation12 + $0x288] sm:$0xff] }
 0xa3d   :  { %11695 = vst [vmem:[#allocation132_spill] sm:$0xff] %v9807_v0  ;;  %v3909_v40 = vld [vmem:[#allocation12 + $0x2a8] sm:$0xff]  ;;  %v9867_v8 = vcombine.low %v3896_v27, %v3900_v56 }
 0xa3e   :  { %11696 = vst [vmem:[#allocation99_spill] sm:$0xff] %v9809_v35  ;;  %11697 = vst [vmem:[#allocation100_spill] sm:$0xff] %v9813_v44 }
 0xa3f   :  { %4769 = vmatpush1.bf16.msra.mxu1 %v7489_v45  ;;  %4810 = vmatpush1.bf16.msra.mxu0 %v7491_v61  ;;  %11698 = vst [vmem:[#allocation101_spill] sm:$0xff] %v9815_v46  ;;  %v3877_v45 = vld [vmem:[#allocation12 + $0x1a8] sm:$0xff]  ;;  %v9819_v61 = vcombine.low %v3864_v53, %v3868_v60  ;;  %11715 = vst [vmem:[#allocation25_spill] sm:$0xff] %v9867_v8  ;;  %v9869_v53 = vcombine.low %v3897_v5, %v3901_v55 }
 0xa40   :  { %4770 = vmatprep.subr.bf16.mxu1 %v7498_v6  ;;  %4811 = vmatprep.subr.bf16.mxu0 %v7500_v24  ;;  %v9821_v6 = vcombine.low %v3865_v11, %v3869_v33  ;;  %v9825_v24 = vcombine.high %v3872_v62, %v3876_v18  ;;  %v9827_v21 = vcombine.high %v3873_v38, %v3877_v45  ;;  %v3912_v33 = vld [vmem:[#allocation12 + $0x2c0] sm:$0xff] }
 0xa41   :  { %11699 = vst [vmem:[#allocation102_spill] sm:$0xff] %v9819_v61  ;;  %11716 = vst [vmem:[#allocation26_spill] sm:$0xff] %v9869_v53  ;;  %v9875_v11 = vcombine.high %v3905_v7, %v3909_v40 }
 0xa42   :  { %11700 = vst [vmem:[#allocation103_spill] sm:$0xff] %v9821_v6  ;;  %11701 = vst [vmem:[#allocation104_spill] sm:$0xff] %v9825_v24 }
 0xa43   :  { %4771 = vmatpush1.bf16.msra.mxu1 %v7497_v3  ;;  %4812 = vmatpush1.bf16.msra.mxu0 %v7499_v57  ;;  %11702 = vst [vmem:[#allocation105_spill] sm:$0xff] %v9827_v21  ;;  %v3885_v3 = vld [vmem:[#allocation12 + $0x1e8] sm:$0xff]  ;;  %v9831_v57 = vcombine.low %v3872_v62, %v3876_v18  ;;  %11718 = vst [vmem:[#allocation28_spill] sm:$0xff] %v9875_v11  ;;  %v3916_v62 = vld [vmem:[#allocation12 + $0x2e0] sm:$0xff] }
 0xa44   :  { %4772 = vmatprep.subr.bf16.mxu1 %v7506_v4  ;;  %4813 = vmatprep.subr.bf16.mxu0 %v7508_v25  ;;  %v9833_v4 = vcombine.low %v3873_v38, %v3877_v45  ;;  %v9837_v25 = vcombine.high %v3880_v20, %v3884_v42  ;;  %v9839_v26 = vcombine.high %v3881_v58, %v3885_v3  ;;  %v3913_v18 = vld [vmem:[#allocation12 + $0x2c8] sm:$0xff] }
 0xa45   :  { %11703 = vst [vmem:[#allocation106_spill] sm:$0xff] %v9831_v57  ;;  %v9845_v51 = vcombine.low %v3881_v58, %v3885_v3  ;;  %v3917_v38 = vld [vmem:[#allocation12 + $0x2e8] sm:$0xff]  ;;  %v3920_v3 = vld [vmem:[#allocation12 + $0x300] sm:$0xff] }
 0xa46   :  { %11704 = vst [vmem:[#allocation114_spill] sm:$0xff] %v9833_v4  ;;  %11705 = vst [vmem:[#allocation115_spill] sm:$0xff] %v9837_v25  ;;  %v9887_v58 = vcombine.high %v3913_v18, %v3917_v38  ;;  %v9893_v27 = vcombine.low %v3913_v18, %v3917_v38  ;;  %v9897_v56 = vcombine.high %v3920_v3, %v3924_v52  ;;  %v3936_v38 = vld [vmem:[#allocation12 + $0x380] sm:$0xff] }
 0xa47   :  { %4773 = vmatpush1.bf16.msra.mxu1 %v7505_v41  ;;  %4814 = vmatpush1.bf16.msra.mxu0 %v7507_v31  ;;  %11706 = vst [vmem:[#allocation116_spill] sm:$0xff] %v9839_v26  ;;  %v3893_v41 = vld [vmem:[#allocation12 + $0x228] sm:$0xff]  ;;  %v9843_v31 = vcombine.low %v3880_v20, %v3884_v42  ;;  %11708 = vst [vmem:[#allocation120_spill] sm:$0xff] %v9845_v51  ;;  %v9881_v20 = vcombine.low %v3905_v7, %v3909_v40 }
 0xa48   :  { %5464 = vmatprep.subr.bf16.mxu1 %v9751_v9  ;;  %5505 = vmatprep.subr.bf16.mxu0 %v9753_v17  ;;  %v9851_v14 = vcombine.high %v3889_v34, %v3893_v41  ;;  %v9857_v2 = vcombine.low %v3889_v34, %v3893_v41  ;;  %v9885_v42 = vcombine.high %v3912_v33, %v3916_v62  ;;  %v3925_v34 = vld [vmem:[#allocation12 + $0x328] sm:$0xff] }
 0xa49   :  { %11707 = vst [vmem:[#allocation119_spill] sm:$0xff] %v9843_v31  ;;  %11720 = vst [vmem:[#allocation30_spill] sm:$0xff] %v9881_v20  ;;  %v9891_v41 = vcombine.low %v3912_v33, %v3916_v62  ;;  %v3933_v7 = vld [vmem:[#allocation12 + $0x368] sm:$0xff]  ;;  %v9903_v40 = vcombine.low %v3920_v3, %v3924_v52  ;;  %v9905_v33 = vcombine.low %v3921_v15, %v3925_v34 }
 0xa4a   :  { %4775 = vmatmul.mubr.bf16.vlgmr.msra.gmra.mrb[52].mxu1 %v9741_v22  ;;  %4816 = vmatmul.mubr.bf16.vlgmr.msra.gmra.mrb[48].mxu0 %v9741_v22  ;;  %v3853_v22 = vld [vmem:[#allocation12 + $0xe8] sm:$0xff]  ;;  %11710 = vst [vmem:[#allocation122_spill] sm:$0xff] %v9851_v14  ;;  %11712 = vst [vmem:[#allocation124_spill] sm:$0xff] %v9857_v2 }
 0xa4b   :  { %5465 = vmatpush1.bf16.msra.mxu1 %v9755_v23  ;;  %5506 = vmatpush1.bf16.msra.mxu0 %v9757_v13  ;;  %v9791_v48 = vcombine.high %v3849_v47, %v3853_v22  ;;  %v9797_v32 = vcombine.low %v3849_v47, %v3853_v22  ;;  %v9863_v47 = vcombine.high %v3897_v5, %v3901_v55  ;;  %v3904_v22 = vld [vmem:[#allocation12 + $0x280] sm:$0xff] }
 0xa4c   :  { %5466 = vmatprep.subr.bf16.mxu1 %v9761_v54  ;;  %5507 = vmatprep.subr.bf16.mxu0 %v9763_v16  ;;  %v9873_v60 = vcombine.high %v3904_v22, %v3908_v29  ;;  %v9879_v45 = vcombine.low %v3904_v22, %v3908_v29  ;;  %11721 = vst [vmem:[#allocation31_spill] sm:$0xff] %v9885_v42  ;;  %11722 = vst [vmem:[#allocation32_spill] sm:$0xff] %v9887_v58  ;;  %v3928_v55 = vld [vmem:[#allocation12 + $0x340] sm:$0xff]  ;;  %v3929_v29 = vld [vmem:[#allocation12 + $0x348] sm:$0xff] }
 0xa4d   :  { %5496 = vmatprep.mubr.bf16.mxu1 %v11686_v37  ;;  %5537 = vmatprep.mubr.bf16.mxu0 %v11686_v37  ;;  %11690 = vst [vmem:[#allocation125_spill] sm:$0xff] %v9791_v48  ;;  %11692 = vst [vmem:[#allocation127_spill] sm:$0xff] %v9797_v32  ;;  %v9899_v5 = vcombine.high %v3921_v15, %v3925_v34  ;;  %v3932_v22 = vld [vmem:[#allocation12 + $0x360] sm:$0xff]  ;;  %v9911_v18 = vcombine.high %v3929_v29, %v3933_v7 }
 0xa4e   :  { %11714 = vst [vmem:[#allocation129_spill] sm:$0xff] %v9863_v47  ;;  %11717 = vst [vmem:[#allocation27_spill] sm:$0xff] %v9873_v60  ;;  %v9909_v62 = vcombine.high %v3928_v55, %v3932_v22  ;;  %v9915_v3 = vcombine.low %v3928_v55, %v3932_v22  ;;  %v9917_v52 = vcombine.low %v3929_v29, %v3933_v7 }
 0xa4f   :  { %5467 = vmatpush1.bf16.msra.mxu1 %v9769_v1  ;;  %5508 = vmatpush1.bf16.msra.mxu0 %v9771_v63  ;;  %11719 = vst [vmem:[#allocation29_spill] sm:$0xff] %v9879_v45  ;;  %11723 = vst [vmem:[#allocation33_spill] sm:$0xff] %v9891_v41 }
 0xa50   :  { %5468 = vmatprep.subr.bf16.mxu1 %v9775_v36  ;;  %5509 = vmatprep.subr.bf16.mxu0 %v9777_v28  ;;  %11724 = vst [vmem:[#allocation34_spill] sm:$0xff] %v9893_v27  ;;  %11725 = vst [vmem:[#allocation35_spill] sm:$0xff] %v9897_v56 }
 0xa51   :  { %11726 = vst [vmem:[#allocation36_spill] sm:$0xff] %v9899_v5  ;;  %11727 = vst [vmem:[#allocation37_spill] sm:$0xff] %v9903_v40 }
 0xa52   :  { %11728 = vst [vmem:[#allocation38_spill] sm:$0xff] %v9905_v33  ;;  %11729 = vst [vmem:[#allocation39_spill] sm:$0xff] %v9909_v62 }
 0xa53   :  { %5469 = vmatpush1.bf16.msra.mxu1 %v9783_v49  ;;  %5510 = vmatpush1.bf16.msra.mxu0 %v9785_v50  ;;  %11730 = vst [vmem:[#allocation40_spill] sm:$0xff] %v9911_v18  ;;  %11731 = vst [vmem:[#allocation41_spill] sm:$0xff] %v9915_v3 }
 0xa54   :  { %5470 = vmatprep.subr.bf16.mxu1 %v9789_v59  ;;  %5511 = vmatprep.subr.bf16.mxu0 %v9791_v48  ;;  %11732 = vst [vmem:[#allocation42_spill] sm:$0xff] %v9917_v52 }
 0xa57   :  { %5471 = vmatpush1.bf16.msra.mxu1 %v9795_v10  ;;  %5512 = vmatpush1.bf16.msra.mxu0 %v9797_v32 }
 0xa58   :  { %5472 = vmatprep.subr.bf16.mxu1 %v9801_v19  ;;  %5513 = vmatprep.subr.bf16.mxu0 %v9803_v39 }
 0xa5b   :  { %5473 = vmatpush1.bf16.msra.mxu1 %v9807_v0  ;;  %5514 = vmatpush1.bf16.msra.mxu0 %v9809_v35 }
 0xa5c   :  { %5474 = vmatprep.subr.bf16.mxu1 %v9813_v44  ;;  %5515 = vmatprep.subr.bf16.mxu0 %v9815_v46 }
 0xa5f   :  { %5475 = vmatpush1.bf16.msra.mxu1 %v9819_v61  ;;  %5516 = vmatpush1.bf16.msra.mxu0 %v9821_v6 }
 0xa60   :  { %5476 = vmatprep.subr.bf16.mxu1 %v9825_v24  ;;  %5517 = vmatprep.subr.bf16.mxu0 %v9827_v21 }
 0xa63   :  { %5477 = vmatpush1.bf16.msra.mxu1 %v9831_v57  ;;  %5518 = vmatpush1.bf16.msra.mxu0 %v9833_v4 }
 0xa64   :  { %5478 = vmatprep.subr.bf16.mxu1 %v9837_v25  ;;  %5519 = vmatprep.subr.bf16.mxu0 %v9839_v26 }
 0xa67   :  { %5479 = vmatpush1.bf16.msra.mxu1 %v9843_v31  ;;  %5520 = vmatpush1.bf16.msra.mxu0 %v9845_v51 }
 0xa68   :  { %5480 = vmatprep.subr.bf16.mxu1 %v9849_v30  ;;  %5521 = vmatprep.subr.bf16.mxu0 %v9851_v14 }
 0xa6b   :  { %5481 = vmatpush1.bf16.msra.mxu1 %v9855_v12  ;;  %5522 = vmatpush1.bf16.msra.mxu0 %v9857_v2 }
 0xa6c   :  { %5482 = vmatprep.subr.bf16.mxu1 %v9861_v43  ;;  %5523 = vmatprep.subr.bf16.mxu0 %v9863_v47 }
 0xa6f   :  { %5483 = vmatpush1.bf16.msra.mxu1 %v9867_v8  ;;  %5524 = vmatpush1.bf16.msra.mxu0 %v9869_v53 }
 0xa70   :  { %5484 = vmatprep.subr.bf16.mxu1 %v9873_v60  ;;  %5525 = vmatprep.subr.bf16.mxu0 %v9875_v11 }
 0xa73   :  { %5485 = vmatpush1.bf16.msra.mxu1 %v9879_v45  ;;  %5526 = vmatpush1.bf16.msra.mxu0 %v9881_v20  ;;  %v3941_v20 = vld [vmem:[#allocation12 + $0x3a8] sm:$0xff] }
 0xa74   :  { %5486 = vmatprep.subr.bf16.mxu1 %v9885_v42  ;;  %5527 = vmatprep.subr.bf16.mxu0 %v9887_v58  ;;  %v3940_v58 = vld [vmem:[#allocation12 + $0x3a0] sm:$0xff]  ;;  %v3937_v42 = vld [vmem:[#allocation12 + $0x388] sm:$0xff] }
 0xa75   :  { %v9921_v15 = vcombine.high %v3936_v38, %v3940_v58  ;;  %v9923_v34 = vcombine.high %v3937_v42, %v3941_v20  ;;  %v9927_v55 = vcombine.low %v3936_v38, %v3940_v58  ;;  %v9929_v22 = vcombine.low %v3937_v42, %v3941_v20 }
 0xa77   :  { %5487 = vmatpush1.bf16.msra.mxu1 %v9891_v41  ;;  %5528 = vmatpush1.bf16.msra.mxu0 %v9893_v27  ;;  %11733 = vst [vmem:[#allocation43_spill] sm:$0xff] %v9921_v15  ;;  %11734 = vst [vmem:[#allocation44_spill] sm:$0xff] %v9923_v34  ;;  %v3945_v27 = vld [vmem:[#allocation12 + $0x3c8] sm:$0xff] }
 0xa78   :  { %5488 = vmatprep.subr.bf16.mxu1 %v9897_v56  ;;  %5529 = vmatprep.subr.bf16.mxu0 %v9899_v5  ;;  %v3944_v5 = vld [vmem:[#allocation12 + $0x3c0] sm:$0xff]  ;;  %v3949_v41 = vld [vmem:[#allocation12 + $0x3e8] sm:$0xff]  ;;  %11735 = vst [vmem:[#allocation45_spill] sm:$0xff] %v9927_v55  ;;  %11736 = vst [vmem:[#allocation46_spill] sm:$0xff] %v9929_v22 }
 0xa79   :  { %v3948_v56 = vld [vmem:[#allocation12 + $0x3e0] sm:$0xff]  ;;  %v9935_v7 = vcombine.high %v3945_v27, %v3949_v41  ;;  %v9941_v20 = vcombine.low %v3945_v27, %v3949_v41 }
 0xa7a   :  { %v9933_v29 = vcombine.high %v3944_v5, %v3948_v56  ;;  %v9939_v58 = vcombine.low %v3944_v5, %v3948_v56 }
 0xa7b   :  { %5489 = vmatpush1.bf16.msra.mxu1 %v9903_v40  ;;  %5530 = vmatpush1.bf16.msra.mxu0 %v9905_v33  ;;  %11738 = vst [vmem:[#allocation48_spill] sm:$0xff] %v9935_v7  ;;  %v3827_v33 = vld [vmem:[#allocation12 + $0x18] sm:$0xff]  ;;  %11740 = vst [vmem:[#allocation50_spill] sm:$0xff] %v9941_v20 }
 0xa7c   :  { %5490 = vmatprep.subr.bf16.mxu1 %v9909_v62  ;;  %5531 = vmatprep.subr.bf16.mxu0 %v9911_v18  ;;  %11737 = vst [vmem:[#allocation47_spill] sm:$0xff] %v9933_v29  ;;  %v3826_v18 = vld [vmem:[#allocation12 + $0x10] sm:$0xff]  ;;  %v3831_v40 = vld [vmem:[#allocation12 + $0x38] sm:$0xff]  ;;  %11739 = vst [vmem:[#allocation49_spill] sm:$0xff] %v9939_v58 }
 0xa7d   :  { %v3830_v62 = vld [vmem:[#allocation12 + $0x30] sm:$0xff]  ;;  %v9947_v38 = vcombine.high %v3827_v33, %v3831_v40  ;;  %v9953_v41 = vcombine.low %v3827_v33, %v3831_v40 }
 0xa7e   :  { %v9945_v42 = vcombine.high %v3826_v18, %v3830_v62  ;;  %v9951_v56 = vcombine.low %v3826_v18, %v3830_v62 }
 0xa7f   :  { %5491 = vmatpush1.bf16.msra.mxu1 %v9915_v3  ;;  %5532 = vmatpush1.bf16.msra.mxu0 %v9917_v52  ;;  %11742 = vst [vmem:[#allocation52_spill] sm:$0xff] %v9947_v38  ;;  %v3835_v52 = vld [vmem:[#allocation12 + $0x58] sm:$0xff]  ;;  %11744 = vst [vmem:[#allocation54_spill] sm:$0xff] %v9953_v41 }
 0xa80   :  { %5492 = vmatprep.subr.bf16.mxu1 %v9921_v15  ;;  %5533 = vmatprep.subr.bf16.mxu0 %v9923_v34  ;;  %11741 = vst [vmem:[#allocation51_spill] sm:$0xff] %v9945_v42  ;;  %v3834_v34 = vld [vmem:[#allocation12 + $0x50] sm:$0xff]  ;;  %v3839_v3 = vld [vmem:[#allocation12 + $0x78] sm:$0xff]  ;;  %11743 = vst [vmem:[#allocation53_spill] sm:$0xff] %v9951_v56 }
 0xa81   :  { %v3838_v15 = vld [vmem:[#allocation12 + $0x70] sm:$0xff]  ;;  %v9959_v5 = vcombine.high %v3835_v52, %v3839_v3  ;;  %v9967_v33 = vcombine.low %v3835_v52, %v3839_v3 }
 0xa82   :  { %v9957_v27 = vcombine.high %v3834_v34, %v3838_v15  ;;  %v9965_v40 = vcombine.low %v3834_v34, %v3838_v15 }
 0xa83   :  { %5493 = vmatpush1.bf16.msra.mxu1 %v9927_v55  ;;  %5534 = vmatpush1.bf16.msra.mxu0 %v9929_v22  ;;  %11746 = vst [vmem:[#allocation56_spill] sm:$0xff] %v9959_v5  ;;  %v3843_v22 = vld [vmem:[#allocation12 + $0x98] sm:$0xff]  ;;  %11748 = vst [vmem:[#allocation58_spill] sm:$0xff] %v9967_v33 }
 0xa84   :  { %5494 = vmatprep.subr.bf16.mxu1 %v9933_v29  ;;  %5535 = vmatprep.subr.bf16.mxu0 %v9935_v7  ;;  %11745 = vst [vmem:[#allocation55_spill] sm:$0xff] %v9957_v27  ;;  %v3842_v7 = vld [vmem:[#allocation12 + $0x90] sm:$0xff]  ;;  %v3847_v55 = vld [vmem:[#allocation12 + $0xb8] sm:$0xff]  ;;  %11747 = vst [vmem:[#allocation57_spill] sm:$0xff] %v9965_v40 }
 0xa85   :  { %v3846_v29 = vld [vmem:[#allocation12 + $0xb0] sm:$0xff]  ;;  %v9973_v18 = vcombine.high %v3843_v22, %v3847_v55  ;;  %v9981_v52 = vcombine.low %v3843_v22, %v3847_v55 }
 0xa86   :  { %v9971_v62 = vcombine.high %v3842_v7, %v3846_v29  ;;  %v9979_v3 = vcombine.low %v3842_v7, %v3846_v29 }
 0xa87   :  { %5495 = vmatpush1.bf16.msra.mxu1 %v9939_v58  ;;  %5536 = vmatpush1.bf16.msra.mxu0 %v9941_v20  ;;  %11750 = vst [vmem:[#allocation60_spill] sm:$0xff] %v9973_v18  ;;  %v3851_v20 = vld [vmem:[#allocation12 + $0xd8] sm:$0xff]  ;;  %11752 = vst [vmem:[#allocation62_spill] sm:$0xff] %v9981_v52 }
 0xa88   :  { %5546 = vmatprep.subr.bf16.mxu1 %v9945_v42  ;;  %5587 = vmatprep.subr.bf16.mxu0 %v9947_v38  ;;  %11749 = vst [vmem:[#allocation59_spill] sm:$0xff] %v9971_v62  ;;  %v3850_v38 = vld [vmem:[#allocation12 + $0xd0] sm:$0xff]  ;;  %v3855_v58 = vld [vmem:[#allocation12 + $0xf8] sm:$0xff]  ;;  %11751 = vst [vmem:[#allocation61_spill] sm:$0xff] %v9979_v3 }
 0xa89   :  { %v3854_v42 = vld [vmem:[#allocation12 + $0xf0] sm:$0xff]  ;;  %v9987_v34 = vcombine.high %v3851_v20, %v3855_v58  ;;  %v9993_v55 = vcombine.low %v3851_v20, %v3855_v58 }
 0xa8a   :  { %5497 = vmatmul.mubr.bf16.vlgmr.msra.gmra.mrb[56].mxu1 %v11686_v37  ;;  %5538 = vmatmul.mubr.bf16.vlgmr.msra.gmra.mrb[52].mxu0 %v11686_v37  ;;  %v9985_v15 = vcombine.high %v3850_v38, %v3854_v42  ;;  %v9991_v29 = vcombine.low %v3850_v38, %v3854_v42 }
 0xa8b   :  { %5547 = vmatpush1.bf16.msra.mxu1 %v9951_v56  ;;  %5588 = vmatpush1.bf16.msra.mxu0 %v9953_v41  ;;  %11754 = vst [vmem:[#allocation64_spill] sm:$0xff] %v9987_v34  ;;  %v3859_v41 = vld [vmem:[#allocation12 + $0x118] sm:$0xff]  ;;  %11756 = vst [vmem:[#allocation66_spill] sm:$0xff] %v9993_v55 }
 0xa8c   :  { %5548 = vmatprep.subr.bf16.mxu1 %v9957_v27  ;;  %5589 = vmatprep.subr.bf16.mxu0 %v9959_v5  ;;  %11753 = vst [vmem:[#allocation63_spill] sm:$0xff] %v9985_v15  ;;  %v3858_v5 = vld [vmem:[#allocation12 + $0x110] sm:$0xff]  ;;  %v3863_v56 = vld [vmem:[#allocation12 + $0x138] sm:$0xff]  ;;  %11755 = vst [vmem:[#allocation65_spill] sm:$0xff] %v9991_v29 }
 0xa8d   :  { %5578 = vmatprep.mubr.bf16.mxu1 %v11686_v37  ;;  %5619 = vmatprep.mubr.bf16.mxu0 %v11686_v37  ;;  %v3862_v27 = vld [vmem:[#allocation12 + $0x130] sm:$0xff]  ;;  %v9999_v7 = vcombine.high %v3859_v41, %v3863_v56  ;;  %v10005_v58 = vcombine.low %v3859_v41, %v3863_v56 }
 0xa8e   :  { %v9997_v22 = vcombine.high %v3858_v5, %v3862_v27  ;;  %v10003_v42 = vcombine.low %v3858_v5, %v3862_v27 }
 0xa8f   :  { %5549 = vmatpush1.bf16.msra.mxu1 %v9965_v40  ;;  %5590 = vmatpush1.bf16.msra.mxu0 %v9967_v33  ;;  %11758 = vst [vmem:[#allocation68_spill] sm:$0xff] %v9999_v7  ;;  %v3867_v33 = vld [vmem:[#allocation12 + $0x158] sm:$0xff]  ;;  %11760 = vst [vmem:[#allocation70_spill] sm:$0xff] %v10005_v58 }
 0xa90   :  { %5550 = vmatprep.subr.bf16.mxu1 %v9971_v62  ;;  %5591 = vmatprep.subr.bf16.mxu0 %v9973_v18  ;;  %11757 = vst [vmem:[#allocation67_spill] sm:$0xff] %v9997_v22  ;;  %v3866_v18 = vld [vmem:[#allocation12 + $0x150] sm:$0xff]  ;;  %v3871_v40 = vld [vmem:[#allocation12 + $0x178] sm:$0xff]  ;;  %11759 = vst [vmem:[#allocation69_spill] sm:$0xff] %v10003_v42 }
 0xa91   :  { %v3870_v62 = vld [vmem:[#allocation12 + $0x170] sm:$0xff]  ;;  %v10011_v38 = vcombine.high %v3867_v33, %v3871_v40  ;;  %v10017_v56 = vcombine.low %v3867_v33, %v3871_v40 }
 0xa92   :  { %v10009_v20 = vcombine.high %v3866_v18, %v3870_v62  ;;  %v10015_v27 = vcombine.low %v3866_v18, %v3870_v62 }
 0xa93   :  { %5551 = vmatpush1.bf16.msra.mxu1 %v9979_v3  ;;  %5592 = vmatpush1.bf16.msra.mxu0 %v9981_v52  ;;  %11762 = vst [vmem:[#allocation72_spill] sm:$0xff] %v10011_v38  ;;  %v3875_v52 = vld [vmem:[#allocation12 + $0x198] sm:$0xff]  ;;  %11764 = vst [vmem:[#allocation74_spill] sm:$0xff] %v10017_v56 }
 0xa94   :  { %5552 = vmatprep.subr.bf16.mxu1 %v9985_v15  ;;  %5593 = vmatprep.subr.bf16.mxu0 %v9987_v34  ;;  %11761 = vst [vmem:[#allocation71_spill] sm:$0xff] %v10009_v20  ;;  %v3874_v34 = vld [vmem:[#allocation12 + $0x190] sm:$0xff]  ;;  %v3879_v3 = vld [vmem:[#allocation12 + $0x1b8] sm:$0xff]  ;;  %11763 = vst [vmem:[#allocation73_spill] sm:$0xff] %v10015_v27 }
 0xa95   :  { %v3878_v15 = vld [vmem:[#allocation12 + $0x1b0] sm:$0xff]  ;;  %v10023_v5 = vcombine.high %v3875_v52, %v3879_v3  ;;  %v10029_v40 = vcombine.low %v3875_v52, %v3879_v3 }
 0xa96   :  { %v10021_v41 = vcombine.high %v3874_v34, %v3878_v15  ;;  %v10027_v62 = vcombine.low %v3874_v34, %v3878_v15 }
 0xa97   :  { %5553 = vmatpush1.bf16.msra.mxu1 %v9991_v29  ;;  %5594 = vmatpush1.bf16.msra.mxu0 %v9993_v55  ;;  %11766 = vst [vmem:[#allocation76_spill] sm:$0xff] %v10023_v5  ;;  %v3883_v55 = vld [vmem:[#allocation12 + $0x1d8] sm:$0xff]  ;;  %11768 = vst [vmem:[#allocation78_spill] sm:$0xff] %v10029_v40 }
 0xa98   :  { %5554 = vmatprep.subr.bf16.mxu1 %v9997_v22  ;;  %5595 = vmatprep.subr.bf16.mxu0 %v9999_v7  ;;  %11765 = vst [vmem:[#allocation75_spill] sm:$0xff] %v10021_v41  ;;  %v3882_v7 = vld [vmem:[#allocation12 + $0x1d0] sm:$0xff]  ;;  %v3887_v29 = vld [vmem:[#allocation12 + $0x1f8] sm:$0xff]  ;;  %11767 = vst [vmem:[#allocation77_spill] sm:$0xff] %v10027_v62 }
 0xa99   :  { %v3886_v22 = vld [vmem:[#allocation12 + $0x1f0] sm:$0xff]  ;;  %v10035_v18 = vcombine.high %v3883_v55, %v3887_v29  ;;  %v10041_v3 = vcombine.low %v3883_v55, %v3887_v29 }
 0xa9a   :  { %v10033_v33 = vcombine.high %v3882_v7, %v3886_v22  ;;  %v10039_v15 = vcombine.low %v3882_v7, %v3886_v22 }
 0xa9b   :  { %5555 = vmatpush1.bf16.msra.mxu1 %v10003_v42  ;;  %5596 = vmatpush1.bf16.msra.mxu0 %v10005_v58  ;;  %11770 = vst [vmem:[#allocation80_spill] sm:$0xff] %v10035_v18  ;;  %v3891_v58 = vld [vmem:[#allocation12 + $0x218] sm:$0xff]  ;;  %11772 = vst [vmem:[#allocation82_spill] sm:$0xff] %v10041_v3 }
 0xa9c   :  { %5556 = vmatprep.subr.bf16.mxu1 %v10009_v20  ;;  %5597 = vmatprep.subr.bf16.mxu0 %v10011_v38  ;;  %11769 = vst [vmem:[#allocation79_spill] sm:$0xff] %v10033_v33  ;;  %v3890_v38 = vld [vmem:[#allocation12 + $0x210] sm:$0xff]  ;;  %v3895_v42 = vld [vmem:[#allocation12 + $0x238] sm:$0xff]  ;;  %11771 = vst [vmem:[#allocation81_spill] sm:$0xff] %v10039_v15 }
 0xa9d   :  { %v3894_v20 = vld [vmem:[#allocation12 + $0x230] sm:$0xff]  ;;  %v10047_v34 = vcombine.high %v3891_v58, %v3895_v42  ;;  %v10053_v29 = vcombine.low %v3891_v58, %v3895_v42 }
 0xa9e   :  { %v10045_v52 = vcombine.high %v3890_v38, %v3894_v20  ;;  %v10051_v22 = vcombine.low %v3890_v38, %v3894_v20 }
 0xa9f   :  { %5557 = vmatpush1.bf16.msra.mxu1 %v10015_v27  ;;  %5598 = vmatpush1.bf16.msra.mxu0 %v10017_v56  ;;  %11774 = vst [vmem:[#allocation84_spill] sm:$0xff] %v10047_v34  ;;  %v3899_v56 = vld [vmem:[#allocation12 + $0x258] sm:$0xff]  ;;  %11776 = vst [vmem:[#allocation86_spill] sm:$0xff] %v10053_v29 }
 0xaa0   :  { %5558 = vmatprep.subr.bf16.mxu1 %v10021_v41  ;;  %5599 = vmatprep.subr.bf16.mxu0 %v10023_v5  ;;  %11773 = vst [vmem:[#allocation83_spill] sm:$0xff] %v10045_v52  ;;  %v3898_v5 = vld [vmem:[#allocation12 + $0x250] sm:$0xff]  ;;  %v3903_v27 = vld [vmem:[#allocation12 + $0x278] sm:$0xff]  ;;  %11775 = vst [vmem:[#allocation85_spill] sm:$0xff] %v10051_v22 }
 0xaa1   :  { %v3902_v41 = vld [vmem:[#allocation12 + $0x270] sm:$0xff]  ;;  %v10059_v7 = vcombine.high %v3899_v56, %v3903_v27  ;;  %v10065_v42 = vcombine.low %v3899_v56, %v3903_v27 }
 0xaa2   :  { %v10057_v55 = vcombine.high %v3898_v5, %v3902_v41  ;;  %v10063_v20 = vcombine.low %v3898_v5, %v3902_v41 }
 0xaa3   :  { %5559 = vmatpush1.bf16.msra.mxu1 %v10027_v62  ;;  %5600 = vmatpush1.bf16.msra.mxu0 %v10029_v40  ;;  %11778 = vst [vmem:[#allocation152_spill] sm:$0xff] %v10059_v7  ;;  %v3907_v40 = vld [vmem:[#allocation12 + $0x298] sm:$0xff]  ;;  %11780 = vst [vmem:[#allocation107_spill] sm:$0xff] %v10065_v42 }
 0xaa4   :  { %5560 = vmatprep.subr.bf16.mxu1 %v10033_v33  ;;  %5601 = vmatprep.subr.bf16.mxu0 %v10035_v18  ;;  %11777 = vst [vmem:[#allocation87_spill] sm:$0xff] %v10057_v55  ;;  %v3906_v18 = vld [vmem:[#allocation12 + $0x290] sm:$0xff]  ;;  %v3911_v62 = vld [vmem:[#allocation12 + $0x2b8] sm:$0xff]  ;;  %11779 = vst [vmem:[#allocation155_spill] sm:$0xff] %v10063_v20 }
 0xaa5   :  { %v3910_v33 = vld [vmem:[#allocation12 + $0x2b0] sm:$0xff]  ;;  %v10071_v38 = vcombine.high %v3907_v40, %v3911_v62  ;;  %v10077_v27 = vcombine.low %v3907_v40, %v3911_v62 }
 0xaa6   :  { %v10069_v58 = vcombine.high %v3906_v18, %v3910_v33  ;;  %v10075_v41 = vcombine.low %v3906_v18, %v3910_v33 }
 0xaa7   :  { %5561 = vmatpush1.bf16.msra.mxu1 %v10039_v15  ;;  %5602 = vmatpush1.bf16.msra.mxu0 %v10041_v3  ;;  %11782 = vst [vmem:[#allocation109_spill] sm:$0xff] %v10071_v38  ;;  %v3915_v3 = vld [vmem:[#allocation12 + $0x2d8] sm:$0xff]  ;;  %11784 = vst [vmem:[#allocation111_spill] sm:$0xff] %v10077_v27 }
 0xaa8   :  { %5562 = vmatprep.subr.bf16.mxu1 %v10045_v52  ;;  %5603 = vmatprep.subr.bf16.mxu0 %v10047_v34  ;;  %11781 = vst [vmem:[#allocation108_spill] sm:$0xff] %v10069_v58  ;;  %v3914_v34 = vld [vmem:[#allocation12 + $0x2d0] sm:$0xff]  ;;  %v3919_v15 = vld [vmem:[#allocation12 + $0x2f8] sm:$0xff]  ;;  %11783 = vst [vmem:[#allocation110_spill] sm:$0xff] %v10075_v41 }
 0xaa9   :  { %v3918_v52 = vld [vmem:[#allocation12 + $0x2f0] sm:$0xff]  ;;  %v10083_v5 = vcombine.high %v3915_v3, %v3919_v15  ;;  %v10089_v62 = vcombine.low %v3915_v3, %v3919_v15 }
 0xaaa   :  { %v10081_v56 = vcombine.high %v3914_v34, %v3918_v52  ;;  %v10087_v33 = vcombine.low %v3914_v34, %v3918_v52 }
 0xaab   :  { %5563 = vmatpush1.bf16.msra.mxu1 %v10051_v22  ;;  %5604 = vmatpush1.bf16.msra.mxu0 %v10053_v29  ;;  %11786 = vst [vmem:[#allocation113_spill] sm:$0xff] %v10083_v5  ;;  %v3923_v29 = vld [vmem:[#allocation12 + $0x318] sm:$0xff]  ;;  %11788 = vst [vmem:[#allocation118_spill] sm:$0xff] %v10089_v62 }
 0xaac   :  { %5564 = vmatprep.subr.bf16.mxu1 %v10057_v55  ;;  %5605 = vmatprep.subr.bf16.mxu0 %v10059_v7  ;;  %11785 = vst [vmem:[#allocation112_spill] sm:$0xff] %v10081_v56  ;;  %v3922_v7 = vld [vmem:[#allocation12 + $0x310] sm:$0xff]  ;;  %v3927_v22 = vld [vmem:[#allocation12 + $0x338] sm:$0xff]  ;;  %11787 = vst [vmem:[#allocation117_spill] sm:$0xff] %v10087_v33 }
 0xaad   :  { %v3926_v55 = vld [vmem:[#allocation12 + $0x330] sm:$0xff]  ;;  %v10095_v18 = vcombine.high %v3923_v29, %v3927_v22  ;;  %v10101_v15 = vcombine.low %v3923_v29, %v3927_v22 }
 0xaae   :  { %v10093_v40 = vcombine.high %v3922_v7, %v3926_v55  ;;  %v10099_v52 = vcombine.low %v3922_v7, %v3926_v55 }
 0xaaf   :  { %5565 = vmatpush1.bf16.msra.mxu1 %v10063_v20  ;;  %5606 = vmatpush1.bf16.msra.mxu0 %v10065_v42  ;;  %11790 = vst [vmem:[#allocation134_spill] sm:$0xff] %v10095_v18  ;;  %v3931_v42 = vld [vmem:[#allocation12 + $0x358] sm:$0xff]  ;;  %11792 = vst [vmem:[#allocation136_spill] sm:$0xff] %v10101_v15 }
 0xab0   :  { %5566 = vmatprep.subr.bf16.mxu1 %v10069_v58  ;;  %5607 = vmatprep.subr.bf16.mxu0 %v10071_v38  ;;  %11789 = vst [vmem:[#allocation133_spill] sm:$0xff] %v10093_v40  ;;  %v3930_v38 = vld [vmem:[#allocation12 + $0x350] sm:$0xff]  ;;  %v3935_v20 = vld [vmem:[#allocation12 + $0x378] sm:$0xff]  ;;  %11791 = vst [vmem:[#allocation135_spill] sm:$0xff] %v10099_v52 }
 0xab1   :  { %v3934_v58 = vld [vmem:[#allocation12 + $0x370] sm:$0xff]  ;;  %v10107_v34 = vcombine.high %v3931_v42, %v3935_v20  ;;  %v10113_v22 = vcombine.low %v3931_v42, %v3935_v20 }
 0xab2   :  { %v10105_v3 = vcombine.high %v3930_v38, %v3934_v58  ;;  %v10111_v55 = vcombine.low %v3930_v38, %v3934_v58 }
 0xab3   :  { %5567 = vmatpush1.bf16.msra.mxu1 %v10075_v41  ;;  %5608 = vmatpush1.bf16.msra.mxu0 %v10077_v27  ;;  %11794 = vst [vmem:[#allocation138_spill] sm:$0xff] %v10107_v34  ;;  %v3939_v27 = vld [vmem:[#allocation12 + $0x398] sm:$0xff]  ;;  %11796 = vst [vmem:[#allocation140_spill] sm:$0xff] %v10113_v22 }
 0xab4   :  { %5568 = vmatprep.subr.bf16.mxu1 %v10081_v56  ;;  %5609 = vmatprep.subr.bf16.mxu0 %v10083_v5  ;;  %11793 = vst [vmem:[#allocation137_spill] sm:$0xff] %v10105_v3  ;;  %v3938_v5 = vld [vmem:[#allocation12 + $0x390] sm:$0xff]  ;;  %v3943_v41 = vld [vmem:[#allocation12 + $0x3b8] sm:$0xff]  ;;  %11795 = vst [vmem:[#allocation139_spill] sm:$0xff] %v10111_v55 }
 0xab5   :  { %v3942_v56 = vld [vmem:[#allocation12 + $0x3b0] sm:$0xff]  ;;  %v10119_v7 = vcombine.high %v3939_v27, %v3943_v41  ;;  %v10125_v20 = vcombine.low %v3939_v27, %v3943_v41 }
 0xab6   :  { %v10117_v29 = vcombine.high %v3938_v5, %v3942_v56  ;;  %v10123_v58 = vcombine.low %v3938_v5, %v3942_v56 }
 0xab7   :  { %5569 = vmatpush1.bf16.msra.mxu1 %v10087_v33  ;;  %5610 = vmatpush1.bf16.msra.mxu0 %v10089_v62  ;;  %11798 = vst [vmem:[#allocation142_spill] sm:$0xff] %v10119_v7  ;;  %v3947_v62 = vld [vmem:[#allocation12 + $0x3d8] sm:$0xff]  ;;  %11800 = vst [vmem:[#allocation144_spill] sm:$0xff] %v10125_v20 }
 0xab8   :  { %5570 = vmatprep.subr.bf16.mxu1 %v10093_v40  ;;  %5611 = vmatprep.subr.bf16.mxu0 %v10095_v18  ;;  %11797 = vst [vmem:[#allocation141_spill] sm:$0xff] %v10117_v29  ;;  %v3946_v18 = vld [vmem:[#allocation12 + $0x3d0] sm:$0xff]  ;;  %v3951_v33 = vld [vmem:[#allocation12 + $0x3f8] sm:$0xff]  ;;  %11799 = vst [vmem:[#allocation143_spill] sm:$0xff] %v10123_v58 }
 0xab9   :  { %v3950_v40 = vld [vmem:[#allocation12 + $0x3f0] sm:$0xff]  ;;  %v10131_v38 = vcombine.high %v3947_v62, %v3951_v33 }
 0xaba   :  { %v10129_v42 = vcombine.high %v3946_v18, %v3950_v40 }
 0xabb   :  { %5571 = vmatpush1.bf16.msra.mxu1 %v10099_v52  ;;  %5612 = vmatpush1.bf16.msra.mxu0 %v10101_v15  ;;  %11802 = vst [vmem:[#allocation146_spill] sm:$0xff] %v10131_v38 }
 0xabc   :  { %5572 = vmatprep.subr.bf16.mxu1 %v10105_v3  ;;  %5613 = vmatprep.subr.bf16.mxu0 %v10107_v34  ;;  %11801 = vst [vmem:[#allocation145_spill] sm:$0xff] %v10129_v42  ;;  %v10135_v34 = vcombine.low %v3946_v18, %v3950_v40  ;;  %v11805_v18 = vld [vmem:[#allocation30_spill] sm:$0xff] }
 0xabe   :  { %11803 = vst [vmem:[#allocation147_spill] sm:$0xff] %v10135_v34 }
 0xabf   :  { %5573 = vmatpush1.bf16.msra.mxu1 %v10111_v55  ;;  %5614 = vmatpush1.bf16.msra.mxu0 %v10113_v22  ;;  %v10137_v55 = vcombine.low %v3947_v62, %v3951_v33 }
 0xac0   :  { %5574 = vmatprep.subr.bf16.mxu1 %v10117_v29  ;;  %5615 = vmatprep.subr.bf16.mxu0 %v10119_v7 }
 0xac1   :  { %11804 = vst [vmem:[#allocation148_spill] sm:$0xff] %v10137_v55 }
 0xac3   :  { %5575 = vmatpush1.bf16.msra.mxu1 %v10123_v58  ;;  %5616 = vmatpush1.bf16.msra.mxu0 %v10125_v20 }
 0xac4   :  { %5576 = vmatprep.subr.bf16.mxu1 %v10129_v42  ;;  %5617 = vmatprep.subr.bf16.mxu0 %v10131_v38 }
 0xac7   :  { %5577 = vmatpush1.bf16.msra.mxu1 %v10135_v34  ;;  %5618 = vmatpush1.bf16.msra.mxu0 %v10137_v55 }
 0xac8   :  { %5698 = vmatprep.subr.bf16.mxu1 %v9751_v9  ;;  %5739 = vmatprep.subr.bf16.mxu0 %v9753_v17 }
 0xaca   :  { %5579 = vmatmul.mubr.bf16.vlgmr.msra.gmra.mrb[60].mxu1 %v11686_v37  ;;  %5620 = vmatmul.mubr.bf16.vlgmr.msra.gmra.mrb[56].mxu0 %v11686_v37 }
 0xacb   :  { %5699 = vmatpush1.bf16.msra.mxu1 %v9755_v23  ;;  %5740 = vmatpush1.bf16.msra.mxu0 %v9757_v13 }
 0xacc   :  { %5700 = vmatprep.subr.bf16.mxu1 %v9761_v54  ;;  %5741 = vmatprep.subr.bf16.mxu0 %v9763_v16 }
 0xacf   :  { %5701 = vmatpush1.bf16.msra.mxu1 %v9769_v1  ;;  %5742 = vmatpush1.bf16.msra.mxu0 %v9771_v63 }
 0xad0   :  { %5702 = vmatprep.subr.bf16.mxu1 %v9775_v36  ;;  %5743 = vmatprep.subr.bf16.mxu0 %v9777_v28 }
 0xad3   :  { %5703 = vmatpush1.bf16.msra.mxu1 %v9783_v49  ;;  %5744 = vmatpush1.bf16.msra.mxu0 %v9785_v50 }
 0xad4   :  { %5704 = vmatprep.subr.bf16.mxu1 %v9789_v59  ;;  %5745 = vmatprep.subr.bf16.mxu0 %v9791_v48 }
 0xad7   :  { %5705 = vmatpush1.bf16.msra.mxu1 %v9795_v10  ;;  %5746 = vmatpush1.bf16.msra.mxu0 %v9797_v32 }
 0xad8   :  { %5706 = vmatprep.subr.bf16.mxu1 %v9801_v19  ;;  %5747 = vmatprep.subr.bf16.mxu0 %v9803_v39 }
 0xadb   :  { %5707 = vmatpush1.bf16.msra.mxu1 %v9807_v0  ;;  %5748 = vmatpush1.bf16.msra.mxu0 %v9809_v35 }
 0xadc   :  { %5708 = vmatprep.subr.bf16.mxu1 %v9813_v44  ;;  %5749 = vmatprep.subr.bf16.mxu0 %v9815_v46 }
 0xadd   :  { %v10167_v37 = vpop.f32.mrb[48].mxu1  ;;  %v10169_v41 = vpop.f32.mrb[44].mxu0 }
 0xade   :  { %v4696_v27 = vpop.f32.mrb[49].mxu1  ;;  %v10171_v56 = vpop.f32.mrb[45].mxu0 }
 0xadf   :  { %v4698_v5 = vpop.f32.mrb[50].mxu1  ;;  %v4739_v33 = vpop.f32.mrb[46].mxu0  ;;  %5709 = vmatpush1.bf16.msra.mxu1 %v9819_v61  ;;  %5750 = vmatpush1.bf16.msra.mxu0 %v9821_v6 }
 0xae0   :  { %v4699_v62 = vpop.f32.mrb[51].mxu1  ;;  %v4740_v40 = vpop.f32.mrb[47].mxu0  ;;  %5710 = vmatprep.subr.bf16.mxu1 %v9825_v24  ;;  %5751 = vmatprep.subr.bf16.mxu0 %v9827_v21  ;;  %v11806_v5 = vld [vmem:[#allocation31_spill] sm:$0xff]  ;;  %v11807_v33 = vld [vmem:[#allocation32_spill] sm:$0xff] }
 0xae1   :  { %v11808_v62 = vld [vmem:[#allocation33_spill] sm:$0xff]  ;;  %v11809_v40 = vld [vmem:[#allocation34_spill] sm:$0xff] }
 0xae3   :  { %5711 = vmatpush1.bf16.msra.mxu1 %v9831_v57  ;;  %5752 = vmatpush1.bf16.msra.mxu0 %v9833_v4 }
 0xae4   :  { %5712 = vmatprep.subr.bf16.mxu1 %v9837_v25  ;;  %5753 = vmatprep.subr.bf16.mxu0 %v9839_v26 }
 0xae7   :  { %5713 = vmatpush1.bf16.msra.mxu1 %v9843_v31  ;;  %5754 = vmatpush1.bf16.msra.mxu0 %v9845_v51 }
 0xae8   :  { %5714 = vmatprep.subr.bf16.mxu1 %v9849_v30  ;;  %5755 = vmatprep.subr.bf16.mxu0 %v9851_v14 }
 0xaeb   :  { %5715 = vmatpush1.bf16.msra.mxu1 %v9855_v12  ;;  %5756 = vmatpush1.bf16.msra.mxu0 %v9857_v2 }
 0xaec   :  { %5716 = vmatprep.subr.bf16.mxu1 %v9861_v43  ;;  %5757 = vmatprep.subr.bf16.mxu0 %v9863_v47  ;;  %v11810_v47 = vld [vmem:[#allocation35_spill] sm:$0xff] }
 0xaef   :  { %5717 = vmatpush1.bf16.msra.mxu1 %v9867_v8  ;;  %5758 = vmatpush1.bf16.msra.mxu0 %v9869_v53  ;;  %v11811_v8 = vld [vmem:[#allocation36_spill] sm:$0xff]  ;;  %v11812_v53 = vld [vmem:[#allocation37_spill] sm:$0xff] }
 0xaf0   :  { %5718 = vmatprep.subr.bf16.mxu1 %v9873_v60  ;;  %5759 = vmatprep.subr.bf16.mxu0 %v9875_v11  ;;  %v11813_v60 = vld [vmem:[#allocation38_spill] sm:$0xff]  ;;  %v11814_v11 = vld [vmem:[#allocation39_spill] sm:$0xff] }
 0xaf3   :  { %5719 = vmatpush1.bf16.msra.mxu1 %v9879_v45  ;;  %5760 = vmatpush1.bf16.msra.mxu0 %v11805_v18  ;;  %v11815_v45 = vld [vmem:[#allocation40_spill] sm:$0xff]  ;;  %v11816_v18 = vld [vmem:[#allocation41_spill] sm:$0xff] }
 0xaf4   :  { %5720 = vmatprep.subr.bf16.mxu1 %v11806_v5  ;;  %5761 = vmatprep.subr.bf16.mxu0 %v11807_v33  ;;  %v11817_v5 = vld [vmem:[#allocation42_spill] sm:$0xff]  ;;  %v11818_v33 = vld [vmem:[#allocation43_spill] sm:$0xff] }
 0xaf7   :  { %5721 = vmatpush1.bf16.msra.mxu1 %v11808_v62  ;;  %5762 = vmatpush1.bf16.msra.mxu0 %v11809_v40  ;;  %v11819_v62 = vld [vmem:[#allocation44_spill] sm:$0xff]  ;;  %v11820_v40 = vld [vmem:[#allocation45_spill] sm:$0xff] }
 0xaf8   :  { %5722 = vmatprep.subr.bf16.mxu1 %v11810_v47  ;;  %5763 = vmatprep.subr.bf16.mxu0 %v11811_v8  ;;  %v11821_v47 = vld [vmem:[#allocation46_spill] sm:$0xff]  ;;  %v11822_v8 = vld [vmem:[#allocation47_spill] sm:$0xff] }
 0xafb   :  { %5723 = vmatpush1.bf16.msra.mxu1 %v11812_v53  ;;  %5764 = vmatpush1.bf16.msra.mxu0 %v11813_v60  ;;  %v11823_v53 = vld [vmem:[#allocation48_spill] sm:$0xff]  ;;  %v11824_v60 = vld [vmem:[#allocation49_spill] sm:$0xff] }
 0xafc   :  { %5724 = vmatprep.subr.bf16.mxu1 %v11814_v11  ;;  %5765 = vmatprep.subr.bf16.mxu0 %v11815_v45  ;;  %v11825_v11 = vld [vmem:[#allocation50_spill] sm:$0xff]  ;;  %v11826_v45 = vld [vmem:[#allocation51_spill] sm:$0xff] }
 0xaff   :  { %5725 = vmatpush1.bf16.msra.mxu1 %v11816_v18  ;;  %5766 = vmatpush1.bf16.msra.mxu0 %v11817_v5  ;;  %v11827_v18 = vld [vmem:[#allocation52_spill] sm:$0xff] }
 0xb00   :  { %5726 = vmatprep.subr.bf16.mxu1 %v11818_v33  ;;  %5767 = vmatprep.subr.bf16.mxu0 %v11819_v62 }
 0xb03   :  { %5727 = vmatpush1.bf16.msra.mxu1 %v11820_v40  ;;  %5768 = vmatpush1.bf16.msra.mxu0 %v11821_v47 }
 0xb04   :  { %5728 = vmatprep.subr.bf16.mxu1 %v11822_v8  ;;  %5769 = vmatprep.subr.bf16.mxu0 %v11823_v53  ;;  %v3952_v53 = vld [vmem:[%s10764_s15] sm:$0xff] }
 0xb07   :  { %5729 = vmatpush1.bf16.msra.mxu1 %v11824_v60  ;;  %5770 = vmatpush1.bf16.msra.mxu0 %v11825_v11  ;;  %v11828_v60 = vld [vmem:[#allocation23_spill] sm:$0xff]  ;;  %v11829_v11 = vld [vmem:[#allocation24_spill] sm:$0xff] }
 0xb08   :  { %5780 = vmatprep.subr.bf16.mxu1 %v11826_v45  ;;  %5821 = vmatprep.subr.bf16.mxu0 %v11827_v18  ;;  %v3983_v8 = vrot.slane %v3952_v53, %v11828_v60  ;;  %v3987_v14 = vrot.slane %v3952_v53, %v11829_v11 }
 0xb0a   :  { %v10225_v45 = vadd.f32 %v10167_v37, %v3983_v8  ;;  %v10227_v18 = vadd.f32 %v4696_v27, %v3987_v14  ;;  %v11832_v8 = vld [vmem:[#allocation22_spill] sm:$0xff] }
 0xb0b   :  { %v11833_v37 = vsub.s32 2, %v11832_v8 }
 0xb0c   :  { %11830 = vst [vmem:[#allocation149_spill] sm:$0xff] %v10225_v45  ;;  %11831 = vst [vmem:[#allocation150_spill] sm:$0xff] %v10227_v18 }
 0xb0d   :  { %v3991_v14 = vrot.slane %v3952_v53, %v11833_v37 }
 0xb0f   :  { %v10234_v27 = vadd.f32 %v10169_v41, %v3991_v14 }
 0xb11   :  { %11834 = vst [vmem:[#allocation151_spill] sm:$0xff] %v10234_v27 }
 0xb1d   :  { %v4776_v5 = vpop.f32.mrb[52].mxu1  ;;  %v10217_v33 = vpop.f32.mrb[48].mxu0 }
 0xb1e   :  { %v4778_v62 = vpop.f32.mrb[53].mxu1  ;;  %v4819_v43 = vpop.f32.mrb[49].mxu0 }
 0xb1f   :  { %v4780_v40 = vpop.f32.mrb[54].mxu1  ;;  %v4821_v2 = vpop.f32.mrb[50].mxu0 }
 0xb20   :  { %v4781_v47 = vpop.f32.mrb[55].mxu1  ;;  %v4822_v12 = vpop.f32.mrb[51].mxu0 }
 0xb5d   :  { %v5498_v30 = vpop.f32.mrb[56].mxu1  ;;  %v5539_v51 = vpop.f32.mrb[52].mxu0 }
 0xb5e   :  { %v5628_v40 = vadd.f32 %v5498_v30, %v10225_v45  ;;  %v5500_v2 = vpop.f32.mrb[57].mxu1  ;;  %v5541_v47 = vpop.f32.mrb[53].mxu0  ;;  %v5630_v30 = vadd.f32 %v5539_v51, %v10234_v27 }
 0xb5f   :  { %v5629_v12 = vadd.f32 %v5500_v2, %v10227_v18  ;;  %v5502_v31 = vpop.f32.mrb[58].mxu1  ;;  %v5543_v26 = vpop.f32.mrb[54].mxu0  ;;  %v11835_v2 = vsub.s32 4, %v11832_v8 }
 0xb60   :  { %v7637_v25 = vmul.f32 -1.442695, %v5628_v40  ;;  %v5503_v4 = vpop.f32.mrb[59].mxu1  ;;  %v5544_v60 = vpop.f32.mrb[55].mxu0 }
 0xb61   :  { %v7638_v57 = vmul.f32 -1.442695, %v5629_v12  ;;  %v3999_v41 = vrot.slane %v3952_v53, %v11835_v2  ;;  %v11836_v12 = vsub.s32 5, %v11832_v8 }
 0xb62   :  { %8058 = vpow2.f32 %v7637_v25 }
 0xb63   :  { %8060 = vpow2.f32 %v7638_v57  ;;  %v4003_v51 = vrot.slane %v3952_v53, %v11836_v12  ;;  %v10243_v37 = vadd.f32 %v4776_v5, %v3999_v41 }
 0xb64   :  { %8062 = vtanh.f32 %v5630_v30 }
 0xb65   :  { %11837 = vst [vmem:[#allocation153_spill] sm:$0xff] %v10243_v37  ;;  %v5636_v14 = vrot.slane %v10243_v37, 6 }
 0xb6c   :  { %v8059_v11 = vpop.eup %8058 }
 0xb6d   :  { %v8061_v45 = vpop.eup %8060  ;;  %v5651_v21 = vadd.f32 1.0, %v8059_v11  ;;  %v10245_v11 = vadd.f32 %v4778_v62, %v4003_v51  ;;  %v11841_v51 = vsub.s32 6, %v11832_v8 }
 0xb6e   :  { %v5657_v31 = vadd.f32 1.0, %v8061_v45  ;;  %v8063_v4 = vpop.eup %8062 }
 0xb6f   :  { %8064 = vrcp.f32 %v5651_v21  ;;  %11838 = vst [vmem:[#allocation154_spill] sm:$0xff] %v10245_v11  ;;  %v11839_v21 = vsub.s32 7, %v11832_v8 }
 0xb70   :  { %8066 = vrcp.f32 %v5657_v31 }
 0xb71   :  { %v4011_v45 = vrot.slane %v3952_v53, %v11839_v21  ;;  %v4007_v21 = vrot.slane %v3952_v53, %v11841_v51 }
 0xb73   :  { %v10253_v12 = vadd.f32 %v4819_v43, %v4011_v45  ;;  %v10262_v43 = vadd.f32 %v10217_v33, %v4007_v21 }
 0xb79   :  { %v8065_v26 = vpop.eup %8064 }
 0xb7a   :  { %v8067_v60 = vpop.eup %8066  ;;  %v5668_v25 = vmul.f32 %v8065_v26, %v8063_v4  ;;  %v5637_v4 = vrot.slane %v10245_v11, 6  ;;  %v11840_v26 = vsub.s32 3, %v11832_v8 }
 0xb7b   :  { %v5667_v57 = vmul.f32 0.0, %v8067_v60 }
 0xb7c   :  { %v3995_v60 = vrot.slane %v3952_v53, %v11840_v26  ;;  %v5638_v53 = vrot.slane %v10262_v43, 6 }
 0xb7d   :  { %v10237_v40 = vadd.f32 %v5668_v25, %v5667_v57 }
 0xb7e   :  { %v10258_v11 = vadd.f32 %v10171_v56, %v3995_v60 }
 0xb80   :  { %v5631_v45 = vadd.f32 %v5541_v47, %v10258_v11 }
 0xb9d   :  { %v5580_v30 = vpop.f32.mrb[60].mxu1  ;;  %v5621_v31 = vpop.f32.mrb[56].mxu0 }
 0xb9e   :  { %v5644_v25 = vadd.f32 %v5636_v14, %v5580_v30  ;;  %v5582_v57 = vpop.f32.mrb[61].mxu1  ;;  %v5623_v2 = vpop.f32.mrb[57].mxu0  ;;  %v5639_v14 = vrot.slane %v10253_v12, 6 }
 0xb9f   :  { %v5645_v5 = vadd.f32 %v5637_v4, %v5582_v57  ;;  %v5584_v62 = vpop.f32.mrb[62].mxu1  ;;  %v5625_v41 = vpop.f32.mrb[58].mxu0  ;;  %v7639_v4 = vmul.f32 -1.442695, %v5631_v45 }
 0xba0   :  { %v7640_v27 = vmul.f32 -1.442695, %v5644_v25  ;;  %v5585_v37 = vpop.f32.mrb[63].mxu1  ;;  %v5626_v18 = vpop.f32.mrb[59].mxu0  ;;  %v5647_v30 = vadd.f32 %v5639_v14, %v5623_v2 }
 0xba1   :  { %v7641_v24 = vmul.f32 -1.442695, %v5645_v5  ;;  %v5646_v37 = vadd.f32 %v5638_v53, %v5621_v31 }
 0xba2   :  { %8068 = vpow2.f32 %v7640_v27  ;;  %v7642_v8 = vmul.f32 -1.442695, %v5647_v30 }
 0xba3   :  { %8070 = vpow2.f32 %v7641_v24 }
 0xba4   :  { %8072 = vpow2.f32 %v7639_v4 }
 0xba5   :  { %8074 = vpow2.f32 %v7642_v8  ;;  %v11844_v8 = vld [vmem:[#allocation53_spill] sm:$0xff] }
 0xba6   :  { %8076 = vtanh.f32 %v5646_v37  ;;  %v11845_v37 = vld [vmem:[#allocation54_spill] sm:$0xff] }
 0xbac   :  { %v8069_v18 = vpop.eup %8068 }
 0xbad   :  { %v8071_v26 = vpop.eup %8070  ;;  %v5675_v56 = vadd.f32 1.0, %v8069_v18  ;;  %v11846_v18 = vld [vmem:[#allocation55_spill] sm:$0xff] }
 0xbae   :  { %v5681_v24 = vadd.f32 1.0, %v8071_v26  ;;  %v8073_v27 = vpop.eup %8072  ;;  %v11847_v26 = vld [vmem:[#allocation56_spill] sm:$0xff] }
 0xbaf   :  { %8078 = vrcp.f32 %v5675_v56  ;;  %v8075_v33 = vpop.eup %8074  ;;  %v5664_v47 = vadd.f32 1.0, %v8073_v27  ;;  %v11848_v56 = vld [vmem:[#allocation57_spill] sm:$0xff]  ;;  %v11850_v27 = vld [vmem:[#allocation59_spill] sm:$0xff] }
 0xbb0   :  { %8080 = vrcp.f32 %v5681_v24  ;;  %v8077_v60 = vpop.eup %8076  ;;  %v5688_v5 = vadd.f32 1.0, %v8075_v33  ;;  %v11849_v24 = vld [vmem:[#allocation58_spill] sm:$0xff]  ;;  %v11851_v33 = vld [vmem:[#allocation60_spill] sm:$0xff] }
 0xbb1   :  { %8082 = vtanh.f32 %v10237_v40 }
 0xbb2   :  { %8084 = vrcp.f32 %v5664_v47  ;;  %v11854_v47 = vld [vmem:[#allocation63_spill] sm:$0xff] }
 0xbb3   :  { %8086 = vrcp.f32 %v5688_v5  ;;  %v11857_v5 = vld [vmem:[#allocation66_spill] sm:$0xff] }
 0xbb9   :  { %v8079_v25 = vpop.eup %8078 }
 0xbba   :  { %v8081_v57 = vpop.eup %8080  ;;  %v5692_v2 = vmul.f32 %v8079_v25, %v8077_v60  ;;  %v11852_v60 = vld [vmem:[#allocation61_spill] sm:$0xff]  ;;  %v11853_v25 = vld [vmem:[#allocation62_spill] sm:$0xff] }
 0xbbb   :  { %v5691_v62 = vmul.f32 0.0, %v8081_v57  ;;  %v8083_v41 = vpop.eup %8082  ;;  %v11855_v57 = vld [vmem:[#allocation64_spill] sm:$0xff] }
 0xbbc   :  { %v8085_v51 = vpop.eup %8084 }
 0xbbd   :  { %v10267_v31 = vadd.f32 %v5692_v2, %v5691_v62  ;;  %v8087_v21 = vpop.eup %8086  ;;  %v10270_v45 = vmul.f32 %v8085_v51, %v8083_v41  ;;  %v11856_v2 = vld [vmem:[#allocation65_spill] sm:$0xff]  ;;  %v11858_v62 = vld [vmem:[#allocation67_spill] sm:$0xff]  ;;  %v11859_v41 = vld [vmem:[#allocation68_spill] sm:$0xff] }
 0xbbe   :  { %v11860_v51 = vld [vmem:[#allocation69_spill] sm:$0xff] }
 0xbbf   :  { %8088 = vtanh.f32 %v10267_v31  ;;  %11842 = vst [vmem:[#allocation88_spill] sm:$0xff] %v10270_v45  ;;  %v10278_v53 = vpack.c.bf16 %v10270_v45, %v10270_v45  ;;  %v11865_v45 = vld [vmem:[#allocation74_spill] sm:$0xff] }
 0xbc9   :  { %v8089_v14 = vpop.eup %8088 }
 0xbca   :  { %v10272_v30 = vmul.f32 %v8089_v14, %v8087_v21  ;;  %v11861_v21 = vld [vmem:[#allocation70_spill] sm:$0xff]  ;;  %v11862_v14 = vld [vmem:[#allocation71_spill] sm:$0xff] }
 0xbcc   :  { %11843 = vst [vmem:[#allocation156_spill] sm:$0xff] %v10272_v30  ;;  %v5697_v4 = vpack.c.bf16 %v10272_v30, %v10272_v30  ;;  %v11864_v30 = vld [vmem:[#allocation73_spill] sm:$0xff] }
 0xbce   :  { %5730 = vmatprep.mubr.bf16.mxu1 %v5697_v4  ;;  %5771 = vmatprep.mubr.bf16.mxu0 %v5697_v4 }
 0xbcf   :  { %5731 = vmatmul.mubr.bf16.vlgmr.msra.gmra.mrb[64].mxu1 %v10278_v53  ;;  %5772 = vmatmul.mubr.bf16.vlgmr.msra.gmra.mrb[60].mxu0 %v10278_v53 }
 0xbd0   :  { %5781 = vmatpush1.bf16.msra.mxu1 %v11844_v8  ;;  %5822 = vmatpush1.bf16.msra.mxu0 %v11845_v37 }
 0xbd1   :  { %5812 = vmatprep.mubr.bf16.mxu1 %v5697_v4  ;;  %5853 = vmatprep.mubr.bf16.mxu0 %v5697_v4  ;;  %v11863_v4 = vld [vmem:[#allocation72_spill] sm:$0xff] }
 0xbd2   :  { %5782 = vmatprep.subr.bf16.mxu1 %v11846_v18  ;;  %5823 = vmatprep.subr.bf16.mxu0 %v11847_v26 }
 0xbd4   :  { %5783 = vmatpush1.bf16.msra.mxu1 %v11848_v56  ;;  %5824 = vmatpush1.bf16.msra.mxu0 %v11849_v24 }
 0xbd5   :  { %5784 = vmatprep.subr.bf16.mxu1 %v11850_v27  ;;  %5825 = vmatprep.subr.bf16.mxu0 %v11851_v33 }
 0xbd8   :  { %5785 = vmatpush1.bf16.msra.mxu1 %v11852_v60  ;;  %5826 = vmatpush1.bf16.msra.mxu0 %v11853_v25 }
 0xbd9   :  { %5786 = vmatprep.subr.bf16.mxu1 %v11854_v47  ;;  %5827 = vmatprep.subr.bf16.mxu0 %v11855_v57  ;;  %v11866_v57 = vld [vmem:[#allocation75_spill] sm:$0xff] }
 0xbdc   :  { %5787 = vmatpush1.bf16.msra.mxu1 %v11856_v2  ;;  %5828 = vmatpush1.bf16.msra.mxu0 %v11857_v5  ;;  %v11867_v2 = vld [vmem:[#allocation76_spill] sm:$0xff]  ;;  %v11868_v5 = vld [vmem:[#allocation77_spill] sm:$0xff] }
 0xbdd   :  { %5788 = vmatprep.subr.bf16.mxu1 %v11858_v62  ;;  %5829 = vmatprep.subr.bf16.mxu0 %v11859_v41  ;;  %v11869_v62 = vld [vmem:[#allocation78_spill] sm:$0xff]  ;;  %v11870_v41 = vld [vmem:[#allocation79_spill] sm:$0xff] }
 0xbe0   :  { %5789 = vmatpush1.bf16.msra.mxu1 %v11860_v51  ;;  %5830 = vmatpush1.bf16.msra.mxu0 %v11861_v21  ;;  %v11871_v51 = vld [vmem:[#allocation80_spill] sm:$0xff]  ;;  %v11872_v21 = vld [vmem:[#allocation81_spill] sm:$0xff] }
 0xbe1   :  { %5790 = vmatprep.subr.bf16.mxu1 %v11862_v14  ;;  %5831 = vmatprep.subr.bf16.mxu0 %v11863_v4  ;;  %v11873_v14 = vld [vmem:[#allocation82_spill] sm:$0xff]  ;;  %v11874_v4 = vld [vmem:[#allocation83_spill] sm:$0xff] }
 0xbe4   :  { %5791 = vmatpush1.bf16.msra.mxu1 %v11864_v30  ;;  %5832 = vmatpush1.bf16.msra.mxu0 %v11865_v45  ;;  %v11875_v30 = vld [vmem:[#allocation84_spill] sm:$0xff]  ;;  %v11876_v45 = vld [vmem:[#allocation85_spill] sm:$0xff] }
 0xbe5   :  { %5792 = vmatprep.subr.bf16.mxu1 %v11866_v57  ;;  %5833 = vmatprep.subr.bf16.mxu0 %v11867_v2  ;;  %v11877_v57 = vld [vmem:[#allocation86_spill] sm:$0xff]  ;;  %v11878_v2 = vld [vmem:[#allocation87_spill] sm:$0xff] }
 0xbe8   :  { %5793 = vmatpush1.bf16.msra.mxu1 %v11868_v5  ;;  %5834 = vmatpush1.bf16.msra.mxu0 %v11869_v62  ;;  %v11879_v5 = vld [vmem:[#allocation152_spill] sm:$0xff]  ;;  %v11880_v62 = vld [vmem:[#allocation155_spill] sm:$0xff] }
 0xbe9   :  { %5794 = vmatprep.subr.bf16.mxu1 %v11870_v41  ;;  %5835 = vmatprep.subr.bf16.mxu0 %v11871_v51  ;;  %v11881_v41 = vld [vmem:[#allocation107_spill] sm:$0xff]  ;;  %v11882_v51 = vld [vmem:[#allocation108_spill] sm:$0xff] }
 0xbec   :  { %5795 = vmatpush1.bf16.msra.mxu1 %v11872_v21  ;;  %5836 = vmatpush1.bf16.msra.mxu0 %v11873_v14  ;;  %v11883_v21 = vld [vmem:[#allocation109_spill] sm:$0xff]  ;;  %v11884_v14 = vld [vmem:[#allocation110_spill] sm:$0xff] }
 0xbed   :  { %5796 = vmatprep.subr.bf16.mxu1 %v11874_v4  ;;  %5837 = vmatprep.subr.bf16.mxu0 %v11875_v30  ;;  %v11885_v4 = vld [vmem:[#allocation111_spill] sm:$0xff]  ;;  %v11886_v30 = vld [vmem:[#allocation112_spill] sm:$0xff] }
 0xbf0   :  { %5797 = vmatpush1.bf16.msra.mxu1 %v11876_v45  ;;  %5838 = vmatpush1.bf16.msra.mxu0 %v11877_v57  ;;  %v11887_v45 = vld [vmem:[#allocation113_spill] sm:$0xff] }
 0xbf1   :  { %5798 = vmatprep.subr.bf16.mxu1 %v11878_v2  ;;  %5839 = vmatprep.subr.bf16.mxu0 %v11879_v5  ;;  %v11888_v57 = vld [vmem:[#allocation117_spill] sm:$0xff]  ;;  %v11889_v2 = vld [vmem:[#allocation118_spill] sm:$0xff] }
 0xbf2   :  { %v11890_v5 = vld [vmem:[#allocation133_spill] sm:$0xff] }
 0xbf4   :  { %5799 = vmatpush1.bf16.msra.mxu1 %v11880_v62  ;;  %5840 = vmatpush1.bf16.msra.mxu0 %v11881_v41  ;;  %v11891_v62 = vld [vmem:[#allocation134_spill] sm:$0xff] }
 0xbf5   :  { %5800 = vmatprep.subr.bf16.mxu1 %v11882_v51  ;;  %5841 = vmatprep.subr.bf16.mxu0 %v11883_v21 }
 0xbf8   :  { %5801 = vmatpush1.bf16.msra.mxu1 %v11884_v14  ;;  %5842 = vmatpush1.bf16.msra.mxu0 %v11885_v4  ;;  %v11892_v14 = vld [vmem:[#allocation138_spill] sm:$0xff]  ;;  %v11893_v4 = vld [vmem:[#allocation139_spill] sm:$0xff] }
 0xbf9   :  { %5802 = vmatprep.subr.bf16.mxu1 %v11886_v30  ;;  %5843 = vmatprep.subr.bf16.mxu0 %v11887_v45 }
 0xbfc   :  { %5803 = vmatpush1.bf16.msra.mxu1 %v11888_v57  ;;  %5844 = vmatpush1.bf16.msra.mxu0 %v11889_v2 }
 0xbfd   :  { %5804 = vmatprep.subr.bf16.mxu1 %v11890_v5  ;;  %5845 = vmatprep.subr.bf16.mxu0 %v11891_v62 }
 0xc00   :  { %5805 = vmatpush1.bf16.msra.mxu1 %v10099_v52  ;;  %5846 = vmatpush1.bf16.msra.mxu0 %v10101_v15 }
 0xc01   :  { %5806 = vmatprep.subr.bf16.mxu1 %v10105_v3  ;;  %5847 = vmatprep.subr.bf16.mxu0 %v11892_v14 }
 0xc04   :  { %5807 = vmatpush1.bf16.msra.mxu1 %v11893_v4  ;;  %5848 = vmatpush1.bf16.msra.mxu0 %v10113_v22 }
 0xc05   :  { %5808 = vmatprep.subr.bf16.mxu1 %v10117_v29  ;;  %5849 = vmatprep.subr.bf16.mxu0 %v10119_v7 }
 0xc08   :  { %5809 = vmatpush1.bf16.msra.mxu1 %v10123_v58  ;;  %5850 = vmatpush1.bf16.msra.mxu0 %v10125_v20 }
 0xc09   :  { %5810 = vmatprep.subr.bf16.mxu1 %v10129_v42  ;;  %5851 = vmatprep.subr.bf16.mxu0 %v10131_v38 }
 0xc0c   :  { %5811 = vmatpush1.bf16.msra.mxu1 %v10135_v34  ;;  %5852 = vmatpush1.bf16.msra.mxu0 %v10137_v55 }
 0xc0d   :  { %5940 = vmatprep.subr.bf16.mxu1 %v9751_v9  ;;  %5981 = vmatprep.subr.bf16.mxu0 %v9753_v17 }
 0xc0f   :  { %5813 = vmatmul.mubr.bf16.vlgmr.msra.gmra.mrb[68].mxu1 %v10278_v53  ;;  %5854 = vmatmul.mubr.bf16.vlgmr.msra.gmra.mrb[64].mxu0 %v10278_v53  ;;  %v11894_v53 = vld [vmem:[#allocation104_spill] sm:$0xff] }
 0xc10   :  { %5941 = vmatpush1.bf16.msra.mxu1 %v9755_v23  ;;  %5982 = vmatpush1.bf16.msra.mxu0 %v9757_v13 }
 0xc11   :  { %5942 = vmatprep.subr.bf16.mxu1 %v9761_v54  ;;  %5983 = vmatprep.subr.bf16.mxu0 %v9763_v16 }
 0xc14   :  { %5943 = vmatpush1.bf16.msra.mxu1 %v9769_v1  ;;  %5984 = vmatpush1.bf16.msra.mxu0 %v9771_v63 }
 0xc15   :  { %5944 = vmatprep.subr.bf16.mxu1 %v9775_v36  ;;  %5985 = vmatprep.subr.bf16.mxu0 %v9777_v28 }
 0xc18   :  { %5945 = vmatpush1.bf16.msra.mxu1 %v9783_v49  ;;  %5986 = vmatpush1.bf16.msra.mxu0 %v9785_v50 }
 0xc19   :  { %5946 = vmatprep.subr.bf16.mxu1 %v9789_v59  ;;  %5987 = vmatprep.subr.bf16.mxu0 %v9791_v48  ;;  %v11937_v59 = vld [vmem:[#allocation150_spill] sm:$0xff] }
 0xc1c   :  { %5947 = vmatpush1.bf16.msra.mxu1 %v9795_v10  ;;  %5988 = vmatpush1.bf16.msra.mxu0 %v9797_v32  ;;  %v11895_v10 = vld [vmem:[#allocation105_spill] sm:$0xff]  ;;  %v11896_v32 = vld [vmem:[#allocation106_spill] sm:$0xff] }
 0xc1d   :  { %5948 = vmatprep.subr.bf16.mxu1 %v9801_v19  ;;  %5989 = vmatprep.subr.bf16.mxu0 %v9803_v39  ;;  %v11897_v19 = vld [vmem:[#allocation114_spill] sm:$0xff]  ;;  %v11898_v39 = vld [vmem:[#allocation115_spill] sm:$0xff] }
 0xc20   :  { %5949 = vmatpush1.bf16.msra.mxu1 %v9807_v0  ;;  %5990 = vmatpush1.bf16.msra.mxu0 %v9809_v35  ;;  %v11899_v0 = vld [vmem:[#allocation116_spill] sm:$0xff]  ;;  %v11900_v35 = vld [vmem:[#allocation119_spill] sm:$0xff] }
 0xc21   :  { %5950 = vmatprep.subr.bf16.mxu1 %v9813_v44  ;;  %5991 = vmatprep.subr.bf16.mxu0 %v9815_v46  ;;  %v11901_v44 = vld [vmem:[#allocation120_spill] sm:$0xff]  ;;  %v11902_v46 = vld [vmem:[#allocation121_spill] sm:$0xff] }
 0xc24   :  { %5951 = vmatpush1.bf16.msra.mxu1 %v9819_v61  ;;  %5992 = vmatpush1.bf16.msra.mxu0 %v9821_v6  ;;  %v11903_v61 = vld [vmem:[#allocation122_spill] sm:$0xff]  ;;  %v11904_v6 = vld [vmem:[#allocation123_spill] sm:$0xff] }
 0xc25   :  { %5952 = vmatprep.subr.bf16.mxu1 %v11894_v53  ;;  %5993 = vmatprep.subr.bf16.mxu0 %v11895_v10  ;;  %v11905_v53 = vld [vmem:[#allocation124_spill] sm:$0xff] }
 0xc26   :  { %v11906_v10 = vld [vmem:[#allocation128_spill] sm:$0xff] }
 0xc28   :  { %5953 = vmatpush1.bf16.msra.mxu1 %v11896_v32  ;;  %5994 = vmatpush1.bf16.msra.mxu0 %v11897_v19  ;;  %v11907_v32 = vld [vmem:[#allocation129_spill] sm:$0xff] }
 0xc29   :  { %5954 = vmatprep.subr.bf16.mxu1 %v11898_v39  ;;  %5995 = vmatprep.subr.bf16.mxu0 %v11899_v0  ;;  %v11908_v19 = vld [vmem:[#allocation25_spill] sm:$0xff]  ;;  %v11909_v39 = vld [vmem:[#allocation26_spill] sm:$0xff]  ;;  %v11910_v0 = vld [vmem:[#allocation27_spill] sm:$0xff] }
 0xc2c   :  { %5955 = vmatpush1.bf16.msra.mxu1 %v11900_v35  ;;  %5996 = vmatpush1.bf16.msra.mxu0 %v11901_v44  ;;  %v11911_v35 = vld [vmem:[#allocation28_spill] sm:$0xff]  ;;  %v11912_v44 = vld [vmem:[#allocation29_spill] sm:$0xff] }
 0xc2d   :  { %5956 = vmatprep.subr.bf16.mxu1 %v11902_v46  ;;  %5997 = vmatprep.subr.bf16.mxu0 %v11903_v61  ;;  %v11913_v46 = vld [vmem:[#allocation30_spill] sm:$0xff]  ;;  %v11914_v61 = vld [vmem:[#allocation31_spill] sm:$0xff] }
 0xc30   :  { %5957 = vmatpush1.bf16.msra.mxu1 %v11904_v6  ;;  %5998 = vmatpush1.bf16.msra.mxu0 %v11905_v53  ;;  %v11915_v6 = vld [vmem:[#allocation32_spill] sm:$0xff]  ;;  %v11916_v53 = vld [vmem:[#allocation33_spill] sm:$0xff] }
 0xc31   :  { %5958 = vmatprep.subr.bf16.mxu1 %v11906_v10  ;;  %5999 = vmatprep.subr.bf16.mxu0 %v11907_v32  ;;  %v11917_v10 = vld [vmem:[#allocation34_spill] sm:$0xff]  ;;  %v11918_v32 = vld [vmem:[#allocation35_spill] sm:$0xff] }
 0xc34   :  { %5959 = vmatpush1.bf16.msra.mxu1 %v11908_v19  ;;  %6000 = vmatpush1.bf16.msra.mxu0 %v11909_v39  ;;  %v11919_v19 = vld [vmem:[#allocation36_spill] sm:$0xff]  ;;  %v11920_v39 = vld [vmem:[#allocation37_spill] sm:$0xff] }
 0xc35   :  { %5960 = vmatprep.subr.bf16.mxu1 %v11910_v0  ;;  %6001 = vmatprep.subr.bf16.mxu0 %v11911_v35  ;;  %v11921_v0 = vld [vmem:[#allocation38_spill] sm:$0xff]  ;;  %v11922_v35 = vld [vmem:[#allocation39_spill] sm:$0xff] }
 0xc38   :  { %5961 = vmatpush1.bf16.msra.mxu1 %v11912_v44  ;;  %6002 = vmatpush1.bf16.msra.mxu0 %v11913_v46  ;;  %v11923_v44 = vld [vmem:[#allocation40_spill] sm:$0xff]  ;;  %v11924_v46 = vld [vmem:[#allocation41_spill] sm:$0xff] }
 0xc39   :  { %5962 = vmatprep.subr.bf16.mxu1 %v11914_v61  ;;  %6003 = vmatprep.subr.bf16.mxu0 %v11915_v6  ;;  %v11925_v61 = vld [vmem:[#allocation42_spill] sm:$0xff]  ;;  %v11926_v6 = vld [vmem:[#allocation43_spill] sm:$0xff] }
 0xc3c   :  { %5963 = vmatpush1.bf16.msra.mxu1 %v11916_v53  ;;  %6004 = vmatpush1.bf16.msra.mxu0 %v11917_v10  ;;  %v11927_v53 = vld [vmem:[#allocation44_spill] sm:$0xff]  ;;  %v11928_v10 = vld [vmem:[#allocation45_spill] sm:$0xff] }
 0xc3d   :  { %5964 = vmatprep.subr.bf16.mxu1 %v11918_v32  ;;  %6005 = vmatprep.subr.bf16.mxu0 %v11919_v19  ;;  %v11929_v32 = vld [vmem:[#allocation46_spill] sm:$0xff]  ;;  %v11930_v19 = vld [vmem:[#allocation47_spill] sm:$0xff] }
 0xc40   :  { %5965 = vmatpush1.bf16.msra.mxu1 %v11920_v39  ;;  %6006 = vmatpush1.bf16.msra.mxu0 %v11921_v0  ;;  %v11931_v39 = vld [vmem:[#allocation48_spill] sm:$0xff]  ;;  %v11932_v0 = vld [vmem:[#allocation49_spill] sm:$0xff] }
 0xc41   :  { %5966 = vmatprep.subr.bf16.mxu1 %v11922_v35  ;;  %6007 = vmatprep.subr.bf16.mxu0 %v11923_v44  ;;  %v11933_v35 = vld [vmem:[#allocation50_spill] sm:$0xff]  ;;  %v11934_v44 = vld [vmem:[#allocation51_spill] sm:$0xff] }
 0xc44   :  { %5967 = vmatpush1.bf16.msra.mxu1 %v11924_v46  ;;  %6008 = vmatpush1.bf16.msra.mxu0 %v11925_v61  ;;  %v11935_v46 = vld [vmem:[#allocation52_spill] sm:$0xff]  ;;  %v11936_v61 = vld [vmem:[#allocation149_spill] sm:$0xff] }
 0xc45   :  { %5968 = vmatprep.subr.bf16.mxu1 %v11926_v6  ;;  %6009 = vmatprep.subr.bf16.mxu0 %v11927_v53  ;;  %v5866_v6 = vrot.slane %v11936_v61, 2 }
 0xc48   :  { %5969 = vmatpush1.bf16.msra.mxu1 %v11928_v10  ;;  %6010 = vmatpush1.bf16.msra.mxu0 %v11929_v32  ;;  %v5867_v10 = vrot.slane %v11937_v59, 2 }
 0xc49   :  { %5970 = vmatprep.subr.bf16.mxu1 %v11930_v19  ;;  %6011 = vmatprep.subr.bf16.mxu0 %v11931_v39 }
 0xc4c   :  { %5971 = vmatpush1.bf16.msra.mxu1 %v11932_v0  ;;  %6012 = vmatpush1.bf16.msra.mxu0 %v11933_v35 }
 0xc4d   :  { %6022 = vmatprep.subr.bf16.mxu1 %v11934_v44  ;;  %6063 = vmatprep.subr.bf16.mxu0 %v11935_v46  ;;  %v11938_v44 = vld [vmem:[#allocation151_spill] sm:$0xff] }
 0xc4e   :  { %v5868_v46 = vrot.slane %v11938_v44, 2 }
 0xca2   :  { %v5732_v48 = vpop.f32.mrb[64].mxu1  ;;  %v5773_v53 = vpop.f32.mrb[60].mxu0 }
 0xca3   :  { %v5874_v50 = vadd.f32 %v5866_v6, %v5732_v48  ;;  %v5734_v32 = vpop.f32.mrb[65].mxu1  ;;  %v5775_v49 = vpop.f32.mrb[61].mxu0  ;;  %v5876_v1 = vadd.f32 %v5868_v46, %v5773_v53 }
 0xca4   :  { %v5875_v19 = vadd.f32 %v5867_v10, %v5734_v32  ;;  %v5736_v28 = vpop.f32.mrb[66].mxu1  ;;  %v5777_v39 = vpop.f32.mrb[62].mxu0 }
 0xca5   :  { %v7643_v36 = vmul.f32 -1.442695, %v5874_v50  ;;  %v5737_v0 = vpop.f32.mrb[67].mxu1  ;;  %v5778_v63 = vpop.f32.mrb[63].mxu0 }
 0xca6   :  { %v7644_v35 = vmul.f32 -1.442695, %v5875_v19 }
 0xca7   :  { %8090 = vpow2.f32 %v7643_v36  ;;  %v11939_v36 = vld [vmem:[#allocation153_spill] sm:$0xff] }
 0xca8   :  { %8092 = vpow2.f32 %v7644_v35  ;;  %v5878_v19 = vrot.slane %v11939_v36, 4  ;;  %v11940_v35 = vld [vmem:[#allocation154_spill] sm:$0xff] }
 0xca9   :  { %8094 = vtanh.f32 %v5876_v1  ;;  %v5879_v46 = vrot.slane %v11940_v35, 4 }
 0xcb1   :  { %v8091_v61 = vpop.eup %8090 }
 0xcb2   :  { %v8093_v16 = vpop.eup %8092  ;;  %v5893_v54 = vadd.f32 1.0, %v8091_v61 }
 0xcb3   :  { %v5899_v59 = vadd.f32 1.0, %v8093_v16  ;;  %v8095_v48 = vpop.eup %8094 }
 0xcb4   :  { %8096 = vrcp.f32 %v5893_v54 }
 0xcb5   :  { %8098 = vrcp.f32 %v5899_v59 }
 0xcbe   :  { %v8097_v10 = vpop.eup %8096 }
 0xcbf   :  { %v8099_v28 = vpop.eup %8098  ;;  %v5910_v32 = vmul.f32 %v8097_v10, %v8095_v48  ;;  %v5881_v10 = vrot.slane %v10253_v12, 4 }
 0xcc0   :  { %v5909_v50 = vmul.f32 %v8099_v28, %v10237_v40  ;;  %v5869_v40 = vrot.slane %v10258_v11, 2 }
 0xcc2   :  { %v10416_v63 = vadd.f32 %v5910_v32, %v5909_v50  ;;  %v5877_v28 = vadd.f32 %v5869_v40, %v5775_v49 }
 0xcc4   :  { %v7645_v50 = vmul.f32 -1.442695, %v5877_v28 }
 0xce2   :  { %v5814_v39 = vpop.f32.mrb[68].mxu1  ;;  %v5855_v0 = vpop.f32.mrb[64].mxu0 }
 0xce3   :  { %v5886_v6 = vadd.f32 %v5878_v19, %v5814_v39  ;;  %v5816_v61 = vpop.f32.mrb[69].mxu1  ;;  %v5857_v1 = vpop.f32.mrb[65].mxu0  ;;  %v5880_v19 = vrot.slane %v10262_v43, 4 }
 0xce4   :  { %v5887_v16 = vadd.f32 %v5879_v46, %v5816_v61  ;;  %v5818_v54 = vpop.f32.mrb[70].mxu1  ;;  %v5859_v59 = vpop.f32.mrb[66].mxu0  ;;  %v5889_v32 = vadd.f32 %v5881_v10, %v5857_v1 }
 0xce5   :  { %v7646_v53 = vmul.f32 -1.442695, %v5886_v6  ;;  %v5819_v44 = vpop.f32.mrb[71].mxu1  ;;  %v5860_v13 = vpop.f32.mrb[67].mxu0  ;;  %v5888_v35 = vadd.f32 %v5880_v19, %v5855_v0 }
 0xce6   :  { %v7647_v48 = vmul.f32 -1.442695, %v5887_v16  ;;  %v7648_v39 = vmul.f32 -1.442695, %v5889_v32 }
 0xce7   :  { %8100 = vpow2.f32 %v7646_v53 }
 0xce8   :  { %8102 = vpow2.f32 %v7647_v48 }
 0xce9   :  { %8104 = vpow2.f32 %v7645_v50 }
 0xcea   :  { %8106 = vpow2.f32 %v7648_v39 }
 0xceb   :  { %8108 = vtanh.f32 %v5888_v35 }
 0xcf1   :  { %v8101_v46 = vpop.eup %8100 }
 0xcf2   :  { %v8103_v61 = vpop.eup %8102  ;;  %v5917_v6 = vadd.f32 1.0, %v8101_v46  ;;  %v11942_v46 = vld [vmem:[#allocation64_spill] sm:$0xff] }
 0xcf3   :  { %v5923_v13 = vadd.f32 1.0, %v8103_v61  ;;  %v8105_v44 = vpop.eup %8104  ;;  %v11943_v61 = vld [vmem:[#allocation65_spill] sm:$0xff] }
 0xcf4   :  { %8110 = vrcp.f32 %v5917_v6  ;;  %v8107_v16 = vpop.eup %8106  ;;  %v5906_v49 = vadd.f32 1.0, %v8105_v44  ;;  %v11944_v6 = vld [vmem:[#allocation66_spill] sm:$0xff]  ;;  %v11946_v44 = vld [vmem:[#allocation68_spill] sm:$0xff] }
 0xcf5   :  { %8112 = vrcp.f32 %v5923_v13  ;;  %v8109_v54 = vpop.eup %8108  ;;  %v5930_v48 = vadd.f32 1.0, %v8107_v16  ;;  %v11945_v13 = vld [vmem:[#allocation67_spill] sm:$0xff]  ;;  %v11947_v16 = vld [vmem:[#allocation69_spill] sm:$0xff] }
 0xcf6   :  { %8114 = vtanh.f32 %v10416_v63 }
 0xcf7   :  { %8116 = vrcp.f32 %v5906_v49  ;;  %v11950_v49 = vld [vmem:[#allocation72_spill] sm:$0xff] }
 0xcf8   :  { %8118 = vrcp.f32 %v5930_v48  ;;  %v11953_v48 = vld [vmem:[#allocation75_spill] sm:$0xff] }
 0xcfe   :  { %v8111_v59 = vpop.eup %8110 }
 0xcff   :  { %v8113_v1 = vpop.eup %8112  ;;  %v5934_v53 = vmul.f32 %v8111_v59, %v8109_v54  ;;  %v11948_v54 = vld [vmem:[#allocation70_spill] sm:$0xff]  ;;  %v11949_v59 = vld [vmem:[#allocation71_spill] sm:$0xff] }
 0xd00   :  { %v5933_v40 = vmul.f32 %v8113_v1, %v10267_v31  ;;  %v8115_v35 = vpop.eup %8114  ;;  %v11951_v1 = vld [vmem:[#allocation73_spill] sm:$0xff] }
 0xd01   :  { %v8117_v10 = vpop.eup %8116 }
 0xd02   :  { %v10425_v0 = vadd.f32 %v5934_v53, %v5933_v40  ;;  %v8119_v28 = vpop.eup %8118  ;;  %v10428_v50 = vmul.f32 %v8117_v10, %v8115_v35  ;;  %v11952_v53 = vld [vmem:[#allocation74_spill] sm:$0xff]  ;;  %v11954_v40 = vld [vmem:[#allocation76_spill] sm:$0xff]  ;;  %v11955_v35 = vld [vmem:[#allocation77_spill] sm:$0xff] }
 0xd03   :  { %v11956_v10 = vld [vmem:[#allocation78_spill] sm:$0xff] }
 0xd04   :  { %8120 = vtanh.f32 %v10425_v0  ;;  %v10436_v31 = vpack.c.bf16 %v10428_v50, %v10428_v50 }
 0xd0e   :  { %v8121_v32 = vpop.eup %8120 }
 0xd0f   :  { %v10430_v19 = vmul.f32 %v8121_v32, %v8119_v28  ;;  %v11957_v28 = vld [vmem:[#allocation79_spill] sm:$0xff]  ;;  %v11958_v32 = vld [vmem:[#allocation80_spill] sm:$0xff] }
 0xd11   :  { %11941 = vst [vmem:[#allocation22_spill] sm:$0xff] %v10430_v19  ;;  %v5939_v39 = vpack.c.bf16 %v10430_v19, %v10430_v19  ;;  %v11960_v19 = vld [vmem:[#allocation82_spill] sm:$0xff] }
 0xd13   :  { %5972 = vmatprep.mubr.bf16.mxu1 %v5939_v39  ;;  %6013 = vmatprep.mubr.bf16.mxu0 %v5939_v39 }
 0xd14   :  { %5973 = vmatmul.mubr.bf16.vlgmr.msra.gmra.mrb[72].mxu1 %v10436_v31  ;;  %6014 = vmatmul.mubr.bf16.vlgmr.msra.gmra.mrb[68].mxu0 %v10436_v31 }
 0xd15   :  { %6023 = vmatpush1.bf16.msra.mxu1 %v11844_v8  ;;  %6064 = vmatpush1.bf16.msra.mxu0 %v11845_v37 }
 0xd16   :  { %6054 = vmatprep.mubr.bf16.mxu1 %v5939_v39  ;;  %6095 = vmatprep.mubr.bf16.mxu0 %v5939_v39  ;;  %v11959_v39 = vld [vmem:[#allocation81_spill] sm:$0xff] }
 0xd17   :  { %6024 = vmatprep.subr.bf16.mxu1 %v11846_v18  ;;  %6065 = vmatprep.subr.bf16.mxu0 %v11847_v26 }
 0xd19   :  { %6025 = vmatpush1.bf16.msra.mxu1 %v11848_v56  ;;  %6066 = vmatpush1.bf16.msra.mxu0 %v11849_v24 }
 0xd1a   :  { %6026 = vmatprep.subr.bf16.mxu1 %v11850_v27  ;;  %6067 = vmatprep.subr.bf16.mxu0 %v11851_v33 }
 0xd1d   :  { %6027 = vmatpush1.bf16.msra.mxu1 %v11852_v60  ;;  %6068 = vmatpush1.bf16.msra.mxu0 %v11853_v25 }
 0xd1e   :  { %6028 = vmatprep.subr.bf16.mxu1 %v11854_v47  ;;  %6069 = vmatprep.subr.bf16.mxu0 %v11942_v46 }
 0xd21   :  { %6029 = vmatpush1.bf16.msra.mxu1 %v11943_v61  ;;  %6070 = vmatpush1.bf16.msra.mxu0 %v11944_v6 }
 0xd22   :  { %6030 = vmatprep.subr.bf16.mxu1 %v11945_v13  ;;  %6071 = vmatprep.subr.bf16.mxu0 %v11946_v44 }
 0xd25   :  { %6031 = vmatpush1.bf16.msra.mxu1 %v11947_v16  ;;  %6072 = vmatpush1.bf16.msra.mxu0 %v11948_v54 }
 0xd26   :  { %6032 = vmatprep.subr.bf16.mxu1 %v11949_v59  ;;  %6073 = vmatprep.subr.bf16.mxu0 %v11950_v49  ;;  %v11961_v49 = vld [vmem:[#allocation83_spill] sm:$0xff] }
 0xd29   :  { %6033 = vmatpush1.bf16.msra.mxu1 %v11951_v1  ;;  %6074 = vmatpush1.bf16.msra.mxu0 %v11952_v53  ;;  %v11962_v1 = vld [vmem:[#allocation84_spill] sm:$0xff]  ;;  %v11963_v53 = vld [vmem:[#allocation85_spill] sm:$0xff] }
 0xd2a   :  { %6034 = vmatprep.subr.bf16.mxu1 %v11953_v48  ;;  %6075 = vmatprep.subr.bf16.mxu0 %v11954_v40  ;;  %v11964_v48 = vld [vmem:[#allocation86_spill] sm:$0xff]  ;;  %v11965_v40 = vld [vmem:[#allocation87_spill] sm:$0xff] }
 0xd2d   :  { %6035 = vmatpush1.bf16.msra.mxu1 %v11955_v35  ;;  %6076 = vmatpush1.bf16.msra.mxu0 %v11956_v10  ;;  %v11966_v35 = vld [vmem:[#allocation152_spill] sm:$0xff]  ;;  %v11967_v10 = vld [vmem:[#allocation155_spill] sm:$0xff] }
 0xd2e   :  { %6036 = vmatprep.subr.bf16.mxu1 %v11957_v28  ;;  %6077 = vmatprep.subr.bf16.mxu0 %v11958_v32 }
 0xd31   :  { %6037 = vmatpush1.bf16.msra.mxu1 %v11959_v39  ;;  %6078 = vmatpush1.bf16.msra.mxu0 %v11960_v19  ;;  %v11968_v19 = vld [vmem:[#allocation110_spill] sm:$0xff] }
 0xd32   :  { %6038 = vmatprep.subr.bf16.mxu1 %v11961_v49  ;;  %6079 = vmatprep.subr.bf16.mxu0 %v11962_v1  ;;  %v11969_v49 = vld [vmem:[#allocation111_spill] sm:$0xff] }
 0xd35   :  { %6039 = vmatpush1.bf16.msra.mxu1 %v11963_v53  ;;  %6080 = vmatpush1.bf16.msra.mxu0 %v11964_v48 }
 0xd36   :  { %6040 = vmatprep.subr.bf16.mxu1 %v11965_v40  ;;  %6081 = vmatprep.subr.bf16.mxu0 %v11966_v35 }
 0xd39   :  { %6041 = vmatpush1.bf16.msra.mxu1 %v11967_v10  ;;  %6082 = vmatpush1.bf16.msra.mxu0 %v11881_v41 }
 0xd3a   :  { %6042 = vmatprep.subr.bf16.mxu1 %v11882_v51  ;;  %6083 = vmatprep.subr.bf16.mxu0 %v11883_v21 }
 0xd3d   :  { %6043 = vmatpush1.bf16.msra.mxu1 %v11968_v19  ;;  %6084 = vmatpush1.bf16.msra.mxu0 %v11969_v49 }
 0xd3e   :  { %6044 = vmatprep.subr.bf16.mxu1 %v11886_v30  ;;  %6085 = vmatprep.subr.bf16.mxu0 %v11887_v45 }
 0xd41   :  { %6045 = vmatpush1.bf16.msra.mxu1 %v11888_v57  ;;  %6086 = vmatpush1.bf16.msra.mxu0 %v11889_v2 }
 0xd42   :  { %6046 = vmatprep.subr.bf16.mxu1 %v11890_v5  ;;  %6087 = vmatprep.subr.bf16.mxu0 %v11891_v62 }
 0xd45   :  { %6047 = vmatpush1.bf16.msra.mxu1 %v10099_v52  ;;  %6088 = vmatpush1.bf16.msra.mxu0 %v10101_v15 }
 0xd46   :  { %6048 = vmatprep.subr.bf16.mxu1 %v10105_v3  ;;  %6089 = vmatprep.subr.bf16.mxu0 %v11892_v14 }
 0xd49   :  { %6049 = vmatpush1.bf16.msra.mxu1 %v11893_v4  ;;  %6090 = vmatpush1.bf16.msra.mxu0 %v10113_v22  ;;  %v12034_v22 = vld [vmem:[#allocation150_spill] sm:$0xff] }
 0xd4a   :  { %6050 = vmatprep.subr.bf16.mxu1 %v10117_v29  ;;  %6091 = vmatprep.subr.bf16.mxu0 %v10119_v7  ;;  %v11978_v7 = vld [vmem:[#allocation97_spill] sm:$0xff] }
 0xd4d   :  { %6051 = vmatpush1.bf16.msra.mxu1 %v10123_v58  ;;  %6092 = vmatpush1.bf16.msra.mxu0 %v10125_v20  ;;  %v11970_v58 = vld [vmem:[#allocation89_spill] sm:$0xff]  ;;  %v11971_v20 = vld [vmem:[#allocation90_spill] sm:$0xff] }
 0xd4e   :  { %6052 = vmatprep.subr.bf16.mxu1 %v10129_v42  ;;  %6093 = vmatprep.subr.bf16.mxu0 %v10131_v38  ;;  %v11972_v42 = vld [vmem:[#allocation91_spill] sm:$0xff]  ;;  %v11973_v38 = vld [vmem:[#allocation92_spill] sm:$0xff] }
 0xd51   :  { %6053 = vmatpush1.bf16.msra.mxu1 %v10135_v34  ;;  %6094 = vmatpush1.bf16.msra.mxu0 %v10137_v55  ;;  %v11974_v34 = vld [vmem:[#allocation93_spill] sm:$0xff]  ;;  %v11975_v55 = vld [vmem:[#allocation94_spill] sm:$0xff] }
 0xd52   :  { %6178 = vmatprep.subr.bf16.mxu1 %v9751_v9  ;;  %6219 = vmatprep.subr.bf16.mxu0 %v9753_v17  ;;  %v11976_v9 = vld [vmem:[#allocation95_spill] sm:$0xff]  ;;  %v11977_v17 = vld [vmem:[#allocation96_spill] sm:$0xff] }
 0xd54   :  { %6055 = vmatmul.mubr.bf16.vlgmr.msra.gmra.mrb[76].mxu1 %v10436_v31  ;;  %6096 = vmatmul.mubr.bf16.vlgmr.msra.gmra.mrb[72].mxu0 %v10436_v31  ;;  %v11979_v31 = vld [vmem:[#allocation98_spill] sm:$0xff] }
 0xd55   :  { %6179 = vmatpush1.bf16.msra.mxu1 %v9755_v23  ;;  %6220 = vmatpush1.bf16.msra.mxu0 %v11970_v58  ;;  %v11980_v23 = vld [vmem:[#allocation125_spill] sm:$0xff]  ;;  %v11981_v58 = vld [vmem:[#allocation126_spill] sm:$0xff] }
 0xd56   :  { %6180 = vmatprep.subr.bf16.mxu1 %v11971_v20  ;;  %6221 = vmatprep.subr.bf16.mxu0 %v11972_v42  ;;  %v11982_v20 = vld [vmem:[#allocation127_spill] sm:$0xff]  ;;  %v11983_v42 = vld [vmem:[#allocation130_spill] sm:$0xff] }
 0xd59   :  { %6181 = vmatpush1.bf16.msra.mxu1 %v11973_v38  ;;  %6222 = vmatpush1.bf16.msra.mxu0 %v11974_v34  ;;  %v11984_v38 = vld [vmem:[#allocation131_spill] sm:$0xff]  ;;  %v11985_v34 = vld [vmem:[#allocation132_spill] sm:$0xff] }
 0xd5a   :  { %6182 = vmatprep.subr.bf16.mxu1 %v11975_v55  ;;  %6223 = vmatprep.subr.bf16.mxu0 %v11976_v9  ;;  %v11986_v55 = vld [vmem:[#allocation99_spill] sm:$0xff]  ;;  %v11987_v9 = vld [vmem:[#allocation100_spill] sm:$0xff] }
 0xd5d   :  { %6183 = vmatpush1.bf16.msra.mxu1 %v11977_v17  ;;  %6224 = vmatpush1.bf16.msra.mxu0 %v11978_v7  ;;  %v11988_v17 = vld [vmem:[#allocation101_spill] sm:$0xff]  ;;  %v11989_v7 = vld [vmem:[#allocation102_spill] sm:$0xff] }
 0xd5e   :  { %6184 = vmatprep.subr.bf16.mxu1 %v11979_v31  ;;  %6225 = vmatprep.subr.bf16.mxu0 %v11980_v23  ;;  %v11990_v31 = vld [vmem:[#allocation103_spill] sm:$0xff]  ;;  %v11991_v23 = vld [vmem:[#allocation104_spill] sm:$0xff] }
 0xd61   :  { %6185 = vmatpush1.bf16.msra.mxu1 %v11981_v58  ;;  %6226 = vmatpush1.bf16.msra.mxu0 %v11982_v20  ;;  %v11992_v58 = vld [vmem:[#allocation105_spill] sm:$0xff]  ;;  %v11993_v20 = vld [vmem:[#allocation106_spill] sm:$0xff] }
 0xd62   :  { %6186 = vmatprep.subr.bf16.mxu1 %v11983_v42  ;;  %6227 = vmatprep.subr.bf16.mxu0 %v11984_v38  ;;  %v11994_v42 = vld [vmem:[#allocation114_spill] sm:$0xff]  ;;  %v11995_v38 = vld [vmem:[#allocation115_spill] sm:$0xff] }
 0xd65   :  { %6187 = vmatpush1.bf16.msra.mxu1 %v11985_v34  ;;  %6228 = vmatpush1.bf16.msra.mxu0 %v11986_v55  ;;  %v11996_v34 = vld [vmem:[#allocation116_spill] sm:$0xff]  ;;  %v11997_v55 = vld [vmem:[#allocation119_spill] sm:$0xff] }
 0xd66   :  { %6188 = vmatprep.subr.bf16.mxu1 %v11987_v9  ;;  %6229 = vmatprep.subr.bf16.mxu0 %v11988_v17  ;;  %v11998_v9 = vld [vmem:[#allocation120_spill] sm:$0xff]  ;;  %v11999_v17 = vld [vmem:[#allocation121_spill] sm:$0xff] }
 0xd69   :  { %6189 = vmatpush1.bf16.msra.mxu1 %v11989_v7  ;;  %6230 = vmatpush1.bf16.msra.mxu0 %v11990_v31  ;;  %v12000_v7 = vld [vmem:[#allocation122_spill] sm:$0xff]  ;;  %v12001_v31 = vld [vmem:[#allocation123_spill] sm:$0xff] }
 0xd6a   :  { %6190 = vmatprep.subr.bf16.mxu1 %v11991_v23  ;;  %6231 = vmatprep.subr.bf16.mxu0 %v11992_v58  ;;  %v12002_v23 = vld [vmem:[#allocation124_spill] sm:$0xff] }
 0xd6b   :  { %v12003_v58 = vld [vmem:[#allocation128_spill] sm:$0xff] }
 0xd6d   :  { %6191 = vmatpush1.bf16.msra.mxu1 %v11993_v20  ;;  %6232 = vmatpush1.bf16.msra.mxu0 %v11994_v42  ;;  %v12004_v20 = vld [vmem:[#allocation129_spill] sm:$0xff] }
 0xd6e   :  { %6192 = vmatprep.subr.bf16.mxu1 %v11995_v38  ;;  %6233 = vmatprep.subr.bf16.mxu0 %v11996_v34  ;;  %v12005_v42 = vld [vmem:[#allocation25_spill] sm:$0xff]  ;;  %v12006_v38 = vld [vmem:[#allocation26_spill] sm:$0xff]  ;;  %v12007_v34 = vld [vmem:[#allocation27_spill] sm:$0xff] }
 0xd71   :  { %6193 = vmatpush1.bf16.msra.mxu1 %v11997_v55  ;;  %6234 = vmatpush1.bf16.msra.mxu0 %v11998_v9  ;;  %v12008_v55 = vld [vmem:[#allocation28_spill] sm:$0xff]  ;;  %v12009_v9 = vld [vmem:[#allocation29_spill] sm:$0xff] }
 0xd72   :  { %6194 = vmatprep.subr.bf16.mxu1 %v11999_v17  ;;  %6235 = vmatprep.subr.bf16.mxu0 %v12000_v7  ;;  %v12010_v17 = vld [vmem:[#allocation30_spill] sm:$0xff]  ;;  %v12011_v7 = vld [vmem:[#allocation31_spill] sm:$0xff] }
 0xd75   :  { %6195 = vmatpush1.bf16.msra.mxu1 %v12001_v31  ;;  %6236 = vmatpush1.bf16.msra.mxu0 %v12002_v23  ;;  %v12012_v31 = vld [vmem:[#allocation32_spill] sm:$0xff]  ;;  %v12013_v23 = vld [vmem:[#allocation33_spill] sm:$0xff] }
 0xd76   :  { %6196 = vmatprep.subr.bf16.mxu1 %v12003_v58  ;;  %6237 = vmatprep.subr.bf16.mxu0 %v12004_v20  ;;  %v12014_v58 = vld [vmem:[#allocation34_spill] sm:$0xff]  ;;  %v12015_v20 = vld [vmem:[#allocation35_spill] sm:$0xff] }
 0xd79   :  { %6197 = vmatpush1.bf16.msra.mxu1 %v12005_v42  ;;  %6238 = vmatpush1.bf16.msra.mxu0 %v12006_v38  ;;  %v12016_v42 = vld [vmem:[#allocation36_spill] sm:$0xff]  ;;  %v12017_v38 = vld [vmem:[#allocation37_spill] sm:$0xff] }
 0xd7a   :  { %6198 = vmatprep.subr.bf16.mxu1 %v12007_v34  ;;  %6239 = vmatprep.subr.bf16.mxu0 %v12008_v55  ;;  %v12018_v34 = vld [vmem:[#allocation38_spill] sm:$0xff]  ;;  %v12019_v55 = vld [vmem:[#allocation39_spill] sm:$0xff] }
 0xd7d   :  { %6199 = vmatpush1.bf16.msra.mxu1 %v12009_v9  ;;  %6240 = vmatpush1.bf16.msra.mxu0 %v12010_v17  ;;  %v12020_v9 = vld [vmem:[#allocation40_spill] sm:$0xff]  ;;  %v12021_v17 = vld [vmem:[#allocation41_spill] sm:$0xff] }
 0xd7e   :  { %6200 = vmatprep.subr.bf16.mxu1 %v12011_v7  ;;  %6241 = vmatprep.subr.bf16.mxu0 %v12012_v31  ;;  %v12022_v7 = vld [vmem:[#allocation42_spill] sm:$0xff]  ;;  %v12023_v31 = vld [vmem:[#allocation43_spill] sm:$0xff] }
 0xd81   :  { %6201 = vmatpush1.bf16.msra.mxu1 %v12013_v23  ;;  %6242 = vmatpush1.bf16.msra.mxu0 %v12014_v58  ;;  %v12024_v23 = vld [vmem:[#allocation44_spill] sm:$0xff]  ;;  %v12025_v58 = vld [vmem:[#allocation45_spill] sm:$0xff] }
 0xd82   :  { %6202 = vmatprep.subr.bf16.mxu1 %v12015_v20  ;;  %6243 = vmatprep.subr.bf16.mxu0 %v12016_v42  ;;  %v12026_v20 = vld [vmem:[#allocation46_spill] sm:$0xff]  ;;  %v12027_v42 = vld [vmem:[#allocation47_spill] sm:$0xff] }
 0xd85   :  { %6203 = vmatpush1.bf16.msra.mxu1 %v12017_v38  ;;  %6244 = vmatpush1.bf16.msra.mxu0 %v12018_v34  ;;  %v12028_v38 = vld [vmem:[#allocation48_spill] sm:$0xff]  ;;  %v12029_v34 = vld [vmem:[#allocation49_spill] sm:$0xff] }
 0xd86   :  { %6204 = vmatprep.subr.bf16.mxu1 %v12019_v55  ;;  %6245 = vmatprep.subr.bf16.mxu0 %v12020_v9  ;;  %v12030_v55 = vld [vmem:[#allocation50_spill] sm:$0xff]  ;;  %v12031_v9 = vld [vmem:[#allocation51_spill] sm:$0xff] }
 0xd89   :  { %6205 = vmatpush1.bf16.msra.mxu1 %v12021_v17  ;;  %6246 = vmatpush1.bf16.msra.mxu0 %v12022_v7  ;;  %v12032_v17 = vld [vmem:[#allocation52_spill] sm:$0xff]  ;;  %v12033_v7 = vld [vmem:[#allocation149_spill] sm:$0xff] }
 0xd8a   :  { %6206 = vmatprep.subr.bf16.mxu1 %v12023_v31  ;;  %6247 = vmatprep.subr.bf16.mxu0 %v12024_v23  ;;  %v6104_v31 = vrot.slane %v12033_v7, 4  ;;  %v12035_v7 = vld [vmem:[#allocation151_spill] sm:$0xff] }
 0xd8b   :  { %v6106_v62 = vrot.slane %v12035_v7, 4 }
 0xd8d   :  { %6207 = vmatpush1.bf16.msra.mxu1 %v12025_v58  ;;  %6248 = vmatpush1.bf16.msra.mxu0 %v12026_v20  ;;  %v6105_v58 = vrot.slane %v12034_v22, 4 }
 0xd8e   :  { %6208 = vmatprep.subr.bf16.mxu1 %v12027_v42  ;;  %6249 = vmatprep.subr.bf16.mxu0 %v12028_v38 }
 0xd91   :  { %6209 = vmatpush1.bf16.msra.mxu1 %v12029_v34  ;;  %6250 = vmatpush1.bf16.msra.mxu0 %v12030_v55 }
 0xd92   :  { %6260 = vmatprep.subr.bf16.mxu1 %v12031_v9  ;;  %6301 = vmatprep.subr.bf16.mxu0 %v12032_v17  ;;  %v6107_v9 = vrot.slane %v10258_v11, 4 }
 0xde7   :  { %v5974_v29 = vpop.f32.mrb[72].mxu1  ;;  %v6015_v23 = vpop.f32.mrb[68].mxu0 }
 0xde8   :  { %v6112_v4 = vadd.f32 %v6104_v31, %v5974_v29  ;;  %v5976_v20 = vpop.f32.mrb[73].mxu1  ;;  %v6017_v14 = vpop.f32.mrb[69].mxu0  ;;  %v6114_v2 = vadd.f32 %v6106_v62, %v6015_v23  ;;  %v12036_v23 = vld [vmem:[#allocation88_spill] sm:$0xff] }
 0xde9   :  { %v6113_v42 = vadd.f32 %v6105_v58, %v5976_v20  ;;  %v5978_v3 = vpop.f32.mrb[74].mxu1  ;;  %v6019_v38 = vpop.f32.mrb[70].mxu0  ;;  %v6115_v17 = vadd.f32 %v6107_v9, %v6017_v14 }
 0xdea   :  { %v7649_v15 = vmul.f32 -1.442695, %v6112_v4  ;;  %v5979_v34 = vpop.f32.mrb[75].mxu1  ;;  %v6020_v52 = vpop.f32.mrb[71].mxu0 }
 0xdeb   :  { %v7650_v55 = vmul.f32 -1.442695, %v6113_v42  ;;  %v7651_v5 = vmul.f32 -1.442695, %v6115_v17  ;;  %v6432_v34 = vrot.slane %v12036_v23, 1 }
 0xdec   :  { %8122 = vpow2.f32 %v7649_v15 }
 0xded   :  { %8124 = vpow2.f32 %v7650_v55  ;;  %v6444_v17 = vsel %vm197_vm3, %v6432_v34, %v10428_v50 }
 0xdee   :  { %8126 = vpow2.f32 %v7651_v5 }
 0xdef   :  { %8128 = vtanh.f32 %v6114_v2  ;;  %v6408_v2 = vrot.slane %v10428_v50, 7 }
 0xdf6   :  { %v8123_v22 = vpop.eup %8122 }
 0xdf7   :  { %v8125_v29 = vpop.eup %8124  ;;  %v6131_v31 = vadd.f32 1.0, %v8123_v22 }
 0xdf8   :  { %v6137_v3 = vadd.f32 1.0, %v8125_v29  ;;  %v8127_v4 = vpop.eup %8126 }
 0xdf9   :  { %8130 = vrcp.f32 %v6131_v31  ;;  %v8129_v52 = vpop.eup %8128  ;;  %v6144_v42 = vadd.f32 1.0, %v8127_v4 }
 0xdfa   :  { %8132 = vrcp.f32 %v6137_v3  ;;  %v6116_v3 = vrot.slane %v11939_v36, 2 }
 0xdfb   :  { %8134 = vrcp.f32 %v6144_v42 }
 0xe03   :  { %v8131_v58 = vpop.eup %8130 }
 0xe04   :  { %v8133_v15 = vpop.eup %8132  ;;  %v6148_v20 = vmul.f32 %v8131_v58, %v8129_v52  ;;  %v12038_v58 = vld [vmem:[#allocation154_spill] sm:$0xff] }
 0xe05   :  { %v6147_v14 = vmul.f32 %v8133_v15, %v10416_v63  ;;  %v8135_v62 = vpop.eup %8134  ;;  %v6424_v63 = vsel %vm197_vm3, %v12036_v23, %v6408_v2  ;;  %v6117_v15 = vrot.slane %v12038_v58, 2 }
 0xe07   :  { %v10575_v38 = vadd.f32 %v6148_v20, %v6147_v14 }
 0xe09   :  { %8136 = vtanh.f32 %v10575_v38 }
 0xe13   :  { %v8137_v22 = vpop.eup %8136 }
 0xe14   :  { %v6151_v5 = vmul.f32 %v8137_v22, %v8135_v62 }
 0xe16   :  { %v6414_v55 = vrot.slane %v6151_v5, 6  ;;  %v6436_v9 = vrot.slane %v6151_v5, 7 }
 0xe18   :  { %v10585_v29 = vsel %vm504_vm8, %v6424_v63, %v6414_v55  ;;  %v10588_v31 = vsel %vm504_vm8, %v6444_v17, %v6436_v9  ;;  %v6119_v9 = vrot.slane %v10253_v12, 2  ;;  %v6118_v63 = vrot.slane %v10262_v43, 2 }
 0xe19   :  { %12037 = vst [vmem:[#allocation53_spill] sm:$0xff] %v10588_v31 }
 0xe27   :  { %v6056_v4 = vpop.f32.mrb[76].mxu1  ;;  %v6097_v52 = vpop.f32.mrb[72].mxu0 }
 0xe28   :  { %v6124_v20 = vadd.f32 %v6116_v3, %v6056_v4  ;;  %v6058_v42 = vpop.f32.mrb[77].mxu1  ;;  %v6099_v14 = vpop.f32.mrb[73].mxu0  ;;  %v6126_v31 = vadd.f32 %v6118_v63, %v6097_v52  ;;  %v7887_v63 = vld [vmem:[#allocation14 + $0x70] ss:$8 sps:$4 sm:$0xff]  }
 0xe29   :  { %v6125_v62 = vadd.f32 %v6117_v15, %v6058_v42  ;;  %v6060_v50 = vpop.f32.mrb[78].mxu1  ;;  %v6101_v22 = vpop.f32.mrb[74].mxu0  ;;  %v6127_v17 = vadd.f32 %v6119_v9, %v6099_v14  ;;  %v7884_v9 = vld [vmem:[#allocation14 + $0x60] ss:$8 sps:$4 sm:$0xff]  }
 0xe2a   :  { %v7652_v34 = vmul.f32 -1.442695, %v6124_v20  ;;  %v6061_v2 = vpop.f32.mrb[79].mxu1  ;;  %v6102_v23 = vpop.f32.mrb[75].mxu0 }
 0xe2b   :  { %v7653_v55 = vmul.f32 -1.442695, %v6125_v62  ;;  %v7654_v36 = vmul.f32 -1.442695, %v6127_v17  ;;  %v10602_v23 = vpack.c.bf16 %v6151_v5, %v6151_v5  ;;  %v7881_v5 = vld [vmem:[#allocation14 + $0x50] ss:$8 sps:$4 sm:$0xff]  }
 0xe2c   :  { %8138 = vpow2.f32 %v7652_v34  ;;  %v7889_v17 = vld [vmem:[#allocation14 + $0x74] ss:$8 sps:$4 sm:$0xff]  }
 0xe2d   :  { %8140 = vpow2.f32 %v7653_v55  ;;  %v7886_v55 = vld [vmem:[#allocation14 + $0x64] ss:$8 sps:$4 sm:$0xff]  }
 0xe2e   :  { %8142 = vpow2.f32 %v7654_v36 }
 0xe2f   :  { %8144 = vtanh.f32 %v6126_v31 }
 0xe36   :  { %v8139_v58 = vpop.eup %8138 }
 0xe37   :  { %v8141_v3 = vpop.eup %8140  ;;  %v6155_v4 = vadd.f32 1.0, %v8139_v58 }
 0xe38   :  { %v6161_v15 = vadd.f32 1.0, %v8141_v3  ;;  %v8143_v20 = vpop.eup %8142  ;;  %v7892_v3 = vld [vmem:[#allocation14 + $0x84] ss:$8 sps:$4 sm:$0xff]  }
 0xe39   :  { %8146 = vrcp.f32 %v6155_v4  ;;  %v8145_v42 = vpop.eup %8144  ;;  %v6168_v34 = vadd.f32 1.0, %v8143_v20  ;;  %v7890_v4 = vld [vmem:[#allocation14 + $0x80] ss:$8 sps:$4 sm:$0xff]   ;;  %v7893_v20 = vld [vmem:[#allocation14 + $0x90] ss:$8 sps:$4 sm:$0xff]  }
 0xe3a   :  { %8148 = vrcp.f32 %v6161_v15  ;;  %v7895_v15 = vld [vmem:[#allocation14 + $0x94] ss:$8 sps:$4 sm:$0xff]  }
 0xe3b   :  { %8150 = vrcp.f32 %v6168_v34  ;;  %v7904_v34 = vld [vmem:[#allocation14 + $0xc4] ss:$8 sps:$4 sm:$0xff]  }
 0xe43   :  { %v8147_v62 = vpop.eup %8146 }
 0xe44   :  { %v8149_v50 = vpop.eup %8148  ;;  %v6172_v22 = vmul.f32 %v8147_v62, %v8145_v42  ;;  %v7898_v42 = vld [vmem:[#allocation14 + $0xa4] ss:$8 sps:$4 sm:$0xff]   ;;  %v7896_v62 = vld [vmem:[#allocation14 + $0xa0] ss:$8 sps:$4 sm:$0xff]  }
 0xe45   :  { %v6171_v14 = vmul.f32 %v8149_v50, %v10425_v0  ;;  %v8151_v52 = vpop.eup %8150  ;;  %v12050_v0 = vld [vmem:[#allocation134_spill] sm:$0xff]  ;;  %v7901_v50 = vld [vmem:[#allocation14 + $0xb4] ss:$8 sps:$4 sm:$0xff]  }
 0xe47   :  { %v10595_v2 = vadd.f32 %v6172_v22, %v6171_v14  ;;  %v7899_v22 = vld [vmem:[#allocation14 + $0xb0] ss:$8 sps:$4 sm:$0xff]   ;;  %v7902_v14 = vld [vmem:[#allocation14 + $0xc0] ss:$8 sps:$4 sm:$0xff]  }
 0xe49   :  { %8152 = vtanh.f32 %v10595_v2 }
 0xe53   :  { %v8153_v58 = vpop.eup %8152 }
 0xe54   :  { %v10598_v36 = vmul.f32 %v8153_v58, %v8151_v52  ;;  %v7907_v52 = vld [vmem:[#allocation14 + $0xd4] ss:$8 sps:$4 sm:$0xff]   ;;  %v7905_v58 = vld [vmem:[#allocation14 + $0xd0] ss:$8 sps:$4 sm:$0xff]  }
 0xe56   :  { %v6177_v31 = vpack.c.bf16 %v10598_v36, %v10598_v36 }
 0xe58   :  { %6210 = vmatprep.mubr.bf16.mxu1 %v6177_v31  ;;  %6251 = vmatprep.mubr.bf16.mxu0 %v6177_v31 }
 0xe59   :  { %6211 = vmatmul.mubr.bf16.vlgmr.msra.gmra.mrb[80].mxu1 %v10602_v23  ;;  %6252 = vmatmul.mubr.bf16.vlgmr.msra.gmra.mrb[76].mxu0 %v10602_v23 }
 0xe5a   :  { %6261 = vmatpush1.bf16.msra.mxu1 %v11844_v8  ;;  %6302 = vmatpush1.bf16.msra.mxu0 %v11845_v37  ;;  %v12039_v8 = vld [vmem:[#allocation72_spill] sm:$0xff]  ;;  %v12040_v37 = vld [vmem:[#allocation73_spill] sm:$0xff] }
 0xe5b   :  { %6292 = vmatprep.mubr.bf16.mxu1 %v6177_v31  ;;  %6333 = vmatprep.mubr.bf16.mxu0 %v6177_v31  ;;  %v7910_v31 = vld [vmem:[#allocation14 + $0xe4] ss:$8 sps:$4 sm:$0xff]  }
 0xe5c   :  { %6262 = vmatprep.subr.bf16.mxu1 %v11846_v18  ;;  %6303 = vmatprep.subr.bf16.mxu0 %v11847_v26  ;;  %v12041_v18 = vld [vmem:[#allocation74_spill] sm:$0xff]  ;;  %v12042_v26 = vld [vmem:[#allocation75_spill] sm:$0xff] }
 0xe5e   :  { %6263 = vmatpush1.bf16.msra.mxu1 %v11848_v56  ;;  %6304 = vmatpush1.bf16.msra.mxu0 %v11849_v24  ;;  %v12043_v56 = vld [vmem:[#allocation76_spill] sm:$0xff]  ;;  %v12044_v24 = vld [vmem:[#allocation77_spill] sm:$0xff] }
 0xe5f   :  { %6264 = vmatprep.subr.bf16.mxu1 %v11850_v27  ;;  %6305 = vmatprep.subr.bf16.mxu0 %v11851_v33  ;;  %v12045_v27 = vld [vmem:[#allocation78_spill] sm:$0xff] }
 0xe60   :  { %v12046_v33 = vld [vmem:[#allocation82_spill] sm:$0xff] }
 0xe62   :  { %6265 = vmatpush1.bf16.msra.mxu1 %v11852_v60  ;;  %6306 = vmatpush1.bf16.msra.mxu0 %v11853_v25  ;;  %v12047_v60 = vld [vmem:[#allocation83_spill] sm:$0xff]  ;;  %v12048_v25 = vld [vmem:[#allocation118_spill] sm:$0xff] }
 0xe63   :  { %6266 = vmatprep.subr.bf16.mxu1 %v11854_v47  ;;  %6307 = vmatprep.subr.bf16.mxu0 %v11942_v46  ;;  %v12049_v47 = vld [vmem:[#allocation133_spill] sm:$0xff]  ;;  %v12055_v46 = vld [vmem:[#allocation139_spill] sm:$0xff] }
 0xe66   :  { %6267 = vmatpush1.bf16.msra.mxu1 %v11943_v61  ;;  %6308 = vmatpush1.bf16.msra.mxu0 %v11944_v6  ;;  %v12059_v61 = vld [vmem:[#allocation143_spill] sm:$0xff]  ;;  %v12060_v6 = vld [vmem:[#allocation144_spill] sm:$0xff] }
 0xe67   :  { %6268 = vmatprep.subr.bf16.mxu1 %v11945_v13  ;;  %6309 = vmatprep.subr.bf16.mxu0 %v11946_v44  ;;  %v12061_v13 = vld [vmem:[#allocation145_spill] sm:$0xff]  ;;  %v12062_v44 = vld [vmem:[#allocation146_spill] sm:$0xff] }
 0xe6a   :  { %6269 = vmatpush1.bf16.msra.mxu1 %v11947_v16  ;;  %6310 = vmatpush1.bf16.msra.mxu0 %v11948_v54  ;;  %v12063_v16 = vld [vmem:[#allocation147_spill] sm:$0xff]  ;;  %v12064_v54 = vld [vmem:[#allocation148_spill] sm:$0xff] }
 0xe6b   :  { %6270 = vmatprep.subr.bf16.mxu1 %v11949_v59  ;;  %6311 = vmatprep.subr.bf16.mxu0 %v12039_v8  ;;  %v7866_v59 = vld [vmem:[#allocation14] ss:$8 sps:$4 sm:$0xff]   ;;  %v7913_v8 = vld [vmem:[#allocation14 + $0xf4] ss:$8 sps:$4 sm:$0xff]  }
 0xe6e   :  { %6271 = vmatpush1.bf16.msra.mxu1 %v12040_v37  ;;  %6312 = vmatpush1.bf16.msra.mxu0 %v12041_v18  ;;  %v7911_v37 = vld [vmem:[#allocation14 + $0xf0] ss:$8 sps:$4 sm:$0xff]  }
 0xe6f   :  { %6272 = vmatprep.subr.bf16.mxu1 %v12042_v26  ;;  %6313 = vmatprep.subr.bf16.mxu0 %v12043_v56  ;;  %v12065_v18 = vld [vmem:[#allocation149_spill] sm:$0xff] }
 0xe70   :  { %v6342_v26 = vrot.slane %v12065_v18, 6 }
 0xe72   :  { %6273 = vmatpush1.bf16.msra.mxu1 %v12044_v24  ;;  %6314 = vmatpush1.bf16.msra.mxu0 %v12045_v27  ;;  %v12066_v27 = vld [vmem:[#allocation150_spill] sm:$0xff] }
 0xe73   :  { %6274 = vmatprep.subr.bf16.mxu1 %v11957_v28  ;;  %6315 = vmatprep.subr.bf16.mxu0 %v11958_v32  ;;  %v7880_v28 = vld [vmem:[#allocation14 + $0x44] ss:$8 sps:$4 sm:$0xff]   ;;  %v7878_v32 = vld [vmem:[#allocation14 + $0x40] ss:$8 sps:$4 sm:$0xff]  }
 0xe76   :  { %6275 = vmatpush1.bf16.msra.mxu1 %v11959_v39  ;;  %6316 = vmatpush1.bf16.msra.mxu0 %v12046_v33  ;;  %v7883_v39 = vld [vmem:[#allocation14 + $0x54] ss:$8 sps:$4 sm:$0xff]   ;;  %v6343_v33 = vrot.slane %v12066_v27, 6 }
 0xe77   :  { %6276 = vmatprep.subr.bf16.mxu1 %v12047_v60  ;;  %6317 = vmatprep.subr.bf16.mxu0 %v11962_v1  ;;  %v7871_v1 = vld [vmem:[#allocation14 + $0x14] ss:$8 sps:$4 sm:$0xff]  }
 0xe7a   :  { %6277 = vmatpush1.bf16.msra.mxu1 %v11963_v53  ;;  %6318 = vmatpush1.bf16.msra.mxu0 %v11964_v48  ;;  %v7869_v53 = vld [vmem:[#allocation14 + $0x10] ss:$8 sps:$4 sm:$0xff]   ;;  %v7874_v48 = vld [vmem:[#allocation14 + $0x24] ss:$8 sps:$4 sm:$0xff]  }
 0xe7b   :  { %6278 = vmatprep.subr.bf16.mxu1 %v11965_v40  ;;  %6319 = vmatprep.subr.bf16.mxu0 %v11966_v35  ;;  %v7872_v40 = vld [vmem:[#allocation14 + $0x20] ss:$8 sps:$4 sm:$0xff]   ;;  %v7877_v35 = vld [vmem:[#allocation14 + $0x34] ss:$8 sps:$4 sm:$0xff]  }
 0xe7e   :  { %6279 = vmatpush1.bf16.msra.mxu1 %v11967_v10  ;;  %6320 = vmatpush1.bf16.msra.mxu0 %v11881_v41  ;;  %v12051_v41 = vld [vmem:[#allocation135_spill] sm:$0xff]  ;;  %v7875_v10 = vld [vmem:[#allocation14 + $0x30] ss:$8 sps:$4 sm:$0xff]  }
 0xe7f   :  { %6280 = vmatprep.subr.bf16.mxu1 %v11882_v51  ;;  %6321 = vmatprep.subr.bf16.mxu0 %v11883_v21  ;;  %v12052_v51 = vld [vmem:[#allocation136_spill] sm:$0xff]  ;;  %v12053_v21 = vld [vmem:[#allocation137_spill] sm:$0xff] }
 0xe82   :  { %6281 = vmatpush1.bf16.msra.mxu1 %v11968_v19  ;;  %6322 = vmatpush1.bf16.msra.mxu0 %v11969_v49  ;;  %v12054_v19 = vld [vmem:[#allocation138_spill] sm:$0xff] }
 0xe83   :  { %6282 = vmatprep.subr.bf16.mxu1 %v11886_v30  ;;  %6323 = vmatprep.subr.bf16.mxu0 %v11887_v45  ;;  %v12056_v30 = vld [vmem:[#allocation140_spill] sm:$0xff]  ;;  %v12057_v45 = vld [vmem:[#allocation141_spill] sm:$0xff]  ;;  %v7868_v49 = vld [vmem:[#allocation14 + $0x4] ss:$8 sps:$4 sm:$0xff]  }
 0xe86   :  { %6283 = vmatpush1.bf16.msra.mxu1 %v11888_v57  ;;  %6324 = vmatpush1.bf16.msra.mxu0 %v12048_v25  ;;  %v12058_v57 = vld [vmem:[#allocation142_spill] sm:$0xff] }
 0xe87   :  { %6284 = vmatprep.subr.bf16.mxu1 %v12049_v47  ;;  %6325 = vmatprep.subr.bf16.mxu0 %v12050_v0 }
 0xe8a   :  { %6285 = vmatpush1.bf16.msra.mxu1 %v12051_v41  ;;  %6326 = vmatpush1.bf16.msra.mxu0 %v12052_v51 }
 0xe8b   :  { %6286 = vmatprep.subr.bf16.mxu1 %v12053_v21  ;;  %6327 = vmatprep.subr.bf16.mxu0 %v12054_v19 }
 0xe8e   :  { %6287 = vmatpush1.bf16.msra.mxu1 %v12055_v46  ;;  %6328 = vmatpush1.bf16.msra.mxu0 %v12056_v30 }
 0xe8f   :  { %6288 = vmatprep.subr.bf16.mxu1 %v12057_v45  ;;  %6329 = vmatprep.subr.bf16.mxu0 %v12058_v57  ;;  %v6345_v45 = vrot.slane %v10258_v11, 6 }
 0xe92   :  { %6289 = vmatpush1.bf16.msra.mxu1 %v12059_v61  ;;  %6330 = vmatpush1.bf16.msra.mxu0 %v12060_v6  ;;  %v6344_v61 = vrot.slane %v12035_v7, 6 }
 0xe93   :  { %6290 = vmatprep.subr.bf16.mxu1 %v12061_v13  ;;  %6331 = vmatprep.subr.bf16.mxu0 %v12062_v44 }
 0xe96   :  { %6291 = vmatpush1.bf16.msra.mxu1 %v12063_v16  ;;  %6332 = vmatpush1.bf16.msra.mxu0 %v12064_v54 }
 0xe97   :  { %6664 = vmatprep.subr.bf16.mxu1 %v7868_v49 }
 0xe99   :  { %6293 = vmatmul.mubr.bf16.vlgmr.msra.gmra.mrb[84].mxu1 %v10602_v23  ;;  %6334 = vmatmul.mubr.bf16.vlgmr.msra.gmra.mrb[80].mxu0 %v10602_v23  ;;  %v7908_v23 = vld [vmem:[#allocation14 + $0xe0] ss:$8 sps:$4 sm:$0xff]  }
 0xe9a   :  { %6665 = vmatpush1.bf16.msra.mxu1 %v7866_v59 }
 0xe9b   :  { %6666 = vmatprep.subr.bf16.mxu1 %v7871_v1 }
 0xe9e   :  { %6667 = vmatpush1.bf16.msra.mxu1 %v7869_v53 }
 0xe9f   :  { %6668 = vmatprep.subr.bf16.mxu1 %v7874_v48 }
 0xea2   :  { %6669 = vmatpush1.bf16.msra.mxu1 %v7872_v40 }
 0xea3   :  { %6670 = vmatprep.subr.bf16.mxu1 %v7877_v35 }
 0xea6   :  { %6671 = vmatpush1.bf16.msra.mxu1 %v7875_v10 }
 0xea7   :  { %6672 = vmatprep.subr.bf16.mxu1 %v7880_v28 }
 0xeaa   :  { %6673 = vmatpush1.bf16.msra.mxu1 %v7878_v32 }
 0xeab   :  { %6674 = vmatprep.subr.bf16.mxu1 %v7883_v39 }
 0xeae   :  { %6675 = vmatpush1.bf16.msra.mxu1 %v7881_v5 }
 0xeaf   :  { %6676 = vmatprep.subr.bf16.mxu1 %v7886_v55 }
 0xeb2   :  { %6677 = vmatpush1.bf16.msra.mxu1 %v7884_v9  ;;  %v12067_v9 = vld [vmem:[#allocation53_spill] sm:$0xff] }
 0xeb3   :  { %6678 = vmatprep.subr.bf16.mxu1 %v7889_v17 }
 0xeb6   :  { %6679 = vmatpush1.bf16.msra.mxu1 %v7887_v63 }
 0xeb7   :  { %6680 = vmatprep.subr.bf16.mxu1 %v7892_v3 }
 0xeba   :  { %6681 = vmatpush1.bf16.msra.mxu1 %v7890_v4  ;;  %v12068_v4 = vld [vmem:[#allocation153_spill] sm:$0xff] }
 0xebb   :  { %6682 = vmatprep.subr.bf16.mxu1 %v7895_v15 }
 0xebe   :  { %6683 = vmatpush1.bf16.msra.mxu1 %v7893_v20 }
 0xebf   :  { %6684 = vmatprep.subr.bf16.mxu1 %v7898_v42  ;;  %v12069_v42 = vld [vmem:[#allocation154_spill] sm:$0xff] }
 0xec2   :  { %6685 = vmatpush1.bf16.msra.mxu1 %v7896_v62 }
 0xec3   :  { %6686 = vmatprep.subr.bf16.mxu1 %v7901_v50 }
 0xec6   :  { %6687 = vmatpush1.bf16.msra.mxu1 %v7899_v22 }
 0xec7   :  { %6688 = vmatprep.subr.bf16.mxu1 %v7904_v34 }
 0xeca   :  { %6689 = vmatpush1.bf16.msra.mxu1 %v7902_v14 }
 0xecb   :  { %6690 = vmatprep.subr.bf16.mxu1 %v7907_v52 }
 0xece   :  { %6691 = vmatpush1.bf16.msra.mxu1 %v7905_v58 }
 0xecf   :  { %6692 = vmatprep.subr.bf16.mxu1 %v7910_v31 }
 0xed2   :  { %6693 = vmatpush1.bf16.msra.mxu1 %v7908_v23 }
 0xed3   :  { %6694 = vmatprep.subr.bf16.mxu1 %v7913_v8 }
 0xed6   :  { %6695 = vmatpush1.bf16.msra.mxu1 %v7911_v37 }
 0xf2c   :  { %v6212_v56 = vpop.f32.mrb[80].mxu1  ;;  %v6253_v24 = vpop.f32.mrb[76].mxu0 }
 0xf2d   :  { %v6350_v60 = vadd.f32 %v6342_v26, %v6212_v56  ;;  %v6214_v25 = vpop.f32.mrb[81].mxu1  ;;  %v6255_v47 = vpop.f32.mrb[77].mxu0  ;;  %v6352_v13 = vadd.f32 %v6344_v61, %v6253_v24 }
 0xf2e   :  { %v6351_v0 = vadd.f32 %v6343_v33, %v6214_v25  ;;  %v6216_v41 = vpop.f32.mrb[82].mxu1  ;;  %v6257_v51 = vpop.f32.mrb[78].mxu0  ;;  %v6353_v57 = vadd.f32 %v6345_v45, %v6255_v47 }
 0xf2f   :  { %v7655_v21 = vmul.f32 -1.442695, %v6350_v60  ;;  %v6217_v19 = vpop.f32.mrb[83].mxu1  ;;  %v6258_v46 = vpop.f32.mrb[79].mxu0  ;;  %v6409_v51 = vrot.slane %v10598_v36, 7 }
 0xf30   :  { %v7656_v30 = vmul.f32 -1.442695, %v6351_v0  ;;  %v7657_v6 = vmul.f32 -1.442695, %v6353_v57  ;;  %v12071_v46 = vld [vmem:[#allocation156_spill] sm:$0xff] }
 0xf31   :  { %8154 = vpow2.f32 %v7655_v21  ;;  %v12070_v21 = vld [vmem:[#allocation22_spill] sm:$0xff] }
 0xf32   :  { %8156 = vpow2.f32 %v7656_v30  ;;  %v6415_v19 = vrot.slane %v12070_v21, 6  ;;  %v6421_v30 = vrot.slane %v12071_v46, 5 }
 0xf33   :  { %8158 = vpow2.f32 %v7657_v6  ;;  %v6437_v6 = vrot.slane %v12070_v21, 7 }
 0xf34   :  { %8160 = vtanh.f32 %v6352_v13  ;;  %v6441_v13 = vrot.slane %v12071_v46, 6 }
 0xf3b   :  { %v8155_v44 = vpop.eup %8154 }
 0xf3c   :  { %v8157_v16 = vpop.eup %8156  ;;  %v6361_v54 = vadd.f32 1.0, %v8155_v44 }
 0xf3d   :  { %v6367_v59 = vadd.f32 1.0, %v8157_v16  ;;  %v8159_v49 = vpop.eup %8158 }
 0xf3e   :  { %8162 = vrcp.f32 %v6361_v54  ;;  %v8161_v1 = vpop.eup %8160  ;;  %v6374_v35 = vadd.f32 1.0, %v8159_v49 }
 0xf3f   :  { %8164 = vrcp.f32 %v6367_v59 }
 0xf40   :  { %8166 = vrcp.f32 %v6374_v35  ;;  %v12072_v35 = vld [vmem:[#allocation23_spill] sm:$0xff] }
 0xf48   :  { %v8163_v53 = vpop.eup %8162 }
 0xf49   :  { %v8165_v48 = vpop.eup %8164  ;;  %v6378_v40 = vmul.f32 %v8163_v53, %v8161_v1 }
 0xf4a   :  { %v6377_v11 = vmul.f32 %v8165_v48, %v10575_v38  ;;  %v8167_v7 = vpop.eup %8166 }
 0xf4c   :  { %v6379_v10 = vadd.f32 %v6378_v40, %v6377_v11  ;;  %v6492_v40 = vld [vmem:[%s10766_s17] sm:$0x3] }
 0xf4d   :  { %v6497_v11 = vrot.slane %v6492_v40, %v12072_v35 }
 0xf4e   :  { %8168 = vtanh.f32 %v6379_v10  ;;  %v12073_v10 = vld [vmem:[#allocation24_spill] sm:$0xff] }
 0xf58   :  { %v8169_v28 = vpop.eup %8168 }
 0xf59   :  { %v6381_v32 = vmul.f32 %v8169_v28, %v8167_v7  ;;  %v6501_v7 = vrot.slane %v6492_v40, %v12073_v10 }
 0xf5b   :  { %v6420_v39 = vrot.slane %v6381_v32, 5  ;;  %v6440_v5 = vrot.slane %v6381_v32, 6 }
 0xf5d   :  { %v10677_v55 = vsel %vm506_vm9, %v10585_v29, %v6420_v39  ;;  %v10681_v17 = vsel %vm506_vm9, %v12067_v9, %v6440_v5 }
 0xf5e   :  { %v6452_v16 = vrot.slane %v10681_v17, 4 }
 0xf60   :  { %v6456_v1 = vsel %vm544_vm10, %v10677_v55, %v6452_v16 }
 0xf61   :  { %v6490_v48 = vpack.c.bf16 %v6456_v1, %v6456_v1 }
 0xf6c   :  { %v6294_v63 = vpop.f32.mrb[84].mxu1  ;;  %v6335_v3 = vpop.f32.mrb[80].mxu0 }
 0xf6d   :  { %v6354_v38 = vadd.f32 %v6294_v63, %v12068_v4  ;;  %v6296_v15 = vpop.f32.mrb[85].mxu1  ;;  %v6337_v20 = vpop.f32.mrb[81].mxu0  ;;  %v6356_v23 = vadd.f32 %v6335_v3, %v10262_v43  ;;  %v6707_v3 = vld [vmem:[%s10767_s18] sm:$0x3] }
 0xf6e   :  { %v6355_v62 = vadd.f32 %v6296_v15, %v12069_v42  ;;  %v6298_v50 = vpop.f32.mrb[86].mxu1  ;;  %v6339_v22 = vpop.f32.mrb[82].mxu0  ;;  %v6357_v29 = vadd.f32 %v6337_v20, %v10253_v12  ;;  %v6712_v4 = vrot.slane %v6707_v3, %v12072_v35 }
 0xf6f   :  { %v7658_v34 = vmul.f32 -1.442695, %v6354_v38  ;;  %v6299_v14 = vpop.f32.mrb[87].mxu1  ;;  %v6340_v52 = vpop.f32.mrb[83].mxu0  ;;  %v6716_v38 = vrot.slane %v6707_v3, %v12073_v10  ;;  %v7914_v22 = vld [vmem:[#allocation15 + $0x40] sm:$0xff]  }
 0xf70   :  { %v7659_v58 = vmul.f32 -1.442695, %v6355_v62  ;;  %v7660_v31 = vmul.f32 -1.442695, %v6357_v29  ;;  %v7916_v14 = vld [vmem:[#allocation15 + $0x48] sm:$0xff]   ;;  %7715 = vmatprep.subr.bf16.mxu0 %v7914_v22  ;;  %v7922_v3 = vld [vmem:[#allocation15 + $0x60] sm:$0xff]  }
 0xf71   :  { %8170 = vpow2.f32 %v7658_v34  ;;  %v7915_v34 = vld [vmem:[#allocation15] sm:$0xff]   ;;  %v7917_v52 = vld [vmem:[#allocation15 + $0x8] sm:$0xff]   ;;  %v7693_v29 = vld [vmem:[#allocation2] ss:$0 sm:$0xff] }
 0xf72   :  { %8172 = vpow2.f32 %v7659_v58  ;;  %7716 = vmatpush3.bf16.msra.mxu0 %v7915_v34  ;;  %v7918_v58 = vld [vmem:[#allocation15 + $0x50] sm:$0xff]  }
 0xf73   :  { %8174 = vpow2.f32 %v7660_v31  ;;  %7717 = vmatprep.subr.bf16.mxu0 %v7916_v14 }
 0xf74   :  { %8176 = vtanh.f32 %v6356_v23 }
 0xf76   :  { %7718 = vmatpush3.bf16.msra.mxu0 %v7917_v52 }
 0xf77   :  { %7719 = vmatprep.subr.bf16.mxu0 %v7918_v58 }
 0xf7b   :  { %v8171_v8 = vpop.eup %8170 }
 0xf7c   :  { %v8173_v37 = vpop.eup %8172  ;;  %v6385_v18 = vadd.f32 1.0, %v8171_v8 }
 0xf7d   :  { %v6391_v26 = vadd.f32 1.0, %v8173_v37  ;;  %v8175_v56 = vpop.eup %8174 }
 0xf7e   :  { %8178 = vrcp.f32 %v6385_v18  ;;  %v8177_v24 = vpop.eup %8176  ;;  %v6398_v25 = vadd.f32 1.0, %v8175_v56 }
 0xf7f   :  { %8180 = vrcp.f32 %v6391_v26 }
 0xf80   :  { %8182 = vrcp.f32 %v6398_v25 }
 0xf88   :  { %v8179_v27 = vpop.eup %8178 }
 0xf89   :  { %v8181_v33 = vpop.eup %8180  ;;  %v6402_v60 = vmul.f32 %v8179_v27, %v8177_v24 }
 0xf8a   :  { %v6401_v47 = vmul.f32 %v8181_v33, %v10595_v2  ;;  %v8183_v43 = vpop.eup %8182 }
 0xf8c   :  { %v6403_v12 = vadd.f32 %v6402_v60, %v6401_v47 }
 0xf8e   :  { %8184 = vtanh.f32 %v6403_v12 }
 0xf98   :  { %v8185_v0 = vpop.eup %8184 }
 0xf99   :  { %v6405_v41 = vmul.f32 %v8185_v0, %v8183_v43 }
 0xf9b   :  { %v6425_v45 = vsel %vm197_vm3, %v6405_v41, %v6409_v51  ;;  %v6433_v57 = vrot.slane %v6405_v41, 1 }
 0xf9c   :  { %v6427_v61 = vsel %vm504_vm8, %v6425_v45, %v6415_v19 }
 0xf9d   :  { %v10695_v2 = vsel %vm506_vm9, %v6427_v61, %v6421_v30  ;;  %v6445_v44 = vsel %vm197_vm3, %v6433_v57, %v10598_v36 }
 0xf9e   :  { %v6447_v54 = vsel %vm504_vm8, %v6445_v44, %v6437_v6 }
 0xf9f   :  { %v10703_v59 = vsel %vm506_vm9, %v6447_v54, %v6441_v13 }
 0xfa0   :  { %v6453_v49 = vrot.slane %v10703_v59, 4 }
 0xfa2   :  { %v6457_v53 = vsel %vm544_vm10, %v10695_v2, %v6453_v49 }
 0xfa3   :  { %v6491_v36 = vpack.c.bf16 %v6457_v53, %v6457_v53 }
 0xfa5   :  { %6696 = vmatprep.mubr.bf16.mxu1 %v6491_v36 }
 0xfa6   :  { %6697 = vmatmul.mubr.bf16.vlgmr.msra.gmra.mrb[88].mxu1 %v6490_v48 }
0x1079   :  { %v6698_v28 = vpop.f32.mrb[88].mxu1 }
0x107a   :  { %v6699_v32 = vadd.f32 %v6698_v28, %v6497_v11  ;;  %v6700_v39 = vpop.f32.mrb[89].mxu1 }
0x107b   :  { %v6701_v5 = vadd.f32 %v6700_v39, %v6501_v7  ;;  %v6702_v9 = vpop.f32.mrb[90].mxu1 }
0x107c   :  { %8186 = vtanh.f32 %v6699_v32  ;;  %v6703_v63 = vpop.f32.mrb[91].mxu1  ;;  %v7919_v32 = vld [vmem:[#allocation15 + $0x10] sm:$0xff]  }
0x107d   :  { %8188 = vtanh.f32 %v6701_v5  ;;  %7720 = vmatpush3.bf16.msra.mxu0 %v7919_v32  ;;  %v7920_v5 = vld [vmem:[#allocation15 + $0x58] sm:$0xff]  }
0x107e   :  { %v7921_v63 = vld [vmem:[#allocation15 + $0x18] sm:$0xff]   ;;  %7721 = vmatprep.subr.bf16.mxu0 %v7920_v5 }
0x107f   :  { %v7712_v32 = vld [vmem:[#allocation3] ss:$0 sm:$0xff] }
0x1081   :  { %7722 = vmatpush3.bf16.msra.mxu0 %v7921_v63 }
0x1082   :  { %7723 = vmatprep.subr.bf16.mxu0 %v7922_v3 }
0x1086   :  { %v8187_v15 = vpop.eup %8186 }
0x1087   :  { %v8189_v20 = vpop.eup %8188  ;;  %v6719_v42 = vmul.f32 %v8187_v15, %v6712_v4  ;;  %v7923_v4 = vld [vmem:[#allocation15 + $0x20] sm:$0xff]   ;;  %v7925_v15 = vld [vmem:[#allocation15 + $0x28] sm:$0xff]  }
0x1088   :  { %v6720_v62 = vmul.f32 %v8189_v20, %v6716_v38  ;;  %7724 = vmatpush3.bf16.msra.mxu0 %v7923_v4  ;;  %v7924_v38 = vld [vmem:[#allocation15 + $0x68] sm:$0xff]   ;;  %v7926_v20 = vld [vmem:[#allocation15 + $0x70] sm:$0xff]  }
0x1089   :  { %7725 = vmatprep.subr.bf16.mxu0 %v7924_v38 }
0x108a   :  { %v6721_v50 = vadd.f32 %v6720_v62, %v6719_v42  ;;  %v7927_v42 = vld [vmem:[#allocation15 + $0x30] sm:$0xff]   ;;  %v7928_v62 = vld [vmem:[#allocation15 + $0x78] sm:$0xff]  }
0x108c   :  { %6722 = vadd.xlane.f32.xlu1 %v6721_v50  ;;  %7726 = vmatpush3.bf16.msra.mxu0 %v7925_v15  ;;  %v7929_v50 = vld [vmem:[#allocation15 + $0x38] sm:$0xff]  }
0x108d   :  { %7727 = vmatprep.subr.bf16.mxu0 %v7926_v20 }
0x1090   :  { %7728 = vmatpush3.bf16.msra.mxu0 %v7927_v42 }
0x1091   :  { %7729 = vmatprep.subr.bf16.mxu0 %v7928_v62 }
0x1094   :  { %7730 = vmatpush3.bf16.msra.mxu0 %v7929_v50 }
0x1119   :  { %v6723_v31 = vpop.xlane.xlu1 %6722 }
0x111a   :  { %v6731_v23 = vadd.f32 %v7693_v29, %v6723_v31 }
0x111c   :  { %v6733_v8 = vsel %vm6732_vm11, %v6731_v23, -inf  ;;  %v6774_v37 = vsel %vm6773_vm12, %v6731_v23, -inf }
0x111d   :  { %v6734_v18 = vrot.slane %v6733_v8, 4  ;;  %v6775_v26 = vrot.slane %v6774_v37, 4 }
0x111f   :  { %v6735_v56 = vmax.f32 %v6733_v8, %v6734_v18  ;;  %v6776_v24 = vmax.f32 %v6774_v37, %v6775_v26 }
0x1121   :  { %v6736_v27 = vrot.slane %v6735_v56, 2  ;;  %v6777_v33 = vrot.slane %v6776_v24, 2 }
0x1123   :  { %v6737_v60 = vmax.f32 %v6735_v56, %v6736_v27  ;;  %v6778_v25 = vmax.f32 %v6776_v24, %v6777_v33 }
0x1125   :  { %v6738_v47 = vrot.slane %v6737_v60, 1  ;;  %v6779_v12 = vrot.slane %v6778_v25, 1 }
0x1127   :  { %v6739_v43 = vmax.f32 %v6737_v60, %v6738_v47  ;;  %v6780_v0 = vmax.f32 %v6778_v25, %v6779_v12 }
0x1129   :  { %v6740_v41 = vsub.f32 %v6731_v23, %v6739_v43  ;;  %v6781_v51 = vsub.f32 %v6731_v23, %v6780_v0 }
0x112b   :  { %v6741_v21 = vmul.f32 1.442695, %v6740_v41  ;;  %v6782_v19 = vmul.f32 1.442695, %v6781_v51 }
0x112d   :  { %8190 = vpow2.f32 %v6741_v21 }
0x112e   :  { %8192 = vpow2.f32 %v6782_v19 }
0x1137   :  { %v8191_v46 = vpop.eup %8190 }
0x1138   :  { %v8193_v30 = vpop.eup %8192  ;;  %v6743_v45 = vsel %vm6732_vm11, %v8191_v46, 0.0 }
0x1139   :  { %v6744_v57 = vrot.slane %v6743_v45, 4  ;;  %v6785_v61 = vrot.slane %v8193_v30, 4 }
0x113b   :  { %v6745_v6 = vadd.f32 %v6744_v57, %v6743_v45  ;;  %v6787_v13 = vsel %vm6732_vm11, %v6785_v61, 0.0 }
0x113c   :  { %v6788_v44 = vrot.slane %v6787_v13, 4 }
0x113d   :  { %v6746_v54 = vrot.slane %v6745_v6, 2 }
0x113e   :  { %v6789_v1 = vadd.f32 %v6788_v44, %v6787_v13 }
0x113f   :  { %v6747_v53 = vadd.f32 %v6746_v54, %v6745_v6 }
0x1140   :  { %v6790_v36 = vrot.slane %v6789_v1, 2 }
0x1141   :  { %v6748_v40 = vrot.slane %v6747_v53, 1 }
0x1142   :  { %v6791_v48 = vadd.f32 %v6790_v36, %v6789_v1  ;;  %v7694_v1 = vld [vmem:[%s10770_s21] ss:$0 sm:$0xff] }
0x1143   :  { %v6749_v10 = vadd.f32 %v6748_v40, %v6747_v53 }
0x1144   :  { %v6792_v35 = vrot.slane %v6791_v48, 1 }
0x1146   :  { %v6793_v11 = vadd.f32 %v6792_v35, %v6791_v48 }
0x1148   :  { %8194 = vrcp.f32 %v6793_v11  ;;  %v7711_v11 = vld [vmem:[%s10771_s22] ss:$0 sm:$0xff] }
0x1149   :  { %8196 = vrcp.f32 %v6749_v10 }
0x1152   :  { %v8195_v7 = vpop.eup %8194 }
0x1153   :  { %v6795_v28 = vmul.f32 %v8195_v7, %v8193_v30  ;;  %v8197_v39 = vpop.eup %8196 }
0x1154   :  { %v6751_v9 = vmul.f32 %v8197_v39, %v8191_v46 }
0x1155   :  { %6798 = vperm.xlu0 %7780, %v6795_v28  }
0x1159   :  { %6754 = vperm.xlu0 %7780, %v6751_v9  }
0x11d4   :  { %v6799_v22 = vpop.permute.xlu0 %6798 }
0x11d5   :  { %v6801_v34 = vmul.f32 %v6799_v22, %v6452_v16  ;;  %v6802_v14 = vmul.f32 %v6799_v22, %v6453_v49 }
0x11d7   :  { %v6805_v52 = vrot.slane %v6801_v34, 4  ;;  %v6806_v58 = vrot.slane %v6802_v14, 4 }
0x11d8   :  { %v6755_v29 = vpop.permute.xlu0 %6754 }
0x11d9   :  { %v6809_v31 = vsel %vm544_vm10, %v6805_v52, 0.0  ;;  %v6816_v23 = vsel %vm544_vm10, %v6806_v58, 0.0  ;;  %v6757_v8 = vmul.f32 %v6755_v29, %v10677_v55  ;;  %v6758_v37 = vmul.f32 %v6755_v29, %v10695_v2 }
0x11da   :  { %v6810_v18 = vrot.slane %v6809_v31, 4  ;;  %v6817_v26 = vrot.slane %v6816_v23, 4 }
0x11db   :  { %v6759_v56 = vsel %vm544_vm10, %v6757_v8, 0.0  ;;  %v6766_v17 = vsel %vm544_vm10, %v6758_v37, 0.0 }
0x11dc   :  { %v6811_v16 = vadd.f32 %v6810_v18, %v6809_v31  ;;  %v6818_v59 = vadd.f32 %v6817_v26, %v6816_v23  ;;  %v6760_v49 = vrot.slane %v6759_v56, 4  ;;  %v6767_v24 = vrot.slane %v6766_v17, 4 }
0x11de   :  { %v6812_v27 = vrot.slane %v6811_v16, 2  ;;  %v6819_v33 = vrot.slane %v6818_v59, 2  ;;  %v6761_v60 = vadd.f32 %v6760_v49, %v6759_v56  ;;  %v6768_v25 = vadd.f32 %v6767_v24, %v6766_v17 }
0x11e0   :  { %v6813_v47 = vadd.f32 %v6812_v27, %v6811_v16  ;;  %v6820_v12 = vadd.f32 %v6819_v33, %v6818_v59  ;;  %v6762_v43 = vrot.slane %v6761_v60, 2  ;;  %v6769_v55 = vrot.slane %v6768_v25, 2 }
0x11e2   :  { %v6814_v0 = vrot.slane %v6813_v47, 1  ;;  %v6821_v2 = vrot.slane %v6820_v12, 1  ;;  %v6763_v41 = vadd.f32 %v6762_v43, %v6761_v60  ;;  %v6770_v51 = vadd.f32 %v6769_v55, %v6768_v25 }
0x11e4   :  { %v6764_v21 = vrot.slane %v6763_v41, 1  ;;  %v6771_v19 = vrot.slane %v6770_v51, 1  ;;  %v6815_v46 = vadd.f32 %v6814_v0, %v6813_v47  ;;  %v6822_v57 = vadd.f32 %v6821_v2, %v6820_v12 }
0x11e6   :  { %v6765_v30 = vadd.f32 %v6764_v21, %v6763_v41  ;;  %v6772_v45 = vadd.f32 %v6771_v19, %v6770_v51 }
0x11e8   :  { %v6824_v61 = vsel %vm197_vm3, %v6772_v45, %v6822_v57  ;;  %v6823_v6 = vsel %vm197_vm3, %v6765_v30, %v6815_v46 }
0x11e9   :  { %v6858_v13 = vpack.c.bf16 %v6824_v61, %v6824_v61  ;;  %v6857_v44 = vpack.c.bf16 %v6823_v6, %v6823_v6 }
0x11eb   :  { %6994 = vmatprep.mubr.bf16.mxu0 %v6858_v13 }
0x11ec   :  { %6995 = vmatmul.mubr.bf16.vlgmr.msra.gmra.mrb[84].mxu0 %v6857_v44 }
0x12bf   :  { %v7731_v54 = vpop.f32.mrb[84].mxu0 }
0x12c0   :  { %v7732_v53 = vpop.f32.mrb[85].mxu0 }
0x12c1   :  { %v7733_v36 = vadd.f32 %v7732_v53, %v7731_v54  ;;  %v7734_v48 = vpop.f32.mrb[86].mxu0 }
0x12c2   :  { %v7735_v40 = vpop.f32.mrb[87].mxu0 }
0x12c3   :  { %v6997_v35 = vadd.f32 %v7733_v36, %v7694_v1 }
0x12c5   :  { %v7002_v10 = vmax.f32 %v6997_v35, 0.0 }
0x12c7   :  { %v7010_v7 = vmul.f32 %v7711_v11, %v7002_v10 }
0x12c9   :  { %v7011_v28 = vsel %vm504_vm8, %v7010_v7, 0.0 }
0x12ca   :  { %7012 = vadd.xlane.f32.xlu0 %v7011_v28 }
0x1357   :  { %v7013_v39 = vpop.xlane.xlu0 %7012 }
0x1358   :  { %v7021_v5 = vadd.f32 %v7712_v32, %v7013_v39 }
0x135a   :  { %7023 = vst.msk [vmem:[%s10772_s24] sm:$0x3] %vm7022_vm13, %v7021_v5 }
0x135b   :  { %7028 = vsyncpa [#allocation5], 1 }
0x135c   :  { %7029 = vsyncpa [#allocation7], 1 }
0x135d   :  { %7030 = vsyncpa [#allocation10], 1 }
0x135e   :  { %7031 = vsyncpa [#allocation13], 1 }
0x135f   :  { %7032 = vsyncpa [#allocation16], 1 }

</bundles_post_ra>
